<compile_context>
chip_gen: v5e
topology: v5e:2x2
jax: 0.10.0
libtpu: 0.0.40
codegen_flags: <defaults>
</compile_context>

<pallas_src>
import jax
import jax.numpy as jnp
from jax import lax
from jax.experimental import pallas as pl
from jax.experimental.pallas import tpu as pltpu


# ------------------------------ fused kernel --------------------------------

def _fused_cnn_kernel(x_ref, w1t_ref, b1_ref, w2t_ref, b2_ref,
                      wfc1_ref, bfc1_ref, wfc2_ref, bfc2_ref, out_ref):
    f32 = jnp.float32
    bf16 = jnp.bfloat16

    # ---- conv1: 1->8 ch (padded to 128 lanes), 3x3 VALID, + bias + ReLU ----
    x3 = x_ref[0]                                        # (28, 40, 1) f32
    acc1 = jnp.zeros((26, 32, 128), f32)
    for t in range(9):
        i, j = t // 3, t % 3
        xs = x3[i:i + 26, j:j + 32, :]                   # (26, 32, 1)
        acc1 = acc1 + xs * w1t_ref[t:t + 1, :]           # bcast -> (26,32,128)
    y1 = jnp.maximum(acc1 + b1_ref[...], 0.0)            # (26, 32, 128) f32
    # valid region: [0:26, 0:26, 0:8]; rest is finite junk / zeros.

    # ---- maxpool1 2x2 (floor) -> (13, 24, 128); W-pairs via one-hot matmul --
    r1 = lax.broadcasted_iota(jnp.int32, (24, 32), 0)
    c1 = lax.broadcasted_iota(jnp.int32, (24, 32), 1)
    sel_e1 = ((c1 == 2 * r1) & (r1 < 13)).astype(f32)    # (24, 32)
    sel_o1 = ((c1 == 2 * r1 + 1) & (r1 < 13)).astype(f32)
    rows = []
    for h in range(13):
        m = jnp.maximum(y1[2 * h], y1[2 * h + 1])        # (32, 128)
        rows.append(jnp.maximum(jnp.dot(sel_e1, m), jnp.dot(sel_o1, m)))
    p1 = jnp.stack(rows, axis=0)                         # (13, 24, 128) f32

    # ---- conv2: 8->16 ch, 9 shifted-slice bf16 matmuls, f32 accumulation ----
    acc2 = jnp.zeros((176, 128), f32)
    for t in range(9):
        i, j = t // 3, t % 3
        sl = p1[i:i + 11, j:j + 16, :].reshape(176, 128).astype(bf16)
        acc2 = acc2 + jnp.dot(sl, w2t_ref[t], preferred_element_type=f32)
    y2 = jnp.maximum(acc2 + b2_ref[...], 0.0).reshape(11, 16, 128)

    # ---- maxpool2 2x2 (floor) -> (5, 8, 128) --------------------------------
    r2 = lax.broadcasted_iota(jnp.int32, (8, 16), 0)
    c2 = lax.broadcasted_iota(jnp.int32, (8, 16), 1)
    sel_e2 = ((c2 == 2 * r2) & (r2 < 5)).astype(f32)     # (8, 16)
    sel_o2 = ((c2 == 2 * r2 + 1) & (r2 < 5)).astype(f32)
    rows2 = []
    for h in range(5):
        m = jnp.maximum(y2[2 * h], y2[2 * h + 1])        # (16, 128)
        rows2.append(jnp.maximum(jnp.dot(sel_e2, m), jnp.dot(sel_o2, m)))
    p2 = jnp.stack(rows2, axis=0)                        # (5, 8, 128) f32

    # ---- fc1 (+ReLU): contract the 25 valid spatial positions; the PyTorch
    #      NCHW flatten order is folded into wfc1 on the host. -----------------
    z = jnp.zeros((1, 128), f32)
    for hp in range(5):
        for wp in range(5):
            v = p2[hp, wp:wp + 1, :].astype(bf16)        # (1, 128)
            z = z + jnp.dot(v, wfc1_ref[hp * 5 + wp],
                            preferred_element_type=f32)
    z = jnp.maximum(z + bfc1_ref[...], 0.0)              # (1, 128) f32

    # ---- fc2 ----------------------------------------------------------------
    out = jnp.dot(z.astype(bf16), wfc2_ref[...], preferred_element_type=f32)
    out = out + bfc2_ref[...]                            # (1, 128), 10 valid
    out_ref[...] = out.reshape(1, 1, 128)


# --------------------------- host-side weight packing -----------------------

def _pack_params(p):
    f32, bf16 = jnp.float32, jnp.bfloat16
    # conv1: tap-major (9, Cout) padded to (9, 128); kept f32 (VPU FMAs).
    w1t = jnp.transpose(p["w1"][:, 0, :, :], (1, 2, 0)).reshape(9, 8)
    w1t = jnp.pad(w1t, ((0, 0), (0, 120))).astype(f32)
    b1 = jnp.pad(p["b1"], (0, 120)).reshape(1, 128).astype(f32)
    # conv2: per-tap (Cin, Cout) padded to (9, 128, 128) bf16 (MXU input).
    w2t = jnp.transpose(p["w2"], (2, 3, 1, 0)).reshape(9, 8, 16)
    w2t = jnp.pad(w2t, ((0, 0), (0, 120), (0, 112))).astype(bf16)
    b2 = jnp.pad(p["b2"], (0, 112)).reshape(1, 128).astype(f32)
    # fc1: per spatial position (hp, wp) a (Cin=16 -> 128, 100 -> 128) block,
    # rows taken in PyTorch NCHW flatten order c*25 + hp*5 + wp.
    wfc1 = p["wl1"].reshape(16, 5, 5, 100).transpose(1, 2, 0, 3).reshape(25, 16, 100)
    wfc1 = jnp.pad(wfc1, ((0, 0), (0, 112), (0, 28))).astype(bf16)
    bfc1 = jnp.pad(p["bl1"], (0, 28)).reshape(1, 128).astype(f32)
    wfc2 = jnp.pad(p["wl2"], ((0, 28), (0, 118))).astype(bf16)
    bfc2 = jnp.pad(p["bl2"], (0, 118)).reshape(1, 128).astype(f32)
    return (w1t, b1, w2t, b2, wfc1, bfc1, wfc2, bfc2)


# ------------------------------- full forward --------------------------------

def my_cnn_forward(x_nchw, p):
    assert x_nchw.shape[1:] == (1, 28, 28), x_nchw.shape
    B = x_nchw.shape[0]
    packed = _pack_params(p)
    # NCHW -> NHWC (C=1) and pad W 28->40 so all in-kernel shifted slices /
    # flattens stay 8-sublane aligned.
    xh = jnp.transpose(x_nchw, (0, 2, 3, 1)).astype(jnp.float32)
    xh = jnp.pad(xh, ((0, 0), (0, 0), (0, 12), (0, 0)))      # (B, 28, 40, 1)

    const2 = lambda b: (0, 0)
    const3 = lambda b: (0, 0, 0)
    out = pl.pallas_call(
        _fused_cnn_kernel,
        out_shape=jax.ShapeDtypeStruct((B, 1, 128), jnp.float32),
        grid=(B,),
        in_specs=[
            pl.BlockSpec((1, 28, 40, 1), lambda b: (b, 0, 0, 0)),  # image
            pl.BlockSpec((9, 128), const2),          # conv1 taps
            pl.BlockSpec((1, 128), const2),          # conv1 bias
            pl.BlockSpec((9, 128, 128), const3),     # conv2 taps (bf16)
            pl.BlockSpec((1, 128), const2),          # conv2 bias
            pl.BlockSpec((25, 128, 128), const3),    # fc1 per-position (bf16)
            pl.BlockSpec((1, 128), const2),          # fc1 bias
            pl.BlockSpec((128, 128), const2),        # fc2 weight (bf16)
            pl.BlockSpec((1, 128), const2),          # fc2 bias
        ],
        out_specs=pl.BlockSpec((1, 1, 128), lambda b: (b, 0, 0)),
        compiler_params=pltpu.CompilerParams(
            dimension_semantics=("parallel",),
            vmem_limit_bytes=32 * 1024 * 1024),
    )(xh, *packed)
    return out.reshape(B, 128)[:, :10]


def init_params(key):
    ks = jax.random.split(key, 8)

    def nrm(k, shape, scale):
        return (scale * jax.random.normal(k, shape)).astype(jnp.float32)

    return dict(
        w1=nrm(ks[0], (8, 1, 3, 3), 0.2),      # Conv2d(1, 8, 3, 1) weight (OIHW)
        b1=nrm(ks[1], (8,), 0.1),
        w2=nrm(ks[2], (16, 8, 3, 3), 0.1),     # Conv2d(8, 16, 3, 1) weight
        b2=nrm(ks[3], (16,), 0.1),
        wl1=nrm(ks[4], (400, 100), 0.05),      # Linear(25*16, 100), stored (in,out)
        bl1=nrm(ks[5], (100,), 0.1),
        wl2=nrm(ks[6], (100, 10), 0.1),        # Linear(100, 10), stored (in,out)
        bl2=nrm(ks[7], (10,), 0.1),
    )


# --------------------------- pure-JAX reference -----------------------------

def reference_forward(x, p):
    dn = ("NCHW", "OIHW", "NCHW")
    y = lax.conv_general_dilated(x, p["w1"], (1, 1), "VALID",
                                 dimension_numbers=dn,
                                 precision=lax.Precision.HIGHEST)
    y = jnp.maximum(y + p["b1"][None, :, None, None], 0.0)
    y = lax.reduce_window(y, -jnp.inf, lax.max, (1, 1, 2, 2), (1, 1, 2, 2), "VALID")
    y = lax.conv_general_dilated(y, p["w2"], (1, 1), "VALID",
                                 dimension_numbers=dn,
                                 precision=lax.Precision.HIGHEST)
    y = jnp.maximum(y + p["b2"][None, :, None, None], 0.0)
    y = lax.reduce_window(y, -jnp.inf, lax.max, (1, 1, 2, 2), (1, 1, 2, 2), "VALID")
    y = y.reshape(y.shape[0], -1)
    y = jnp.maximum(jnp.dot(y, p["wl1"], precision=lax.Precision.HIGHEST) + p["bl1"], 0.0)
    y = jnp.dot(y, p["wl2"], precision=lax.Precision.HIGHEST) + p["bl2"]
    return y


if __name__ == "__main__":
    key = jax.random.PRNGKey(0)
    pkey, xkey = jax.random.split(key)
    params = init_params(pkey)
    # MNIST-shaped input (28x28 is required by the 25*16 Linear), small batch.
    x = jax.random.normal(xkey, (2, 1, 28, 28), dtype=jnp.float32)

    fwd = jax.jit(my_cnn_forward)
    out = jax.block_until_ready(fwd(x, params))
    assert out.shape == (2, 10), out.shape

    ref = jax.block_until_ready(reference_forward(x, params))
    max_err = jnp.max(jnp.abs(out - ref))
    assert jnp.allclose(out, ref, rtol=5e-2, atol=5e-2), f"max abs err {max_err}"

    print("KERNEL_OK")
</pallas_src>

<mosaic_0001>
module attributes {stable_mosaic.version = 11 : i64} {
  func.func @_fused_cnn_kernel(%arg0: i32, %arg1: memref<1x28x40x1xf32, #tpu.memory_space<vmem>>, %arg2: memref<9x128xf32, #tpu.memory_space<vmem>>, %arg3: memref<1x128xf32, #tpu.memory_space<vmem>>, %arg4: memref<9x128x128xbf16, #tpu.memory_space<vmem>>, %arg5: memref<1x128xf32, #tpu.memory_space<vmem>>, %arg6: memref<25x128x128xbf16, #tpu.memory_space<vmem>>, %arg7: memref<1x128xf32, #tpu.memory_space<vmem>>, %arg8: memref<128x128xbf16, #tpu.memory_space<vmem>>, %arg9: memref<1x128xf32, #tpu.memory_space<vmem>>, %arg10: memref<1x1x128xf32, #tpu.memory_space<vmem>>) attributes {dimension_semantics = [#tpu.dimension_semantics<parallel>], iteration_bounds = array<i64: 2>, scalar_prefetch = 0 : i64, scratch_operands = 0 : i64, tpu.core_type = #tpu.core_type<tc>, window_params = [{transform_indices = @transform_0, window_bounds = array<i64: 1, 28, 40, 1>}, {pipeline_mode = #tpu.pipeline_mode<synchronous>, transform_indices = @transform_1, window_bounds = array<i64: 9, 128>}, {pipeline_mode = #tpu.pipeline_mode<synchronous>, transform_indices = @transform_2, window_bounds = array<i64: 1, 128>}, {pipeline_mode = #tpu.pipeline_mode<synchronous>, transform_indices = @transform_3, window_bounds = array<i64: 9, 128, 128>}, {pipeline_mode = #tpu.pipeline_mode<synchronous>, transform_indices = @transform_4, window_bounds = array<i64: 1, 128>}, {pipeline_mode = #tpu.pipeline_mode<synchronous>, transform_indices = @transform_5, window_bounds = array<i64: 25, 128, 128>}, {pipeline_mode = #tpu.pipeline_mode<synchronous>, transform_indices = @transform_6, window_bounds = array<i64: 1, 128>}, {pipeline_mode = #tpu.pipeline_mode<synchronous>, transform_indices = @transform_7, window_bounds = array<i64: 128, 128>}, {pipeline_mode = #tpu.pipeline_mode<synchronous>, transform_indices = @transform_8, window_bounds = array<i64: 1, 128>}, {transform_indices = @transform_9, window_bounds = array<i64: 1, 1, 128>}]} {
    %c0 = arith.constant 0 : index
    %c0_0 = arith.constant 0 : index
    %c0_1 = arith.constant 0 : index
    %c0_2 = arith.constant 0 : index
    %0 = vector.load %arg1[%c0, %c0_0, %c0_1, %c0_2] : memref<1x28x40x1xf32, #tpu.memory_space<vmem>>, vector<1x28x40x1xf32>
    %1 = vector.shape_cast %0 : vector<1x28x40x1xf32> to vector<28x40x1xf32>
    %cst = arith.constant 0.000000e+00 : f32
    %2 = vector.broadcast %cst : f32 to vector<26x32x128xf32>
    %3 = vector.extract_strided_slice %1 {offsets = [0, 0, 0], sizes = [26, 32, 1], strides = [1, 1, 1]} : vector<28x40x1xf32> to vector<26x32x1xf32>
    %c0_3 = arith.constant 0 : index
    %c0_4 = arith.constant 0 : index
    %4 = vector.load %arg2[%c0_3, %c0_4] : memref<9x128xf32, #tpu.memory_space<vmem>>, vector<1x128xf32>
    %5 = vector.shape_cast %4 : vector<1x128xf32> to vector<1x1x128xf32>
    %6 = vector.broadcast %3 : vector<26x32x1xf32> to vector<26x32x128xf32>
    %7 = vector.broadcast %5 : vector<1x1x128xf32> to vector<26x32x128xf32>
    %8 = arith.mulf %6, %7 : vector<26x32x128xf32>
    %9 = arith.addf %2, %8 : vector<26x32x128xf32>
    %10 = vector.extract_strided_slice %1 {offsets = [0, 1, 0], sizes = [26, 32, 1], strides = [1, 1, 1]} : vector<28x40x1xf32> to vector<26x32x1xf32>
    %c1 = arith.constant 1 : index
    %c0_5 = arith.constant 0 : index
    %11 = vector.load %arg2[%c1, %c0_5] : memref<9x128xf32, #tpu.memory_space<vmem>>, vector<1x128xf32>
    %12 = vector.shape_cast %11 : vector<1x128xf32> to vector<1x1x128xf32>
    %13 = vector.broadcast %10 : vector<26x32x1xf32> to vector<26x32x128xf32>
    %14 = vector.broadcast %12 : vector<1x1x128xf32> to vector<26x32x128xf32>
    %15 = arith.mulf %13, %14 : vector<26x32x128xf32>
    %16 = arith.addf %9, %15 : vector<26x32x128xf32>
    %17 = vector.extract_strided_slice %1 {offsets = [0, 2, 0], sizes = [26, 32, 1], strides = [1, 1, 1]} : vector<28x40x1xf32> to vector<26x32x1xf32>
    %c2 = arith.constant 2 : index
    %c0_6 = arith.constant 0 : index
    %18 = vector.load %arg2[%c2, %c0_6] : memref<9x128xf32, #tpu.memory_space<vmem>>, vector<1x128xf32>
    %19 = vector.shape_cast %18 : vector<1x128xf32> to vector<1x1x128xf32>
    %20 = vector.broadcast %17 : vector<26x32x1xf32> to vector<26x32x128xf32>
    %21 = vector.broadcast %19 : vector<1x1x128xf32> to vector<26x32x128xf32>
    %22 = arith.mulf %20, %21 : vector<26x32x128xf32>
    %23 = arith.addf %16, %22 : vector<26x32x128xf32>
    %24 = vector.extract_strided_slice %1 {offsets = [1, 0, 0], sizes = [26, 32, 1], strides = [1, 1, 1]} : vector<28x40x1xf32> to vector<26x32x1xf32>
    %c3 = arith.constant 3 : index
    %c0_7 = arith.constant 0 : index
    %25 = vector.load %arg2[%c3, %c0_7] : memref<9x128xf32, #tpu.memory_space<vmem>>, vector<1x128xf32>
    %26 = vector.shape_cast %25 : vector<1x128xf32> to vector<1x1x128xf32>
    %27 = vector.broadcast %24 : vector<26x32x1xf32> to vector<26x32x128xf32>
    %28 = vector.broadcast %26 : vector<1x1x128xf32> to vector<26x32x128xf32>
    %29 = arith.mulf %27, %28 : vector<26x32x128xf32>
    %30 = arith.addf %23, %29 : vector<26x32x128xf32>
    %31 = vector.extract_strided_slice %1 {offsets = [1, 1, 0], sizes = [26, 32, 1], strides = [1, 1, 1]} : vector<28x40x1xf32> to vector<26x32x1xf32>
    %c4 = arith.constant 4 : index
    %c0_8 = arith.constant 0 : index
    %32 = vector.load %arg2[%c4, %c0_8] : memref<9x128xf32, #tpu.memory_space<vmem>>, vector<1x128xf32>
    %33 = vector.shape_cast %32 : vector<1x128xf32> to vector<1x1x128xf32>
    %34 = vector.broadcast %31 : vector<26x32x1xf32> to vector<26x32x128xf32>
    %35 = vector.broadcast %33 : vector<1x1x128xf32> to vector<26x32x128xf32>
    %36 = arith.mulf %34, %35 : vector<26x32x128xf32>
    %37 = arith.addf %30, %36 : vector<26x32x128xf32>
    %38 = vector.extract_strided_slice %1 {offsets = [1, 2, 0], sizes = [26, 32, 1], strides = [1, 1, 1]} : vector<28x40x1xf32> to vector<26x32x1xf32>
    %c5 = arith.constant 5 : index
    %c0_9 = arith.constant 0 : index
    %39 = vector.load %arg2[%c5, %c0_9] : memref<9x128xf32, #tpu.memory_space<vmem>>, vector<1x128xf32>
    %40 = vector.shape_cast %39 : vector<1x128xf32> to vector<1x1x128xf32>
    %41 = vector.broadcast %38 : vector<26x32x1xf32> to vector<26x32x128xf32>
    %42 = vector.broadcast %40 : vector<1x1x128xf32> to vector<26x32x128xf32>
    %43 = arith.mulf %41, %42 : vector<26x32x128xf32>
    %44 = arith.addf %37, %43 : vector<26x32x128xf32>
    %45 = vector.extract_strided_slice %1 {offsets = [2, 0, 0], sizes = [26, 32, 1], strides = [1, 1, 1]} : vector<28x40x1xf32> to vector<26x32x1xf32>
    %c6 = arith.constant 6 : index
    %c0_10 = arith.constant 0 : index
    %46 = vector.load %arg2[%c6, %c0_10] : memref<9x128xf32, #tpu.memory_space<vmem>>, vector<1x128xf32>
    %47 = vector.shape_cast %46 : vector<1x128xf32> to vector<1x1x128xf32>
    %48 = vector.broadcast %45 : vector<26x32x1xf32> to vector<26x32x128xf32>
    %49 = vector.broadcast %47 : vector<1x1x128xf32> to vector<26x32x128xf32>
    %50 = arith.mulf %48, %49 : vector<26x32x128xf32>
    %51 = arith.addf %44, %50 : vector<26x32x128xf32>
    %52 = vector.extract_strided_slice %1 {offsets = [2, 1, 0], sizes = [26, 32, 1], strides = [1, 1, 1]} : vector<28x40x1xf32> to vector<26x32x1xf32>
    %c7 = arith.constant 7 : index
    %c0_11 = arith.constant 0 : index
    %53 = vector.load %arg2[%c7, %c0_11] : memref<9x128xf32, #tpu.memory_space<vmem>>, vector<1x128xf32>
    %54 = vector.shape_cast %53 : vector<1x128xf32> to vector<1x1x128xf32>
    %55 = vector.broadcast %52 : vector<26x32x1xf32> to vector<26x32x128xf32>
    %56 = vector.broadcast %54 : vector<1x1x128xf32> to vector<26x32x128xf32>
    %57 = arith.mulf %55, %56 : vector<26x32x128xf32>
    %58 = arith.addf %51, %57 : vector<26x32x128xf32>
    %59 = vector.extract_strided_slice %1 {offsets = [2, 2, 0], sizes = [26, 32, 1], strides = [1, 1, 1]} : vector<28x40x1xf32> to vector<26x32x1xf32>
    %c8 = arith.constant 8 : index
    %c0_12 = arith.constant 0 : index
    %60 = vector.load %arg2[%c8, %c0_12] : memref<9x128xf32, #tpu.memory_space<vmem>>, vector<1x128xf32>
    %61 = vector.shape_cast %60 : vector<1x128xf32> to vector<1x1x128xf32>
    %62 = vector.broadcast %59 : vector<26x32x1xf32> to vector<26x32x128xf32>
    %63 = vector.broadcast %61 : vector<1x1x128xf32> to vector<26x32x128xf32>
    %64 = arith.mulf %62, %63 : vector<26x32x128xf32>
    %65 = arith.addf %58, %64 : vector<26x32x128xf32>
    %c0_13 = arith.constant 0 : index
    %c0_14 = arith.constant 0 : index
    %66 = vector.load %arg3[%c0_13, %c0_14] : memref<1x128xf32, #tpu.memory_space<vmem>>, vector<1x128xf32>
    %67 = vector.shape_cast %66 : vector<1x128xf32> to vector<1x1x128xf32>
    %68 = vector.broadcast %67 : vector<1x1x128xf32> to vector<26x32x128xf32>
    %69 = arith.addf %65, %68 : vector<26x32x128xf32>
    %cst_15 = arith.constant 0.000000e+00 : f32
    %70 = vector.broadcast %cst_15 : f32 to vector<26x32x128xf32>
    %71 = arith.maximumf %69, %70 : vector<26x32x128xf32>
    %72 = tpu.iota {dimensions = array<i32: 0>} : vector<24x32xi32>
    %73 = tpu.iota {dimensions = array<i32: 1>} : vector<24x32xi32>
    %c2_i32 = arith.constant 2 : i32
    %74 = vector.broadcast %c2_i32 : i32 to vector<24x32xi32>
    %75 = arith.muli %74, %72 : vector<24x32xi32>
    %76 = arith.cmpi eq, %73, %75 : vector<24x32xi32>
    %c13_i32 = arith.constant 13 : i32
    %77 = vector.broadcast %c13_i32 : i32 to vector<24x32xi32>
    %78 = arith.cmpi slt, %72, %77 : vector<24x32xi32>
    %79 = arith.andi %76, %78 : vector<24x32xi1>
    %80 = arith.extui %79 : vector<24x32xi1> to vector<24x32xi32>
    %81 = arith.sitofp %80 : vector<24x32xi32> to vector<24x32xf32>
    %c2_i32_16 = arith.constant 2 : i32
    %82 = vector.broadcast %c2_i32_16 : i32 to vector<24x32xi32>
    %83 = arith.muli %82, %72 : vector<24x32xi32>
    %c1_i32 = arith.constant 1 : i32
    %84 = vector.broadcast %c1_i32 : i32 to vector<24x32xi32>
    %85 = arith.addi %83, %84 : vector<24x32xi32>
    %86 = arith.cmpi eq, %73, %85 : vector<24x32xi32>
    %c13_i32_17 = arith.constant 13 : i32
    %87 = vector.broadcast %c13_i32_17 : i32 to vector<24x32xi32>
    %88 = arith.cmpi slt, %72, %87 : vector<24x32xi32>
    %89 = arith.andi %86, %88 : vector<24x32xi1>
    %90 = arith.extui %89 : vector<24x32xi1> to vector<24x32xi32>
    %91 = arith.sitofp %90 : vector<24x32xi32> to vector<24x32xf32>
    %92 = vector.extract_strided_slice %71 {offsets = [0, 0, 0], sizes = [1, 32, 128], strides = [1, 1, 1]} : vector<26x32x128xf32> to vector<1x32x128xf32>
    %93 = vector.shape_cast %92 : vector<1x32x128xf32> to vector<32x128xf32>
    %94 = vector.extract_strided_slice %71 {offsets = [1, 0, 0], sizes = [1, 32, 128], strides = [1, 1, 1]} : vector<26x32x128xf32> to vector<1x32x128xf32>
    %95 = vector.shape_cast %94 : vector<1x32x128xf32> to vector<32x128xf32>
    %96 = arith.maximumf %93, %95 : vector<32x128xf32>
    %cst_18 = arith.constant dense<0.000000e+00> : vector<24x128xf32>
    %97 = tpu.matmul %81, %96, %cst_18 {dimension_numbers = #tpu.dot_dimension_numbers<[1], [0], [0], [1], [0, 0, 1, 1], [], []>} : vector<24x32xf32>, vector<32x128xf32>, vector<24x128xf32> -> vector<24x128xf32>
    %cst_19 = arith.constant dense<0.000000e+00> : vector<24x128xf32>
    %98 = tpu.matmul %91, %96, %cst_19 {dimension_numbers = #tpu.dot_dimension_numbers<[1], [0], [0], [1], [0, 0, 1, 1], [], []>} : vector<24x32xf32>, vector<32x128xf32>, vector<24x128xf32> -> vector<24x128xf32>
    %99 = arith.maximumf %97, %98 : vector<24x128xf32>
    %100 = vector.extract_strided_slice %71 {offsets = [2, 0, 0], sizes = [1, 32, 128], strides = [1, 1, 1]} : vector<26x32x128xf32> to vector<1x32x128xf32>
    %101 = vector.shape_cast %100 : vector<1x32x128xf32> to vector<32x128xf32>
    %102 = vector.extract_strided_slice %71 {offsets = [3, 0, 0], sizes = [1, 32, 128], strides = [1, 1, 1]} : vector<26x32x128xf32> to vector<1x32x128xf32>
    %103 = vector.shape_cast %102 : vector<1x32x128xf32> to vector<32x128xf32>
    %104 = arith.maximumf %101, %103 : vector<32x128xf32>
    %cst_20 = arith.constant dense<0.000000e+00> : vector<24x128xf32>
    %105 = tpu.matmul %81, %104, %cst_20 {dimension_numbers = #tpu.dot_dimension_numbers<[1], [0], [0], [1], [0, 0, 1, 1], [], []>} : vector<24x32xf32>, vector<32x128xf32>, vector<24x128xf32> -> vector<24x128xf32>
    %cst_21 = arith.constant dense<0.000000e+00> : vector<24x128xf32>
    %106 = tpu.matmul %91, %104, %cst_21 {dimension_numbers = #tpu.dot_dimension_numbers<[1], [0], [0], [1], [0, 0, 1, 1], [], []>} : vector<24x32xf32>, vector<32x128xf32>, vector<24x128xf32> -> vector<24x128xf32>
    %107 = arith.maximumf %105, %106 : vector<24x128xf32>
    %108 = vector.extract_strided_slice %71 {offsets = [4, 0, 0], sizes = [1, 32, 128], strides = [1, 1, 1]} : vector<26x32x128xf32> to vector<1x32x128xf32>
    %109 = vector.shape_cast %108 : vector<1x32x128xf32> to vector<32x128xf32>
    %110 = vector.extract_strided_slice %71 {offsets = [5, 0, 0], sizes = [1, 32, 128], strides = [1, 1, 1]} : vector<26x32x128xf32> to vector<1x32x128xf32>
    %111 = vector.shape_cast %110 : vector<1x32x128xf32> to vector<32x128xf32>
    %112 = arith.maximumf %109, %111 : vector<32x128xf32>
    %cst_22 = arith.constant dense<0.000000e+00> : vector<24x128xf32>
    %113 = tpu.matmul %81, %112, %cst_22 {dimension_numbers = #tpu.dot_dimension_numbers<[1], [0], [0], [1], [0, 0, 1, 1], [], []>} : vector<24x32xf32>, vector<32x128xf32>, vector<24x128xf32> -> vector<24x128xf32>
    %cst_23 = arith.constant dense<0.000000e+00> : vector<24x128xf32>
    %114 = tpu.matmul %91, %112, %cst_23 {dimension_numbers = #tpu.dot_dimension_numbers<[1], [0], [0], [1], [0, 0, 1, 1], [], []>} : vector<24x32xf32>, vector<32x128xf32>, vector<24x128xf32> -> vector<24x128xf32>
    %115 = arith.maximumf %113, %114 : vector<24x128xf32>
    %116 = vector.extract_strided_slice %71 {offsets = [6, 0, 0], sizes = [1, 32, 128], strides = [1, 1, 1]} : vector<26x32x128xf32> to vector<1x32x128xf32>
    %117 = vector.shape_cast %116 : vector<1x32x128xf32> to vector<32x128xf32>
    %118 = vector.extract_strided_slice %71 {offsets = [7, 0, 0], sizes = [1, 32, 128], strides = [1, 1, 1]} : vector<26x32x128xf32> to vector<1x32x128xf32>
    %119 = vector.shape_cast %118 : vector<1x32x128xf32> to vector<32x128xf32>
    %120 = arith.maximumf %117, %119 : vector<32x128xf32>
    %cst_24 = arith.constant dense<0.000000e+00> : vector<24x128xf32>
    %121 = tpu.matmul %81, %120, %cst_24 {dimension_numbers = #tpu.dot_dimension_numbers<[1], [0], [0], [1], [0, 0, 1, 1], [], []>} : vector<24x32xf32>, vector<32x128xf32>, vector<24x128xf32> -> vector<24x128xf32>
    %cst_25 = arith.constant dense<0.000000e+00> : vector<24x128xf32>
    %122 = tpu.matmul %91, %120, %cst_25 {dimension_numbers = #tpu.dot_dimension_numbers<[1], [0], [0], [1], [0, 0, 1, 1], [], []>} : vector<24x32xf32>, vector<32x128xf32>, vector<24x128xf32> -> vector<24x128xf32>
    %123 = arith.maximumf %121, %122 : vector<24x128xf32>
    %124 = vector.extract_strided_slice %71 {offsets = [8, 0, 0], sizes = [1, 32, 128], strides = [1, 1, 1]} : vector<26x32x128xf32> to vector<1x32x128xf32>
    %125 = vector.shape_cast %124 : vector<1x32x128xf32> to vector<32x128xf32>
    %126 = vector.extract_strided_slice %71 {offsets = [9, 0, 0], sizes = [1, 32, 128], strides = [1, 1, 1]} : vector<26x32x128xf32> to vector<1x32x128xf32>
    %127 = vector.shape_cast %126 : vector<1x32x128xf32> to vector<32x128xf32>
    %128 = arith.maximumf %125, %127 : vector<32x128xf32>
    %cst_26 = arith.constant dense<0.000000e+00> : vector<24x128xf32>
    %129 = tpu.matmul %81, %128, %cst_26 {dimension_numbers = #tpu.dot_dimension_numbers<[1], [0], [0], [1], [0, 0, 1, 1], [], []>} : vector<24x32xf32>, vector<32x128xf32>, vector<24x128xf32> -> vector<24x128xf32>
    %cst_27 = arith.constant dense<0.000000e+00> : vector<24x128xf32>
    %130 = tpu.matmul %91, %128, %cst_27 {dimension_numbers = #tpu.dot_dimension_numbers<[1], [0], [0], [1], [0, 0, 1, 1], [], []>} : vector<24x32xf32>, vector<32x128xf32>, vector<24x128xf32> -> vector<24x128xf32>
    %131 = arith.maximumf %129, %130 : vector<24x128xf32>
    %132 = vector.extract_strided_slice %71 {offsets = [10, 0, 0], sizes = [1, 32, 128], strides = [1, 1, 1]} : vector<26x32x128xf32> to vector<1x32x128xf32>
    %133 = vector.shape_cast %132 : vector<1x32x128xf32> to vector<32x128xf32>
    %134 = vector.extract_strided_slice %71 {offsets = [11, 0, 0], sizes = [1, 32, 128], strides = [1, 1, 1]} : vector<26x32x128xf32> to vector<1x32x128xf32>
    %135 = vector.shape_cast %134 : vector<1x32x128xf32> to vector<32x128xf32>
    %136 = arith.maximumf %133, %135 : vector<32x128xf32>
    %cst_28 = arith.constant dense<0.000000e+00> : vector<24x128xf32>
    %137 = tpu.matmul %81, %136, %cst_28 {dimension_numbers = #tpu.dot_dimension_numbers<[1], [0], [0], [1], [0, 0, 1, 1], [], []>} : vector<24x32xf32>, vector<32x128xf32>, vector<24x128xf32> -> vector<24x128xf32>
    %cst_29 = arith.constant dense<0.000000e+00> : vector<24x128xf32>
    %138 = tpu.matmul %91, %136, %cst_29 {dimension_numbers = #tpu.dot_dimension_numbers<[1], [0], [0], [1], [0, 0, 1, 1], [], []>} : vector<24x32xf32>, vector<32x128xf32>, vector<24x128xf32> -> vector<24x128xf32>
    %139 = arith.maximumf %137, %138 : vector<24x128xf32>
    %140 = vector.extract_strided_slice %71 {offsets = [12, 0, 0], sizes = [1, 32, 128], strides = [1, 1, 1]} : vector<26x32x128xf32> to vector<1x32x128xf32>
    %141 = vector.shape_cast %140 : vector<1x32x128xf32> to vector<32x128xf32>
    %142 = vector.extract_strided_slice %71 {offsets = [13, 0, 0], sizes = [1, 32, 128], strides = [1, 1, 1]} : vector<26x32x128xf32> to vector<1x32x128xf32>
    %143 = vector.shape_cast %142 : vector<1x32x128xf32> to vector<32x128xf32>
    %144 = arith.maximumf %141, %143 : vector<32x128xf32>
    %cst_30 = arith.constant dense<0.000000e+00> : vector<24x128xf32>
    %145 = tpu.matmul %81, %144, %cst_30 {dimension_numbers = #tpu.dot_dimension_numbers<[1], [0], [0], [1], [0, 0, 1, 1], [], []>} : vector<24x32xf32>, vector<32x128xf32>, vector<24x128xf32> -> vector<24x128xf32>
    %cst_31 = arith.constant dense<0.000000e+00> : vector<24x128xf32>
    %146 = tpu.matmul %91, %144, %cst_31 {dimension_numbers = #tpu.dot_dimension_numbers<[1], [0], [0], [1], [0, 0, 1, 1], [], []>} : vector<24x32xf32>, vector<32x128xf32>, vector<24x128xf32> -> vector<24x128xf32>
    %147 = arith.maximumf %145, %146 : vector<24x128xf32>
    %148 = vector.extract_strided_slice %71 {offsets = [14, 0, 0], sizes = [1, 32, 128], strides = [1, 1, 1]} : vector<26x32x128xf32> to vector<1x32x128xf32>
    %149 = vector.shape_cast %148 : vector<1x32x128xf32> to vector<32x128xf32>
    %150 = vector.extract_strided_slice %71 {offsets = [15, 0, 0], sizes = [1, 32, 128], strides = [1, 1, 1]} : vector<26x32x128xf32> to vector<1x32x128xf32>
    %151 = vector.shape_cast %150 : vector<1x32x128xf32> to vector<32x128xf32>
    %152 = arith.maximumf %149, %151 : vector<32x128xf32>
    %cst_32 = arith.constant dense<0.000000e+00> : vector<24x128xf32>
    %153 = tpu.matmul %81, %152, %cst_32 {dimension_numbers = #tpu.dot_dimension_numbers<[1], [0], [0], [1], [0, 0, 1, 1], [], []>} : vector<24x32xf32>, vector<32x128xf32>, vector<24x128xf32> -> vector<24x128xf32>
    %cst_33 = arith.constant dense<0.000000e+00> : vector<24x128xf32>
    %154 = tpu.matmul %91, %152, %cst_33 {dimension_numbers = #tpu.dot_dimension_numbers<[1], [0], [0], [1], [0, 0, 1, 1], [], []>} : vector<24x32xf32>, vector<32x128xf32>, vector<24x128xf32> -> vector<24x128xf32>
    %155 = arith.maximumf %153, %154 : vector<24x128xf32>
    %156 = vector.extract_strided_slice %71 {offsets = [16, 0, 0], sizes = [1, 32, 128], strides = [1, 1, 1]} : vector<26x32x128xf32> to vector<1x32x128xf32>
    %157 = vector.shape_cast %156 : vector<1x32x128xf32> to vector<32x128xf32>
    %158 = vector.extract_strided_slice %71 {offsets = [17, 0, 0], sizes = [1, 32, 128], strides = [1, 1, 1]} : vector<26x32x128xf32> to vector<1x32x128xf32>
    %159 = vector.shape_cast %158 : vector<1x32x128xf32> to vector<32x128xf32>
    %160 = arith.maximumf %157, %159 : vector<32x128xf32>
    %cst_34 = arith.constant dense<0.000000e+00> : vector<24x128xf32>
    %161 = tpu.matmul %81, %160, %cst_34 {dimension_numbers = #tpu.dot_dimension_numbers<[1], [0], [0], [1], [0, 0, 1, 1], [], []>} : vector<24x32xf32>, vector<32x128xf32>, vector<24x128xf32> -> vector<24x128xf32>
    %cst_35 = arith.constant dense<0.000000e+00> : vector<24x128xf32>
    %162 = tpu.matmul %91, %160, %cst_35 {dimension_numbers = #tpu.dot_dimension_numbers<[1], [0], [0], [1], [0, 0, 1, 1], [], []>} : vector<24x32xf32>, vector<32x128xf32>, vector<24x128xf32> -> vector<24x128xf32>
    %163 = arith.maximumf %161, %162 : vector<24x128xf32>
    %164 = vector.extract_strided_slice %71 {offsets = [18, 0, 0], sizes = [1, 32, 128], strides = [1, 1, 1]} : vector<26x32x128xf32> to vector<1x32x128xf32>
    %165 = vector.shape_cast %164 : vector<1x32x128xf32> to vector<32x128xf32>
    %166 = vector.extract_strided_slice %71 {offsets = [19, 0, 0], sizes = [1, 32, 128], strides = [1, 1, 1]} : vector<26x32x128xf32> to vector<1x32x128xf32>
    %167 = vector.shape_cast %166 : vector<1x32x128xf32> to vector<32x128xf32>
    %168 = arith.maximumf %165, %167 : vector<32x128xf32>
    %cst_36 = arith.constant dense<0.000000e+00> : vector<24x128xf32>
    %169 = tpu.matmul %81, %168, %cst_36 {dimension_numbers = #tpu.dot_dimension_numbers<[1], [0], [0], [1], [0, 0, 1, 1], [], []>} : vector<24x32xf32>, vector<32x128xf32>, vector<24x128xf32> -> vector<24x128xf32>
    %cst_37 = arith.constant dense<0.000000e+00> : vector<24x128xf32>
    %170 = tpu.matmul %91, %168, %cst_37 {dimension_numbers = #tpu.dot_dimension_numbers<[1], [0], [0], [1], [0, 0, 1, 1], [], []>} : vector<24x32xf32>, vector<32x128xf32>, vector<24x128xf32> -> vector<24x128xf32>
    %171 = arith.maximumf %169, %170 : vector<24x128xf32>
    %172 = vector.extract_strided_slice %71 {offsets = [20, 0, 0], sizes = [1, 32, 128], strides = [1, 1, 1]} : vector<26x32x128xf32> to vector<1x32x128xf32>
    %173 = vector.shape_cast %172 : vector<1x32x128xf32> to vector<32x128xf32>
    %174 = vector.extract_strided_slice %71 {offsets = [21, 0, 0], sizes = [1, 32, 128], strides = [1, 1, 1]} : vector<26x32x128xf32> to vector<1x32x128xf32>
    %175 = vector.shape_cast %174 : vector<1x32x128xf32> to vector<32x128xf32>
    %176 = arith.maximumf %173, %175 : vector<32x128xf32>
    %cst_38 = arith.constant dense<0.000000e+00> : vector<24x128xf32>
    %177 = tpu.matmul %81, %176, %cst_38 {dimension_numbers = #tpu.dot_dimension_numbers<[1], [0], [0], [1], [0, 0, 1, 1], [], []>} : vector<24x32xf32>, vector<32x128xf32>, vector<24x128xf32> -> vector<24x128xf32>
    %cst_39 = arith.constant dense<0.000000e+00> : vector<24x128xf32>
    %178 = tpu.matmul %91, %176, %cst_39 {dimension_numbers = #tpu.dot_dimension_numbers<[1], [0], [0], [1], [0, 0, 1, 1], [], []>} : vector<24x32xf32>, vector<32x128xf32>, vector<24x128xf32> -> vector<24x128xf32>
    %179 = arith.maximumf %177, %178 : vector<24x128xf32>
    %180 = vector.extract_strided_slice %71 {offsets = [22, 0, 0], sizes = [1, 32, 128], strides = [1, 1, 1]} : vector<26x32x128xf32> to vector<1x32x128xf32>
    %181 = vector.shape_cast %180 : vector<1x32x128xf32> to vector<32x128xf32>
    %182 = vector.extract_strided_slice %71 {offsets = [23, 0, 0], sizes = [1, 32, 128], strides = [1, 1, 1]} : vector<26x32x128xf32> to vector<1x32x128xf32>
    %183 = vector.shape_cast %182 : vector<1x32x128xf32> to vector<32x128xf32>
    %184 = arith.maximumf %181, %183 : vector<32x128xf32>
    %cst_40 = arith.constant dense<0.000000e+00> : vector<24x128xf32>
    %185 = tpu.matmul %81, %184, %cst_40 {dimension_numbers = #tpu.dot_dimension_numbers<[1], [0], [0], [1], [0, 0, 1, 1], [], []>} : vector<24x32xf32>, vector<32x128xf32>, vector<24x128xf32> -> vector<24x128xf32>
    %cst_41 = arith.constant dense<0.000000e+00> : vector<24x128xf32>
    %186 = tpu.matmul %91, %184, %cst_41 {dimension_numbers = #tpu.dot_dimension_numbers<[1], [0], [0], [1], [0, 0, 1, 1], [], []>} : vector<24x32xf32>, vector<32x128xf32>, vector<24x128xf32> -> vector<24x128xf32>
    %187 = arith.maximumf %185, %186 : vector<24x128xf32>
    %188 = vector.extract_strided_slice %71 {offsets = [24, 0, 0], sizes = [1, 32, 128], strides = [1, 1, 1]} : vector<26x32x128xf32> to vector<1x32x128xf32>
    %189 = vector.shape_cast %188 : vector<1x32x128xf32> to vector<32x128xf32>
    %190 = vector.extract_strided_slice %71 {offsets = [25, 0, 0], sizes = [1, 32, 128], strides = [1, 1, 1]} : vector<26x32x128xf32> to vector<1x32x128xf32>
    %191 = vector.shape_cast %190 : vector<1x32x128xf32> to vector<32x128xf32>
    %192 = arith.maximumf %189, %191 : vector<32x128xf32>
    %cst_42 = arith.constant dense<0.000000e+00> : vector<24x128xf32>
    %193 = tpu.matmul %81, %192, %cst_42 {dimension_numbers = #tpu.dot_dimension_numbers<[1], [0], [0], [1], [0, 0, 1, 1], [], []>} : vector<24x32xf32>, vector<32x128xf32>, vector<24x128xf32> -> vector<24x128xf32>
    %cst_43 = arith.constant dense<0.000000e+00> : vector<24x128xf32>
    %194 = tpu.matmul %91, %192, %cst_43 {dimension_numbers = #tpu.dot_dimension_numbers<[1], [0], [0], [1], [0, 0, 1, 1], [], []>} : vector<24x32xf32>, vector<32x128xf32>, vector<24x128xf32> -> vector<24x128xf32>
    %195 = arith.maximumf %193, %194 : vector<24x128xf32>
    %196 = vector.shape_cast %99 : vector<24x128xf32> to vector<1x24x128xf32>
    %197 = vector.shape_cast %107 : vector<24x128xf32> to vector<1x24x128xf32>
    %198 = vector.shape_cast %115 : vector<24x128xf32> to vector<1x24x128xf32>
    %199 = vector.shape_cast %123 : vector<24x128xf32> to vector<1x24x128xf32>
    %200 = vector.shape_cast %131 : vector<24x128xf32> to vector<1x24x128xf32>
    %201 = vector.shape_cast %139 : vector<24x128xf32> to vector<1x24x128xf32>
    %202 = vector.shape_cast %147 : vector<24x128xf32> to vector<1x24x128xf32>
    %203 = vector.shape_cast %155 : vector<24x128xf32> to vector<1x24x128xf32>
    %204 = vector.shape_cast %163 : vector<24x128xf32> to vector<1x24x128xf32>
    %205 = vector.shape_cast %171 : vector<24x128xf32> to vector<1x24x128xf32>
    %206 = vector.shape_cast %179 : vector<24x128xf32> to vector<1x24x128xf32>
    %207 = vector.shape_cast %187 : vector<24x128xf32> to vector<1x24x128xf32>
    %208 = vector.shape_cast %195 : vector<24x128xf32> to vector<1x24x128xf32>
    %209 = tpu.concatenate %196, %197, %198, %199, %200, %201, %202, %203, %204, %205, %206, %207, %208 in 0 : vector<1x24x128xf32>, vector<1x24x128xf32>, vector<1x24x128xf32>, vector<1x24x128xf32>, vector<1x24x128xf32>, vector<1x24x128xf32>, vector<1x24x128xf32>, vector<1x24x128xf32>, vector<1x24x128xf32>, vector<1x24x128xf32>, vector<1x24x128xf32>, vector<1x24x128xf32>, vector<1x24x128xf32> -> vector<13x24x128xf32>
    %cst_44 = arith.constant 0.000000e+00 : f32
    %210 = vector.broadcast %cst_44 : f32 to vector<176x128xf32>
    %211 = vector.extract_strided_slice %209 {offsets = [0, 0, 0], sizes = [11, 16, 128], strides = [1, 1, 1]} : vector<13x24x128xf32> to vector<11x16x128xf32>
    %212 = vector.shape_cast %211 : vector<11x16x128xf32> to vector<176x128xf32>
    %213 = arith.truncf %212 : vector<176x128xf32> to vector<176x128xbf16>
    %c0_45 = arith.constant 0 : index
    %c0_46 = arith.constant 0 : index
    %c0_47 = arith.constant 0 : index
    %214 = vector.load %arg4[%c0_45, %c0_46, %c0_47] : memref<9x128x128xbf16, #tpu.memory_space<vmem>>, vector<1x128x128xbf16>
    %215 = vector.shape_cast %214 : vector<1x128x128xbf16> to vector<128x128xbf16>
    %cst_48 = arith.constant dense<0.000000e+00> : vector<176x128xf32>
    %216 = tpu.matmul %213, %215, %cst_48 {dimension_numbers = #tpu.dot_dimension_numbers<[1], [0], [0], [1], [0, 0, 1, 1], [], []>} : vector<176x128xbf16>, vector<128x128xbf16>, vector<176x128xf32> -> vector<176x128xf32>
    %217 = arith.addf %210, %216 : vector<176x128xf32>
    %218 = vector.extract_strided_slice %209 {offsets = [0, 1, 0], sizes = [11, 16, 128], strides = [1, 1, 1]} : vector<13x24x128xf32> to vector<11x16x128xf32>
    %219 = vector.shape_cast %218 : vector<11x16x128xf32> to vector<176x128xf32>
    %220 = arith.truncf %219 : vector<176x128xf32> to vector<176x128xbf16>
    %c1_49 = arith.constant 1 : index
    %c0_50 = arith.constant 0 : index
    %c0_51 = arith.constant 0 : index
    %221 = vector.load %arg4[%c1_49, %c0_50, %c0_51] : memref<9x128x128xbf16, #tpu.memory_space<vmem>>, vector<1x128x128xbf16>
    %222 = vector.shape_cast %221 : vector<1x128x128xbf16> to vector<128x128xbf16>
    %cst_52 = arith.constant dense<0.000000e+00> : vector<176x128xf32>
    %223 = tpu.matmul %220, %222, %cst_52 {dimension_numbers = #tpu.dot_dimension_numbers<[1], [0], [0], [1], [0, 0, 1, 1], [], []>} : vector<176x128xbf16>, vector<128x128xbf16>, vector<176x128xf32> -> vector<176x128xf32>
    %224 = arith.addf %217, %223 : vector<176x128xf32>
    %225 = vector.extract_strided_slice %209 {offsets = [0, 2, 0], sizes = [11, 16, 128], strides = [1, 1, 1]} : vector<13x24x128xf32> to vector<11x16x128xf32>
    %226 = vector.shape_cast %225 : vector<11x16x128xf32> to vector<176x128xf32>
    %227 = arith.truncf %226 : vector<176x128xf32> to vector<176x128xbf16>
    %c2_53 = arith.constant 2 : index
    %c0_54 = arith.constant 0 : index
    %c0_55 = arith.constant 0 : index
    %228 = vector.load %arg4[%c2_53, %c0_54, %c0_55] : memref<9x128x128xbf16, #tpu.memory_space<vmem>>, vector<1x128x128xbf16>
    %229 = vector.shape_cast %228 : vector<1x128x128xbf16> to vector<128x128xbf16>
    %cst_56 = arith.constant dense<0.000000e+00> : vector<176x128xf32>
    %230 = tpu.matmul %227, %229, %cst_56 {dimension_numbers = #tpu.dot_dimension_numbers<[1], [0], [0], [1], [0, 0, 1, 1], [], []>} : vector<176x128xbf16>, vector<128x128xbf16>, vector<176x128xf32> -> vector<176x128xf32>
    %231 = arith.addf %224, %230 : vector<176x128xf32>
    %232 = vector.extract_strided_slice %209 {offsets = [1, 0, 0], sizes = [11, 16, 128], strides = [1, 1, 1]} : vector<13x24x128xf32> to vector<11x16x128xf32>
    %233 = vector.shape_cast %232 : vector<11x16x128xf32> to vector<176x128xf32>
    %234 = arith.truncf %233 : vector<176x128xf32> to vector<176x128xbf16>
    %c3_57 = arith.constant 3 : index
    %c0_58 = arith.constant 0 : index
    %c0_59 = arith.constant 0 : index
    %235 = vector.load %arg4[%c3_57, %c0_58, %c0_59] : memref<9x128x128xbf16, #tpu.memory_space<vmem>>, vector<1x128x128xbf16>
    %236 = vector.shape_cast %235 : vector<1x128x128xbf16> to vector<128x128xbf16>
    %cst_60 = arith.constant dense<0.000000e+00> : vector<176x128xf32>
    %237 = tpu.matmul %234, %236, %cst_60 {dimension_numbers = #tpu.dot_dimension_numbers<[1], [0], [0], [1], [0, 0, 1, 1], [], []>} : vector<176x128xbf16>, vector<128x128xbf16>, vector<176x128xf32> -> vector<176x128xf32>
    %238 = arith.addf %231, %237 : vector<176x128xf32>
    %239 = vector.extract_strided_slice %209 {offsets = [1, 1, 0], sizes = [11, 16, 128], strides = [1, 1, 1]} : vector<13x24x128xf32> to vector<11x16x128xf32>
    %240 = vector.shape_cast %239 : vector<11x16x128xf32> to vector<176x128xf32>
    %241 = arith.truncf %240 : vector<176x128xf32> to vector<176x128xbf16>
    %c4_61 = arith.constant 4 : index
    %c0_62 = arith.constant 0 : index
    %c0_63 = arith.constant 0 : index
    %242 = vector.load %arg4[%c4_61, %c0_62, %c0_63] : memref<9x128x128xbf16, #tpu.memory_space<vmem>>, vector<1x128x128xbf16>
    %243 = vector.shape_cast %242 : vector<1x128x128xbf16> to vector<128x128xbf16>
    %cst_64 = arith.constant dense<0.000000e+00> : vector<176x128xf32>
    %244 = tpu.matmul %241, %243, %cst_64 {dimension_numbers = #tpu.dot_dimension_numbers<[1], [0], [0], [1], [0, 0, 1, 1], [], []>} : vector<176x128xbf16>, vector<128x128xbf16>, vector<176x128xf32> -> vector<176x128xf32>
    %245 = arith.addf %238, %244 : vector<176x128xf32>
    %246 = vector.extract_strided_slice %209 {offsets = [1, 2, 0], sizes = [11, 16, 128], strides = [1, 1, 1]} : vector<13x24x128xf32> to vector<11x16x128xf32>
    %247 = vector.shape_cast %246 : vector<11x16x128xf32> to vector<176x128xf32>
    %248 = arith.truncf %247 : vector<176x128xf32> to vector<176x128xbf16>
    %c5_65 = arith.constant 5 : index
    %c0_66 = arith.constant 0 : index
    %c0_67 = arith.constant 0 : index
    %249 = vector.load %arg4[%c5_65, %c0_66, %c0_67] : memref<9x128x128xbf16, #tpu.memory_space<vmem>>, vector<1x128x128xbf16>
    %250 = vector.shape_cast %249 : vector<1x128x128xbf16> to vector<128x128xbf16>
    %cst_68 = arith.constant dense<0.000000e+00> : vector<176x128xf32>
    %251 = tpu.matmul %248, %250, %cst_68 {dimension_numbers = #tpu.dot_dimension_numbers<[1], [0], [0], [1], [0, 0, 1, 1], [], []>} : vector<176x128xbf16>, vector<128x128xbf16>, vector<176x128xf32> -> vector<176x128xf32>
    %252 = arith.addf %245, %251 : vector<176x128xf32>
    %253 = vector.extract_strided_slice %209 {offsets = [2, 0, 0], sizes = [11, 16, 128], strides = [1, 1, 1]} : vector<13x24x128xf32> to vector<11x16x128xf32>
    %254 = vector.shape_cast %253 : vector<11x16x128xf32> to vector<176x128xf32>
    %255 = arith.truncf %254 : vector<176x128xf32> to vector<176x128xbf16>
    %c6_69 = arith.constant 6 : index
    %c0_70 = arith.constant 0 : index
    %c0_71 = arith.constant 0 : index
    %256 = vector.load %arg4[%c6_69, %c0_70, %c0_71] : memref<9x128x128xbf16, #tpu.memory_space<vmem>>, vector<1x128x128xbf16>
    %257 = vector.shape_cast %256 : vector<1x128x128xbf16> to vector<128x128xbf16>
    %cst_72 = arith.constant dense<0.000000e+00> : vector<176x128xf32>
    %258 = tpu.matmul %255, %257, %cst_72 {dimension_numbers = #tpu.dot_dimension_numbers<[1], [0], [0], [1], [0, 0, 1, 1], [], []>} : vector<176x128xbf16>, vector<128x128xbf16>, vector<176x128xf32> -> vector<176x128xf32>
    %259 = arith.addf %252, %258 : vector<176x128xf32>
    %260 = vector.extract_strided_slice %209 {offsets = [2, 1, 0], sizes = [11, 16, 128], strides = [1, 1, 1]} : vector<13x24x128xf32> to vector<11x16x128xf32>
    %261 = vector.shape_cast %260 : vector<11x16x128xf32> to vector<176x128xf32>
    %262 = arith.truncf %261 : vector<176x128xf32> to vector<176x128xbf16>
    %c7_73 = arith.constant 7 : index
    %c0_74 = arith.constant 0 : index
    %c0_75 = arith.constant 0 : index
    %263 = vector.load %arg4[%c7_73, %c0_74, %c0_75] : memref<9x128x128xbf16, #tpu.memory_space<vmem>>, vector<1x128x128xbf16>
    %264 = vector.shape_cast %263 : vector<1x128x128xbf16> to vector<128x128xbf16>
    %cst_76 = arith.constant dense<0.000000e+00> : vector<176x128xf32>
    %265 = tpu.matmul %262, %264, %cst_76 {dimension_numbers = #tpu.dot_dimension_numbers<[1], [0], [0], [1], [0, 0, 1, 1], [], []>} : vector<176x128xbf16>, vector<128x128xbf16>, vector<176x128xf32> -> vector<176x128xf32>
    %266 = arith.addf %259, %265 : vector<176x128xf32>
    %267 = vector.extract_strided_slice %209 {offsets = [2, 2, 0], sizes = [11, 16, 128], strides = [1, 1, 1]} : vector<13x24x128xf32> to vector<11x16x128xf32>
    %268 = vector.shape_cast %267 : vector<11x16x128xf32> to vector<176x128xf32>
    %269 = arith.truncf %268 : vector<176x128xf32> to vector<176x128xbf16>
    %c8_77 = arith.constant 8 : index
    %c0_78 = arith.constant 0 : index
    %c0_79 = arith.constant 0 : index
    %270 = vector.load %arg4[%c8_77, %c0_78, %c0_79] : memref<9x128x128xbf16, #tpu.memory_space<vmem>>, vector<1x128x128xbf16>
    %271 = vector.shape_cast %270 : vector<1x128x128xbf16> to vector<128x128xbf16>
    %cst_80 = arith.constant dense<0.000000e+00> : vector<176x128xf32>
    %272 = tpu.matmul %269, %271, %cst_80 {dimension_numbers = #tpu.dot_dimension_numbers<[1], [0], [0], [1], [0, 0, 1, 1], [], []>} : vector<176x128xbf16>, vector<128x128xbf16>, vector<176x128xf32> -> vector<176x128xf32>
    %273 = arith.addf %266, %272 : vector<176x128xf32>
    %c0_81 = arith.constant 0 : index
    %c0_82 = arith.constant 0 : index
    %274 = vector.load %arg5[%c0_81, %c0_82] : memref<1x128xf32, #tpu.memory_space<vmem>>, vector<1x128xf32>
    %275 = vector.broadcast %274 : vector<1x128xf32> to vector<176x128xf32>
    %276 = arith.addf %273, %275 : vector<176x128xf32>
    %cst_83 = arith.constant 0.000000e+00 : f32
    %277 = vector.broadcast %cst_83 : f32 to vector<176x128xf32>
    %278 = arith.maximumf %276, %277 : vector<176x128xf32>
    %279 = vector.shape_cast %278 : vector<176x128xf32> to vector<11x16x128xf32>
    %280 = tpu.iota {dimensions = array<i32: 0>} : vector<8x16xi32>
    %281 = tpu.iota {dimensions = array<i32: 1>} : vector<8x16xi32>
    %c2_i32_84 = arith.constant 2 : i32
    %282 = vector.broadcast %c2_i32_84 : i32 to vector<8x16xi32>
    %283 = arith.muli %282, %280 : vector<8x16xi32>
    %284 = arith.cmpi eq, %281, %283 : vector<8x16xi32>
    %c5_i32 = arith.constant 5 : i32
    %285 = vector.broadcast %c5_i32 : i32 to vector<8x16xi32>
    %286 = arith.cmpi slt, %280, %285 : vector<8x16xi32>
    %287 = arith.andi %284, %286 : vector<8x16xi1>
    %288 = arith.extui %287 : vector<8x16xi1> to vector<8x16xi32>
    %289 = arith.sitofp %288 : vector<8x16xi32> to vector<8x16xf32>
    %c2_i32_85 = arith.constant 2 : i32
    %290 = vector.broadcast %c2_i32_85 : i32 to vector<8x16xi32>
    %291 = arith.muli %290, %280 : vector<8x16xi32>
    %c1_i32_86 = arith.constant 1 : i32
    %292 = vector.broadcast %c1_i32_86 : i32 to vector<8x16xi32>
    %293 = arith.addi %291, %292 : vector<8x16xi32>
    %294 = arith.cmpi eq, %281, %293 : vector<8x16xi32>
    %c5_i32_87 = arith.constant 5 : i32
    %295 = vector.broadcast %c5_i32_87 : i32 to vector<8x16xi32>
    %296 = arith.cmpi slt, %280, %295 : vector<8x16xi32>
    %297 = arith.andi %294, %296 : vector<8x16xi1>
    %298 = arith.extui %297 : vector<8x16xi1> to vector<8x16xi32>
    %299 = arith.sitofp %298 : vector<8x16xi32> to vector<8x16xf32>
    %300 = vector.extract_strided_slice %279 {offsets = [0, 0, 0], sizes = [1, 16, 128], strides = [1, 1, 1]} : vector<11x16x128xf32> to vector<1x16x128xf32>
    %301 = vector.shape_cast %300 : vector<1x16x128xf32> to vector<16x128xf32>
    %302 = vector.extract_strided_slice %279 {offsets = [1, 0, 0], sizes = [1, 16, 128], strides = [1, 1, 1]} : vector<11x16x128xf32> to vector<1x16x128xf32>
    %303 = vector.shape_cast %302 : vector<1x16x128xf32> to vector<16x128xf32>
    %304 = arith.maximumf %301, %303 : vector<16x128xf32>
    %cst_88 = arith.constant dense<0.000000e+00> : vector<8x128xf32>
    %305 = tpu.matmul %289, %304, %cst_88 {dimension_numbers = #tpu.dot_dimension_numbers<[1], [0], [0], [1], [0, 0, 1, 1], [], []>} : vector<8x16xf32>, vector<16x128xf32>, vector<8x128xf32> -> vector<8x128xf32>
    %cst_89 = arith.constant dense<0.000000e+00> : vector<8x128xf32>
    %306 = tpu.matmul %299, %304, %cst_89 {dimension_numbers = #tpu.dot_dimension_numbers<[1], [0], [0], [1], [0, 0, 1, 1], [], []>} : vector<8x16xf32>, vector<16x128xf32>, vector<8x128xf32> -> vector<8x128xf32>
    %307 = arith.maximumf %305, %306 : vector<8x128xf32>
    %308 = vector.extract_strided_slice %279 {offsets = [2, 0, 0], sizes = [1, 16, 128], strides = [1, 1, 1]} : vector<11x16x128xf32> to vector<1x16x128xf32>
    %309 = vector.shape_cast %308 : vector<1x16x128xf32> to vector<16x128xf32>
    %310 = vector.extract_strided_slice %279 {offsets = [3, 0, 0], sizes = [1, 16, 128], strides = [1, 1, 1]} : vector<11x16x128xf32> to vector<1x16x128xf32>
    %311 = vector.shape_cast %310 : vector<1x16x128xf32> to vector<16x128xf32>
    %312 = arith.maximumf %309, %311 : vector<16x128xf32>
    %cst_90 = arith.constant dense<0.000000e+00> : vector<8x128xf32>
    %313 = tpu.matmul %289, %312, %cst_90 {dimension_numbers = #tpu.dot_dimension_numbers<[1], [0], [0], [1], [0, 0, 1, 1], [], []>} : vector<8x16xf32>, vector<16x128xf32>, vector<8x128xf32> -> vector<8x128xf32>
    %cst_91 = arith.constant dense<0.000000e+00> : vector<8x128xf32>
    %314 = tpu.matmul %299, %312, %cst_91 {dimension_numbers = #tpu.dot_dimension_numbers<[1], [0], [0], [1], [0, 0, 1, 1], [], []>} : vector<8x16xf32>, vector<16x128xf32>, vector<8x128xf32> -> vector<8x128xf32>
    %315 = arith.maximumf %313, %314 : vector<8x128xf32>
    %316 = vector.extract_strided_slice %279 {offsets = [4, 0, 0], sizes = [1, 16, 128], strides = [1, 1, 1]} : vector<11x16x128xf32> to vector<1x16x128xf32>
    %317 = vector.shape_cast %316 : vector<1x16x128xf32> to vector<16x128xf32>
    %318 = vector.extract_strided_slice %279 {offsets = [5, 0, 0], sizes = [1, 16, 128], strides = [1, 1, 1]} : vector<11x16x128xf32> to vector<1x16x128xf32>
    %319 = vector.shape_cast %318 : vector<1x16x128xf32> to vector<16x128xf32>
    %320 = arith.maximumf %317, %319 : vector<16x128xf32>
    %cst_92 = arith.constant dense<0.000000e+00> : vector<8x128xf32>
    %321 = tpu.matmul %289, %320, %cst_92 {dimension_numbers = #tpu.dot_dimension_numbers<[1], [0], [0], [1], [0, 0, 1, 1], [], []>} : vector<8x16xf32>, vector<16x128xf32>, vector<8x128xf32> -> vector<8x128xf32>
    %cst_93 = arith.constant dense<0.000000e+00> : vector<8x128xf32>
    %322 = tpu.matmul %299, %320, %cst_93 {dimension_numbers = #tpu.dot_dimension_numbers<[1], [0], [0], [1], [0, 0, 1, 1], [], []>} : vector<8x16xf32>, vector<16x128xf32>, vector<8x128xf32> -> vector<8x128xf32>
    %323 = arith.maximumf %321, %322 : vector<8x128xf32>
    %324 = vector.extract_strided_slice %279 {offsets = [6, 0, 0], sizes = [1, 16, 128], strides = [1, 1, 1]} : vector<11x16x128xf32> to vector<1x16x128xf32>
    %325 = vector.shape_cast %324 : vector<1x16x128xf32> to vector<16x128xf32>
    %326 = vector.extract_strided_slice %279 {offsets = [7, 0, 0], sizes = [1, 16, 128], strides = [1, 1, 1]} : vector<11x16x128xf32> to vector<1x16x128xf32>
    %327 = vector.shape_cast %326 : vector<1x16x128xf32> to vector<16x128xf32>
    %328 = arith.maximumf %325, %327 : vector<16x128xf32>
    %cst_94 = arith.constant dense<0.000000e+00> : vector<8x128xf32>
    %329 = tpu.matmul %289, %328, %cst_94 {dimension_numbers = #tpu.dot_dimension_numbers<[1], [0], [0], [1], [0, 0, 1, 1], [], []>} : vector<8x16xf32>, vector<16x128xf32>, vector<8x128xf32> -> vector<8x128xf32>
    %cst_95 = arith.constant dense<0.000000e+00> : vector<8x128xf32>
    %330 = tpu.matmul %299, %328, %cst_95 {dimension_numbers = #tpu.dot_dimension_numbers<[1], [0], [0], [1], [0, 0, 1, 1], [], []>} : vector<8x16xf32>, vector<16x128xf32>, vector<8x128xf32> -> vector<8x128xf32>
    %331 = arith.maximumf %329, %330 : vector<8x128xf32>
    %332 = vector.extract_strided_slice %279 {offsets = [8, 0, 0], sizes = [1, 16, 128], strides = [1, 1, 1]} : vector<11x16x128xf32> to vector<1x16x128xf32>
    %333 = vector.shape_cast %332 : vector<1x16x128xf32> to vector<16x128xf32>
    %334 = vector.extract_strided_slice %279 {offsets = [9, 0, 0], sizes = [1, 16, 128], strides = [1, 1, 1]} : vector<11x16x128xf32> to vector<1x16x128xf32>
    %335 = vector.shape_cast %334 : vector<1x16x128xf32> to vector<16x128xf32>
    %336 = arith.maximumf %333, %335 : vector<16x128xf32>
    %cst_96 = arith.constant dense<0.000000e+00> : vector<8x128xf32>
    %337 = tpu.matmul %289, %336, %cst_96 {dimension_numbers = #tpu.dot_dimension_numbers<[1], [0], [0], [1], [0, 0, 1, 1], [], []>} : vector<8x16xf32>, vector<16x128xf32>, vector<8x128xf32> -> vector<8x128xf32>
    %cst_97 = arith.constant dense<0.000000e+00> : vector<8x128xf32>
    %338 = tpu.matmul %299, %336, %cst_97 {dimension_numbers = #tpu.dot_dimension_numbers<[1], [0], [0], [1], [0, 0, 1, 1], [], []>} : vector<8x16xf32>, vector<16x128xf32>, vector<8x128xf32> -> vector<8x128xf32>
    %339 = arith.maximumf %337, %338 : vector<8x128xf32>
    %340 = vector.shape_cast %307 : vector<8x128xf32> to vector<1x8x128xf32>
    %341 = vector.shape_cast %315 : vector<8x128xf32> to vector<1x8x128xf32>
    %342 = vector.shape_cast %323 : vector<8x128xf32> to vector<1x8x128xf32>
    %343 = vector.shape_cast %331 : vector<8x128xf32> to vector<1x8x128xf32>
    %344 = vector.shape_cast %339 : vector<8x128xf32> to vector<1x8x128xf32>
    %345 = tpu.concatenate %340, %341, %342, %343, %344 in 0 : vector<1x8x128xf32>, vector<1x8x128xf32>, vector<1x8x128xf32>, vector<1x8x128xf32>, vector<1x8x128xf32> -> vector<5x8x128xf32>
    %cst_98 = arith.constant 0.000000e+00 : f32
    %346 = vector.broadcast %cst_98 : f32 to vector<1x128xf32>
    %347 = vector.extract_strided_slice %345 {offsets = [0, 0, 0], sizes = [1, 1, 128], strides = [1, 1, 1]} : vector<5x8x128xf32> to vector<1x1x128xf32>
    %348 = vector.shape_cast %347 : vector<1x1x128xf32> to vector<1x128xf32>
    %349 = arith.truncf %348 : vector<1x128xf32> to vector<1x128xbf16>
    %c0_99 = arith.constant 0 : index
    %c0_100 = arith.constant 0 : index
    %c0_101 = arith.constant 0 : index
    %350 = vector.load %arg6[%c0_99, %c0_100, %c0_101] : memref<25x128x128xbf16, #tpu.memory_space<vmem>>, vector<1x128x128xbf16>
    %351 = vector.shape_cast %350 : vector<1x128x128xbf16> to vector<128x128xbf16>
    %cst_102 = arith.constant dense<0.000000e+00> : vector<1x128xf32>
    %352 = tpu.matmul %349, %351, %cst_102 {dimension_numbers = #tpu.dot_dimension_numbers<[1], [0], [0], [1], [0, 0, 1, 1], [], []>} : vector<1x128xbf16>, vector<128x128xbf16>, vector<1x128xf32> -> vector<1x128xf32>
    %353 = arith.addf %346, %352 : vector<1x128xf32>
    %354 = vector.extract_strided_slice %345 {offsets = [0, 1, 0], sizes = [1, 1, 128], strides = [1, 1, 1]} : vector<5x8x128xf32> to vector<1x1x128xf32>
    %355 = vector.shape_cast %354 : vector<1x1x128xf32> to vector<1x128xf32>
    %356 = arith.truncf %355 : vector<1x128xf32> to vector<1x128xbf16>
    %c1_103 = arith.constant 1 : index
    %c0_104 = arith.constant 0 : index
    %c0_105 = arith.constant 0 : index
    %357 = vector.load %arg6[%c1_103, %c0_104, %c0_105] : memref<25x128x128xbf16, #tpu.memory_space<vmem>>, vector<1x128x128xbf16>
    %358 = vector.shape_cast %357 : vector<1x128x128xbf16> to vector<128x128xbf16>
    %cst_106 = arith.constant dense<0.000000e+00> : vector<1x128xf32>
    %359 = tpu.matmul %356, %358, %cst_106 {dimension_numbers = #tpu.dot_dimension_numbers<[1], [0], [0], [1], [0, 0, 1, 1], [], []>} : vector<1x128xbf16>, vector<128x128xbf16>, vector<1x128xf32> -> vector<1x128xf32>
    %360 = arith.addf %353, %359 : vector<1x128xf32>
    %361 = vector.extract_strided_slice %345 {offsets = [0, 2, 0], sizes = [1, 1, 128], strides = [1, 1, 1]} : vector<5x8x128xf32> to vector<1x1x128xf32>
    %362 = vector.shape_cast %361 : vector<1x1x128xf32> to vector<1x128xf32>
    %363 = arith.truncf %362 : vector<1x128xf32> to vector<1x128xbf16>
    %c2_107 = arith.constant 2 : index
    %c0_108 = arith.constant 0 : index
    %c0_109 = arith.constant 0 : index
    %364 = vector.load %arg6[%c2_107, %c0_108, %c0_109] : memref<25x128x128xbf16, #tpu.memory_space<vmem>>, vector<1x128x128xbf16>
    %365 = vector.shape_cast %364 : vector<1x128x128xbf16> to vector<128x128xbf16>
    %cst_110 = arith.constant dense<0.000000e+00> : vector<1x128xf32>
    %366 = tpu.matmul %363, %365, %cst_110 {dimension_numbers = #tpu.dot_dimension_numbers<[1], [0], [0], [1], [0, 0, 1, 1], [], []>} : vector<1x128xbf16>, vector<128x128xbf16>, vector<1x128xf32> -> vector<1x128xf32>
    %367 = arith.addf %360, %366 : vector<1x128xf32>
    %368 = vector.extract_strided_slice %345 {offsets = [0, 3, 0], sizes = [1, 1, 128], strides = [1, 1, 1]} : vector<5x8x128xf32> to vector<1x1x128xf32>
    %369 = vector.shape_cast %368 : vector<1x1x128xf32> to vector<1x128xf32>
    %370 = arith.truncf %369 : vector<1x128xf32> to vector<1x128xbf16>
    %c3_111 = arith.constant 3 : index
    %c0_112 = arith.constant 0 : index
    %c0_113 = arith.constant 0 : index
    %371 = vector.load %arg6[%c3_111, %c0_112, %c0_113] : memref<25x128x128xbf16, #tpu.memory_space<vmem>>, vector<1x128x128xbf16>
    %372 = vector.shape_cast %371 : vector<1x128x128xbf16> to vector<128x128xbf16>
    %cst_114 = arith.constant dense<0.000000e+00> : vector<1x128xf32>
    %373 = tpu.matmul %370, %372, %cst_114 {dimension_numbers = #tpu.dot_dimension_numbers<[1], [0], [0], [1], [0, 0, 1, 1], [], []>} : vector<1x128xbf16>, vector<128x128xbf16>, vector<1x128xf32> -> vector<1x128xf32>
    %374 = arith.addf %367, %373 : vector<1x128xf32>
    %375 = vector.extract_strided_slice %345 {offsets = [0, 4, 0], sizes = [1, 1, 128], strides = [1, 1, 1]} : vector<5x8x128xf32> to vector<1x1x128xf32>
    %376 = vector.shape_cast %375 : vector<1x1x128xf32> to vector<1x128xf32>
    %377 = arith.truncf %376 : vector<1x128xf32> to vector<1x128xbf16>
    %c4_115 = arith.constant 4 : index
    %c0_116 = arith.constant 0 : index
    %c0_117 = arith.constant 0 : index
    %378 = vector.load %arg6[%c4_115, %c0_116, %c0_117] : memref<25x128x128xbf16, #tpu.memory_space<vmem>>, vector<1x128x128xbf16>
    %379 = vector.shape_cast %378 : vector<1x128x128xbf16> to vector<128x128xbf16>
    %cst_118 = arith.constant dense<0.000000e+00> : vector<1x128xf32>
    %380 = tpu.matmul %377, %379, %cst_118 {dimension_numbers = #tpu.dot_dimension_numbers<[1], [0], [0], [1], [0, 0, 1, 1], [], []>} : vector<1x128xbf16>, vector<128x128xbf16>, vector<1x128xf32> -> vector<1x128xf32>
    %381 = arith.addf %374, %380 : vector<1x128xf32>
    %382 = vector.extract_strided_slice %345 {offsets = [1, 0, 0], sizes = [1, 1, 128], strides = [1, 1, 1]} : vector<5x8x128xf32> to vector<1x1x128xf32>
    %383 = vector.shape_cast %382 : vector<1x1x128xf32> to vector<1x128xf32>
    %384 = arith.truncf %383 : vector<1x128xf32> to vector<1x128xbf16>
    %c5_119 = arith.constant 5 : index
    %c0_120 = arith.constant 0 : index
    %c0_121 = arith.constant 0 : index
    %385 = vector.load %arg6[%c5_119, %c0_120, %c0_121] : memref<25x128x128xbf16, #tpu.memory_space<vmem>>, vector<1x128x128xbf16>
    %386 = vector.shape_cast %385 : vector<1x128x128xbf16> to vector<128x128xbf16>
    %cst_122 = arith.constant dense<0.000000e+00> : vector<1x128xf32>
    %387 = tpu.matmul %384, %386, %cst_122 {dimension_numbers = #tpu.dot_dimension_numbers<[1], [0], [0], [1], [0, 0, 1, 1], [], []>} : vector<1x128xbf16>, vector<128x128xbf16>, vector<1x128xf32> -> vector<1x128xf32>
    %388 = arith.addf %381, %387 : vector<1x128xf32>
    %389 = vector.extract_strided_slice %345 {offsets = [1, 1, 0], sizes = [1, 1, 128], strides = [1, 1, 1]} : vector<5x8x128xf32> to vector<1x1x128xf32>
    %390 = vector.shape_cast %389 : vector<1x1x128xf32> to vector<1x128xf32>
    %391 = arith.truncf %390 : vector<1x128xf32> to vector<1x128xbf16>
    %c6_123 = arith.constant 6 : index
    %c0_124 = arith.constant 0 : index
    %c0_125 = arith.constant 0 : index
    %392 = vector.load %arg6[%c6_123, %c0_124, %c0_125] : memref<25x128x128xbf16, #tpu.memory_space<vmem>>, vector<1x128x128xbf16>
    %393 = vector.shape_cast %392 : vector<1x128x128xbf16> to vector<128x128xbf16>
    %cst_126 = arith.constant dense<0.000000e+00> : vector<1x128xf32>
    %394 = tpu.matmul %391, %393, %cst_126 {dimension_numbers = #tpu.dot_dimension_numbers<[1], [0], [0], [1], [0, 0, 1, 1], [], []>} : vector<1x128xbf16>, vector<128x128xbf16>, vector<1x128xf32> -> vector<1x128xf32>
    %395 = arith.addf %388, %394 : vector<1x128xf32>
    %396 = vector.extract_strided_slice %345 {offsets = [1, 2, 0], sizes = [1, 1, 128], strides = [1, 1, 1]} : vector<5x8x128xf32> to vector<1x1x128xf32>
    %397 = vector.shape_cast %396 : vector<1x1x128xf32> to vector<1x128xf32>
    %398 = arith.truncf %397 : vector<1x128xf32> to vector<1x128xbf16>
    %c7_127 = arith.constant 7 : index
    %c0_128 = arith.constant 0 : index
    %c0_129 = arith.constant 0 : index
    %399 = vector.load %arg6[%c7_127, %c0_128, %c0_129] : memref<25x128x128xbf16, #tpu.memory_space<vmem>>, vector<1x128x128xbf16>
    %400 = vector.shape_cast %399 : vector<1x128x128xbf16> to vector<128x128xbf16>
    %cst_130 = arith.constant dense<0.000000e+00> : vector<1x128xf32>
    %401 = tpu.matmul %398, %400, %cst_130 {dimension_numbers = #tpu.dot_dimension_numbers<[1], [0], [0], [1], [0, 0, 1, 1], [], []>} : vector<1x128xbf16>, vector<128x128xbf16>, vector<1x128xf32> -> vector<1x128xf32>
    %402 = arith.addf %395, %401 : vector<1x128xf32>
    %403 = vector.extract_strided_slice %345 {offsets = [1, 3, 0], sizes = [1, 1, 128], strides = [1, 1, 1]} : vector<5x8x128xf32> to vector<1x1x128xf32>
    %404 = vector.shape_cast %403 : vector<1x1x128xf32> to vector<1x128xf32>
    %405 = arith.truncf %404 : vector<1x128xf32> to vector<1x128xbf16>
    %c8_131 = arith.constant 8 : index
    %c0_132 = arith.constant 0 : index
    %c0_133 = arith.constant 0 : index
    %406 = vector.load %arg6[%c8_131, %c0_132, %c0_133] : memref<25x128x128xbf16, #tpu.memory_space<vmem>>, vector<1x128x128xbf16>
    %407 = vector.shape_cast %406 : vector<1x128x128xbf16> to vector<128x128xbf16>
    %cst_134 = arith.constant dense<0.000000e+00> : vector<1x128xf32>
    %408 = tpu.matmul %405, %407, %cst_134 {dimension_numbers = #tpu.dot_dimension_numbers<[1], [0], [0], [1], [0, 0, 1, 1], [], []>} : vector<1x128xbf16>, vector<128x128xbf16>, vector<1x128xf32> -> vector<1x128xf32>
    %409 = arith.addf %402, %408 : vector<1x128xf32>
    %410 = vector.extract_strided_slice %345 {offsets = [1, 4, 0], sizes = [1, 1, 128], strides = [1, 1, 1]} : vector<5x8x128xf32> to vector<1x1x128xf32>
    %411 = vector.shape_cast %410 : vector<1x1x128xf32> to vector<1x128xf32>
    %412 = arith.truncf %411 : vector<1x128xf32> to vector<1x128xbf16>
    %c9 = arith.constant 9 : index
    %c0_135 = arith.constant 0 : index
    %c0_136 = arith.constant 0 : index
    %413 = vector.load %arg6[%c9, %c0_135, %c0_136] : memref<25x128x128xbf16, #tpu.memory_space<vmem>>, vector<1x128x128xbf16>
    %414 = vector.shape_cast %413 : vector<1x128x128xbf16> to vector<128x128xbf16>
    %cst_137 = arith.constant dense<0.000000e+00> : vector<1x128xf32>
    %415 = tpu.matmul %412, %414, %cst_137 {dimension_numbers = #tpu.dot_dimension_numbers<[1], [0], [0], [1], [0, 0, 1, 1], [], []>} : vector<1x128xbf16>, vector<128x128xbf16>, vector<1x128xf32> -> vector<1x128xf32>
    %416 = arith.addf %409, %415 : vector<1x128xf32>
    %417 = vector.extract_strided_slice %345 {offsets = [2, 0, 0], sizes = [1, 1, 128], strides = [1, 1, 1]} : vector<5x8x128xf32> to vector<1x1x128xf32>
    %418 = vector.shape_cast %417 : vector<1x1x128xf32> to vector<1x128xf32>
    %419 = arith.truncf %418 : vector<1x128xf32> to vector<1x128xbf16>
    %c10 = arith.constant 10 : index
    %c0_138 = arith.constant 0 : index
    %c0_139 = arith.constant 0 : index
    %420 = vector.load %arg6[%c10, %c0_138, %c0_139] : memref<25x128x128xbf16, #tpu.memory_space<vmem>>, vector<1x128x128xbf16>
    %421 = vector.shape_cast %420 : vector<1x128x128xbf16> to vector<128x128xbf16>
    %cst_140 = arith.constant dense<0.000000e+00> : vector<1x128xf32>
    %422 = tpu.matmul %419, %421, %cst_140 {dimension_numbers = #tpu.dot_dimension_numbers<[1], [0], [0], [1], [0, 0, 1, 1], [], []>} : vector<1x128xbf16>, vector<128x128xbf16>, vector<1x128xf32> -> vector<1x128xf32>
    %423 = arith.addf %416, %422 : vector<1x128xf32>
    %424 = vector.extract_strided_slice %345 {offsets = [2, 1, 0], sizes = [1, 1, 128], strides = [1, 1, 1]} : vector<5x8x128xf32> to vector<1x1x128xf32>
    %425 = vector.shape_cast %424 : vector<1x1x128xf32> to vector<1x128xf32>
    %426 = arith.truncf %425 : vector<1x128xf32> to vector<1x128xbf16>
    %c11 = arith.constant 11 : index
    %c0_141 = arith.constant 0 : index
    %c0_142 = arith.constant 0 : index
    %427 = vector.load %arg6[%c11, %c0_141, %c0_142] : memref<25x128x128xbf16, #tpu.memory_space<vmem>>, vector<1x128x128xbf16>
    %428 = vector.shape_cast %427 : vector<1x128x128xbf16> to vector<128x128xbf16>
    %cst_143 = arith.constant dense<0.000000e+00> : vector<1x128xf32>
    %429 = tpu.matmul %426, %428, %cst_143 {dimension_numbers = #tpu.dot_dimension_numbers<[1], [0], [0], [1], [0, 0, 1, 1], [], []>} : vector<1x128xbf16>, vector<128x128xbf16>, vector<1x128xf32> -> vector<1x128xf32>
    %430 = arith.addf %423, %429 : vector<1x128xf32>
    %431 = vector.extract_strided_slice %345 {offsets = [2, 2, 0], sizes = [1, 1, 128], strides = [1, 1, 1]} : vector<5x8x128xf32> to vector<1x1x128xf32>
    %432 = vector.shape_cast %431 : vector<1x1x128xf32> to vector<1x128xf32>
    %433 = arith.truncf %432 : vector<1x128xf32> to vector<1x128xbf16>
    %c12 = arith.constant 12 : index
    %c0_144 = arith.constant 0 : index
    %c0_145 = arith.constant 0 : index
    %434 = vector.load %arg6[%c12, %c0_144, %c0_145] : memref<25x128x128xbf16, #tpu.memory_space<vmem>>, vector<1x128x128xbf16>
    %435 = vector.shape_cast %434 : vector<1x128x128xbf16> to vector<128x128xbf16>
    %cst_146 = arith.constant dense<0.000000e+00> : vector<1x128xf32>
    %436 = tpu.matmul %433, %435, %cst_146 {dimension_numbers = #tpu.dot_dimension_numbers<[1], [0], [0], [1], [0, 0, 1, 1], [], []>} : vector<1x128xbf16>, vector<128x128xbf16>, vector<1x128xf32> -> vector<1x128xf32>
    %437 = arith.addf %430, %436 : vector<1x128xf32>
    %438 = vector.extract_strided_slice %345 {offsets = [2, 3, 0], sizes = [1, 1, 128], strides = [1, 1, 1]} : vector<5x8x128xf32> to vector<1x1x128xf32>
    %439 = vector.shape_cast %438 : vector<1x1x128xf32> to vector<1x128xf32>
    %440 = arith.truncf %439 : vector<1x128xf32> to vector<1x128xbf16>
    %c13 = arith.constant 13 : index
    %c0_147 = arith.constant 0 : index
    %c0_148 = arith.constant 0 : index
    %441 = vector.load %arg6[%c13, %c0_147, %c0_148] : memref<25x128x128xbf16, #tpu.memory_space<vmem>>, vector<1x128x128xbf16>
    %442 = vector.shape_cast %441 : vector<1x128x128xbf16> to vector<128x128xbf16>
    %cst_149 = arith.constant dense<0.000000e+00> : vector<1x128xf32>
    %443 = tpu.matmul %440, %442, %cst_149 {dimension_numbers = #tpu.dot_dimension_numbers<[1], [0], [0], [1], [0, 0, 1, 1], [], []>} : vector<1x128xbf16>, vector<128x128xbf16>, vector<1x128xf32> -> vector<1x128xf32>
    %444 = arith.addf %437, %443 : vector<1x128xf32>
    %445 = vector.extract_strided_slice %345 {offsets = [2, 4, 0], sizes = [1, 1, 128], strides = [1, 1, 1]} : vector<5x8x128xf32> to vector<1x1x128xf32>
    %446 = vector.shape_cast %445 : vector<1x1x128xf32> to vector<1x128xf32>
    %447 = arith.truncf %446 : vector<1x128xf32> to vector<1x128xbf16>
    %c14 = arith.constant 14 : index
    %c0_150 = arith.constant 0 : index
    %c0_151 = arith.constant 0 : index
    %448 = vector.load %arg6[%c14, %c0_150, %c0_151] : memref<25x128x128xbf16, #tpu.memory_space<vmem>>, vector<1x128x128xbf16>
    %449 = vector.shape_cast %448 : vector<1x128x128xbf16> to vector<128x128xbf16>
    %cst_152 = arith.constant dense<0.000000e+00> : vector<1x128xf32>
    %450 = tpu.matmul %447, %449, %cst_152 {dimension_numbers = #tpu.dot_dimension_numbers<[1], [0], [0], [1], [0, 0, 1, 1], [], []>} : vector<1x128xbf16>, vector<128x128xbf16>, vector<1x128xf32> -> vector<1x128xf32>
    %451 = arith.addf %444, %450 : vector<1x128xf32>
    %452 = vector.extract_strided_slice %345 {offsets = [3, 0, 0], sizes = [1, 1, 128], strides = [1, 1, 1]} : vector<5x8x128xf32> to vector<1x1x128xf32>
    %453 = vector.shape_cast %452 : vector<1x1x128xf32> to vector<1x128xf32>
    %454 = arith.truncf %453 : vector<1x128xf32> to vector<1x128xbf16>
    %c15 = arith.constant 15 : index
    %c0_153 = arith.constant 0 : index
    %c0_154 = arith.constant 0 : index
    %455 = vector.load %arg6[%c15, %c0_153, %c0_154] : memref<25x128x128xbf16, #tpu.memory_space<vmem>>, vector<1x128x128xbf16>
    %456 = vector.shape_cast %455 : vector<1x128x128xbf16> to vector<128x128xbf16>
    %cst_155 = arith.constant dense<0.000000e+00> : vector<1x128xf32>
    %457 = tpu.matmul %454, %456, %cst_155 {dimension_numbers = #tpu.dot_dimension_numbers<[1], [0], [0], [1], [0, 0, 1, 1], [], []>} : vector<1x128xbf16>, vector<128x128xbf16>, vector<1x128xf32> -> vector<1x128xf32>
    %458 = arith.addf %451, %457 : vector<1x128xf32>
    %459 = vector.extract_strided_slice %345 {offsets = [3, 1, 0], sizes = [1, 1, 128], strides = [1, 1, 1]} : vector<5x8x128xf32> to vector<1x1x128xf32>
    %460 = vector.shape_cast %459 : vector<1x1x128xf32> to vector<1x128xf32>
    %461 = arith.truncf %460 : vector<1x128xf32> to vector<1x128xbf16>
    %c16 = arith.constant 16 : index
    %c0_156 = arith.constant 0 : index
    %c0_157 = arith.constant 0 : index
    %462 = vector.load %arg6[%c16, %c0_156, %c0_157] : memref<25x128x128xbf16, #tpu.memory_space<vmem>>, vector<1x128x128xbf16>
    %463 = vector.shape_cast %462 : vector<1x128x128xbf16> to vector<128x128xbf16>
    %cst_158 = arith.constant dense<0.000000e+00> : vector<1x128xf32>
    %464 = tpu.matmul %461, %463, %cst_158 {dimension_numbers = #tpu.dot_dimension_numbers<[1], [0], [0], [1], [0, 0, 1, 1], [], []>} : vector<1x128xbf16>, vector<128x128xbf16>, vector<1x128xf32> -> vector<1x128xf32>
    %465 = arith.addf %458, %464 : vector<1x128xf32>
    %466 = vector.extract_strided_slice %345 {offsets = [3, 2, 0], sizes = [1, 1, 128], strides = [1, 1, 1]} : vector<5x8x128xf32> to vector<1x1x128xf32>
    %467 = vector.shape_cast %466 : vector<1x1x128xf32> to vector<1x128xf32>
    %468 = arith.truncf %467 : vector<1x128xf32> to vector<1x128xbf16>
    %c17 = arith.constant 17 : index
    %c0_159 = arith.constant 0 : index
    %c0_160 = arith.constant 0 : index
    %469 = vector.load %arg6[%c17, %c0_159, %c0_160] : memref<25x128x128xbf16, #tpu.memory_space<vmem>>, vector<1x128x128xbf16>
    %470 = vector.shape_cast %469 : vector<1x128x128xbf16> to vector<128x128xbf16>
    %cst_161 = arith.constant dense<0.000000e+00> : vector<1x128xf32>
    %471 = tpu.matmul %468, %470, %cst_161 {dimension_numbers = #tpu.dot_dimension_numbers<[1], [0], [0], [1], [0, 0, 1, 1], [], []>} : vector<1x128xbf16>, vector<128x128xbf16>, vector<1x128xf32> -> vector<1x128xf32>
    %472 = arith.addf %465, %471 : vector<1x128xf32>
    %473 = vector.extract_strided_slice %345 {offsets = [3, 3, 0], sizes = [1, 1, 128], strides = [1, 1, 1]} : vector<5x8x128xf32> to vector<1x1x128xf32>
    %474 = vector.shape_cast %473 : vector<1x1x128xf32> to vector<1x128xf32>
    %475 = arith.truncf %474 : vector<1x128xf32> to vector<1x128xbf16>
    %c18 = arith.constant 18 : index
    %c0_162 = arith.constant 0 : index
    %c0_163 = arith.constant 0 : index
    %476 = vector.load %arg6[%c18, %c0_162, %c0_163] : memref<25x128x128xbf16, #tpu.memory_space<vmem>>, vector<1x128x128xbf16>
    %477 = vector.shape_cast %476 : vector<1x128x128xbf16> to vector<128x128xbf16>
    %cst_164 = arith.constant dense<0.000000e+00> : vector<1x128xf32>
    %478 = tpu.matmul %475, %477, %cst_164 {dimension_numbers = #tpu.dot_dimension_numbers<[1], [0], [0], [1], [0, 0, 1, 1], [], []>} : vector<1x128xbf16>, vector<128x128xbf16>, vector<1x128xf32> -> vector<1x128xf32>
    %479 = arith.addf %472, %478 : vector<1x128xf32>
    %480 = vector.extract_strided_slice %345 {offsets = [3, 4, 0], sizes = [1, 1, 128], strides = [1, 1, 1]} : vector<5x8x128xf32> to vector<1x1x128xf32>
    %481 = vector.shape_cast %480 : vector<1x1x128xf32> to vector<1x128xf32>
    %482 = arith.truncf %481 : vector<1x128xf32> to vector<1x128xbf16>
    %c19 = arith.constant 19 : index
    %c0_165 = arith.constant 0 : index
    %c0_166 = arith.constant 0 : index
    %483 = vector.load %arg6[%c19, %c0_165, %c0_166] : memref<25x128x128xbf16, #tpu.memory_space<vmem>>, vector<1x128x128xbf16>
    %484 = vector.shape_cast %483 : vector<1x128x128xbf16> to vector<128x128xbf16>
    %cst_167 = arith.constant dense<0.000000e+00> : vector<1x128xf32>
    %485 = tpu.matmul %482, %484, %cst_167 {dimension_numbers = #tpu.dot_dimension_numbers<[1], [0], [0], [1], [0, 0, 1, 1], [], []>} : vector<1x128xbf16>, vector<128x128xbf16>, vector<1x128xf32> -> vector<1x128xf32>
    %486 = arith.addf %479, %485 : vector<1x128xf32>
    %487 = vector.extract_strided_slice %345 {offsets = [4, 0, 0], sizes = [1, 1, 128], strides = [1, 1, 1]} : vector<5x8x128xf32> to vector<1x1x128xf32>
    %488 = vector.shape_cast %487 : vector<1x1x128xf32> to vector<1x128xf32>
    %489 = arith.truncf %488 : vector<1x128xf32> to vector<1x128xbf16>
    %c20 = arith.constant 20 : index
    %c0_168 = arith.constant 0 : index
    %c0_169 = arith.constant 0 : index
    %490 = vector.load %arg6[%c20, %c0_168, %c0_169] : memref<25x128x128xbf16, #tpu.memory_space<vmem>>, vector<1x128x128xbf16>
    %491 = vector.shape_cast %490 : vector<1x128x128xbf16> to vector<128x128xbf16>
    %cst_170 = arith.constant dense<0.000000e+00> : vector<1x128xf32>
    %492 = tpu.matmul %489, %491, %cst_170 {dimension_numbers = #tpu.dot_dimension_numbers<[1], [0], [0], [1], [0, 0, 1, 1], [], []>} : vector<1x128xbf16>, vector<128x128xbf16>, vector<1x128xf32> -> vector<1x128xf32>
    %493 = arith.addf %486, %492 : vector<1x128xf32>
    %494 = vector.extract_strided_slice %345 {offsets = [4, 1, 0], sizes = [1, 1, 128], strides = [1, 1, 1]} : vector<5x8x128xf32> to vector<1x1x128xf32>
    %495 = vector.shape_cast %494 : vector<1x1x128xf32> to vector<1x128xf32>
    %496 = arith.truncf %495 : vector<1x128xf32> to vector<1x128xbf16>
    %c21 = arith.constant 21 : index
    %c0_171 = arith.constant 0 : index
    %c0_172 = arith.constant 0 : index
    %497 = vector.load %arg6[%c21, %c0_171, %c0_172] : memref<25x128x128xbf16, #tpu.memory_space<vmem>>, vector<1x128x128xbf16>
    %498 = vector.shape_cast %497 : vector<1x128x128xbf16> to vector<128x128xbf16>
    %cst_173 = arith.constant dense<0.000000e+00> : vector<1x128xf32>
    %499 = tpu.matmul %496, %498, %cst_173 {dimension_numbers = #tpu.dot_dimension_numbers<[1], [0], [0], [1], [0, 0, 1, 1], [], []>} : vector<1x128xbf16>, vector<128x128xbf16>, vector<1x128xf32> -> vector<1x128xf32>
    %500 = arith.addf %493, %499 : vector<1x128xf32>
    %501 = vector.extract_strided_slice %345 {offsets = [4, 2, 0], sizes = [1, 1, 128], strides = [1, 1, 1]} : vector<5x8x128xf32> to vector<1x1x128xf32>
    %502 = vector.shape_cast %501 : vector<1x1x128xf32> to vector<1x128xf32>
    %503 = arith.truncf %502 : vector<1x128xf32> to vector<1x128xbf16>
    %c22 = arith.constant 22 : index
    %c0_174 = arith.constant 0 : index
    %c0_175 = arith.constant 0 : index
    %504 = vector.load %arg6[%c22, %c0_174, %c0_175] : memref<25x128x128xbf16, #tpu.memory_space<vmem>>, vector<1x128x128xbf16>
    %505 = vector.shape_cast %504 : vector<1x128x128xbf16> to vector<128x128xbf16>
    %cst_176 = arith.constant dense<0.000000e+00> : vector<1x128xf32>
    %506 = tpu.matmul %503, %505, %cst_176 {dimension_numbers = #tpu.dot_dimension_numbers<[1], [0], [0], [1], [0, 0, 1, 1], [], []>} : vector<1x128xbf16>, vector<128x128xbf16>, vector<1x128xf32> -> vector<1x128xf32>
    %507 = arith.addf %500, %506 : vector<1x128xf32>
    %508 = vector.extract_strided_slice %345 {offsets = [4, 3, 0], sizes = [1, 1, 128], strides = [1, 1, 1]} : vector<5x8x128xf32> to vector<1x1x128xf32>
    %509 = vector.shape_cast %508 : vector<1x1x128xf32> to vector<1x128xf32>
    %510 = arith.truncf %509 : vector<1x128xf32> to vector<1x128xbf16>
    %c23 = arith.constant 23 : index
    %c0_177 = arith.constant 0 : index
    %c0_178 = arith.constant 0 : index
    %511 = vector.load %arg6[%c23, %c0_177, %c0_178] : memref<25x128x128xbf16, #tpu.memory_space<vmem>>, vector<1x128x128xbf16>
    %512 = vector.shape_cast %511 : vector<1x128x128xbf16> to vector<128x128xbf16>
    %cst_179 = arith.constant dense<0.000000e+00> : vector<1x128xf32>
    %513 = tpu.matmul %510, %512, %cst_179 {dimension_numbers = #tpu.dot_dimension_numbers<[1], [0], [0], [1], [0, 0, 1, 1], [], []>} : vector<1x128xbf16>, vector<128x128xbf16>, vector<1x128xf32> -> vector<1x128xf32>
    %514 = arith.addf %507, %513 : vector<1x128xf32>
    %515 = vector.extract_strided_slice %345 {offsets = [4, 4, 0], sizes = [1, 1, 128], strides = [1, 1, 1]} : vector<5x8x128xf32> to vector<1x1x128xf32>
    %516 = vector.shape_cast %515 : vector<1x1x128xf32> to vector<1x128xf32>
    %517 = arith.truncf %516 : vector<1x128xf32> to vector<1x128xbf16>
    %c24 = arith.constant 24 : index
    %c0_180 = arith.constant 0 : index
    %c0_181 = arith.constant 0 : index
    %518 = vector.load %arg6[%c24, %c0_180, %c0_181] : memref<25x128x128xbf16, #tpu.memory_space<vmem>>, vector<1x128x128xbf16>
    %519 = vector.shape_cast %518 : vector<1x128x128xbf16> to vector<128x128xbf16>
    %cst_182 = arith.constant dense<0.000000e+00> : vector<1x128xf32>
    %520 = tpu.matmul %517, %519, %cst_182 {dimension_numbers = #tpu.dot_dimension_numbers<[1], [0], [0], [1], [0, 0, 1, 1], [], []>} : vector<1x128xbf16>, vector<128x128xbf16>, vector<1x128xf32> -> vector<1x128xf32>
    %521 = arith.addf %514, %520 : vector<1x128xf32>
    %c0_183 = arith.constant 0 : index
    %c0_184 = arith.constant 0 : index
    %522 = vector.load %arg7[%c0_183, %c0_184] : memref<1x128xf32, #tpu.memory_space<vmem>>, vector<1x128xf32>
    %523 = arith.addf %521, %522 : vector<1x128xf32>
    %cst_185 = arith.constant 0.000000e+00 : f32
    %524 = vector.broadcast %cst_185 : f32 to vector<1x128xf32>
    %525 = arith.maximumf %523, %524 : vector<1x128xf32>
    %526 = arith.truncf %525 : vector<1x128xf32> to vector<1x128xbf16>
    %c0_186 = arith.constant 0 : index
    %c0_187 = arith.constant 0 : index
    %527 = vector.load %arg8[%c0_186, %c0_187] : memref<128x128xbf16, #tpu.memory_space<vmem>>, vector<128x128xbf16>
    %cst_188 = arith.constant dense<0.000000e+00> : vector<1x128xf32>
    %528 = tpu.matmul %526, %527, %cst_188 {dimension_numbers = #tpu.dot_dimension_numbers<[1], [0], [0], [1], [0, 0, 1, 1], [], []>} : vector<1x128xbf16>, vector<128x128xbf16>, vector<1x128xf32> -> vector<1x128xf32>
    %c0_189 = arith.constant 0 : index
    %c0_190 = arith.constant 0 : index
    %529 = vector.load %arg9[%c0_189, %c0_190] : memref<1x128xf32, #tpu.memory_space<vmem>>, vector<1x128xf32>
    %530 = arith.addf %528, %529 : vector<1x128xf32>
    %531 = vector.shape_cast %530 : vector<1x128xf32> to vector<1x1x128xf32>
    %c0_191 = arith.constant 0 : index
    %c0_192 = arith.constant 0 : index
    %c0_193 = arith.constant 0 : index
    %532 = vector.load %arg10[%c0_191, %c0_192, %c0_193] : memref<1x1x128xf32, #tpu.memory_space<vmem>>, vector<1x1x128xf32>
    tpu.vector_store %arg10[%c0_191, %c0_192, %c0_193], %531 {strides = array<i32>} : memref<1x1x128xf32, #tpu.memory_space<vmem>>, vector<1x1x128xf32>,
    return
  }
  func.func @transform_0(%arg0: i32) -> (i32, i32, i32, i32) {
    %c0_i32 = arith.constant 0 : i32
    %c0_i32_0 = arith.constant 0 : i32
    %c0_i32_1 = arith.constant 0 : i32
    %c0_i32_2 = arith.constant 0 : i32
    return %arg0, %c0_i32, %c0_i32_0, %c0_i32_1 : i32, i32, i32, i32
  }
  func.func @transform_1(%arg0: i32) -> (i32, i32) {
    %c0_i32 = arith.constant 0 : i32
    %c0_i32_0 = arith.constant 0 : i32
    %c0_i32_1 = arith.constant 0 : i32
    return %c0_i32, %c0_i32_0 : i32, i32
  }
  func.func @transform_2(%arg0: i32) -> (i32, i32) {
    %c0_i32 = arith.constant 0 : i32
    %c0_i32_0 = arith.constant 0 : i32
    %c0_i32_1 = arith.constant 0 : i32
    return %c0_i32, %c0_i32_0 : i32, i32
  }
  func.func @transform_3(%arg0: i32) -> (i32, i32, i32) {
    %c0_i32 = arith.constant 0 : i32
    %c0_i32_0 = arith.constant 0 : i32
    %c0_i32_1 = arith.constant 0 : i32
    %c0_i32_2 = arith.constant 0 : i32
    return %c0_i32, %c0_i32_0, %c0_i32_1 : i32, i32, i32
  }
  func.func @transform_4(%arg0: i32) -> (i32, i32) {
    %c0_i32 = arith.constant 0 : i32
    %c0_i32_0 = arith.constant 0 : i32
    %c0_i32_1 = arith.constant 0 : i32
    return %c0_i32, %c0_i32_0 : i32, i32
  }
  func.func @transform_5(%arg0: i32) -> (i32, i32, i32) {
    %c0_i32 = arith.constant 0 : i32
    %c0_i32_0 = arith.constant 0 : i32
    %c0_i32_1 = arith.constant 0 : i32
    %c0_i32_2 = arith.constant 0 : i32
    return %c0_i32, %c0_i32_0, %c0_i32_1 : i32, i32, i32
  }
  func.func @transform_6(%arg0: i32) -> (i32, i32) {
    %c0_i32 = arith.constant 0 : i32
    %c0_i32_0 = arith.constant 0 : i32
    %c0_i32_1 = arith.constant 0 : i32
    return %c0_i32, %c0_i32_0 : i32, i32
  }
  func.func @transform_7(%arg0: i32) -> (i32, i32) {
    %c0_i32 = arith.constant 0 : i32
    %c0_i32_0 = arith.constant 0 : i32
    %c0_i32_1 = arith.constant 0 : i32
    return %c0_i32, %c0_i32_0 : i32, i32
  }
  func.func @transform_8(%arg0: i32) -> (i32, i32) {
    %c0_i32 = arith.constant 0 : i32
    %c0_i32_0 = arith.constant 0 : i32
    %c0_i32_1 = arith.constant 0 : i32
    return %c0_i32, %c0_i32_0 : i32, i32
  }
  func.func @transform_9(%arg0: i32) -> (i32, i32, i32) {
    %c0_i32 = arith.constant 0 : i32
    %c0_i32_0 = arith.constant 0 : i32
    %c0_i32_1 = arith.constant 0 : i32
    return %arg0, %c0_i32, %c0_i32_0 : i32, i32, i32
  }
}

</mosaic_0001>

<bundles_post_ra>
// kernel: my_cnn_forward.1
= control target key start
LH: loop header
LB: loop body
LE: loop exit
PB: predicated region body
PF: predicated region fallthrough
CT: control target
= control target key end

     0   :  { %14 = vsyncpa [#allocation3], 0  ;;  %s22811_s0 = inlined_call_operand.vmem [shape: f32[2,28,40,1], index: 0, kind: input, shape index: {}]   ;;  %s22812_s1 = inlined_call_operand.vmem [shape: f32[9,128], index: 1, kind: input, shape index: {}]   ;;  %s22813_s2 = inlined_call_operand.vmem [shape: f32[1,128], index: 2, kind: input, shape index: {}]   ;;  %s22814_s3 = inlined_call_operand.vmem [shape: bf16[9,128,128], index: 3, kind: input, shape index: {}]   ;;  %s22815_s4 = inlined_call_operand.vmem [shape: f32[1,128], index: 4, kind: input, shape index: {}]   ;;  %s22816_s5 = inlined_call_operand.vmem [shape: bf16[25,128,128], index: 5, kind: input, shape index: {}]   ;;  %s22817_s6 = inlined_call_operand.vmem [shape: f32[1,128], index: 6, kind: input, shape index: {}]   ;;  %s22818_s7 = inlined_call_operand.vmem [shape: bf16[128,128], index: 7, kind: input, shape index: {}]   ;;  %s22819_s8 = inlined_call_operand.vmem [shape: f32[1,128], index: 8, kind: input, shape index: {}]   ;;  %s22820_s9 = inlined_call_operand.hbm [shape: f32[2,1,128], index: 9, kind: output, shape index: {}]  }
   0x1   :  { %16 = vsyncpa [#allocation3 + $0x1], 0  ;;  %s13293_s30 = smov 0   ;;  %s13295_s10 = smov 0  }
   0x2   :  { %s13297_s11 = smov 0   ;;  %s13299_s12 = smov 0  }
   0x3 LB: > { %s13314_s13 = sadd.s32 4294967295, %s13239_s12   ;;  %s11061_s14 = sadd.s32 4294967294, %s13239_s12   ;;  %s13239_s12 = sphi %s13299_s12, %s24587_s12   ;;  %s13235_s11 = sphi %s13297_s11, %s24586_s11   ;;  %s13231_s10 = sphi %s13295_s10, %s24585_s10   ;;  %s13227_s30 = sphi %s13293_s30, %s24584_s30  }
   0x4   : > { %s13318_s15 = sadd.s32 1, %s13239_s12   ;;  %s223_s16 = sadd.s32 1, %s13235_s11 }
   0x5   : > { %s220_s17 = ssub.s32 %s13239_s12, %s13318_s15  ;;  %p233_p0 = scmp.ne.s32.totalorder %s13235_s11, %s13231_s10 }
   0x6   : > { %p221_p1 = scmp.eq.s32.totalorder %s220_s17, 0  ;;  %p234_p2 = scmp.eq.s32.totalorder %s13314_s13, 1 }
   0x7   : > { %p239_p3 = scmp.ne.s32.totalorder %s13231_s10, %s13227_s30  ;;  %p240_p4 = scmp.eq.s32.totalorder %s11061_s14, 1 }
   0x8   : > { %s13329_s18 = scalar_select %p221_p1, %s13235_s11, %s223_s16  }
   0x9   : > { %p13331_p5 = por %p234_p2, %p233_p0  ;;  %p13335_p6 = por %p240_p4, %p239_p3 }
   0xa   : > { %p11064_p7 = scmp.ge.s32.totalorder %s13239_s12, 1  ;;  %p290_p8 = scmp.lt.s32.totalorder %s13239_s12, 3 }
   0xc   : > { %p291_p9 = pnand %p11064_p7, %p290_p8 }
   0xe   : > { %294 = sbr.rel (%p291_p9) target bundleno = 2316 (0x90c), region = 56 }
  0x13   : > { %p325_p10 = scmp.lt.s32.totalorder %s13314_s13, 1  ;;  %v13241_v0 = vmov 0   ;;  %v13396_v50 = vld [vmem:[%s22812_s1 + $0x1] ss:$0 sm:$0xff]  ;;  %v13404_v55 = vld [vmem:[%s22812_s1 + $0x2] ss:$0 sm:$0xff]  ;;  %s11002_s27 = scalar_lea.hbm %s22820_s9, %s13314_s13 }
  0x14   : > { %13096 = vset.pattern.permute.xlu2 %v13241_v0  ;;  %13095 = vset.pattern.permute.xlu1 %v13241_v0  ;;  %v13413_v58 = vld [vmem:[%s22812_s1 + $0x4] ss:$0 sm:$0xff]  ;;  %v13422_v61 = vld [vmem:[%s22812_s1 + $0x5] ss:$0 sm:$0xff]  ;;  %vm1592_vm0 = vcmask 1046528   ;;  %vm2297_vm1 = vcmask 1045504  }
  0x15   : > { %13094 = vset.pattern.permute.xlu0 %v13241_v0  ;;  %s326_s21 = scalar_select %p325_p10, %s13314_s13, 1  ;;  %vm6281_vm2 = vcmask 261120   ;;  %vm8658_vm12 = vcmask 130048  }
  0x16   : > { %s323_s24 = sand.u32 1, %s13231_s10   ;;  %s11006_s17 = sshll.u32 %s11002_s27, 4  ;;  %s11007_s17 = int_to_ptr.hbm [resolvable:$true] %s11006_s17 }
  0x17   : > { %s13052_s22 = smul.u32 1120, %s326_s21  ;;  %s324_s14 = scalar_lea.vmem [#allocation2], %s323_s24 }
  0x18   : > { %s11004_s16 = sshll.u32 %s324_s14, 4  ;;  %s10994_s21 = scalar_lea.sflag [#allocation3], %s323_s24  ;;  %s11005_s16 = int_to_ptr.vmem [resolvable:$true] %s11004_s16 }
  0x19   : > { %s13346_s25 = scalar_lea.vmem %s22811_s0, %s13052_s22  ;;  %s13191_s22 = sshra.s32 %s11007_s17, 4  ;;  %s13192_s22 = int_to_ptr.hbm [resolvable:$true] %s13191_s22 }
  0x1a   : > { %v334_v1 = vld [vmem:[%s13346_s25 + $0x20] sm:$0xff]  ;;  %v333_v2 = vld [vmem:[%s13346_s25 + $0x18] sm:$0xff]  ;;  %v332_v3 = vld [vmem:[%s13346_s25 + $0x10] sm:$0xff]  ;;  %s13193_s23 = scalar_lea.hbm %s13192_s22, 1  ;;  %p13198_p0 = scmp.lt.s32.totalorder %s13192_s22, %s22820_s9 }
  0x1b   : > { %1203 = vperm.xlu1 %13095, %v334_v1   ;;  %488 = vperm.xlu0 %13094, %v333_v2   ;;  %v339_v4 = vld [vmem:[%s13346_s25 + $0x48] sm:$0xff]  ;;  %v338_v5 = vld [vmem:[%s13346_s25 + $0x40] sm:$0xff]  ;;  %v337_v6 = vld [vmem:[%s13346_s25 + $0x38] sm:$0xff]  ;;  %p13194_p11 = scmp.ne.s32.totalorder %s13192_s22, %s13193_s23 }
  0x1c   : > { %483 = vperm.xlu2 %13096, %v332_v3   ;;  %v336_v7 = vld [vmem:[%s13346_s25 + $0x30] sm:$0xff]  ;;  %v331_v8 = vld [vmem:[%s13346_s25 + $0x8] sm:$0xff]  ;;  %v330_v9 = vld [vmem:[%s13346_s25] sm:$0xff] }
  0x1d   : > { %v343_v10 = vld [vmem:[%s13346_s25 + $0x68] sm:$0xff]  ;;  %v344_v12 = vld [vmem:[%s13346_s25 + $0x70] sm:$0xff]  ;;  %v341_v13 = vld [vmem:[%s13346_s25 + $0x58] sm:$0xff]  ;;  %p13195_p12 = pnand %p13194_p11, %p13331_p5 }
  0x1e   : > { %v335_v11 = vld [vmem:[%s13346_s25 + $0x28] sm:$0xff]  ;;  %v342_v14 = vld [vmem:[%s13346_s25 + $0x60] sm:$0xff]  ;;  %v348_v15 = vld [vmem:[%s13346_s25 + $0x90] sm:$0xff] }
  0x1f   : > { %v340_v16 = vld [vmem:[%s13346_s25 + $0x50] sm:$0xff]  ;;  %v349_v17 = vld [vmem:[%s13346_s25 + $0x98] sm:$0xff]  ;;  %v347_v18 = vld [vmem:[%s13346_s25 + $0x88] sm:$0xff]  ;;  %p13196_p13 = pneg %p13195_p12 }
  0x20   : > { %v345_v19 = vld [vmem:[%s13346_s25 + $0x78] sm:$0xff]  ;;  %v346_v20 = vld [vmem:[%s13346_s25 + $0x80] sm:$0xff]  ;;  %v352_v22 = vld [vmem:[%s13346_s25 + $0xb0] sm:$0xff] }
  0x21   : > { %v353_v21 = vld [vmem:[%s13346_s25 + $0xb8] sm:$0xff]  ;;  %v354_v23 = vld [vmem:[%s13346_s25 + $0xc0] sm:$0xff]  ;;  %v351_v24 = vld [vmem:[%s13346_s25 + $0xa8] sm:$0xff] }
  0x22   : > { %v358_v25 = vld [vmem:[%s13346_s25 + $0xe0] sm:$0xff]  ;;  %v359_v27 = vld [vmem:[%s13346_s25 + $0xe8] sm:$0xff]  ;;  %v356_v28 = vld [vmem:[%s13346_s25 + $0xd0] sm:$0xff] }
  0x23   : > { %1208 = vperm.xlu1 %13095, %v339_v4   ;;  %508 = vperm.xlu0 %13094, %v338_v5   ;;  %v350_v26 = vld [vmem:[%s13346_s25 + $0xa0] sm:$0xff]  ;;  %v357_v29 = vld [vmem:[%s13346_s25 + $0xd8] sm:$0xff]  ;;  %v355_v30 = vld [vmem:[%s13346_s25 + $0xc8] sm:$0xff] }
  0x24   : > { %503 = vperm.xlu2 %13096, %v337_v6   ;;  %v368_v31 = vld [vmem:[%s13346_s25 + $0x130] sm:$0xff]  ;;  %v363_v32 = vld [vmem:[%s13346_s25 + $0x108] sm:$0xff]  ;;  %v362_v34 = vld [vmem:[%s13346_s25 + $0x100] sm:$0xff] }
  0x25   : > { %v364_v33 = vld [vmem:[%s13346_s25 + $0x110] sm:$0xff]  ;;  %v369_v35 = vld [vmem:[%s13346_s25 + $0x138] sm:$0xff]  ;;  %v367_v36 = vld [vmem:[%s13346_s25 + $0x128] sm:$0xff] }
  0x26   : > { %v366_v37 = vld [vmem:[%s13346_s25 + $0x120] sm:$0xff]  ;;  %v361_v38 = vld [vmem:[%s13346_s25 + $0xf8] sm:$0xff]  ;;  %v360_v39 = vld [vmem:[%s13346_s25 + $0xf0] sm:$0xff] }
  0x27   : > { %v373_v41 = vld [vmem:[%s13346_s25 + $0x158] sm:$0xff]  ;;  %v374_v43 = vld [vmem:[%s13346_s25 + $0x160] sm:$0xff]  ;;  %v371_v45 = vld [vmem:[%s13346_s25 + $0x148] sm:$0xff] }
  0x28   : > { %v365_v42 = vld [vmem:[%s13346_s25 + $0x118] sm:$0xff]  ;;  %v372_v46 = vld [vmem:[%s13346_s25 + $0x150] sm:$0xff]  ;;  %v370_v47 = vld [vmem:[%s13346_s25 + $0x140] sm:$0xff] }
  0x29   : > { %v379_v51 = vld [vmem:[%s13346_s25 + $0x188] sm:$0xff]  ;;  %v378_v53 = vld [vmem:[%s13346_s25 + $0x180] sm:$0xff]  ;;  %v377_v54 = vld [vmem:[%s13346_s25 + $0x178] sm:$0xff] }
  0x2a   : > { %v13432_v2 = vld [vmem:[%s22812_s1] ss:$0 sm:$0xff]  ;;  %v13437_v3 = vld [vmem:[%s22812_s1 + $0x3] ss:$0 sm:$0xff]  ;;  %v375_v5 = vld [vmem:[%s13346_s25 + $0x168] sm:$0xff] }
  0x2b   : > { %498 = vperm.xlu1 %13095, %v336_v7   ;;  %478 = vperm.xlu0 %13094, %v331_v8  }
  0x2c   : > { %473 = vperm.xlu2 %13096, %v330_v9   ;;  %v376_v9 = vld [vmem:[%s13346_s25 + $0x170] sm:$0xff] }
  0x33   : > { %528 = vperm.xlu1 %13095, %v343_v10   ;;  %493 = vperm.xlu0 %13094, %v335_v11  }
  0x34   : > { %1213 = vperm.xlu2 %13096, %v344_v12   ;;  %v383_v12 = vld [vmem:[%s13346_s25 + $0x1a8] sm:$0xff] }
  0x3b   : > { %518 = vperm.xlu1 %13095, %v341_v13   ;;  %523 = vperm.xlu0 %13094, %v342_v14  }
  0x3c   : > { %548 = vperm.xlu2 %13096, %v348_v15  }
  0x43   : > { %513 = vperm.xlu1 %13095, %v340_v16   ;;  %1218 = vperm.xlu0 %13094, %v349_v17  }
  0x44   : > { %543 = vperm.xlu2 %13096, %v347_v18  }
  0x4b   : > { %533 = vperm.xlu1 %13095, %v345_v19   ;;  %538 = vperm.xlu0 %13094, %v346_v20  }
  0x4c   : > { %568 = vperm.xlu2 %13096, %v353_v21  }
  0x53   : > { %563 = vperm.xlu1 %13095, %v352_v22   ;;  %1223 = vperm.xlu0 %13094, %v354_v23  }
  0x54   : > { %558 = vperm.xlu2 %13096, %v351_v24  }
  0x5b   : > { %588 = vperm.xlu1 %13095, %v358_v25   ;;  %553 = vperm.xlu0 %13094, %v350_v26   ;;  %v13477_v26 = vld [vmem:[%s22812_s1 + $0x7] ss:$0 sm:$0xff] }
  0x5c   : > { %1228 = vperm.xlu2 %13096, %v359_v27  }
  0x63   : > { %578 = vperm.xlu1 %13095, %v356_v28   ;;  %583 = vperm.xlu0 %13094, %v357_v29  }
  0x64   : > { %573 = vperm.xlu2 %13096, %v355_v30  }
  0x6b   : > { %628 = vperm.xlu1 %13095, %v368_v31   ;;  %608 = vperm.xlu0 %13094, %v363_v32   ;;  %v13488_v31 = vld [vmem:[%s22812_s1 + $0x8] ss:$0 sm:$0xff] }
  0x6c   : > { %1233 = vperm.xlu2 %13096, %v364_v33  }
  0x73   : > { %603 = vperm.xlu1 %13095, %v362_v34   ;;  %1238 = vperm.xlu0 %13094, %v369_v35  }
  0x74   : > { %623 = vperm.xlu2 %13096, %v367_v36  }
  0x76   : > { %v484_v40 = vpop.permute.xlu2 %483 }
  0x77   : > { %v13407_v56 = vmul.f32 %v13396_v50, %v484_v40  ;;  %v13426_v63 = vmul.f32 %v13404_v55, %v484_v40  ;;  %v994_v10 = vmul.f32 %v13432_v2, %v484_v40 }
  0x79   : > { %v1596_v62 = vrot.slane %v13407_v56, 1  ;;  %v22821_v13 = vrot.slane %v13426_v63, 2 }
  0x7b   : > { %618 = vperm.xlu1 %13095, %v366_v37   ;;  %598 = vperm.xlu0 %13094, %v361_v38  }
  0x7c   : > { %593 = vperm.xlu2 %13096, %v360_v39  }
  0x7e   : > { %v504_v44 = vpop.permute.xlu2 %503 }
  0x7f   : > { %v13440_v4 = vmul.f32 %v13396_v50, %v504_v44  ;;  %v13444_v6 = vmul.f32 %v13404_v55, %v504_v44  ;;  %v13447_v7 = vmul.f32 %v13413_v58, %v504_v44  ;;  %v13453_v11 = vmul.f32 %v13422_v61, %v504_v44 }
  0x80   : > { %v13464_v18 = vmul.f32 %v13432_v2, %v504_v44  ;;  %v2764_v20 = vmul.f32 %v13437_v3, %v504_v44 }
  0x81   : > { %v1605_v19 = vrot.slane %v13440_v4, 1  ;;  %v22823_v22 = vrot.slane %v13444_v6, 2  ;;  %v22822_v23 = vrot.slane %v13447_v7, 1 }
  0x83   : > { %648 = vperm.xlu1 %13095, %v373_v41   ;;  %613 = vperm.xlu0 %13094, %v365_v42   ;;  %v384_v42 = vld [vmem:[%s13346_s25 + $0x1b0] sm:$0xff] }
  0x84   : > { %1243 = vperm.xlu2 %13096, %v374_v43  }
  0x86   : > { %v474_v52 = vpop.permute.xlu2 %473 }
  0x87   : > { %v13458_v14 = vmul.f32 %v13396_v50, %v474_v52  ;;  %v13469_v21 = vmul.f32 %v13404_v55, %v474_v52  ;;  %v13483_v29 = vmul.f32 %v13432_v2, %v474_v52 }
  0x89   : > { %v1593_v33 = vrot.slane %v13458_v14, 1 }
  0x8b   : > { %638 = vperm.xlu1 %13095, %v371_v45   ;;  %643 = vperm.xlu0 %13094, %v372_v46  }
  0x8c   : > { %633 = vperm.xlu2 %13096, %v370_v47   ;;  %v388_v47 = vld [vmem:[%s13346_s25 + $0x1d0] sm:$0xff] }
  0x8d   : > { %v1204_v48 = vpop.permute.xlu1 %1203  ;;  %v489_v49 = vpop.permute.xlu0 %488 }
  0x8e   : > { %v1335_v57 = vmul.f32 %v13396_v50, %v489_v49  ;;  %v1336_v0 = vmul.f32 %v13396_v50, %v1204_v48  ;;  %v2040_v8 = vmul.f32 %v13404_v55, %v489_v49  ;;  %v1214_v17 = vpop.permute.xlu2 %1213  ;;  %v2041_v24 = vmul.f32 %v13404_v55, %v1204_v48 }
  0x8f   : > { %v13491_v32 = vmul.f32 %v13396_v50, %v1214_v17  ;;  %v995_v39 = vmul.f32 %v13432_v2, %v489_v49  ;;  %v13504_v40 = vmul.f32 %v13404_v55, %v1214_v17  ;;  %v13507_v41 = vmul.f32 %v13413_v58, %v1214_v17 }
  0x90   : > { %v1598_v1 = vrot.slane %v1335_v57, 1  ;;  %v1600_v15 = vrot.slane %v1336_v0, 1  ;;  %v2303_v25 = vrot.slane %v2040_v8, 2  ;;  %v2305_v43 = vrot.slane %v2041_v24, 2 }
  0x91   : > { %23387 = vst [vmem:[#allocation5_spill] sm:$0xff] %v13491_v32  ;;  %v13514_v45 = vmul.f32 %v13422_v61, %v1214_v17  ;;  %v13517_v46 = vmul.f32 %v13477_v26, %v1214_v17  ;;  %v13522_v52 = vmul.f32 %v13488_v31, %v1214_v17 }
  0x92   : > { %v1599_v16 = vsel %vm1592_vm0, %v1596_v62, %v1598_v1  ;;  %v1601_v34 = vsel %vm1592_vm0, %v1598_v1, %v1600_v15  ;;  %23388 = vst [vmem:[#allocation6_spill] sm:$0xff] %v13504_v40  ;;  %v2304_v44 = vsel %vm2297_vm1, %v22821_v13, %v2303_v25  ;;  %v3253_v15 = vrot.slane %v13507_v41, 1  ;;  %v385_v41 = vld [vmem:[%s13346_s25 + $0x1b8] sm:$0xff] }
  0x93   : > { %1248 = vperm.xlu1 %13095, %v379_v51   ;;  %668 = vperm.xlu0 %13094, %v378_v53   ;;  %v1933_v30 = vadd.f32 %v1599_v16, %v994_v10  ;;  %v1934_v48 = vadd.f32 %v1601_v34, %v995_v39  ;;  %v389_v53 = vld [vmem:[%s13346_s25 + $0x1d8] sm:$0xff]  ;;  %v23401_v32 = vrot.slane %v13517_v46, 1 }
  0x94   : > { %663 = vperm.xlu2 %13096, %v377_v54   ;;  %v381_v51 = vld [vmem:[%s13346_s25 + $0x198] sm:$0xff] }
  0x95   : > { %v13415_v59 = vpop.permute.xlu1 %1208  ;;  %v13417_v60 = vpop.permute.xlu0 %508  ;;  %v2638_v49 = vadd.f32 %v2304_v44, %v1933_v30 }
  0x96   : > { %v1341_v35 = vmul.f32 %v13396_v50, %v13415_v59  ;;  %v1340_v36 = vmul.f32 %v13396_v50, %v13417_v60  ;;  %v2046_v57 = vmul.f32 %v13404_v55, %v13415_v59  ;;  %v2045_v1 = vmul.f32 %v13404_v55, %v13417_v60  ;;  %v13542_v24 = vpop.permute.xlu2 %548 }
  0x97   : > { %v2981_v8 = vmul.f32 %v13413_v58, %v13415_v59  ;;  %v2980_v10 = vmul.f32 %v13413_v58, %v13417_v60  ;;  %23389 = vst [vmem:[#allocation7_spill] sm:$0xff] %v13542_v24  ;;  %v13546_v34 = vadd.f32 %v2764_v20, %v2638_v49  ;;  %v999_v20 = vmul.f32 %v13432_v2, %v13417_v60  ;;  %v387_v49 = vld [vmem:[%s13346_s25 + $0x1c8] sm:$0xff] }
  0x98   : > { %v1609_v54 = vrot.slane %v1341_v35, 1  ;;  %v1607_v0 = vrot.slane %v1340_v36, 1  ;;  %v2314_v36 = vrot.slane %v2046_v57, 2  ;;  %v13674_v56 = vmul.f32 %v13404_v55, %v13542_v24 }
  0x99   : > { %v3244_v44 = vrot.slane %v2981_v8, 1 }
  0x9a   : > { %v1608_v39 = vsel %vm1592_vm0, %v1605_v19, %v1607_v0 }
  0x9b   : > { %653 = vperm.xlu1 %13095, %v375_v5   ;;  %658 = vperm.xlu0 %13094, %v376_v9   ;;  %v13534_v9 = vmul.f32 %v13422_v61, %v13415_v59  ;;  %v1937_v8 = vadd.f32 %v1608_v39, %v13464_v18 }
  0x9c   : > { %688 = vperm.xlu2 %13096, %v383_v12   ;;  %v2306_v12 = vsel %vm2297_vm1, %v2303_v25, %v2305_v43  ;;  %v2765_v25 = vmul.f32 %v13437_v3, %v13417_v60  ;;  %v2312_v43 = vrot.slane %v2045_v1, 2  ;;  %v13576_v1 = vmul.f32 %v13396_v50, %v13542_v24 }
  0x9d   : > { %v13479_v27 = vpop.permute.xlu0 %478  ;;  %v13499_v37 = vpop.permute.xlu1 %498  ;;  %v2639_v59 = vadd.f32 %v2306_v12, %v1934_v48  ;;  %v3242_v48 = vrot.slane %v2980_v10, 1 }
  0x9e   : > { %v13565_v57 = vmul.f32 %v13396_v50, %v13499_v37  ;;  %v1333_v5 = vmul.f32 %v13396_v50, %v13479_v27  ;;  %v2313_v35 = vsel %vm2297_vm1, %v22823_v22, %v2312_v43  ;;  %v2315_v17 = vsel %vm2297_vm1, %v2312_v43, %v2314_v36  ;;  %v386_v22 = vld [vmem:[%s13346_s25 + $0x1c0] sm:$0xff] }
  0x9f   : > { %v13588_v16 = vmul.f32 %v13404_v55, %v13499_v37  ;;  %v13597_v18 = vsel %vm1592_vm0, %v22822_v23, %v3242_v48  ;;  %v3245_v39 = vsel %vm1592_vm0, %v3242_v48, %v3244_v44  ;;  %v13639_v48 = vmul.f32 %v13437_v3, %v13499_v37 }
  0xa0   : > { %v22827_v43 = vrot.slane %v13565_v57, 1  ;;  %v1594_v38 = vrot.slane %v1333_v5, 1 }
  0xa2   : > { %v1606_v28 = vsel %vm1592_vm0, %v22827_v43, %v1605_v19  ;;  %v1595_v4 = vsel %vm1592_vm0, %v1593_v33, %v1594_v38  ;;  %v1597_v19 = vsel %vm1592_vm0, %v1594_v38, %v1596_v62 }
  0xa3   : > { %1253 = vperm.xlu1 %13095, %v384_v42   ;;  %708 = vperm.xlu0 %13094, %v388_v47   ;;  %v1610_v42 = vsel %vm1592_vm0, %v1607_v0, %v1609_v54  ;;  %v382_v54 = vld [vmem:[%s13346_s25 + $0x1a0] sm:$0xff]  ;;  %v13572_v0 = vmul.f32 %v13432_v2, %v13542_v24  ;;  %v13592_v47 = vmul.f32 %v13413_v58, %v13499_v37 }
  0xa4   : > { %1258 = vperm.xlu2 %13096, %v389_v53   ;;  %v13561_v53 = vmul.f32 %v13422_v61, %v13417_v60  ;;  %v1938_v10 = vadd.f32 %v1610_v42, %v999_v20  ;;  %v2869_v60 = vadd.f32 %v2765_v25, %v2639_v59  ;;  %v13601_v59 = vmul.f32 %v13422_v61, %v13499_v37  ;;  %v13621_v42 = vpop.permute.xlu2 %543 }
  0xa5   : > { %v13544_v30 = vpop.permute.xlu0 %493  ;;  %v13567_v12 = vpop.permute.xlu1 %528  ;;  %v2038_v20 = vmul.f32 %v13404_v55, %v13479_v27  ;;  %v23394_v14 = vrot.slane %v13592_v47, 1 }
  0xa6   : > { %v2769_v25 = vmul.f32 %v13437_v3, %v13567_v12  ;;  %v13607_v36 = vmul.f32 %v13413_v58, %v13567_v12  ;;  %v2643_v13 = vadd.f32 %v2315_v17, %v1938_v10  ;;  %v997_v17 = vmul.f32 %v13432_v2, %v13499_v37 }
  0xa7   : > { %v22824_v5 = vrot.slane %v13601_v59, 2  ;;  %v2299_v44 = vrot.slane %v2038_v20, 2  ;;  %v13657_v37 = vmul.f32 %v13396_v50, %v13621_v42  ;;  %v2977_v46 = vmul.f32 %v13413_v58, %v13544_v30 }
  0xa8   : > { %v22825_v23 = vrot.slane %v13607_v36, 1  ;;  %v2873_v10 = vadd.f32 %v2769_v25, %v2643_v13  ;;  %v993_v13 = vmul.f32 %v13432_v2, %v13479_v27  ;;  %v23391_v25 = vrot.slane %v13444_v6, 2 }
  0xa9   : > { %23390 = vst [vmem:[#allocation8_spill] sm:$0xff] %v13657_v37  ;;  %v23393_v27 = vrot.slane %v13447_v7, 1  ;;  %v1936_v38 = vadd.f32 %v1606_v28, %v997_v17  ;;  %v23395_v6 = vrot.slane %v13453_v11, 2  ;;  %v1931_v28 = vadd.f32 %v1595_v4, %v13483_v29 }
  0xaa   : > { %v1932_v17 = vadd.f32 %v1597_v19, %v993_v13  ;;  %v13725_v4 = vmul.f32 %v13488_v31, %v13567_v12  ;;  %v1337_v19 = vmul.f32 %v13396_v50, %v13544_v30  ;;  %v996_v37 = vmul.f32 %v13432_v2, %v13544_v30 }
  0xab   : > { %703 = vperm.xlu1 %13095, %v387_v49   ;;  %683 = vperm.xlu0 %13094, %v382_v54   ;;  %v13616_v54 = vadd.f32 %v2313_v35, %v1937_v8  ;;  %v3578_v35 = vadd.f32 %v3245_v39, %v2869_v60  ;;  %v380_v8 = vld [vmem:[%s13346_s25 + $0x190] sm:$0xff]  ;;  %v3254_v60 = vsel %vm1592_vm0, %v22825_v23, %v3253_v15  ;;  %v23392_v15 = vrot.slane %v13588_v16, 2 }
  0xac   : > { %678 = vperm.xlu2 %13096, %v381_v51   ;;  %v13626_v51 = vmul.f32 %v13422_v61, %v13567_v12  ;;  %v13670_v33 = vsel %vm1592_vm0, %v23394_v14, %v23393_v27  ;;  %v13682_v20 = vsel %vm2297_vm1, %v22824_v5, %v23395_v6  ;;  %v3582_v7 = vadd.f32 %v3254_v60, %v2873_v10 }
  0xad   : > { %v13614_v49 = vpop.permute.xlu0 %523  ;;  %v2311_v39 = vsel %vm2297_vm1, %v23392_v15, %v23391_v25  ;;  %v13691_v25 = vmul.f32 %v13477_v26, %v13567_v12  ;;  %v23396_v15 = vrot.slane %v13469_v21, 2  ;;  %v23398_v6 = vrot.slane %v13534_v9, 2 }
  0xae   : > { %v22826_v62 = vrot.slane %v13626_v51, 2  ;;  %v23399_v5 = vrot.slane %v13561_v53, 2  ;;  %v23400_v9 = vrot.slane %v13514_v45, 2  ;;  %v13731_v14 = vadd.f32 %v2311_v39, %v1936_v38 }
  0xaf   : > { %v2300_v27 = vsel %vm2297_vm1, %v23396_v15, %v2299_v44  ;;  %v13735_v45 = vmul.f32 %v13396_v50, %v13567_v12  ;;  %v2042_v38 = vmul.f32 %v13404_v55, %v13544_v30 }
  0xb0   : > { %v3949_v29 = vsel %vm2297_vm1, %v23399_v5, %v23398_v6  ;;  %v3958_v5 = vsel %vm2297_vm1, %v22826_v62, %v23400_v9  ;;  %v393_v9 = vld [vmem:[%s13346_s25 + $0x1f8] sm:$0xff]  ;;  %v13740_v62 = vmul.f32 %v13488_v31, %v13542_v24  ;;  %v22834_v6 = vrot.slane %v13725_v4, 2 }
  0xb1   : > { %v4282_v15 = vadd.f32 %v3949_v29, %v3578_v35  ;;  %v392_v35 = vld [vmem:[%s13346_s25 + $0x1f0] sm:$0xff]  ;;  %v13749_v29 = vpop.permute.xlu2 %568 }
  0xb3   : > { %673 = vperm.xlu1 %13095, %v380_v8   ;;  %698 = vperm.xlu0 %13094, %v386_v22   ;;  %v13687_v8 = vld [vmem:[%s22812_s1 + $0x6] ss:$0 sm:$0xff]  ;;  %v23397_v22 = vrot.slane %v13426_v63, 2  ;;  %v13712_v63 = vmul.f32 %v13477_v26, %v13542_v24 }
  0xb4   : > { %693 = vperm.xlu2 %13096, %v385_v41   ;;  %v4408_v21 = vmul.f32 %v13687_v8, %v13567_v12  ;;  %v394_v41 = vld [vmem:[%s13346_s25 + $0x200] sm:$0xff] }
  0xb5   : > { %v2302_v10 = vsel %vm2297_vm1, %v2299_v44, %v23397_v22  ;;  %v13700_v60 = vpop.permute.xlu0 %1218  ;;  %v4286_v22 = vadd.f32 %v3958_v5, %v3582_v7  ;;  %v4412_v7 = vmul.f32 %v13687_v8, %v13542_v24  ;;  %v4894_v5 = vrot.slane %v13712_v63, 1 }
  0xb6   : > { %v4629_v44 = vmul.f32 %v13477_v26, %v13700_v60  ;;  %v5333_v13 = vmul.f32 %v13488_v31, %v13700_v60  ;;  %v2637_v43 = vadd.f32 %v2302_v10, %v1932_v17  ;;  %v4512_v39 = vadd.f32 %v4408_v21, %v4282_v15 }
  0xb7   : > { %v2636_v17 = vadd.f32 %v2300_v27, %v1931_v28  ;;  %v1602_v10 = vrot.slane %v1337_v19, 1  ;;  %v4516_v40 = vadd.f32 %v4412_v7, %v4286_v22  ;;  %v23402_v24 = vrot.slane %v13691_v25, 1 }
  0xb8   : > { %v4896_v23 = vrot.slane %v4629_v44, 1  ;;  %v5600_v44 = vrot.slane %v5333_v13, 2  ;;  %v2762_v15 = vmul.f32 %v13437_v3, %v13544_v30  ;;  %v22835_v28 = vrot.slane %v13740_v62, 2 }
  0xb9   : > { %v4888_v21 = vsel %vm1592_vm0, %v23402_v24, %v23401_v32  ;;  %v13766_v27 = vmul.f32 %v13413_v58, %v13614_v49  ;;  %v13772_v32 = vmul.f32 %v13422_v61, %v13544_v30  ;;  %v2307_v22 = vrot.slane %v2042_v38, 2 }
  0xba   : > { %v4897_v13 = vsel %vm1592_vm0, %v4894_v5, %v4896_v23  ;;  %v5221_v24 = vadd.f32 %v4888_v21, %v4512_v39  ;;  %v13777_v23 = vld [vmem:[%s22813_s2] ss:$0 sm:$0xff]  ;;  %v5601_v30 = vsel %vm2297_vm1, %v22835_v28, %v5600_v44  ;;  %v13791_v39 = vpop.permute.xlu1 %518  ;;  %v3237_v28 = vrot.slane %v2977_v46, 1 }
  0xbb   : > { %1263 = vperm.xlu1 %13095, %v394_v41   ;;  %728 = vperm.xlu0 %13094, %v393_v9   ;;  %v5225_v19 = vadd.f32 %v4897_v13, %v4516_v40  ;;  %v2867_v41 = vadd.f32 %v13639_v48, %v2637_v43  ;;  %v23403_v9 = vrot.slane %v13522_v52, 2  ;;  %v23404_v40 = vrot.slane %v13565_v57, 1  ;;  %v390_v21 = vld [vmem:[%s13346_s25 + $0x1e0] sm:$0xff]  ;;  %v397_v57 = vld [vmem:[%s13346_s25 + $0x218] sm:$0xff] }
  0xbc   : > { %723 = vperm.xlu2 %13096, %v392_v35   ;;  %v2768_v52 = vmul.f32 %v13437_v3, %v13614_v49  ;;  %v2866_v13 = vadd.f32 %v2762_v15, %v2636_v17  ;;  %v3249_v44 = vrot.slane %v13766_v27, 1  ;;  %v13807_v17 = vmul.f32 %v13432_v2, %v13749_v29 }
  0xbd   : > { %v5592_v35 = vsel %vm2297_vm1, %v22834_v6, %v23403_v9  ;;  %v1604_v7 = vsel %vm1592_vm0, %v1602_v10, %v23404_v40  ;;  %v5929_v48 = vadd.f32 %v5601_v30, %v5225_v19  ;;  %v391_v6 = vld [vmem:[%s13346_s25 + $0x1e8] sm:$0xff]  ;;  %v398_v10 = vld [vmem:[%s13346_s25 + $0x220] sm:$0xff]  ;;  %v3576_v19 = vadd.f32 %v13670_v33, %v2867_v41  ;;  %v13819_v33 = vpop.permute.xlu2 %558 }
  0xbe   : > { %v5925_v43 = vadd.f32 %v5592_v35, %v5221_v24  ;;  %v1935_v35 = vadd.f32 %v1604_v7, %v996_v37  ;;  %v13811_v15 = vmul.f32 %v13422_v61, %v13614_v49  ;;  %v23405_v46 = vrot.slane %v13588_v16, 2  ;;  %23406 = vst [vmem:[#allocation9_spill] sm:$0xff] %v13819_v33 }
  0xbf   : > { %v6037_v24 = vadd.f32 %v13777_v23, %v5929_v48  ;;  %v2872_v48 = vadd.f32 %v2768_v52, %v13616_v54  ;;  %v3577_v37 = vadd.f32 %v13597_v18, %v13546_v34  ;;  %v13823_v41 = vmul.f32 %v13396_v50, %v13749_v29 }
  0xc0   : > { %v6033_v40 = vadd.f32 %v13777_v23, %v5925_v43  ;;  %v2309_v30 = vsel %vm2297_vm1, %v2307_v22, %v23405_v46  ;;  %v23408_v16 = vrot.slane %v13607_v36, 1  ;;  %v13832_v54 = vmul.f32 %v13477_v26, %v13614_v49 }
  0xc1   : > { %v6141_v43 = vmax.f32 %v6037_v24, 0.0  ;;  %23407 = vst [vmem:[#allocation10_spill] sm:$0xff] %v13823_v41  ;;  %v23409_v34 = vrot.slane %v13592_v47, 1  ;;  %v13839_v22 = vmul.f32 %v13396_v50, %v13791_v39  ;;  %v4407_v36 = vmul.f32 %v13687_v8, %v13614_v49 }
  0xc2   : > { %v6137_v7 = vmax.f32 %v6033_v40, 0.0  ;;  %v13849_v52 = vmul.f32 %v13396_v50, %v13614_v49  ;;  %v23412_v47 = vrot.slane %v13561_v53, 2  ;;  %v22837_v24 = vrot.slane %v13811_v15, 2 }
  0xc3   : > { %713 = vperm.xlu1 %13095, %v390_v21   ;;  %718 = vperm.xlu0 %13094, %v391_v6   ;;  %v3252_v6 = vsel %vm1592_vm0, %v3249_v44, %v23408_v16  ;;  %v3239_v18 = vsel %vm1592_vm0, %v3237_v28, %v23409_v34  ;;  %23410 = vst [vmem:[#allocation11_spill] sm:$0xff] %v13839_v22  ;;  %v23413_v28 = vrot.slane %v13453_v11, 2  ;;  %v23419_v27 = vrot.slane %v13811_v15, 2  ;;  %v409_v22 = vld [vmem:[%s13346_s25 + $0x278] sm:$0xff] }
  0xc4   : > { %748 = vperm.xlu2 %13096, %v398_v10   ;;  %v13843_v21 = vmul.f32 %v13404_v55, %v13749_v29  ;;  %v6280_v10 = vmax.f32 %v6137_v7, %v6141_v43  ;;  %v13858_v46 = vadd.f32 %v13682_v20, %v3576_v19  ;;  %v13862_v16 = vmul.f32 %v13396_v50, %v13819_v33  ;;  %v399_v19 = vld [vmem:[%s13346_s25 + $0x228] sm:$0xff]  ;;  %v13875_v7 = vpop.permute.xlu1 %513 }
  0xc5   : > { %v3947_v40 = vsel %vm2297_vm1, %v23413_v28, %v23412_v47  ;;  %v3581_v34 = vadd.f32 %v3252_v6, %v2872_v48  ;;  %v13865_v43 = vadd.f32 %v2309_v30, %v1935_v35  ;;  %v13867_v53 = vadd.f32 %v3239_v18, %v2866_v13  ;;  %v396_v30 = vld [vmem:[%s13346_s25 + $0x210] sm:$0xff] }
  0xc6   : > { %23411 = vst [vmem:[#allocation12_spill] sm:$0xff] %v13843_v21  ;;  %v4281_v38 = vadd.f32 %v3947_v40, %v3577_v37  ;;  %6303 = vmatpush.msra.mxu0 %v6280_v10  ;;  %6338 = vmatpush.msra.mxu1 %v6280_v10  ;;  %v13871_v11 = vmul.f32 %v13477_v26, %v13621_v42  ;;  %v22836_v20 = vrot.slane %v13832_v54, 1  ;;  %v23415_v28 = vrot.slane %v13626_v51, 2 }
  0xc7   : > { %23414 = vst [vmem:[#allocation13_spill] sm:$0xff] %v13862_v16  ;;  %13048 = vmatpush.msra.mxu3 %v6280_v10  ;;  %v13880_v35 = vmul.f32 %v13488_v31, %v13614_v49  ;;  %v13884_v13 = vmul.f32 %v13488_v31, %v13621_v42  ;;  %v1351_v10 = vmul.f32 %v13396_v50, %v13700_v60 }
  0xc8   : > { %v4511_v37 = vadd.f32 %v4407_v36, %v4281_v38  ;;  %v3956_v38 = vsel %vm2297_vm1, %v22837_v24, %v23415_v28  ;;  %v4411_v6 = vmul.f32 %v13687_v8, %v13621_v42  ;;  %v13902_v18 = vmul.f32 %v13396_v50, %v13875_v7  ;;  %v408_v24 = vld [vmem:[%s13346_s25 + $0x270] sm:$0xff] }
  0xc9   : > { %v4285_v40 = vadd.f32 %v3956_v38, %v3581_v34  ;;  %v2056_v51 = vmul.f32 %v13404_v55, %v13700_v60  ;;  %v23416_v28 = vrot.slane %v13691_v25, 1  ;;  %v4892_v34 = vrot.slane %v13871_v11, 1 }
  0xca   : > { %v22838_v47 = vrot.slane %v13884_v13, 2  ;;  %v13916_v48 = vmul.f32 %v13413_v58, %v13700_v60  ;;  %v13920_v25 = vmul.f32 %v13422_v61, %v13700_v60  ;;  %v13934_v60 = vmul.f32 %v13413_v58, %v13791_v39 }
  0xcb   : > { %743 = vperm.xlu1 %13095, %v397_v57   ;;  %1268 = vperm.xlu0 %13094, %v399_v19   ;;  %v4886_v57 = vsel %vm1592_vm0, %v22836_v20, %v23416_v28  ;;  %v4515_v38 = vadd.f32 %v4411_v6, %v4285_v40  ;;  %v5587_v19 = vrot.slane %v13880_v35, 2  ;;  %v4895_v11 = vsel %vm1592_vm0, %v4892_v34, %v4894_v5 }
  0xcc   : > { %738 = vperm.xlu2 %13096, %v396_v30   ;;  %v5220_v36 = vadd.f32 %v4886_v57, %v4511_v37  ;;  %v2767_v37 = vmul.f32 %v13437_v3, %v13791_v39  ;;  %v1627_v35 = vrot.slane %v1351_v10, 1  ;;  %v13927_v30 = vpop.permute.xlu0 %538  ;;  %v23417_v40 = vrot.slane %v13725_v4, 2  ;;  %v403_v57 = vld [vmem:[%s13346_s25 + $0x248] sm:$0xff] }
  0xcd   : > { %v5224_v6 = vadd.f32 %v4895_v11, %v4515_v38  ;;  %v2332_v63 = vrot.slane %v2056_v51, 2  ;;  %v23418_v5 = vrot.slane %v13740_v62, 2  ;;  %v395_v38 = vld [vmem:[%s13346_s25 + $0x208] sm:$0xff]  ;;  %v3247_v4 = vrot.slane %v13934_v60, 1 }
  0xce   : > { %v5590_v28 = vsel %vm2297_vm1, %v5587_v19, %v23417_v40  ;;  %v2871_v20 = vadd.f32 %v2767_v37, %v13731_v14  ;;  %v13947_v40 = vmul.f32 %v13422_v61, %v13791_v39  ;;  %v4406_v51 = vmul.f32 %v13687_v8, %v13791_v39 }
  0xcf   : > { %v5599_v9 = vsel %vm2297_vm1, %v22838_v47, %v23418_v5  ;;  %v5924_v10 = vadd.f32 %v5590_v28, %v5220_v36  ;;  %v4410_v5 = vmul.f32 %v13687_v8, %v13927_v30  ;;  %v13957_v14 = vmul.f32 %v13477_v26, %v13791_v39 }
  0xd0   : > { %v5928_v11 = vadd.f32 %v5599_v9, %v5224_v6  ;;  %v13961_v9 = vmul.f32 %v13477_v26, %v13927_v30  ;;  %v3250_v37 = vsel %vm1592_vm0, %v3247_v4, %v3249_v44  ;;  %v3951_v6 = vrot.slane %v13947_v40, 2 }
  0xd1   : > { %v6032_v62 = vadd.f32 %v13777_v23, %v5924_v10  ;;  %v4510_v28 = vadd.f32 %v4406_v51, %v13858_v46  ;;  %v3580_v10 = vadd.f32 %v3250_v37, %v2871_v20  ;;  %v4881_v47 = vrot.slane %v13957_v14, 1 }
  0xd2   : > { %v6036_v36 = vadd.f32 %v13777_v23, %v5928_v11  ;;  %v22846_v16 = vrot.slane %v13961_v9, 1  ;;  %v3954_v44 = vsel %vm2297_vm1, %v3951_v6, %v23419_v27  ;;  %v13978_v46 = vmul.f32 %v13488_v31, %v13791_v39 }
  0xd3   : > { %768 = vperm.xlu1 %13095, %v403_v57   ;;  %733 = vperm.xlu0 %13094, %v395_v38   ;;  %v6136_v60 = vmax.f32 %v6032_v62, 0.0  ;;  %v13971_v57 = vpop.permute.xlu1 %533  ;;  %v13982_v20 = vmul.f32 %v13488_v31, %v13927_v30  ;;  %v23420_v38 = vrot.slane %v13576_v1, 1  ;;  %v4284_v40 = vadd.f32 %v3954_v44, %v3580_v10 }
  0xd4   : > { %788 = vperm.xlu2 %13096, %v408_v24   ;;  %v6140_v11 = vmax.f32 %v6036_v36, 0.0  ;;  %v23421_v51 = vrot.slane %v13832_v54, 1  ;;  %v4893_v62 = vsel %vm1592_vm0, %v22846_v16, %v4892_v34  ;;  %v22845_v27 = vrot.slane %v13978_v46, 2  ;;  %v404_v34 = vld [vmem:[%s13346_s25 + $0x250] sm:$0xff] }
  0xd5   : > { %v1628_v24 = vsel %vm1592_vm0, %v23420_v38, %v1627_v35  ;;  %v5594_v33 = vrot.slane %v13982_v20, 2  ;;  %v23422_v35 = vrot.slane %v13674_v56, 2  ;;  %v4514_v10 = vadd.f32 %v4410_v5, %v4284_v40  ;;  %v402_v5 = vld [vmem:[%s13346_s25 + $0x240] sm:$0xff] }
  0xd6   : > { %v4884_v15 = vsel %vm1592_vm0, %v4881_v47, %v23421_v51  ;;  %v6279_v36 = vmax.f32 %v6136_v60, %v6140_v11  ;;  %v2766_v44 = vmul.f32 %v13437_v3, %v13875_v7  ;;  %v2982_v38 = vmul.f32 %v13413_v58, %v13875_v7 }
  0xd7   : > { %v5219_v37 = vadd.f32 %v4884_v15, %v4510_v28  ;;  %v2333_v54 = vsel %vm2297_vm1, %v23422_v35, %v2332_v63  ;;  %v1946_v60 = vadd.f32 %v1628_v24, %v13572_v0  ;;  %v5588_v11 = vsel %vm2297_vm1, %v22845_v27, %v5587_v19 }
  0xd8   : > { %6304 = vmatpush.msra.mxu0 %v6279_v36  ;;  %6339 = vmatpush.msra.mxu1 %v6279_v36  ;;  %v3686_v63 = vmul.f32 %v13422_v61, %v13875_v7  ;;  %v5223_v40 = vadd.f32 %v4893_v62, %v4514_v10  ;;  %v2870_v15 = vadd.f32 %v2766_v44, %v13865_v43  ;;  %v3246_v35 = vrot.slane %v2982_v38, 1 }
  0xd9   : > { %13049 = vmatpush.msra.mxu3 %v6279_v36  ;;  %v5923_v51 = vadd.f32 %v5588_v11, %v5219_v37  ;;  %v23423_v0 = vrot.slane %v13884_v13, 2  ;;  %v23424_v28 = vrot.slane %v13601_v59, 2  ;;  %v23425_v19 = vrot.slane %v13772_v32, 2  ;;  %v14030_v37 = vpop.permute.xlu2 %1228 }
  0xda   : > { %v3950_v16 = vrot.slane %v3686_v63, 2  ;;  %v4405_v62 = vmul.f32 %v13687_v8, %v13875_v7  ;;  %v3248_v13 = vsel %vm1592_vm0, %v3246_v35, %v3247_v4  ;;  %v4409_v32 = vmul.f32 %v13687_v8, %v13971_v57 }
  0xdb   : > { %1278 = vperm.xlu1 %13095, %v409_v22   ;;  %v5597_v24 = vsel %vm2297_vm1, %v5594_v33, %v23423_v0  ;;  %v3943_v27 = vsel %vm2297_vm1, %v23425_v19, %v23424_v28  ;;  %1273 = vperm.xlu0 %13094, %v404_v34   ;;  %v6031_v22 = vadd.f32 %v13777_v23, %v5923_v51  ;;  %v14042_v34 = vpop.permute.xlu1 %563  ;;  %v407_v0 = vld [vmem:[%s13346_s25 + $0x268] sm:$0xff] }
  0xdc   : > { %v5927_v43 = vadd.f32 %v5597_v24, %v5223_v40  ;;  %v4279_v36 = vadd.f32 %v3943_v27, %v13867_v53  ;;  %763 = vperm.xlu2 %13096, %v402_v5   ;;  %v3579_v59 = vadd.f32 %v3248_v13, %v2870_v15  ;;  %v4620_v10 = vmul.f32 %v13477_v26, %v13875_v7  ;;  %v401_v40 = vld [vmem:[%s13346_s25 + $0x238] sm:$0xff]  ;;  %v14051_v15 = vpop.permute.xlu0 %1223 }
  0xdd   : > { %v4625_v44 = vmul.f32 %v13477_v26, %v13971_v57  ;;  %v3952_v4 = vsel %vm2297_vm1, %v3950_v16, %v3951_v6  ;;  %v5324_v27 = vmul.f32 %v13488_v31, %v13875_v7  ;;  %v5329_v5 = vmul.f32 %v13488_v31, %v13971_v57 }
  0xde   : > { %v6035_v38 = vadd.f32 %v13777_v23, %v5927_v43  ;;  %v4509_v53 = vadd.f32 %v4405_v62, %v4279_v36  ;;  %v4283_v28 = vadd.f32 %v3952_v4, %v3579_v59  ;;  %v4880_v11 = vrot.slane %v4620_v10, 1 }
  0xdf   : > { %v4889_v63 = vrot.slane %v4625_v44, 1  ;;  %v14049_v51 = vmul.f32 %v13477_v26, %v14030_v37  ;;  %v6135_v16 = vmax.f32 %v6031_v22, 0.0  ;;  %v5584_v35 = vrot.slane %v5324_v27, 2  ;;  %v406_v44 = vld [vmem:[%s13346_s25 + $0x260] sm:$0xff] }
  0xe0   : > { %v6139_v6 = vmax.f32 %v6035_v38, 0.0  ;;  %v4513_v24 = vadd.f32 %v4409_v32, %v4283_v28  ;;  %v4882_v19 = vsel %vm1592_vm0, %v4880_v11, %v4881_v47  ;;  %v23426_v62 = vrot.slane %v13961_v9, 1 }
  0xe1   : > { %v5593_v13 = vrot.slane %v5329_v5, 2  ;;  %v2651_v36 = vadd.f32 %v2333_v54, %v1946_v60  ;;  %v14062_v59 = vmul.f32 %v13488_v31, %v14030_v37  ;;  %v5218_v22 = vadd.f32 %v4882_v19, %v4509_v53 }
  0xe2   : > { %v4891_v43 = vsel %vm1592_vm0, %v4889_v63, %v23426_v62  ;;  %v6278_v10 = vmax.f32 %v6135_v16, %v6139_v6  ;;  %v2996_v32 = vmul.f32 %v13413_v58, %v14051_v15  ;;  %v3700_v47 = vmul.f32 %v13422_v61, %v14051_v15 }
  0xe3   : > { %758 = vperm.xlu1 %13095, %v401_v40   ;;  %v5222_v14 = vadd.f32 %v4891_v43, %v4513_v24  ;;  %v23427_v9 = vrot.slane %v13978_v46, 2  ;;  %783 = vperm.xlu0 %13094, %v407_v0   ;;  %v3966_v54 = vrot.slane %v13920_v25, 2  ;;  %v5595_v60 = vsel %vm2297_vm1, %v5593_v13, %v5594_v33  ;;  %v23428_v46 = vld [vmem:[#allocation5_spill] sm:$0xff]  ;;  %v23431_v0 = vld [vmem:[#allocation7_spill] sm:$0xff]  ;;  %v14115_v13 = vpop.permute.xlu1 %588 }
  0xe4   : > { %6305 = vmatpush.msra.mxu0 %v6278_v10  ;;  %6340 = vmatpush.msra.mxu1 %v6278_v10  ;;  %v1003_v53 = vmul.f32 %v13432_v2, %v13567_v12  ;;  %v4914_v27 = vrot.slane %v14049_v51, 1  ;;  %v23429_v11 = vrot.slane %v23428_v46, 1  ;;  %v23430_v63 = vrot.slane %v13735_v45, 1 }
  0xe5   : > { %v5586_v38 = vsel %vm2297_vm1, %v5584_v35, %v23427_v9  ;;  %13050 = vmatpush.msra.mxu3 %v6278_v10  ;;  %v5926_v28 = vadd.f32 %v5595_v60, %v5222_v14  ;;  %v14086_v5 = vmul.f32 %v13404_v55, %v13567_v12  ;;  %778 = vperm.xlu2 %13096, %v406_v44   ;;  %v3271_v16 = vrot.slane %v2996_v32, 1  ;;  %v23432_v44 = vld [vmem:[#allocation6_spill] sm:$0xff] }
  0xe6   : > { %v5922_v4 = vadd.f32 %v5586_v38, %v5218_v22  ;;  %v1619_v25 = vsel %vm1592_vm0, %v23430_v63, %v23429_v11  ;;  %v4634_v33 = vmul.f32 %v13477_v26, %v14051_v15  ;;  %v14092_v20 = vmul.f32 %v13488_v31, %v14051_v15 }
  0xe7   : > { %v1942_v51 = vadd.f32 %v1619_v25, %v1003_v53  ;;  %v6034_v6 = vadd.f32 %v13777_v23, %v5926_v28  ;;  %v2321_v35 = vrot.slane %v14086_v5, 2  ;;  %v14099_v12 = vmul.f32 %v13413_v58, %v23431_v0 }
  0xe8   : > { %v6030_v40 = vadd.f32 %v13777_v23, %v5922_v4  ;;  %v2777_v24 = vmul.f32 %v13437_v3, %v13749_v29  ;;  %v14105_v19 = vmul.f32 %v13413_v58, %v13749_v29  ;;  %v14109_v62 = vmul.f32 %v13422_v61, %v23431_v0 }
  0xe9   : > { %v14113_v43 = vmul.f32 %v13422_v61, %v13749_v29  ;;  %v6138_v22 = vmax.f32 %v6034_v6, 0.0  ;;  %v23433_v32 = vrot.slane %v23432_v44, 2  ;;  %v22853_v9 = vrot.slane %v14099_v12, 1 }
  0xea   : > { %v6134_v10 = vmax.f32 %v6030_v40, 0.0  ;;  %v3975_v38 = vrot.slane %v3700_v47, 2  ;;  %v2773_v4 = vmul.f32 %v13437_v3, %v23431_v0  ;;  %v22854_v53 = vrot.slane %v14105_v19, 1  ;;  %v14132_v40 = vpop.permute.xlu2 %573 }
  0xeb   : > { %v2324_v14 = vsel %vm2297_vm1, %v2321_v35, %v23433_v32  ;;  %v2881_v46 = vadd.f32 %v2777_v24, %v2651_v36  ;;  %v23434_v11 = vrot.slane %v13916_v48, 1  ;;  %v22851_v25 = vrot.slane %v14109_v62, 2 }
  0xec   : > { %v2647_v60 = vadd.f32 %v2324_v14, %v1942_v51  ;;  %v6277_v28 = vmax.f32 %v6134_v10, %v6138_v22  ;;  %v3272_v47 = vsel %vm1592_vm0, %v22854_v53, %v3271_v16  ;;  %v22850_v3 = vrot.slane %v14113_v43, 2 }
  0xed   : > { %v3263_v63 = vsel %vm1592_vm0, %v22853_v9, %v23434_v11  ;;  %v4420_v36 = vmul.f32 %v13687_v8, %v14115_v13  ;;  %v4905_v51 = vrot.slane %v4634_v33, 1  ;;  %v3590_v48 = vadd.f32 %v3272_v47, %v2881_v46 }
  0xee   : > { %v2877_v6 = vadd.f32 %v2773_v4, %v2647_v60  ;;  %6306 = vmatpush.msra.mxu0 %v6277_v28  ;;  %6341 = vmatpush.msra.mxu1 %v6277_v28  ;;  %v14142_v0 = vmul.f32 %v13477_v26, %v13749_v29  ;;  %v14146_v24 = vmul.f32 %v13477_v26, %v14115_v13  ;;  %v23446_v9 = vrot.slane %v13674_v56, 2 }
  0xef   : > { %13051 = vmatpush.msra.mxu3 %v6277_v28  ;;  %v3967_v16 = vsel %vm2297_vm1, %v22851_v25, %v3966_v54  ;;  %v3976_v33 = vsel %vm2297_vm1, %v22850_v3, %v3975_v38  ;;  %v14156_v22 = vmul.f32 %v13488_v31, %v14115_v13  ;;  %v14162_v60 = vmul.f32 %v13488_v31, %v13749_v29 }
  0xf0   : > { %v3586_v10 = vadd.f32 %v3263_v63, %v2877_v6  ;;  %v4294_v44 = vadd.f32 %v3976_v33, %v3590_v48  ;;  %v22849_v32 = vrot.slane %v14142_v0, 1  ;;  %v22848_v14 = vrot.slane %v14146_v24, 1 }
  0xf1   : > { %v14166_v54 = vmul.f32 %v13396_v50, %v14030_v37  ;;  %v4416_v38 = vmul.f32 %v13687_v8, %v13749_v29  ;;  %v22847_v28 = vrot.slane %v14156_v22, 2  ;;  %v5609_v6 = vrot.slane %v14092_v20, 2 }
  0xf2   : > { %v4290_v4 = vadd.f32 %v3967_v16, %v3586_v10  ;;  %v4524_v46 = vadd.f32 %v4420_v36, %v4294_v44  ;;  %v4906_v11 = vsel %vm1592_vm0, %v22849_v32, %v4905_v51  ;;  %v4915_v63 = vsel %vm1592_vm0, %v22848_v14, %v4914_v27 }
  0xf3   : > { %v14180_v47 = vmul.f32 %v13404_v55, %v14030_v37  ;;  %v1356_v29 = vmul.f32 %v13396_v50, %v14051_v15  ;;  %v5618_v36 = vrot.slane %v14062_v59, 2  ;;  %v14187_v10 = vmul.f32 %v13413_v58, %v14030_v37 }
  0xf4   : > { %v4520_v48 = vadd.f32 %v4416_v38, %v4290_v4  ;;  %v2061_v51 = vmul.f32 %v13404_v55, %v14051_v15  ;;  %v5233_v27 = vadd.f32 %v4915_v63, %v4524_v46  ;;  %v22852_v20 = vrot.slane %v14162_v60, 2 }
  0xf5   : > { %v14194_v16 = vmul.f32 %v13422_v61, %v14030_v37  ;;  %v14198_v33 = vmul.f32 %v13396_v50, %v13971_v57  ;;  %v5619_v59 = vsel %vm2297_vm1, %v22847_v28, %v5618_v36  ;;  %v14205_v4 = vmul.f32 %v13396_v50, %v13927_v30  ;;  %v14219_v36 = vpop.permute.xlu0 %553 }
  0xf6   : > { %v5229_v44 = vadd.f32 %v4906_v11, %v4520_v48  ;;  %v14209_v15 = vmul.f32 %v13396_v50, %v14132_v40  ;;  %v5610_v37 = vsel %vm2297_vm1, %v22852_v20, %v5609_v6  ;;  %v5937_v38 = vadd.f32 %v5619_v59, %v5233_v27  ;;  %v1234_v48 = vpop.permute.xlu2 %1233 }
  0xf7   : > { %v14217_v11 = vmul.f32 %v13396_v50, %v14042_v34  ;;  %v1636_v63 = vrot.slane %v1356_v29, 1  ;;  %v2341_v3 = vrot.slane %v2061_v51, 2  ;;  %v14238_v27 = vmul.f32 %v13404_v55, %v1234_v48 }
  0xf8   : > { %23435 = vst [vmem:[#allocation5_spill] sm:$0xff] %v14209_v15  ;;  %v5933_v28 = vadd.f32 %v5610_v37, %v5229_v44  ;;  %v6045_v25 = vadd.f32 %v13777_v23, %v5937_v38  ;;  %v14231_v44 = vmul.f32 %v13396_v50, %v1234_v48  ;;  %v23438_v38 = vrot.slane %v13823_v41, 1 }
  0xf9   : > { %23436 = vst [vmem:[#allocation7_spill] sm:$0xff] %v14217_v11  ;;  %v14246_v20 = vmul.f32 %v13413_v58, %v1234_v48  ;;  %v14249_v50 = vmul.f32 %v13422_v61, %v1234_v48  ;;  %v1006_v55 = vmul.f32 %v13432_v2, %v13621_v42  ;;  %v23444_v58 = vld [vmem:[#allocation8_spill] sm:$0xff]  ;;  %v23447_v41 = vrot.slane %v14105_v19, 1 }
  0xfa   : > { %v6041_v46 = vadd.f32 %v13777_v23, %v5933_v28  ;;  %23437 = vst [vmem:[#allocation6_spill] sm:$0xff] %v14231_v44  ;;  %v6149_v37 = vmax.f32 %v6045_v25, 0.0  ;;  %v1637_v6 = vsel %vm1592_vm0, %v23438_v38, %v1636_v63  ;;  %v23440_v28 = vrot.slane %v13843_v21, 2 }
  0xfb   : > { %23439 = vst [vmem:[#allocation14_spill] sm:$0xff] %v14238_v27  ;;  %v1002_v25 = vmul.f32 %v13432_v2, %v13614_v49  ;;  %v23442_v63 = vrot.slane %v13849_v52, 1  ;;  %v23443_v38 = vrot.slane %v13576_v1, 1  ;;  %v14266_v59 = vadd.f32 %v1637_v6, %v13807_v17  ;;  %v14272_v2 = vld [vmem:[%s22812_s1 + $0x2] ss:$0 sm:$0xff] }
  0xfc   : > { %v6145_v32 = vmax.f32 %v6041_v46, 0.0  ;;  %v14243_v14 = vsel %vm2297_vm1, %v23440_v28, %v2341_v3  ;;  %v23441_v46 = vrot.slane %v13735_v45, 1  ;;  %v23445_v28 = vrot.slane %v23444_v58, 1 }
  0xfd   : > { %v14276_v45 = vmul.f32 %v14272_v2, %v13614_v49  ;;  %v14280_v1 = vmul.f32 %v14272_v2, %v13621_v42  ;;  %v14284_v17 = vmul.f32 %v13477_v26, %v1234_v48  ;;  %v14291_v49 = vld [vmem:[%s22812_s1 + $0x4] ss:$0 sm:$0xff]  ;;  %v23448_v19 = vrot.slane %v14099_v12, 1 }
  0xfe   : > { %v6358_v51 = vmax.f32 %v6145_v32, %v6149_v37  ;;  %v1617_v3 = vsel %vm1592_vm0, %v23442_v63, %v23441_v46  ;;  %v1626_v61 = vsel %vm1592_vm0, %v23445_v28, %v23443_v38  ;;  %v14295_v28 = vmul.f32 %v14291_v49, %v13621_v42 }
  0xff   : > { %v1941_v6 = vadd.f32 %v1617_v3, %v1002_v25  ;;  %v1945_v46 = vadd.f32 %v1626_v61, %v1006_v55  ;;  %v2319_v63 = vrot.slane %v14276_v45, 2  ;;  %v22863_v38 = vrot.slane %v14280_v1, 2  ;;  %v14302_v25 = vpop.permute.xlu0 %583  ;;  %v14307_v55 = vld [vmem:[%s22812_s1 + $0x3] ss:$0 sm:$0xff]  ;;  %v14314_v61 = vld [vmem:[%s22812_s1 + $0x5] ss:$0 sm:$0xff] }
 0x100   : > { %6371 = vmatpush.msra.mxu2 %v6358_v51  ;;  %6397 = vmatpush.msrb.mxu3 %v6358_v51  ;;  %v14299_v37 = vmul.f32 %v14291_v49, %v14042_v34  ;;  %v2776_v3 = vmul.f32 %v14307_v55, %v14042_v34  ;;  %v14318_v32 = vmul.f32 %v14314_v61, %v13621_v42  ;;  %v22864_v27 = vrot.slane %v14295_v28, 1 }
 0x101   : > { %v14322_v51 = vmul.f32 %v14314_v61, %v14042_v34  ;;  %v2322_v29 = vsel %vm2297_vm1, %v2319_v63, %v2321_v35  ;;  %v2331_v53 = vsel %vm2297_vm1, %v22863_v38, %v23446_v9  ;;  %v2772_v11 = vmul.f32 %v14307_v55, %v13621_v42 }
 0x102   : > { %v22862_v44 = vrot.slane %v14299_v37, 1  ;;  %v2646_v15 = vadd.f32 %v2322_v29, %v1941_v6  ;;  %v2650_v21 = vadd.f32 %v2331_v53, %v1945_v46  ;;  %v22870_v5 = vrot.slane %v14318_v32, 2 }
 0x103   : > { %v22865_v35 = vrot.slane %v14322_v51, 2  ;;  %v14347_v9 = vmul.f32 %v13477_v26, %v14042_v34  ;;  %v14351_v53 = vmul.f32 %v13477_v26, %v14302_v25  ;;  %v14354_v42 = vmul.f32 %v13488_v31, %v1234_v48 }
 0x104   : > { %v3270_v56 = vsel %vm1592_vm0, %v22862_v44, %v23447_v41  ;;  %v2876_v29 = vadd.f32 %v2772_v11, %v2646_v15  ;;  %v2880_v6 = vadd.f32 %v2776_v3, %v2650_v21  ;;  %v3261_v41 = vsel %vm1592_vm0, %v22864_v27, %v23448_v19 }
 0x105   : > { %v22869_v46 = vrot.slane %v14347_v9, 1  ;;  %v22868_v44 = vrot.slane %v14351_v53, 1  ;;  %v14365_v38 = vmul.f32 %v13488_v31, %v14042_v34  ;;  %v14369_v26 = vmul.f32 %v13488_v31, %v14302_v25 }
 0x106   : > { %v3585_v15 = vadd.f32 %v3261_v41, %v2876_v29  ;;  %v3589_v21 = vadd.f32 %v3270_v56, %v2880_v6  ;;  %v4415_v12 = vmul.f32 %v13687_v8, %v14042_v34  ;;  %v4419_v11 = vmul.f32 %v13687_v8, %v14302_v25 }
 0x107   : > { %v23449_v48 = vrot.slane %v14109_v62, 2  ;;  %v23450_v19 = vrot.slane %v14113_v43, 2  ;;  %v22867_v56 = vrot.slane %v14365_v38, 2  ;;  %v22866_v29 = vrot.slane %v14369_v26, 2 }
 0x108   : > { %v23451_v27 = vrot.slane %v14142_v0, 1 }
 0x109   : > { %v3965_v3 = vsel %vm2297_vm1, %v22870_v5, %v23449_v48  ;;  %v3974_v31 = vsel %vm2297_vm1, %v22865_v35, %v23450_v19  ;;  %v23452_v48 = vrot.slane %v14146_v24, 1  ;;  %v23453_v19 = vrot.slane %v14162_v60, 2  ;;  %v14410_v24 = vld [vmem:[%s22812_s1] ss:$0 sm:$0xff] }
 0x10a   : > { %v4289_v6 = vadd.f32 %v3965_v3, %v3585_v15  ;;  %v4293_v41 = vadd.f32 %v3974_v31, %v3589_v21  ;;  %v4904_v62 = vsel %vm1592_vm0, %v22869_v46, %v23451_v27  ;;  %v23454_v15 = vrot.slane %v14156_v22, 2  ;;  %v23456_v22 = vld [vmem:[#allocation11_spill] sm:$0xff] }
 0x10b   : > { %v4913_v43 = vsel %vm1592_vm0, %v22868_v44, %v23452_v48  ;;  %v5608_v35 = vsel %vm2297_vm1, %v22867_v56, %v23453_v19  ;;  %v1001_v27 = vmul.f32 %v14410_v24, %v13791_v39  ;;  %v1005_v60 = vmul.f32 %v14410_v24, %v13927_v30 }
 0x10c   : > { %v5617_v0 = vsel %vm2297_vm1, %v22866_v29, %v23454_v15  ;;  %v4519_v21 = vadd.f32 %v4415_v12, %v4289_v6  ;;  %v4523_v3 = vadd.f32 %v4419_v11, %v4293_v41  ;;  %v23455_v31 = vrot.slane %v13849_v52, 1 }
 0x10d   : > { %v23457_v48 = vrot.slane %v23456_v22, 1  ;;  %v23458_v15 = vrot.slane %v23444_v58, 1  ;;  %v23459_v29 = vrot.slane %v14205_v4, 1  ;;  %v14428_v5 = vmul.f32 %v14272_v2, %v13791_v39  ;;  %v23460_v58 = vld [vmem:[#allocation9_spill] sm:$0xff] }
 0x10e   : > { %v14432_v12 = vmul.f32 %v14272_v2, %v13927_v30  ;;  %v5228_v52 = vadd.f32 %v4904_v62, %v4519_v21  ;;  %v5232_v11 = vadd.f32 %v4913_v43, %v4523_v3  ;;  %v2771_v6 = vmul.f32 %v14307_v55, %v13927_v30 }
 0x10f   : > { %v1615_v19 = vsel %vm1592_vm0, %v23457_v48, %v23455_v31  ;;  %v1624_v56 = vsel %vm1592_vm0, %v23459_v29, %v23458_v15  ;;  %v2775_v41 = vmul.f32 %v14307_v55, %v23460_v58  ;;  %v22876_v29 = vrot.slane %v14428_v5, 2  ;;  %v14468_v48 = vpop.permute.xlu1 %578 }
 0x110   : > { %v1940_v44 = vadd.f32 %v1615_v19, %v1001_v27  ;;  %v1944_v46 = vadd.f32 %v1624_v56, %v1005_v60  ;;  %v22871_v56 = vrot.slane %v14432_v12, 2  ;;  %v14442_v39 = vmul.f32 %v14291_v49, %v13927_v30 }
 0x111   : > { %v14446_v27 = vmul.f32 %v14291_v49, %v23460_v58  ;;  %v5932_v62 = vadd.f32 %v5608_v35, %v5228_v52  ;;  %v5936_v43 = vadd.f32 %v5617_v0, %v5232_v11  ;;  %v14450_v60 = vmul.f32 %v14314_v61, %v13927_v30 }
 0x112   : > { %v14454_v21 = vmul.f32 %v14314_v61, %v23460_v58  ;;  %v2320_v3 = vsel %vm2297_vm1, %v22876_v29, %v2319_v63  ;;  %v23461_v31 = vrot.slane %v14280_v1, 2  ;;  %v22875_v0 = vrot.slane %v14442_v39, 1 }
 0x113   : > { %v22874_v30 = vrot.slane %v14446_v27, 1  ;;  %v6040_v19 = vadd.f32 %v13777_v23, %v5932_v62  ;;  %v6044_v45 = vadd.f32 %v13777_v23, %v5936_v43  ;;  %v2645_v15 = vadd.f32 %v2320_v3, %v1940_v44 }
 0x114   : > { %v2329_v35 = vsel %vm2297_vm1, %v22871_v56, %v23461_v31  ;;  %v23462_v63 = vrot.slane %v14295_v28, 1  ;;  %v23463_v11 = vrot.slane %v14299_v37, 1  ;;  %v22873_v56 = vrot.slane %v14450_v60, 2 }
 0x115   : > { %v2649_v52 = vadd.f32 %v2329_v35, %v1944_v46  ;;  %v22872_v62 = vrot.slane %v14454_v21, 2  ;;  %v6144_v44 = vmax.f32 %v6040_v19, 0.0  ;;  %v6148_v46 = vmax.f32 %v6044_v45, 0.0 }
 0x116   : > { %v3259_v1 = vsel %vm1592_vm0, %v22875_v0, %v23462_v63  ;;  %v3268_v31 = vsel %vm1592_vm0, %v22874_v30, %v23463_v11  ;;  %v2875_v28 = vadd.f32 %v2771_v6, %v2645_v15  ;;  %v23464_v3 = vrot.slane %v14318_v32, 2  ;;  %v14501_v32 = vld [vmem:[%s22812_s1 + $0x7] ss:$0 sm:$0xff]  ;;  %v405_v15 = vld [vmem:[%s13346_s25 + $0x258] sm:$0xff] }
 0x117   : > { %v2879_v43 = vadd.f32 %v2775_v41, %v2649_v52  ;;  %v23465_v35 = vrot.slane %v14322_v51, 2  ;;  %v4414_v11 = vmul.f32 %v13687_v8, %v23460_v58  ;;  %v4418_v19 = vmul.f32 %v13687_v8, %v14468_v48  ;;  %v400_v52 = vld [vmem:[%s13346_s25 + $0x230] sm:$0xff]  ;;  %v14517_v8 = vld [vmem:[%s22812_s1 + $0x8] ss:$0 sm:$0xff]  ;;  %773 = vperm.xlu1 %13095, %v405_v15  }
 0x118   : > { %v3963_v37 = vsel %vm2297_vm1, %v22873_v56, %v23464_v3  ;;  %v6357_v6 = vmax.f32 %v6144_v44, %v6148_v46  ;;  %v3584_v41 = vadd.f32 %v3259_v1, %v2875_v28  ;;  %v14505_v51 = vmul.f32 %v14501_v32, %v23460_v58  ;;  %v413_v3 = vld [vmem:[%s13346_s25 + $0x298] sm:$0xff]  ;;  %753 = vperm.xlu0 %13094, %v400_v52  }
 0x119   : > { %v3972_v63 = vsel %vm2297_vm1, %v22872_v62, %v23465_v35  ;;  %v3588_v45 = vadd.f32 %v3268_v31, %v2879_v43  ;;  %v14512_v35 = vmul.f32 %v14501_v32, %v14468_v48  ;;  %v14521_v1 = vmul.f32 %v14517_v8, %v23460_v58  ;;  %808 = vperm.xlu2 %13096, %v413_v3  }
 0x11a   : > { %v14525_v31 = vmul.f32 %v14517_v8, %v14468_v48  ;;  %v1000_v44 = vmul.f32 %v14410_v24, %v13875_v7  ;;  %6372 = vmatpush.msra.mxu2 %v6357_v6  ;;  %6398 = vmatpush.msrb.mxu3 %v6357_v6  ;;  %v4288_v46 = vadd.f32 %v3963_v37, %v3584_v41  ;;  %v4899_v43 = vrot.slane %v14505_v51, 1 }
 0x11b   : > { %v4292_v28 = vadd.f32 %v3972_v63, %v3588_v45  ;;  %v1004_v62 = vmul.f32 %v14410_v24, %v13971_v57  ;;  %v4908_v56 = vrot.slane %v14512_v35, 1  ;;  %v5603_v30 = vrot.slane %v14521_v1, 2 }
 0x11c   : > { %v23466_v29 = vrot.slane %v23456_v22, 1  ;;  %v23467_v58 = vrot.slane %v13902_v18, 1  ;;  %v4518_v37 = vadd.f32 %v4414_v11, %v4288_v46  ;;  %v23468_v41 = vrot.slane %v14347_v9, 1  ;;  %v14568_v46 = vpop.permute.xlu0 %608 }
 0x11d   : > { %v4522_v63 = vadd.f32 %v4418_v19, %v4292_v28  ;;  %v23469_v15 = vrot.slane %v14205_v4, 1  ;;  %v23470_v0 = vrot.slane %v14198_v33, 1  ;;  %v23471_v18 = vrot.slane %v14351_v53, 1 }
 0x11e   : > { %v1613_v6 = vsel %vm1592_vm0, %v23467_v58, %v23466_v29  ;;  %v4902_v45 = vsel %vm1592_vm0, %v4899_v43, %v23468_v41  ;;  %v23472_v29 = vrot.slane %v14365_v38, 2  ;;  %v23473_v11 = vrot.slane %v14369_v26, 2  ;;  %v412_v38 = vld [vmem:[%s13346_s25 + $0x290] sm:$0xff] }
 0x11f   : > { %v1622_v22 = vsel %vm1592_vm0, %v23470_v0, %v23469_v15  ;;  %v4911_v58 = vsel %vm1592_vm0, %v4908_v56, %v23471_v18  ;;  %v23474_v4 = vrot.slane %v14525_v31, 2  ;;  %v1939_v0 = vadd.f32 %v1613_v6, %v1000_v44  ;;  %v14582_v15 = vpop.permute.xlu2 %623  ;;  %803 = vperm.xlu1 %13095, %v412_v38  }
 0x120   : > { %v5606_v9 = vsel %vm2297_vm1, %v5603_v30, %v23472_v29  ;;  %v5227_v53 = vadd.f32 %v4902_v45, %v4518_v37  ;;  %v5231_v19 = vadd.f32 %v4911_v58, %v4522_v63  ;;  %v1943_v52 = vadd.f32 %v1622_v22, %v1004_v62  ;;  %v414_v63 = vld [vmem:[%s13346_s25 + $0x2a0] sm:$0xff]  ;;  %v411_v45 = vld [vmem:[%s13346_s25 + $0x288] sm:$0xff]  ;;  %23475 = vst [vmem:[#allocation8_spill] sm:$0xff] %v14582_v15 }
 0x121   : > { %v5615_v33 = vsel %vm2297_vm1, %v23474_v4, %v23473_v11  ;;  %v2047_v3 = vmul.f32 %v14272_v2, %v13875_v7  ;;  %v2052_v28 = vmul.f32 %v14272_v2, %v13971_v57  ;;  %v2770_v26 = vmul.f32 %v14307_v55, %v13971_v57  ;;  %1283 = vperm.xlu0 %13094, %v414_v63  }
 0x122   : > { %v2774_v41 = vmul.f32 %v14307_v55, %v14219_v36  ;;  %v2987_v44 = vmul.f32 %v14291_v49, %v13971_v57  ;;  %v5931_v6 = vadd.f32 %v5606_v9, %v5227_v53  ;;  %v5935_v62 = vadd.f32 %v5615_v33, %v5231_v19  ;;  %798 = vperm.xlu2 %13096, %v411_v45  }
 0x123   : > { %v2316_v37 = vrot.slane %v2047_v3, 2  ;;  %v2992_v7 = vmul.f32 %v14291_v49, %v14219_v36  ;;  %v2325_v22 = vrot.slane %v2052_v28, 2  ;;  %v3691_v58 = vmul.f32 %v14314_v61, %v13971_v57 }
 0x124   : > { %v3255_v18 = vrot.slane %v2987_v44, 1  ;;  %v3696_v29 = vmul.f32 %v14314_v61, %v14219_v36  ;;  %v6039_v9 = vadd.f32 %v13777_v23, %v5931_v6  ;;  %v6043_v11 = vadd.f32 %v13777_v23, %v5935_v62 }
 0x125   : > { %v23476_v4 = vrot.slane %v14428_v5, 2  ;;  %v3264_v53 = vrot.slane %v2992_v7, 1  ;;  %v3993_v19 = vrot.slane %v14249_v50, 2  ;;  %v23477_v3 = vrot.slane %v14432_v12, 2 }
 0x126   : > { %v23478_v44 = vrot.slane %v14442_v39, 1  ;;  %v6143_v6 = vmax.f32 %v6039_v9, 0.0  ;;  %v6147_v23 = vmax.f32 %v6043_v11, 0.0  ;;  %v3959_v5 = vrot.slane %v3691_v58, 2 }
 0x127   : > { %v2318_v33 = vsel %vm2297_vm1, %v2316_v37, %v23476_v4  ;;  %v2327_v28 = vsel %vm2297_vm1, %v2325_v22, %v23477_v3  ;;  %v14603_v37 = vld [vmem:[%s22812_s1 + $0x1] ss:$0 sm:$0xff]  ;;  %v23479_v39 = vrot.slane %v14446_v27, 1  ;;  %v3968_v63 = vrot.slane %v3696_v29, 2  ;;  %v14636_v3 = vpop.permute.xlu0 %1238 }
 0x128   : > { %v2644_v57 = vadd.f32 %v2318_v33, %v1939_v0  ;;  %v3257_v38 = vsel %vm1592_vm0, %v3255_v18, %v23478_v44  ;;  %v2648_v62 = vadd.f32 %v2327_v28, %v1943_v52  ;;  %v14607_v12 = vmul.f32 %v14603_v37, %v14115_v13 }
 0x129   : > { %v3266_v7 = vsel %vm1592_vm0, %v3264_v53, %v23479_v39  ;;  %v14614_v45 = vmul.f32 %v14603_v37, %v14219_v36  ;;  %v6356_v52 = vmax.f32 %v6143_v6, %v6147_v23  ;;  %v4630_v18 = vmul.f32 %v14501_v32, %v14219_v36  ;;  %v418_v23 = vld [vmem:[%s13346_s25 + $0x2c0] sm:$0xff] }
 0x12a   : > { %v2874_v0 = vadd.f32 %v2770_v26, %v2644_v57  ;;  %v2878_v22 = vadd.f32 %v2774_v41, %v2648_v62  ;;  %v14621_v26 = vld [vmem:[%s22812_s1 + $0x6] ss:$0 sm:$0xff]  ;;  %v4635_v29 = vmul.f32 %v14501_v32, %v14132_v40  ;;  %v5334_v41 = vmul.f32 %v14517_v8, %v14219_v36  ;;  %828 = vperm.xlu1 %13095, %v418_v23  }
 0x12b   : > { %v4413_v27 = vmul.f32 %v14621_v26, %v14219_v36  ;;  %v14631_v9 = vmul.f32 %v14603_v37, %v14302_v25  ;;  %6373 = vmatpush.msra.mxu2 %v6356_v52  ;;  %6399 = vmatpush.msrb.mxu3 %v6356_v52  ;;  %v23480_v4 = vrot.slane %v14450_v60, 2  ;;  %v4898_v53 = vrot.slane %v4630_v18, 1  ;;  %v410_v62 = vld [vmem:[%s13346_s25 + $0x280] sm:$0xff]  ;;  %v14654_v52 = vpop.permute.xlu2 %593 }
 0x12c   : > { %v3583_v58 = vadd.f32 %v3257_v38, %v2874_v0  ;;  %v3587_v11 = vadd.f32 %v3266_v7, %v2878_v22  ;;  %v23481_v28 = vrot.slane %v14454_v21, 2  ;;  %v4907_v38 = vrot.slane %v4635_v29, 1  ;;  %v419_v0 = vld [vmem:[%s13346_s25 + $0x2c8] sm:$0xff]  ;;  %793 = vperm.xlu0 %13094, %v410_v62  }
 0x12d   : > { %v3961_v33 = vsel %vm2297_vm1, %v3959_v5, %v23480_v4  ;;  %v5339_v6 = vmul.f32 %v14517_v8, %v14132_v40  ;;  %v4417_v60 = vmul.f32 %v14621_v26, %v14132_v40  ;;  %v4900_v5 = vsel %vm1592_vm0, %v4898_v53, %v4899_v43  ;;  %1288 = vperm.xlu2 %13096, %v419_v0  }
 0x12e   : > { %v3970_v57 = vsel %vm2297_vm1, %v3968_v63, %v23481_v28  ;;  %v4287_v44 = vadd.f32 %v3961_v33, %v3583_v58  ;;  %v5602_v7 = vrot.slane %v5334_v41, 2  ;;  %v2655_v21 = vadd.f32 %v14243_v14, %v14266_v59 }
 0x12f   : > { %v4291_v39 = vadd.f32 %v3970_v57, %v3587_v11  ;;  %v4923_v63 = vrot.slane %v14284_v17, 1  ;;  %v4909_v18 = vsel %vm1592_vm0, %v4907_v38, %v4908_v56  ;;  %v1643_v51 = vrot.slane %v14607_v12, 1 }
 0x130   : > { %v4517_v22 = vadd.f32 %v4413_v27, %v4287_v44  ;;  %v14663_v58 = vmul.f32 %v14501_v32, %v14636_v3  ;;  %v14667_v59 = vmul.f32 %v14603_v37, %v14582_v15  ;;  %v14671_v35 = vmul.f32 %v14603_v37, %v14468_v48 }
 0x131   : > { %v4521_v14 = vadd.f32 %v4417_v60, %v4291_v39  ;;  %v5611_v27 = vrot.slane %v5339_v6, 2  ;;  %v22881_v29 = vrot.slane %v14631_v9, 1  ;;  %v14676_v41 = vmul.f32 %v14603_v37, %v14654_v52  ;;  %v14710_v60 = vpop.permute.xlu1 %628 }
 0x132   : > { %23482 = vst [vmem:[#allocation11_spill] sm:$0xff] %v14667_v59  ;;  %v5226_v56 = vadd.f32 %v4900_v5, %v4517_v22  ;;  %v5604_v4 = vsel %vm2297_vm1, %v5602_v7, %v5603_v30  ;;  %v14683_v33 = vmul.f32 %v14517_v8, %v14636_v3  ;;  %v23484_v53 = vrot.slane %v14525_v31, 2  ;;  %v14703_v31 = vld [vmem:[%s22813_s2] ss:$0 sm:$0xff] }
 0x133   : > { %23483 = vst [vmem:[#allocation15_spill] sm:$0xff] %v14676_v41  ;;  %v5230_v11 = vadd.f32 %v4909_v18, %v4521_v14  ;;  %v1015_v44 = vmul.f32 %v14410_v24, %v14115_v13  ;;  %v4932_v38 = vrot.slane %v14663_v58, 1  ;;  %v23485_v23 = vrot.slane %v14166_v54, 1 }
 0x134   : > { %v5613_v28 = vsel %vm2297_vm1, %v5611_v27, %v23484_v53  ;;  %v5930_v57 = vadd.f32 %v5604_v4, %v5226_v56  ;;  %v14698_v1 = vmul.f32 %v14272_v2, %v14115_v13  ;;  %v2781_v39 = vmul.f32 %v14307_v55, %v14115_v13 }
 0x135   : > { %v5934_v6 = vadd.f32 %v5613_v28, %v5230_v11  ;;  %v1646_v30 = vsel %vm1592_vm0, %v1643_v51, %v23485_v23  ;;  %v2785_v54 = vmul.f32 %v14307_v55, %v14568_v46  ;;  %v14716_v22 = vmul.f32 %v14291_v49, %v14115_v13 }
 0x136   : > { %v6038_v62 = vadd.f32 %v14703_v31, %v5930_v57  ;;  %v1954_v0 = vadd.f32 %v1646_v30, %v1015_v44  ;;  %v2348_v7 = vrot.slane %v14698_v1, 2  ;;  %v14720_v18 = vmul.f32 %v14291_v49, %v14568_v46 }
 0x137   : > { %v6042_v5 = vadd.f32 %v14703_v31, %v5934_v6  ;;  %v2885_v14 = vadd.f32 %v2781_v39, %v2655_v21  ;;  %v14724_v56 = vmul.f32 %v14314_v61, %v14115_v13  ;;  %v14728_v27 = vmul.f32 %v14314_v61, %v14568_v46 }
 0x138   : > { %v6142_v58 = vmax.f32 %v6038_v62, 0.0  ;;  %v23486_v4 = vrot.slane %v14180_v47, 2  ;;  %v3278_v28 = vrot.slane %v14716_v22, 1  ;;  %v3287_v21 = vrot.slane %v14720_v18, 1 }
 0x139   : > { %v6146_v11 = vmax.f32 %v6042_v5, 0.0  ;;  %v22879_v57 = vrot.slane %v14724_v56, 2  ;;  %v22878_v44 = vrot.slane %v14728_v27, 2  ;;  %v4424_v6 = vmul.f32 %v14621_v26, %v14568_v46 }
 0x13a   : > { %v2351_v53 = vsel %vm2297_vm1, %v2348_v7, %v23486_v4  ;;  %v23487_v23 = vrot.slane %v14187_v10, 1  ;;  %v23488_v62 = vrot.slane %v14246_v20, 1  ;;  %v4428_v39 = vmul.f32 %v14621_v26, %v14710_v60 }
 0x13b   : > { %v2659_v13 = vadd.f32 %v2351_v53, %v1954_v0  ;;  %v6355_v47 = vmax.f32 %v6142_v58, %v6146_v11  ;;  %v23489_v53 = vrot.slane %v14194_v16, 2  ;;  %v3994_v20 = vsel %vm2297_vm1, %v22878_v44, %v3993_v19  ;;  %v416_v58 = vld [vmem:[%s13346_s25 + $0x2b0] sm:$0xff]  ;;  %v417_v11 = vld [vmem:[%s13346_s25 + $0x2b8] sm:$0xff] }
 0x13c   : > { %v3281_v30 = vsel %vm1592_vm0, %v3278_v28, %v23487_v23  ;;  %v3290_v0 = vsel %vm1592_vm0, %v3287_v21, %v23488_v62  ;;  %v415_v23 = vld [vmem:[%s13346_s25 + $0x2a8] sm:$0xff]  ;;  %v14772_v16 = vmul.f32 %v14501_v32, %v14710_v60  ;;  %v14776_v50 = vmul.f32 %v14517_v8, %v14568_v46  ;;  %818 = vperm.xlu1 %13095, %v416_v58  }
 0x13d   : > { %v2889_v5 = vadd.f32 %v2785_v54, %v2659_v13  ;;  %v3594_v4 = vadd.f32 %v3281_v30, %v2885_v14  ;;  %v3985_v10 = vsel %vm2297_vm1, %v22879_v57, %v23489_v53  ;;  %6374 = vmatpush.msra.mxu2 %v6355_v47  ;;  %6400 = vmatpush.msrb.mxu3 %v6355_v47  ;;  %v5627_v14 = vrot.slane %v14354_v42, 2 }
 0x13e   : > { %v14768_v54 = vmul.f32 %v14501_v32, %v14568_v46  ;;  %v14781_v30 = vmul.f32 %v14517_v8, %v14710_v60  ;;  %v5636_v47 = vrot.slane %v14683_v33, 2  ;;  %823 = vperm.xlu0 %13094, %v417_v11   ;;  %v22880_v53 = vrot.slane %v14772_v16, 1  ;;  %813 = vperm.xlu2 %13096, %v415_v23   ;;  %v14792_v33 = vpop.permute.xlu1 %603  ;;  %v23493_v23 = vld [vmem:[#allocation7_spill] sm:$0xff] }
 0x13f   : > { %v3598_v19 = vadd.f32 %v3290_v0, %v2889_v5  ;;  %v4298_v13 = vadd.f32 %v3985_v10, %v3594_v4  ;;  %v5625_v43 = vrot.slane %v14776_v50, 2  ;;  %v1010_v44 = vmul.f32 %v14410_v24, %v14042_v34  ;;  %23490 = vst [vmem:[#allocation16_spill] sm:$0xff] %v14792_v33  ;;  %v23506_v50 = vld [vmem:[#allocation13_spill] sm:$0xff] }
 0x140   : > { %v4921_v62 = vrot.slane %v14768_v54, 1  ;;  %v5634_v5 = vrot.slane %v14781_v30, 2  ;;  %v1014_v4 = vmul.f32 %v14410_v24, %v14302_v25  ;;  %v4933_v58 = vsel %vm1592_vm0, %v22880_v53, %v4932_v38 }
 0x141   : > { %v4302_v42 = vadd.f32 %v3994_v20, %v3598_v19  ;;  %v4528_v0 = vadd.f32 %v4424_v6, %v4298_v13  ;;  %v5628_v6 = vsel %vm2297_vm1, %v5625_v43, %v5627_v14  ;;  %v23491_v20 = vld [vmem:[#allocation10_spill] sm:$0xff]  ;;  %v23494_v19 = vrot.slane %v23493_v23, 1 }
 0x142   : > { %v4924_v10 = vsel %vm1592_vm0, %v4921_v62, %v4923_v63  ;;  %v23492_v11 = vrot.slane %v23491_v20, 1  ;;  %v5637_v63 = vsel %vm2297_vm1, %v5634_v5, %v5636_v47  ;;  %v1644_v38 = vsel %vm1592_vm0, %v22881_v29, %v1643_v51 }
 0x143   : > { %v4532_v57 = vadd.f32 %v4428_v39, %v4302_v42  ;;  %v5237_v17 = vadd.f32 %v4924_v10, %v4528_v0  ;;  %v1953_v14 = vadd.f32 %v1644_v38, %v1014_v4  ;;  %v14820_v20 = vmul.f32 %v14272_v2, %v14042_v34 }
 0x144   : > { %v1635_v13 = vsel %vm1592_vm0, %v23494_v19, %v23492_v11  ;;  %v14824_v39 = vmul.f32 %v14272_v2, %v14302_v25  ;;  %v2780_v47 = vmul.f32 %v14307_v55, %v14302_v25  ;;  %v2784_v12 = vmul.f32 %v14307_v55, %v14792_v33  ;;  %v23495_v11 = vld [vmem:[#allocation12_spill] sm:$0xff] }
 0x145   : > { %v1949_v53 = vadd.f32 %v1635_v13, %v1010_v44  ;;  %v5241_v42 = vadd.f32 %v4933_v58, %v4532_v57  ;;  %v5941_v0 = vadd.f32 %v5628_v6, %v5237_v17  ;;  %v22883_v51 = vrot.slane %v14820_v20, 2 }
 0x146   : > { %v22882_v44 = vrot.slane %v14824_v39, 2  ;;  %v14834_v34 = vmul.f32 %v14291_v49, %v14302_v25  ;;  %v14838_v4 = vmul.f32 %v14291_v49, %v14792_v33  ;;  %v14843_v58 = vmul.f32 %v14314_v61, %v14302_v25 }
 0x147   : > { %v5945_v57 = vadd.f32 %v5637_v63, %v5241_v42  ;;  %v6049_v10 = vadd.f32 %v14703_v31, %v5941_v0  ;;  %v14847_v6 = vmul.f32 %v14314_v61, %v14792_v33  ;;  %v23496_v19 = vrot.slane %v23495_v11, 2  ;;  %v1244_v42 = vpop.permute.xlu2 %1243 }
 0x148   : > { %v2349_v17 = vsel %vm2297_vm1, %v22882_v44, %v2348_v7  ;;  %v22891_v63 = vrot.slane %v14834_v34, 1  ;;  %v22890_v25 = vrot.slane %v14838_v4, 1  ;;  %v14863_v38 = vmul.f32 %v14603_v37, %v14568_v46 }
 0x149   : > { %v2340_v13 = vsel %vm2297_vm1, %v22883_v51, %v23496_v19  ;;  %v6053_v0 = vadd.f32 %v14703_v31, %v5945_v57  ;;  %v2658_v29 = vadd.f32 %v2349_v17, %v1953_v14  ;;  %v22889_v19 = vrot.slane %v14843_v58, 2 }
 0x14a   : > { %v2654_v11 = vadd.f32 %v2340_v13, %v1949_v53  ;;  %v3279_v1 = vsel %vm1592_vm0, %v22891_v63, %v3278_v28  ;;  %v3288_v7 = vsel %vm1592_vm0, %v22890_v25, %v3287_v21  ;;  %v22885_v44 = vrot.slane %v14847_v6, 2 }
 0x14b   : > { %v6153_v51 = vmax.f32 %v6049_v10, 0.0  ;;  %v6157_v57 = vmax.f32 %v6053_v0, 0.0  ;;  %v2888_v14 = vadd.f32 %v2784_v12, %v2658_v29  ;;  %v14879_v22 = vmul.f32 %v14603_v37, %v1244_v42 }
 0x14c   : > { %v2884_v53 = vadd.f32 %v2780_v47, %v2654_v11  ;;  %v23498_v13 = vrot.slane %v14724_v56, 2  ;;  %v4423_v28 = vmul.f32 %v14621_v26, %v14792_v33  ;;  %v14890_v21 = vmul.f32 %v14501_v32, %v14792_v33 }
 0x14d   : > { %23497 = vst [vmem:[#allocation10_spill] sm:$0xff] %v14879_v22  ;;  %v6417_v10 = vmax.f32 %v6153_v51, %v6157_v57  ;;  %v3597_v47 = vadd.f32 %v3288_v7, %v2888_v14  ;;  %v14894_v29 = vmul.f32 %v14501_v32, %v14582_v15  ;;  %v23499_v56 = vrot.slane %v14728_v27, 2 }
 0x14e   : > { %v3983_v18 = vsel %vm2297_vm1, %v22889_v19, %v23498_v13  ;;  %v3593_v17 = vadd.f32 %v3279_v1, %v2884_v53  ;;  %v22884_v0 = vrot.slane %v14890_v21, 1  ;;  %v14904_v11 = vmul.f32 %v14517_v8, %v14792_v33 }
 0x14f   : > { %v3992_v12 = vsel %vm2297_vm1, %v22885_v44, %v23499_v56  ;;  %v14908_v51 = vmul.f32 %v14517_v8, %v14582_v15  ;;  %6430 = vmatpush.msrb.mxu0 %v6417_v10  ;;  %6456 = vmatpush.msrb.mxu1 %v6417_v10  ;;  %v4427_v57 = vmul.f32 %v14621_v26, %v14582_v15  ;;  %v22888_v13 = vrot.slane %v14894_v29, 1 }
 0x150   : > { %v4297_v7 = vadd.f32 %v3983_v18, %v3593_v17  ;;  %v4301_v27 = vadd.f32 %v3992_v12, %v3597_v47  ;;  %v14914_v53 = vmul.f32 %v14272_v2, %v1244_v42  ;;  %v4922_v14 = vsel %vm1592_vm0, %v22884_v0, %v4921_v62 }
 0x151   : > { %v22887_v56 = vrot.slane %v14904_v11, 2  ;;  %v22893_v10 = vrot.slane %v14671_v35, 1  ;;  %v14926_v12 = vmul.f32 %v14291_v49, %v1244_v42  ;;  %v14929_v1 = vmul.f32 %v14314_v61, %v1244_v42 }
 0x152   : > { %23500 = vst [vmem:[#allocation7_spill] sm:$0xff] %v14914_v53  ;;  %v4527_v17 = vadd.f32 %v4423_v28, %v4297_v7  ;;  %v4531_v47 = vadd.f32 %v4427_v57, %v4301_v27  ;;  %v23501_v54 = vrot.slane %v14772_v16, 1  ;;  %v22886_v0 = vrot.slane %v14908_v51, 2 }
 0x153   : > { %v14939_v18 = vmul.f32 %v14501_v32, %v1244_v42  ;;  %v5626_v16 = vsel %vm2297_vm1, %v22887_v56, %v5625_v43  ;;  %v14954_v44 = vmul.f32 %v14517_v8, %v1244_v42  ;;  %v14964_v43 = vmul.f32 %v14603_v37, %v14792_v33 }
 0x154   : > { %v4931_v62 = vsel %vm1592_vm0, %v22888_v13, %v23501_v54  ;;  %v5236_v28 = vadd.f32 %v4922_v14, %v4527_v17  ;;  %v5635_v54 = vsel %vm2297_vm1, %v22886_v0, %v5634_v5  ;;  %v14958_v14 = vmul.f32 %v14603_v37, %v14710_v60 }
 0x155   : > { %23502 = vst [vmem:[#allocation12_spill] sm:$0xff] %v14939_v18  ;;  %v5240_v7 = vadd.f32 %v4931_v62, %v4531_v47  ;;  %v1023_v30 = vmul.f32 %v14410_v24, %v14710_v60  ;;  %v1371_v42 = vmul.f32 %v14603_v37, %v14636_v3  ;;  %v1013_v27 = vmul.f32 %v14410_v24, %v14468_v48 }
 0x156   : > { %23503 = vst [vmem:[#allocation17_spill] sm:$0xff] %v14958_v14  ;;  %v5940_v17 = vadd.f32 %v5626_v16, %v5236_v28  ;;  %v23504_v16 = vld [vmem:[#allocation9_spill] sm:$0xff]  ;;  %v23505_v62 = vrot.slane %v23493_v23, 1  ;;  %v23507_v0 = vrot.slane %v23506_v50, 1  ;;  %v23508_v56 = vrot.slane %v14631_v9, 1 }
 0x157   : > { %v5944_v47 = vadd.f32 %v5635_v54, %v5240_v7  ;;  %v14973_v7 = vpop.permute.xlu0 %598  ;;  %v1009_v54 = vmul.f32 %v14410_v24, %v23504_v16  ;;  %v14992_v13 = vmul.f32 %v14272_v2, %v14710_v60  ;;  %v14996_v53 = vmul.f32 %v14272_v2, %v23504_v16  ;;  %v15022_v16 = vpop.permute.xlu1 %618 }
 0x158   : > { %v6048_v57 = vadd.f32 %v14703_v31, %v5940_v17  ;;  %v1633_v5 = vsel %vm1592_vm0, %v23507_v0, %v23505_v62  ;;  %v1642_v17 = vsel %vm1592_vm0, %v22893_v10, %v23508_v56  ;;  %v15000_v9 = vmul.f32 %v14272_v2, %v14468_v48 }
 0x159   : > { %v6052_v28 = vadd.f32 %v14703_v31, %v5944_v47  ;;  %v1948_v63 = vadd.f32 %v1633_v5, %v1009_v54  ;;  %v1952_v23 = vadd.f32 %v1642_v17, %v1013_v27  ;;  %v15004_v56 = vmul.f32 %v14291_v49, %v14468_v48 }
 0x15a   : > { %v6152_v19 = vmax.f32 %v6048_v57, 0.0  ;;  %v15008_v62 = vmul.f32 %v14291_v49, %v14973_v7  ;;  %v15012_v27 = vmul.f32 %v14314_v61, %v14468_v48  ;;  %v1663_v57 = vrot.slane %v1371_v42, 1 }
 0x15b   : > { %v6156_v25 = vmax.f32 %v6052_v28, 0.0  ;;  %v22900_v5 = vrot.slane %v14996_v53, 2  ;;  %v2779_v54 = vmul.f32 %v14307_v55, %v14468_v48  ;;  %v2783_v42 = vmul.f32 %v14307_v55, %v14973_v7 }
 0x15c   : > { %v2076_v47 = vmul.f32 %v14272_v2, %v14636_v3  ;;  %v23509_v28 = vrot.slane %v14820_v20, 2  ;;  %v23511_v48 = vrot.slane %v15000_v9, 2  ;;  %v15044_v17 = vmul.f32 %v14501_v32, %v14973_v7 }
 0x15d   : > { %v6416_v0 = vmax.f32 %v6152_v19, %v6156_v25  ;;  %v15018_v25 = vmul.f32 %v14314_v61, %v14973_v7  ;;  %v15020_v19 = vpop.permute.xlu2 %633  ;;  %v15048_v10 = vmul.f32 %v14291_v49, %v14636_v3  ;;  %v22905_v15 = vrot.slane %v15012_v27, 2 }
 0x15e   : > { %v2338_v22 = vsel %vm2297_vm1, %v22900_v5, %v23509_v28  ;;  %v23512_v28 = vrot.slane %v14834_v34, 1  ;;  %v23516_v34 = vrot.slane %v14958_v14, 1 }
 0x15f   : > { %6431 = vmatpush.msrb.mxu0 %v6416_v0  ;;  %6457 = vmatpush.msrb.mxu1 %v6416_v0  ;;  %v23510_v0 = vrot.slane %v14824_v39, 2  ;;  %v2653_v59 = vadd.f32 %v2338_v22, %v1948_v63  ;;  %v23513_v39 = vrot.slane %v15004_v56, 1  ;;  %v22904_v18 = vrot.slane %v15018_v25, 2 }
 0x160   : > { %v15064_v63 = vmul.f32 %v14501_v32, %v15022_v16  ;;  %v1664_v22 = vsel %vm1592_vm0, %v23516_v34, %v1663_v57  ;;  %v2368_v57 = vrot.slane %v2076_v47, 2 }
 0x161   : > { %v2347_v41 = vsel %vm2297_vm1, %v23511_v48, %v23510_v0  ;;  %v3277_v5 = vsel %vm1592_vm0, %v23513_v39, %v23512_v28  ;;  %v23514_v0 = vrot.slane %v14838_v4, 1  ;;  %v23515_v48 = vrot.slane %v15008_v62, 1 }
 0x162   : > { %v2657_v20 = vadd.f32 %v2347_v41, %v1952_v23  ;;  %v2883_v23 = vadd.f32 %v2779_v54, %v2653_v59  ;;  %v15072_v4 = vmul.f32 %v14314_v61, %v14636_v3  ;;  %v4422_v3 = vmul.f32 %v14621_v26, %v14973_v7 }
 0x163   : > { %v3286_v33 = vsel %vm1592_vm0, %v23515_v48, %v23514_v0  ;;  %v15077_v0 = vmul.f32 %v14517_v8, %v14973_v7  ;;  %v15081_v48 = vmul.f32 %v14517_v8, %v15022_v16  ;;  %v23518_v41 = vrot.slane %v14847_v6, 2 }
 0x164   : > { %v2887_v28 = vadd.f32 %v2783_v42, %v2657_v20  ;;  %v3592_v59 = vadd.f32 %v3277_v5, %v2883_v23  ;;  %v1962_v42 = vadd.f32 %v1664_v22, %v1023_v30  ;;  %v23517_v20 = vrot.slane %v14843_v58, 2  ;;  %v428_v22 = vld [vmem:[%s13346_s25 + $0x310] sm:$0xff]  ;;  %v423_v23 = vld [vmem:[%s13346_s25 + $0x2e8] sm:$0xff] }
 0x165   : > { %v3990_v39 = vsel %vm2297_vm1, %v22904_v18, %v23518_v41  ;;  %v4426_v58 = vmul.f32 %v14621_v26, %v15022_v16  ;;  %v23521_v41 = vrot.slane %v15044_v17, 1  ;;  %v22907_v47 = vrot.slane %v15081_v48, 2  ;;  %868 = vperm.xlu1 %13095, %v428_v22   ;;  %848 = vperm.xlu0 %13094, %v423_v23   ;;  %v15126_v22 = vpop.permute.xlu1 %648 }
 0x166   : > { %v3596_v54 = vadd.f32 %v3286_v33, %v2887_v28  ;;  %v3981_v34 = vsel %vm2297_vm1, %v22905_v15, %v23517_v20  ;;  %v15098_v33 = vmul.f32 %v14603_v37, %v15020_v19  ;;  %v424_v28 = vld [vmem:[%s13346_s25 + $0x2f0] sm:$0xff]  ;;  %v23520_v20 = vrot.slane %v14890_v21, 1 }
 0x167   : > { %v4296_v5 = vadd.f32 %v3981_v34, %v3592_v59  ;;  %v5621_v15 = vrot.slane %v15077_v0, 2  ;;  %v15117_v34 = vpop.permute.xlu2 %663  ;;  %1293 = vperm.xlu2 %13096, %v424_v28   ;;  %v23524_v23 = vrot.slane %v14894_v29, 1  ;;  %v23527_v29 = vrot.slane %v14908_v51, 2 }
 0x168   : > { %23519 = vst [vmem:[#allocation9_spill] sm:$0xff] %v15098_v33  ;;  %v4300_v30 = vadd.f32 %v3990_v39, %v3596_v54  ;;  %v4920_v18 = vsel %vm1592_vm0, %v23521_v41, %v23520_v20  ;;  %v23522_v39 = vrot.slane %v14992_v13, 2  ;;  %v15124_v41 = vmul.f32 %v14272_v2, %v15020_v19  ;;  %v422_v54 = vld [vmem:[%s13346_s25 + $0x2e0] sm:$0xff] }
 0x169   : > { %v4526_v6 = vadd.f32 %v4422_v3, %v4296_v5  ;;  %v23525_v3 = vrot.slane %v15064_v63, 1  ;;  %v23530_v51 = vrot.slane %v14671_v35, 1 }
 0x16a   : > { %v2369_v59 = vsel %vm2297_vm1, %v23522_v39, %v2368_v57  ;;  %v4530_v21 = vadd.f32 %v4426_v58, %v4300_v30  ;;  %23523 = vst [vmem:[#allocation13_spill] sm:$0xff] %v15124_v41  ;;  %v15128_v57 = vpop.permute.xlu0 %613  ;;  %v15138_v30 = vmul.f32 %v14603_v37, %v15022_v16  ;;  %v23526_v39 = vrot.slane %v14904_v11, 2 }
 0x16b   : > { %v15119_v14 = vadd.f32 %v2369_v59, %v1962_v42  ;;  %v4929_v5 = vsel %vm1592_vm0, %v23525_v3, %v23524_v23  ;;  %v5235_v58 = vadd.f32 %v4920_v18, %v4526_v6  ;;  %v5633_v23 = vsel %vm2297_vm1, %v22907_v47, %v23527_v29  ;;  %v429_v47 = vld [vmem:[%s13346_s25 + $0x318] sm:$0xff] }
 0x16c   : > { %v5239_v28 = vadd.f32 %v4929_v5, %v4530_v21  ;;  %v5624_v59 = vsel %vm2297_vm1, %v5621_v15, %v23526_v39  ;;  %v1008_v3 = vmul.f32 %v14410_v24, %v14219_v36  ;;  %v23528_v42 = vrot.slane %v23506_v50, 1  ;;  %v23531_v39 = vld [vmem:[#allocation5_spill] sm:$0xff] }
 0x16d   : > { %v23529_v18 = vrot.slane %v14614_v45, 1  ;;  %v5939_v11 = vadd.f32 %v5624_v59, %v5235_v58  ;;  %v1012_v5 = vmul.f32 %v14410_v24, %v14132_v40  ;;  %v23532_v20 = vrot.slane %v23531_v39, 1  ;;  %843 = vperm.xlu1 %13095, %v422_v54   ;;  %1298 = vperm.xlu0 %13094, %v429_v47  }
 0x16e   : > { %v5943_v21 = vadd.f32 %v5633_v23, %v5239_v28  ;;  %v15168_v50 = vmul.f32 %v14603_v37, %v14973_v7  ;;  %v2062_v58 = vmul.f32 %v14272_v2, %v14132_v40  ;;  %v427_v28 = vld [vmem:[%s13346_s25 + $0x308] sm:$0xff]  ;;  %v3706_v54 = vmul.f32 %v14314_v61, %v14654_v52 }
 0x16f   : > { %v1631_v6 = vsel %vm1592_vm0, %v23529_v18, %v23528_v42  ;;  %v1640_v29 = vsel %vm1592_vm0, %v23532_v20, %v23530_v51  ;;  %v2057_v42 = vmul.f32 %v14272_v2, %v14219_v36  ;;  %v6047_v35 = vadd.f32 %v14703_v31, %v5939_v11  ;;  %863 = vperm.xlu2 %13096, %v427_v28   ;;  %v15193_v47 = vpop.permute.xlu2 %688  ;;  %v15198_v28 = vpop.permute.xlu1 %638 }
 0x170   : > { %v1947_v45 = vadd.f32 %v1631_v6, %v1008_v3  ;;  %v6051_v59 = vadd.f32 %v14703_v31, %v5943_v21  ;;  %v1951_v23 = vadd.f32 %v1640_v29, %v1012_v5  ;;  %v2997_v20 = vmul.f32 %v14291_v49, %v14132_v40 }
 0x171   : > { %v2334_v18 = vrot.slane %v2057_v42, 2  ;;  %v2343_v51 = vrot.slane %v2062_v58, 2  ;;  %v3002_v3 = vmul.f32 %v14291_v49, %v14654_v52  ;;  %v3701_v36 = vmul.f32 %v14314_v61, %v14132_v40 }
 0x172   : > { %v6151_v2 = vmax.f32 %v6047_v35, 0.0  ;;  %v6155_v6 = vmax.f32 %v6051_v59, 0.0  ;;  %v2778_v11 = vmul.f32 %v14307_v55, %v14132_v40  ;;  %v3273_v21 = vrot.slane %v2997_v20, 1  ;;  %v15200_v20 = vpop.permute.xlu0 %643 }
 0x173   : > { %v23533_v5 = vrot.slane %v14996_v53, 2  ;;  %v23534_v29 = vrot.slane %v15000_v9, 2  ;;  %v3282_v42 = vrot.slane %v3002_v3, 1  ;;  %v2782_v40 = vmul.f32 %v14307_v55, %v14654_v52 }
 0x174   : > { %v6415_v58 = vmax.f32 %v6151_v2, %v6155_v6  ;;  %v23535_v9 = vrot.slane %v15004_v56, 1  ;;  %v23536_v61 = vrot.slane %v15008_v62, 1  ;;  %v3977_v3 = vrot.slane %v3701_v36, 2 }
 0x175   : > { %v2336_v39 = vsel %vm2297_vm1, %v2334_v18, %v23533_v5  ;;  %v2345_v49 = vsel %vm2297_vm1, %v2343_v51, %v23534_v29  ;;  %v23537_v6 = vrot.slane %v15012_v27, 2  ;;  %v3986_v56 = vrot.slane %v3706_v54, 2 }
 0x176   : > { %v2652_v35 = vadd.f32 %v2336_v39, %v1947_v45  ;;  %v2656_v59 = vadd.f32 %v2345_v49, %v1951_v23  ;;  %v3275_v18 = vsel %vm1592_vm0, %v3273_v21, %v23535_v9  ;;  %v3284_v51 = vsel %vm1592_vm0, %v3282_v42, %v23536_v61  ;;  %6432 = vmatpush.msrb.mxu0 %v6415_v58 }
 0x177   : > { %6458 = vmatpush.msrb.mxu1 %v6415_v58  ;;  %v3979_v5 = vsel %vm2297_vm1, %v3977_v3, %v23537_v6  ;;  %v4640_v21 = vmul.f32 %v14501_v32, %v14654_v52  ;;  %v4645_v62 = vmul.f32 %v14501_v32, %v15128_v57  ;;  %v4425_v29 = vmul.f32 %v14621_v26, %v15128_v57 }
 0x178   : > { %v2882_v55 = vadd.f32 %v2778_v11, %v2652_v35  ;;  %v2886_v2 = vadd.f32 %v2782_v40, %v2656_v59  ;;  %v5349_v11 = vmul.f32 %v14517_v8, %v15128_v57  ;;  %v23538_v49 = vrot.slane %v15018_v25, 2  ;;  %v15235_v25 = vld [vmem:[%s22812_s1 + $0x2] ss:$0 sm:$0xff] }
 0x179   : > { %v4916_v42 = vrot.slane %v4640_v21, 1  ;;  %v4925_v54 = vrot.slane %v4645_v62, 1  ;;  %v5344_v58 = vmul.f32 %v14517_v8, %v14654_v52  ;;  %v15228_v35 = vmul.f32 %v14603_v37, %v15117_v34 }
 0x17a   : > { %v3591_v36 = vadd.f32 %v3275_v18, %v2882_v55  ;;  %v3595_v39 = vadd.f32 %v3284_v51, %v2886_v2  ;;  %v3988_v27 = vsel %vm2297_vm1, %v3986_v56, %v23538_v49  ;;  %v4421_v9 = vmul.f32 %v14621_v26, %v14654_v52 }
 0x17b   : > { %23539 = vst [vmem:[#allocation5_spill] sm:$0xff] %v15228_v35  ;;  %v15239_v18 = vmul.f32 %v15235_v25, %v15117_v34  ;;  %v23541_v61 = vrot.slane %v15044_v17, 1  ;;  %v23542_v3 = vrot.slane %v15064_v63, 1  ;;  %v5629_v2 = vrot.slane %v5349_v11, 2 }
 0x17c   : > { %v4295_v59 = vadd.f32 %v3979_v5, %v3591_v36  ;;  %v4299_v40 = vadd.f32 %v3988_v27, %v3595_v39  ;;  %v15249_v6 = vmul.f32 %v14410_v24, %v15126_v22  ;;  %v15253_v5 = vmul.f32 %v14603_v37, %v15126_v22 }
 0x17d   : > { %23540 = vst [vmem:[#allocation18_spill] sm:$0xff] %v15239_v18  ;;  %v4918_v51 = vsel %vm1592_vm0, %v4916_v42, %v23541_v61  ;;  %v4927_v55 = vsel %vm1592_vm0, %v4925_v54, %v23542_v3  ;;  %v15257_v17 = vmul.f32 %v15235_v25, %v15126_v22  ;;  %v15261_v63 = vmul.f32 %v14603_v37, %v15128_v57  ;;  %v1249_v54 = vpop.permute.xlu1 %1248 }
 0x17e   : > { %23543 = vst [vmem:[#allocation19_spill] sm:$0xff] %v15249_v6  ;;  %v4525_v56 = vadd.f32 %v4421_v9, %v4295_v59  ;;  %v4529_v21 = vadd.f32 %v4425_v29, %v4299_v40  ;;  %v15265_v62 = vmul.f32 %v14603_v37, %v15198_v28  ;;  %v5620_v24 = vrot.slane %v5344_v58, 2  ;;  %v1259_v29 = vpop.permute.xlu2 %1258  ;;  %v15280_v59 = vpop.permute.xlu0 %668 }
 0x17f   : > { %23544 = vst [vmem:[#allocation20_spill] sm:$0xff] %v15253_v5  ;;  %v15270_v39 = vmul.f32 %v15235_v25, %v15198_v28  ;;  %v15274_v27 = vmul.f32 %v14603_v37, %v15200_v20  ;;  %v15278_v42 = vmul.f32 %v15235_v25, %v15200_v20  ;;  %v23551_v40 = vrot.slane %v15081_v48, 2 }
 0x180   : > { %23545 = vst [vmem:[#allocation21_spill] sm:$0xff] %v15257_v17  ;;  %v5234_v11 = vadd.f32 %v4918_v51, %v4525_v56  ;;  %v5238_v49 = vadd.f32 %v4927_v55, %v4529_v21  ;;  %v5622_v58 = vsel %vm2297_vm1, %v5620_v24, %v5621_v15  ;;  %v15294_v0 = vmul.f32 %v14603_v37, %v1259_v29 }
 0x181   : > { %23546 = vst [vmem:[#allocation22_spill] sm:$0xff] %v15265_v62  ;;  %v5631_v9 = vsel %vm2297_vm1, %v5629_v2, %v23551_v40  ;;  %v15298_v48 = vmul.f32 %v15235_v25, %v1259_v29  ;;  %v15324_v15 = vmul.f32 %v14517_v8, %v1259_v29  ;;  %v15328_v36 = vmul.f32 %v14603_v37, %v1249_v54  ;;  %v23571_v62 = vld [vmem:[#allocation6_spill] sm:$0xff] }
 0x182   : > { %23547 = vst [vmem:[#allocation23_spill] sm:$0xff] %v15270_v39  ;;  %v5938_v3 = vadd.f32 %v5622_v58, %v5234_v11  ;;  %v5942_v55 = vadd.f32 %v5631_v9, %v5238_v49  ;;  %v15307_v58 = vld [vmem:[%s22812_s1 + $0x4] ss:$0 sm:$0xff]  ;;  %v15315_v9 = vld [vmem:[%s22812_s1 + $0x5] ss:$0 sm:$0xff]  ;;  %v15331_v11 = vmul.f32 %v15235_v25, %v1249_v54  ;;  %v15340_v21 = vmul.f32 %v14501_v32, %v1249_v54 }
 0x183   : > { %23548 = vst [vmem:[#allocation24_spill] sm:$0xff] %v15274_v27  ;;  %v15310_v40 = vmul.f32 %v15307_v58, %v1259_v29  ;;  %v15334_v56 = vmul.f32 %v15307_v58, %v1249_v54  ;;  %v15337_v51 = vmul.f32 %v15315_v9, %v1249_v54  ;;  %v15349_v49 = vmul.f32 %v15235_v25, %v15280_v59 }
 0x184   : > { %23549 = vst [vmem:[#allocation25_spill] sm:$0xff] %v15278_v42  ;;  %v6046_v2 = vadd.f32 %v14703_v31, %v5938_v3  ;;  %v6050_v24 = vadd.f32 %v14703_v31, %v5942_v55  ;;  %v15318_v3 = vmul.f32 %v15315_v9, %v1259_v29  ;;  %v15321_v55 = vmul.f32 %v14501_v32, %v1259_v29 }
 0x185   : > { %23550 = vst [vmem:[#allocation26_spill] sm:$0xff] %v15280_v59  ;;  %v15344_v29 = vmul.f32 %v14603_v37, %v15280_v59  ;;  %v15353_v45 = vmul.f32 %v15307_v58, %v15280_v59  ;;  %v6238_v23 = vlaneseq  ;;  %v15365_v39 = vmul.f32 %v14517_v8, %v1249_v54 }
 0x186   : > { %23552 = vst [vmem:[#allocation27_spill] sm:$0xff] %v15294_v0  ;;  %v6150_v53 = vmax.f32 %v6046_v2, 0.0  ;;  %v6154_v61 = vmax.f32 %v6050_v24, 0.0  ;;  %v15367_v0 = vpop.permute.xlu1 %653  ;;  %v15369_v32 = vpop.permute.xlu0 %658  ;;  %v23572_v18 = vrot.slane %v23571_v62, 1  ;;  %v23573_v42 = vrot.slane %v14863_v38, 1 }
 0x187   : > { %23553 = vst [vmem:[#allocation28_spill] sm:$0xff] %v15298_v48  ;;  %v15401_v8 = vmul.f32 %v15235_v25, %v15367_v0  ;;  %v15405_v48 = vmul.f32 %v14603_v37, %v15369_v32  ;;  %v15421_v27 = vmul.f32 %v15235_v25, %v14568_v46  ;;  %v23578_v5 = vrot.slane %v14926_v12, 1 }
 0x188   : > { %23554 = vst [vmem:[#allocation29_spill] sm:$0xff] %v15310_v40  ;;  %v6414_v2 = vmax.f32 %v6150_v53, %v6154_v61  ;;  %v15359_v53 = vpop.permute.xlu2 %678  ;;  %v15389_v61 = vshrl.u32 %v6238_v23, 7  ;;  %v15410_v40 = vand.u32 127, %v6238_v23  ;;  %v1655_v35 = vsel %vm1592_vm0, %v23573_v42, %v23572_v18 }
 0x189   : > { %23555 = vst [vmem:[#allocation30_spill] sm:$0xff] %v15318_v3  ;;  %v15387_v41 = vmul.f32 %v14603_v37, %v15359_v53  ;;  %v15393_v33 = vmul.f32 %v15235_v25, %v15359_v53  ;;  %v15397_v3 = vmul.f32 %v14603_v37, %v15367_v0  ;;  %v15435_v18 = vmul.f32 %v15307_v58, %v14710_v60 }
 0x18a   : > { %23556 = vst [vmem:[#allocation31_spill] sm:$0xff] %v15321_v55  ;;  %6433 = vmatpush.msrb.mxu0 %v6414_v2  ;;  %6459 = vmatpush.msrb.mxu1 %v6414_v2  ;;  %v15376_v2 = vld [vmem:[%s22812_s1] ss:$0 sm:$0xff]  ;;  %v15408_v54 = vadd.s32 8, %v15389_v61  ;;  %v15441_v42 = vmul.f32 %v15307_v58, %v15126_v22  ;;  %v15445_v55 = vmul.f32 %v15315_v9, %v14710_v60  ;;  %v23576_v17 = vrot.slane %v15421_v27, 2 }
 0x18b   : > { %23557 = vst [vmem:[#allocation32_spill] sm:$0xff] %v15324_v15  ;;  %v15380_v24 = vmul.f32 %v15376_v2, %v15280_v59  ;;  %v15426_v15 = vld [vmem:[%s22812_s1 + $0x3] ss:$0 sm:$0xff] }
 0x18c   : > { %23558 = vst [vmem:[#allocation33_spill] sm:$0xff] %v15334_v56  ;;  %v2793_v23 = vmul.f32 %v15426_v15, %v15126_v22  ;;  %v2789_v62 = vmul.f32 %v15426_v15, %v14710_v60  ;;  %vm6251_vm3 = vcmp.lt.s32.totalorder %v15408_v54, 13  ;;  %v22942_v60 = vrot.slane %v15441_v42, 1 }
 0x18d   : > { %23559 = vst [vmem:[#allocation34_spill] sm:$0xff] %v15337_v51  ;;  %v22941_v51 = vrot.slane %v15435_v18, 1 }
 0x18e   : > { %23560 = vst [vmem:[#allocation35_spill] sm:$0xff] %v15344_v29 }
 0x18f   : > { %23561 = vst [vmem:[#allocation36_spill] sm:$0xff] %v15353_v45  ;;  %v15453_v45 = vmul.f32 %v15315_v9, %v15126_v22 }
 0x190   : > { %23562 = vst [vmem:[#allocation37_spill] sm:$0xff] %v15359_v53  ;;  %v1019_v53 = vmul.f32 %v15376_v2, %v14568_v46  ;;  %v23574_v46 = vld [vmem:[#allocation14_spill] sm:$0xff] }
 0x191   : > { %23563 = vst [vmem:[#allocation38_spill] sm:$0xff] %v15387_v41  ;;  %v23575_v56 = vrot.slane %v23574_v46, 2  ;;  %v4436_v46 = vmul.f32 %v14621_v26, %v15280_v59 }
 0x192   : > { %23564 = vst [vmem:[#allocation39_spill] sm:$0xff] %v15389_v61  ;;  %v420_v61 = vld [vmem:[%s13346_s25 + $0x2d0] sm:$0xff] }
 0x193   : > { %23565 = vst [vmem:[#allocation40_spill] sm:$0xff] %v15393_v33  ;;  %v2360_v6 = vsel %vm2297_vm1, %v23576_v17, %v23575_v56  ;;  %v23577_v17 = vrot.slane %v15048_v10, 1  ;;  %833 = vperm.xlu2 %13096, %v420_v61   ;;  %v23589_v61 = vrot.slane %v15344_v29, 1 }
 0x194   : > { %23566 = vst [vmem:[#allocation41_spill] sm:$0xff] %v15397_v3  ;;  %v15504_v3 = vpop.permute.xlu2 %693 }
 0x195   : > { %23567 = vst [vmem:[#allocation42_spill] sm:$0xff] %v15401_v8  ;;  %v1958_v8 = vadd.f32 %v1655_v35, %v1019_v53  ;;  %v2897_v53 = vadd.f32 %v2793_v23, %v15119_v14  ;;  %v22953_v23 = vrot.slane %v15453_v45, 2  ;;  %v3299_v56 = vsel %vm1592_vm0, %v22941_v51, %v23577_v17 }
 0x196   : > { %23568 = vst [vmem:[#allocation43_spill] sm:$0xff] %v15405_v48  ;;  %v22940_v48 = vmul.u32 2, %v15408_v54 }
 0x197   : > { %23569 = vst [vmem:[#allocation44_spill] sm:$0xff] %v15408_v54  ;;  %v2663_v14 = vadd.f32 %v2360_v6, %v1958_v8  ;;  %v3308_v6 = vsel %vm1592_vm0, %v22942_v60, %v23578_v5  ;;  %v15483_v8 = vld [vmem:[%s22812_s1 + $0x7] ss:$0 sm:$0xff]  ;;  %v23580_v5 = vrot.slane %v14929_v1, 2  ;;  %v15513_v1 = vld [vmem:[%s22812_s1 + $0x8] ss:$0 sm:$0xff] }
 0x198   : > { %23570 = vst [vmem:[#allocation45_spill] sm:$0xff] %v15410_v40  ;;  %v6263_v35 = vadd.s32 1, %v22940_v48  ;;  %v4432_v48 = vmul.f32 %v14621_v26, %v15126_v22  ;;  %v15487_v26 = vmul.f32 %v15483_v8, %v15126_v22  ;;  %v15491_v10 = vmul.f32 %v15483_v8, %v15280_v59  ;;  %v426_v54 = vld [vmem:[%s13346_s25 + $0x300] sm:$0xff] }
 0x199   : > { %v2893_v17 = vadd.f32 %v2789_v62, %v2663_v14  ;;  %v3606_v51 = vadd.f32 %v3308_v6, %v2897_v53  ;;  %v4012_v60 = vsel %vm2297_vm1, %v22953_v23, %v23580_v5  ;;  %23581 = vst [vmem:[#allocation14_spill] sm:$0xff] %v15504_v3  ;;  %v15517_v62 = vmul.f32 %v15513_v1, %v15126_v22 }
 0x19a   : > { %vm6266_vm4 = vcmp.eq.s32.totalorder %v15410_v40, %v6263_v35  ;;  %v22951_v35 = vmov 0.0   ;;  %v421_v40 = vld [vmem:[%s13346_s25 + $0x2d8] sm:$0xff]  ;;  %v15521_v53 = vmul.f32 %v15513_v1, %v15280_v59  ;;  %858 = vperm.xlu1 %13095, %v426_v54   ;;  %v23582_v6 = vrot.slane %v15072_v4, 2 }
 0x19b   : > { %vm6269_vm5 = vmand %vm6266_vm4, %vm6251_vm3  ;;  %v3602_v14 = vadd.f32 %v3299_v56, %v2893_v17  ;;  %v23583_v5 = vrot.slane %v15445_v55, 2  ;;  %v4310_v33 = vadd.f32 %v4012_v60, %v3606_v51  ;;  %838 = vperm.xlu0 %13094, %v421_v40   ;;  %v23584_v22 = vrot.slane %v15340_v21, 1 }
 0x19c   : > { %v15494_v12 = vsel %vm6269_vm5, 1.0, %v22951_v35  ;;  %v5654_v35 = vrot.slane %v15365_v39, 2  ;;  %v22958_v54 = vrot.slane %v15517_v62, 2  ;;  %v5645_v56 = vrot.slane %v14954_v44, 2 }
 0x19d   : > { %23579 = vst [vmem:[#allocation6_spill] sm:$0xff] %v15494_v12  ;;  %11073 = vmatmul.msk.f32.vlgmr.msra.gmra.mxu3 %vm6281_vm2, %v15494_v12  ;;  %v4003_v23 = vsel %vm2297_vm1, %v23583_v5, %v23582_v6  ;;  %v23585_v12 = vrot.slane %v15491_v10, 1  ;;  %v22960_v4 = vrot.slane %v15521_v53, 2  ;;  %v15539_v17 = vmul.f32 %v15235_v25, %v15369_v32 }
 0x19e   : > { %v15543_v39 = vmul.f32 %v14603_v37, %v15504_v3  ;;  %v4306_v51 = vadd.f32 %v4003_v23, %v3602_v14  ;;  %v4540_v21 = vadd.f32 %v4436_v46, %v4310_v33  ;;  %v23588_v40 = vrot.slane %v15328_v36, 1  ;;  %v23593_v23 = vld [vmem:[#allocation16_spill] sm:$0xff] }
 0x19f   : > { %v4951_v59 = vsel %vm1592_vm0, %v23585_v12, %v23584_v22  ;;  %23586 = vst [vmem:[#allocation46_spill] sm:$0xff] %v15539_v17  ;;  %v23590_v12 = vld [vmem:[#allocation12_spill] sm:$0xff]  ;;  %v23592_v6 = vrot.slane %v15487_v26, 1  ;;  %v5646_v22 = vsel %vm2297_vm1, %v22958_v54, %v5645_v56  ;;  %v5655_v37 = vsel %vm2297_vm1, %v22960_v4, %v5654_v35  ;;  %v23599_v54 = vld [vmem:[#allocation11_spill] sm:$0xff] }
 0x1a0   : > { %23587 = vst [vmem:[#allocation47_spill] sm:$0xff] %v15543_v39  ;;  %v1682_v60 = vsel %vm1592_vm0, %v23589_v61, %v23588_v40  ;;  %v23591_v44 = vrot.slane %v23590_v12, 1  ;;  %v4536_v33 = vadd.f32 %v4432_v48, %v4306_v51  ;;  %v5249_v36 = vadd.f32 %v4951_v59, %v4540_v21  ;;  %v23594_v14 = vld [vmem:[#allocation8_spill] sm:$0xff] }
 0x1a1   : > { %v1018_v46 = vmul.f32 %v15376_v2, %v23593_v23  ;;  %v1022_v40 = vmul.f32 %v15376_v2, %v23594_v14  ;;  %v23595_v61 = vrot.slane %v14863_v38, 1  ;;  %v23596_v12 = vrot.slane %v14964_v43, 1 }
 0x1a2   : > { %v4942_v5 = vsel %vm1592_vm0, %v23592_v6, %v23591_v44  ;;  %v23597_v6 = vld [vmem:[#allocation17_spill] sm:$0xff]  ;;  %v23600_v29 = vrot.slane %v23599_v54, 1  ;;  %v15577_v59 = vmul.f32 %v15235_v25, %v23593_v23  ;;  %v15581_v48 = vmul.f32 %v15235_v25, %v23594_v14 }
 0x1a3   : > { %v1653_v44 = vsel %vm1592_vm0, %v23596_v12, %v23595_v61  ;;  %v23598_v56 = vrot.slane %v23597_v6, 1  ;;  %v5245_v51 = vadd.f32 %v4942_v5, %v4536_v33  ;;  %v5953_v38 = vadd.f32 %v5655_v37, %v5249_v36 }
 0x1a4   : > { %v1957_v21 = vadd.f32 %v1653_v44, %v1018_v46  ;;  %v22962_v61 = vrot.slane %v15577_v59, 2  ;;  %v22963_v12 = vrot.slane %v15581_v48, 2  ;;  %v2788_v6 = vmul.f32 %v15426_v15, %v23594_v14 }
 0x1a5   : > { %v1662_v35 = vsel %vm1592_vm0, %v23600_v29, %v23598_v56  ;;  %v2792_v29 = vmul.f32 %v15426_v15, %v15200_v20  ;;  %v23601_v23 = vmov 0.0   ;;  %v5949_v56 = vadd.f32 %v5646_v22, %v5245_v51 }
 0x1a6   : > { %v1961_v4 = vadd.f32 %v1662_v35, %v1022_v40  ;;  %6348 = vmatmul.f32.gmra.mxu3 %v23601_v23  ;;  %v6061_v39 = vadd.f32 %v14703_v31, %v5953_v38  ;;  %v15593_v5 = vmul.f32 %v15307_v58, %v23594_v14  ;;  %v15597_v37 = vmul.f32 %v15307_v58, %v15200_v20 }
 0x1a7   : > { %v23602_v33 = vrot.slane %v15421_v27, 2  ;;  %v23603_v46 = vrot.slane %v14992_v13, 2  ;;  %v15611_v40 = vmul.f32 %v15315_v9, %v23594_v14  ;;  %v15615_v44 = vmul.f32 %v15315_v9, %v15200_v20 }
 0x1a8   : > { %v6057_v27 = vadd.f32 %v14703_v31, %v5949_v56  ;;  %v6165_v35 = vmax.f32 %v6061_v39, 0.0  ;;  %v3303_v13 = vrot.slane %v15597_v37, 1  ;;  %v1970_v14 = vadd.f32 %v1682_v60, %v15380_v24 }
 0x1a9   : > { %v2358_v36 = vsel %vm2297_vm1, %v22962_v61, %v23602_v33  ;;  %v2367_v22 = vsel %vm2297_vm1, %v22963_v12, %v23603_v46  ;;  %v3294_v33 = vrot.slane %v15593_v5, 1  ;;  %v3998_v61 = vrot.slane %v15611_v40, 2  ;;  %v425_v40 = vld [vmem:[%s13346_s25 + $0x2f8] sm:$0xff] }
 0x1aa   : > { %v2662_v51 = vadd.f32 %v2358_v36, %v1957_v21  ;;  %v2666_v38 = vadd.f32 %v2367_v22, %v1961_v4  ;;  %v22971_v46 = vrot.slane %v15615_v44, 2  ;;  %v6161_v12 = vmax.f32 %v6057_v27, 0.0  ;;  %853 = vperm.xlu0 %13094, %v425_v40  }
 0x1ab   : > { %v23604_v23 = vrot.slane %v15435_v18, 1  ;;  %v23605_v4 = vrot.slane %v15441_v42, 1  ;;  %v23606_v21 = vrot.slane %v15445_v55, 2  ;;  %v15641_v18 = vld [vmem:[%s22812_s1 + $0x6] ss:$0 sm:$0xff]  ;;  %v15652_v56 = vmul.f32 %v15483_v8, %v15200_v20 }
 0x1ac   : > { %v2892_v17 = vadd.f32 %v2788_v6, %v2662_v51  ;;  %v2896_v3 = vadd.f32 %v2792_v29, %v2666_v38  ;;  %v4431_v60 = vmul.f32 %v15641_v18, %v15200_v20  ;;  %v6476_v6 = vmax.f32 %v6161_v12, %v6165_v35  ;;  %v15669_v35 = vpop.permute.xlu1 %1253 }
 0x1ad   : > { %v3297_v31 = vsel %vm1592_vm0, %v3294_v33, %v23604_v23  ;;  %v3306_v39 = vsel %vm1592_vm0, %v3303_v13, %v23605_v4  ;;  %v4001_v24 = vsel %vm2297_vm1, %v3998_v61, %v23606_v21  ;;  %v23607_v23 = vrot.slane %v15453_v45, 2 }
 0x1ae   : > { %v3601_v42 = vadd.f32 %v3297_v31, %v2892_v17  ;;  %v3605_v29 = vadd.f32 %v3306_v39, %v2896_v3  ;;  %v15656_v36 = vmul.f32 %v15483_v8, %v15117_v34  ;;  %v15660_v22 = vmul.f32 %v15513_v1, %v15200_v20  ;;  %6489 = vmatpush.msrb.mxu2 %v6476_v6 }
 0x1af   : > { %v4010_v55 = vsel %vm2297_vm1, %v22971_v46, %v23607_v23  ;;  %v15664_v3 = vmul.f32 %v15513_v1, %v15117_v34  ;;  %6515 = vmatpush.msra.mxu3 %v6476_v6  ;;  %v4435_v27 = vmul.f32 %v15641_v18, %v15117_v34  ;;  %v23608_v51 = vrot.slane %v15331_v11, 2 }
 0x1b0   : > { %v4305_v17 = vadd.f32 %v4001_v24, %v3601_v42  ;;  %v4309_v12 = vadd.f32 %v4010_v55, %v3605_v29  ;;  %v23609_v38 = vrot.slane %v15349_v49, 2  ;;  %v22970_v4 = vrot.slane %v15652_v56, 1 }
 0x1b1   : > { %v22969_v39 = vrot.slane %v15656_v36, 1  ;;  %v22968_v21 = vrot.slane %v15660_v22, 2  ;;  %v15683_v24 = vmul.f32 %v15426_v15, %v15193_v47  ;;  %v15687_v11 = vmul.f32 %v15307_v58, %v15193_v47 }
 0x1b2   : > { %v2387_v31 = vsel %vm2297_vm1, %v23609_v38, %v23608_v51  ;;  %v4535_v42 = vadd.f32 %v4431_v60, %v4305_v17  ;;  %v4539_v29 = vadd.f32 %v4435_v27, %v4309_v12  ;;  %v23610_v23 = vrot.slane %v15487_v26, 1 }
 0x1b3   : > { %v15679_v6 = vadd.f32 %v2387_v31, %v1970_v14  ;;  %v23611_v51 = vrot.slane %v15491_v10, 1  ;;  %v22967_v38 = vrot.slane %v15664_v3, 2  ;;  %v15702_v60 = vmul.f32 %v15307_v58, %v15669_v35 }
 0x1b4   : > { %v4940_v55 = vsel %vm1592_vm0, %v22970_v4, %v23610_v23  ;;  %v23612_v26 = vrot.slane %v15517_v62, 2  ;;  %v23613_v10 = vrot.slane %v15521_v53, 2  ;;  %v1017_v23 = vmul.f32 %v15376_v2, %v14973_v7 }
 0x1b5   : > { %v4949_v14 = vsel %vm1592_vm0, %v22969_v39, %v23611_v51  ;;  %v5244_v17 = vadd.f32 %v4940_v55, %v4535_v42  ;;  %v1021_v51 = vmul.f32 %v15376_v2, %v15022_v16  ;;  %v23614_v42 = vrot.slane %v14964_v43, 1 }
 0x1b6   : > { %v5248_v12 = vadd.f32 %v4949_v14, %v4539_v29  ;;  %v5644_v27 = vsel %vm2297_vm1, %v22968_v21, %v23612_v26  ;;  %v5653_v31 = vsel %vm2297_vm1, %v22967_v38, %v23613_v10  ;;  %v23615_v62 = vrot.slane %v15168_v50, 1 }
 0x1b7   : > { %v15725_v55 = vmul.f32 %v15315_v9, %v15193_v47  ;;  %v5948_v53 = vadd.f32 %v5644_v27, %v5244_v17  ;;  %v23616_v26 = vrot.slane %v23599_v54, 1  ;;  %v23617_v10 = vrot.slane %v15138_v30, 1 }
 0x1b8   : > { %v1651_v29 = vsel %vm1592_vm0, %v23615_v62, %v23614_v42  ;;  %v5952_v14 = vadd.f32 %v5653_v31, %v5248_v12  ;;  %v15735_v39 = vmul.f32 %v15235_v25, %v14973_v7  ;;  %v15740_v42 = vld [vmem:[%s22813_s2] ss:$0 sm:$0xff]  ;;  %v15746_v12 = vmul.f32 %v15235_v25, %v15022_v16 }
 0x1b9   : > { %v1660_v45 = vsel %vm1592_vm0, %v23617_v10, %v23616_v26  ;;  %v1956_v21 = vadd.f32 %v1651_v29, %v1017_v23  ;;  %v6056_v17 = vadd.f32 %v15740_v42, %v5948_v53  ;;  %v2791_v7 = vmul.f32 %v15426_v15, %v15198_v28 }
 0x1ba   : > { %v1960_v43 = vadd.f32 %v1660_v45, %v1021_v51  ;;  %v6060_v54 = vadd.f32 %v15740_v42, %v5952_v14  ;;  %v2787_v45 = vmul.f32 %v15426_v15, %v15022_v16  ;;  %v22972_v27 = vrot.slane %v15735_v39, 2 }
 0x1bb   : > { %v15755_v31 = vmul.f32 %v15307_v58, %v15022_v16  ;;  %v15759_v23 = vmul.f32 %v15307_v58, %v15198_v28  ;;  %v6160_v51 = vmax.f32 %v6056_v17, 0.0  ;;  %v2362_v29 = vrot.slane %v15746_v12, 2 }
 0x1bc   : > { %v6164_v62 = vmax.f32 %v6060_v54, 0.0  ;;  %v15764_v53 = vmul.f32 %v15315_v9, %v15022_v16  ;;  %v23618_v14 = vrot.slane %v15577_v59, 2  ;;  %v15775_v17 = vmul.f32 %v15315_v9, %v15198_v28 }
 0x1bd   : > { %v22976_v10 = vrot.slane %v15755_v31, 1  ;;  %v22975_v38 = vrot.slane %v15759_v23, 1  ;;  %v23619_v4 = vrot.slane %v15581_v48, 2  ;;  %v4430_v37 = vmul.f32 %v15641_v18, %v15198_v28 }
 0x1be   : > { %v2356_v26 = vsel %vm2297_vm1, %v22972_v27, %v23618_v14  ;;  %v6475_v54 = vmax.f32 %v6160_v51, %v6164_v62  ;;  %v22974_v46 = vrot.slane %v15764_v53, 2  ;;  %v15785_v14 = vmul.f32 %v15315_v9, %v15669_v35 }
 0x1bf   : > { %v2365_v16 = vsel %vm2297_vm1, %v2362_v29, %v23619_v4  ;;  %v2661_v59 = vadd.f32 %v2356_v26, %v1956_v21  ;;  %v3295_v48 = vsel %vm1592_vm0, %v22976_v10, %v3294_v33  ;;  %v22973_v51 = vrot.slane %v15775_v17, 2  ;;  %v23623_v10 = vld [vmem:[#allocation15_spill] sm:$0xff] }
 0x1c0   : > { %v2665_v27 = vadd.f32 %v2365_v16, %v1960_v43  ;;  %6490 = vmatpush.msrb.mxu2 %v6475_v54  ;;  %6516 = vmatpush.msra.mxu3 %v6475_v54  ;;  %v3304_v62 = vsel %vm1592_vm0, %v22975_v38, %v3303_v13  ;;  %v3999_v5 = vsel %vm2297_vm1, %v22974_v46, %v3998_v61  ;;  %v23620_v43 = vrot.slane %v15615_v44, 2  ;;  %v433_v13 = vld [vmem:[%s13346_s25 + $0x338] sm:$0xff]  ;;  %v434_v54 = vld [vmem:[%s13346_s25 + $0x340] sm:$0xff] }
 0x1c1   : > { %v2891_v21 = vadd.f32 %v2787_v45, %v2661_v59  ;;  %v15813_v45 = vmul.f32 %v15483_v8, %v15198_v28  ;;  %v15820_v61 = vmul.f32 %v15483_v8, %v15369_v32  ;;  %v15824_v44 = vmul.f32 %v15513_v1, %v15198_v28  ;;  %888 = vperm.xlu1 %13095, %v433_v13  }
 0x1c2   : > { %v2895_v33 = vadd.f32 %v2791_v7, %v2665_v27  ;;  %v4008_v26 = vsel %vm2297_vm1, %v22973_v51, %v23620_v43  ;;  %v15828_v27 = vmul.f32 %v15513_v1, %v15369_v32  ;;  %v4434_v59 = vmul.f32 %v15641_v18, %v15369_v32  ;;  %1303 = vperm.xlu2 %13096, %v434_v54  }
 0x1c3   : > { %v3600_v16 = vadd.f32 %v3295_v48, %v2891_v21  ;;  %v4935_v43 = vrot.slane %v15813_v45, 1  ;;  %v1016_v48 = vmul.f32 %v15376_v2, %v14654_v52  ;;  %v4944_v4 = vrot.slane %v15820_v61, 1 }
 0x1c4   : > { %v3604_v7 = vadd.f32 %v3304_v62, %v2895_v33  ;;  %v5639_v51 = vrot.slane %v15824_v44, 2  ;;  %v22977_v46 = vrot.slane %v15828_v27, 2  ;;  %v23621_v62 = vrot.slane %v15652_v56, 1 }
 0x1c5   : > { %v4304_v21 = vadd.f32 %v3999_v5, %v3600_v16  ;;  %v23622_v38 = vrot.slane %v15168_v50, 1  ;;  %v23624_v40 = vrot.slane %v23623_v10, 1  ;;  %v23625_v54 = vrot.slane %v15138_v30, 1 }
 0x1c6   : > { %v4308_v13 = vadd.f32 %v4008_v26, %v3604_v7  ;;  %v4938_v33 = vsel %vm1592_vm0, %v4935_v43, %v23621_v62  ;;  %v23626_v16 = vrot.slane %v15261_v63, 1  ;;  %v23627_v56 = vrot.slane %v15656_v36, 1 }
 0x1c7   : > { %v1649_v5 = vsel %vm1592_vm0, %v23624_v40, %v23622_v38  ;;  %v4534_v7 = vadd.f32 %v4430_v37, %v4304_v21  ;;  %v23628_v50 = vrot.slane %v15660_v22, 2  ;;  %v1020_v30 = vmul.f32 %v15376_v2, %v15128_v57  ;;  %v431_v40 = vld [vmem:[%s13346_s25 + $0x328] sm:$0xff] }
 0x1c8   : > { %v1658_v26 = vsel %vm1592_vm0, %v23626_v16, %v23625_v54  ;;  %v4947_v62 = vsel %vm1592_vm0, %v4944_v4, %v23627_v56  ;;  %v4538_v63 = vadd.f32 %v4434_v59, %v4308_v13  ;;  %v23629_v10 = vrot.slane %v15664_v3, 2  ;;  %v432_v59 = vld [vmem:[%s13346_s25 + $0x330] sm:$0xff]  ;;  %v430_v13 = vld [vmem:[%s13346_s25 + $0x320] sm:$0xff] }
 0x1c9   : > { %v5642_v38 = vsel %vm2297_vm1, %v5639_v51, %v23628_v50  ;;  %v1955_v37 = vadd.f32 %v1649_v5, %v1016_v48  ;;  %v2067_v21 = vmul.f32 %v15235_v25, %v14654_v52  ;;  %v5243_v22 = vadd.f32 %v4938_v33, %v4534_v7  ;;  %878 = vperm.xlu1 %13095, %v431_v40  }
 0x1ca   : > { %v5651_v36 = vsel %vm2297_vm1, %v22977_v46, %v23629_v10  ;;  %v1959_v54 = vadd.f32 %v1658_v26, %v1020_v30  ;;  %v2072_v16 = vmul.f32 %v15235_v25, %v15128_v57  ;;  %v2786_v56 = vmul.f32 %v15426_v15, %v15128_v57  ;;  %883 = vperm.xlu0 %13094, %v432_v59  }
 0x1cb   : > { %v5247_v3 = vadd.f32 %v4947_v62, %v4538_v63  ;;  %v2352_v50 = vrot.slane %v2067_v21, 2  ;;  %v3007_v10 = vmul.f32 %v15307_v58, %v15128_v57  ;;  %v3012_v48 = vmul.f32 %v15307_v58, %v15020_v19  ;;  %873 = vperm.xlu2 %13096, %v430_v13  }
 0x1cc   : > { %v5947_v52 = vadd.f32 %v5642_v38, %v5243_v22  ;;  %v2361_v5 = vrot.slane %v2072_v16, 2  ;;  %v3711_v33 = vmul.f32 %v15315_v9, %v15128_v57  ;;  %v3716_v26 = vmul.f32 %v15315_v9, %v15020_v19 }
 0x1cd   : > { %v5951_v7 = vadd.f32 %v5651_v36, %v5247_v3  ;;  %v23630_v30 = vrot.slane %v15735_v39, 2  ;;  %v3291_v63 = vrot.slane %v3007_v10, 1  ;;  %v3300_v21 = vrot.slane %v3012_v48, 1 }
 0x1ce   : > { %v6055_v46 = vadd.f32 %v15740_v42, %v5947_v52  ;;  %v2363_v38 = vsel %vm2297_vm1, %v2361_v5, %v2362_v29  ;;  %v3995_v22 = vrot.slane %v3711_v33, 2  ;;  %v2790_v39 = vmul.f32 %v15426_v15, %v15020_v19 }
 0x1cf   : > { %v2354_v62 = vsel %vm2297_vm1, %v2352_v50, %v23630_v30  ;;  %v6059_v16 = vadd.f32 %v15740_v42, %v5951_v7  ;;  %v2664_v36 = vadd.f32 %v2363_v38, %v1959_v54  ;;  %v23631_v40 = vrot.slane %v15755_v31, 1  ;;  %v438_v30 = vld [vmem:[%s13346_s25 + $0x360] sm:$0xff] }
 0x1d0   : > { %v2660_v57 = vadd.f32 %v2354_v62, %v1955_v37  ;;  %v6159_v13 = vmax.f32 %v6055_v46, 0.0  ;;  %v23632_v50 = vrot.slane %v15759_v23, 1  ;;  %v23633_v29 = vrot.slane %v15764_v53, 2  ;;  %v439_v53 = vld [vmem:[%s13346_s25 + $0x368] sm:$0xff]  ;;  %v437_v62 = vld [vmem:[%s13346_s25 + $0x358] sm:$0xff] }
 0x1d1   : > { %v3293_v59 = vsel %vm1592_vm0, %v3291_v63, %v23631_v40  ;;  %v6163_v54 = vmax.f32 %v6059_v16, 0.0  ;;  %v2894_v10 = vadd.f32 %v2790_v39, %v2664_v36  ;;  %v4004_v48 = vrot.slane %v3716_v26, 2  ;;  %1308 = vperm.xlu1 %13095, %v439_v53   ;;  %v23688_v16 = vld [vmem:[#allocation18_spill] sm:$0xff] }
 0x1d2   : > { %v2890_v3 = vadd.f32 %v2786_v56, %v2660_v57  ;;  %v3302_v12 = vsel %vm1592_vm0, %v3300_v21, %v23632_v50  ;;  %v3997_v37 = vsel %vm2297_vm1, %v3995_v22, %v23633_v29  ;;  %v4429_v31 = vmul.f32 %v15641_v18, %v15020_v19  ;;  %908 = vperm.xlu0 %13094, %v438_v30  }
 0x1d3   : > { %v4433_v46 = vmul.f32 %v15641_v18, %v15367_v0  ;;  %v4650_v23 = vmul.f32 %v15483_v8, %v15020_v19  ;;  %v4655_v56 = vmul.f32 %v15483_v8, %v15367_v0  ;;  %v6474_v5 = vmax.f32 %v6159_v13, %v6163_v54  ;;  %903 = vperm.xlu2 %13096, %v437_v62  }
 0x1d4   : > { %v3599_v52 = vadd.f32 %v3293_v59, %v2890_v3  ;;  %v3603_v33 = vadd.f32 %v3302_v12, %v2894_v10  ;;  %v5354_v7 = vmul.f32 %v15513_v1, %v15020_v19  ;;  %v5359_v26 = vmul.f32 %v15513_v1, %v15367_v0  ;;  %v15943_v10 = vld [vmem:[%s22812_s1 + $0x1] ss:$0 sm:$0xff] }
 0x1d5   : > { %v23634_v63 = vrot.slane %v15775_v17, 2  ;;  %v4934_v57 = vrot.slane %v4650_v23, 1  ;;  %v4943_v22 = vrot.slane %v4655_v56, 1  ;;  %v2905_v39 = vadd.f32 %v15683_v24, %v15679_v6  ;;  %6491 = vmatpush.msrb.mxu2 %v6474_v5  ;;  %6517 = vmatpush.msra.mxu3 %v6474_v5  ;;  %v23638_v6 = vld [vmem:[#allocation41_spill] sm:$0xff]  ;;  %v23642_v56 = vld [vmem:[#allocation20_spill] sm:$0xff] }
 0x1d6   : > { %v4303_v38 = vadd.f32 %v3997_v37, %v3599_v52  ;;  %v23636_v40 = vrot.slane %v15702_v60, 1  ;;  %v23637_v59 = vrot.slane %v15687_v11, 1  ;;  %v5647_v29 = vrot.slane %v5359_v26, 2 }
 0x1d7   : > { %v4006_v21 = vsel %vm2297_vm1, %v4004_v48, %v23634_v63  ;;  %v4936_v50 = vsel %vm1592_vm0, %v4934_v57, %v4935_v43  ;;  %v4945_v12 = vsel %vm1592_vm0, %v4943_v22, %v4944_v4  ;;  %v4029_v60 = vrot.slane %v15785_v14, 2  ;;  %v23645_v63 = vld [vmem:[#allocation45_spill] sm:$0xff]  ;;  %v15976_v22 = vpop.permute.xlu0 %708 }
 0x1d8   : > { %v3326_v13 = vsel %vm1592_vm0, %v23637_v59, %v23636_v40  ;;  %v4307_v17 = vadd.f32 %v4006_v21, %v3603_v33  ;;  %v4533_v3 = vadd.f32 %v4429_v31, %v4303_v38  ;;  %v5638_v54 = vrot.slane %v5354_v7, 2  ;;  %v23639_v31 = vld [vmem:[#allocation39_spill] sm:$0xff] }
 0x1d9   : > { %v15947_v45 = vmul.f32 %v15943_v10, %v15193_v47  ;;  %v3614_v61 = vadd.f32 %v3326_v13, %v2905_v39  ;;  %v22978_v4 = vrot.slane %v15725_v55, 2  ;;  %v6244_v52 = vmul.u32 2, %v23639_v31  ;;  %v23652_v59 = vld [vmem:[#allocation19_spill] sm:$0xff]  ;;  %v16077_v31 = vpop.permute.xlu1 %703 }
 0x1da   : > { %v4537_v37 = vadd.f32 %v4433_v46, %v4307_v17  ;;  %v5242_v43 = vadd.f32 %v4936_v50, %v4533_v3  ;;  %v5640_v14 = vsel %vm2297_vm1, %v5638_v54, %v5639_v51  ;;  %v23640_v46 = vld [vmem:[#allocation10_spill] sm:$0xff]  ;;  %v23643_v53 = vrot.slane %v23642_v56, 1  ;;  %v23653_v3 = vld [vmem:[#allocation7_spill] sm:$0xff] }
 0x1db   : > { %v23641_v23 = vrot.slane %v23640_v46, 1  ;;  %v1386_v33 = vmul.f32 %v15943_v10, %v15669_v35  ;;  %v4664_v7 = vmul.f32 %v15483_v8, %v15669_v35  ;;  %v23644_v26 = vrot.slane %v15828_v27, 2 }
 0x1dc   : > { %v5246_v48 = vadd.f32 %v4945_v12, %v4537_v37  ;;  %v5946_v30 = vadd.f32 %v5640_v14, %v5242_v43  ;;  %v4030_v51 = vsel %vm2297_vm1, %v22978_v4, %v4029_v60  ;;  %vm15970_vm6 = vcmp.eq.s32.totalorder %v23645_v63, %v6244_v52  ;;  %v23655_v12 = vld [vmem:[#allocation21_spill] sm:$0xff]  ;;  %v23657_v37 = vld [vmem:[#allocation26_spill] sm:$0xff] }
 0x1dd   : > { %v1673_v5 = vsel %vm1592_vm0, %v23643_v53, %v23641_v23  ;;  %v5649_v44 = vsel %vm2297_vm1, %v5647_v29, %v23644_v26  ;;  %v23646_v21 = vmov 0  ;;  %v15974_v38 = vadd.s32 1, %v6244_v52  ;;  %v23661_v52 = vld [vmem:[#allocation36_spill] sm:$0xff] }
 0x1de   : > { %v5950_v62 = vadd.f32 %v5649_v44, %v5246_v48  ;;  %v23647_v21 = vsel %vm15970_vm6, 4294967295, %v23646_v21  ;;  %v4318_v57 = vadd.f32 %v4030_v51, %v3614_v61  ;;  %v6054_v27 = vadd.f32 %v15740_v42, %v5946_v30  ;;  %v23659_v48 = vld [vmem:[#allocation33_spill] sm:$0xff] }
 0x1df   : > { %23648 = vst [vmem:[#allocation12_spill] sm:$0xff] %v23647_v21  ;;  %v23650_v39 = vmov 0.0   ;;  %v1966_v13 = vadd.f32 %v1673_v5, %v23652_v59  ;;  %vm6265_vm7 = vcmp.eq.s32.totalorder %v23645_v63, %v15974_v38  ;;  %v23654_v50 = vrot.slane %v23653_v3, 2 }
 0x1e0   : > { %23649 = vst [vmem:[#allocation16_spill] sm:$0xff] %v15974_v38  ;;  %v15982_v40 = vsel %vm15970_vm6, 1.0, %v23650_v39  ;;  %v6058_v17 = vadd.f32 %v15740_v42, %v5950_v62  ;;  %v23656_v29 = vrot.slane %v23655_v12, 2  ;;  %v2797_v54 = vmul.f32 %v15426_v15, %v23657_v37 }
 0x1e1   : > { %23651 = vst [vmem:[#allocation8_spill] sm:$0xff] %v15982_v40  ;;  %11070 = vmatmul.msk.f32.vlgmr.msra.gmra.mxu0 %vm6281_vm2, %v15982_v40  ;;  %v16001_v61 = vsel %vm6265_vm7, 1.0, %v23650_v39  ;;  %v23660_v14 = vrot.slane %v23659_v48, 1  ;;  %v23662_v46 = vrot.slane %v23661_v52, 1  ;;  %v16010_v53 = vmul.f32 %v15315_v9, %v23657_v37  ;;  %11074 = vmatmul.msk.f32.vlgmr.msra.gmra.mxu2 %vm6281_vm2, %v15982_v40 }
 0x1e2   : > { %v2378_v60 = vsel %vm2297_vm1, %v23656_v29, %v23654_v50  ;;  %23658 = vst [vmem:[#allocation17_spill] sm:$0xff] %v16001_v61  ;;  %v6158_v5 = vmax.f32 %v6054_v27, 0.0  ;;  %v6162_v26 = vmax.f32 %v6058_v17, 0.0  ;;  %11072 = vmatmul.msk.f32.vlgmr.msra.gmra.mxu1 %vm6281_vm2, %v16001_v61  ;;  %v4444_v44 = vmul.f32 %v15641_v18, %v15976_v22  ;;  %11076 = vmatmul.msk.f32.vlgmr.msrb.gmra.mxu3 %vm6281_vm2, %v16001_v61  ;;  %v23663_v29 = vld [vmem:[#allocation14_spill] sm:$0xff] }
 0x1e3   : > { %v2671_v43 = vadd.f32 %v2378_v60, %v1966_v13  ;;  %v3317_v23 = vsel %vm1592_vm0, %v23662_v46, %v23660_v14  ;;  %v16020_v30 = vmul.f32 %v15483_v8, %v15193_v47  ;;  %v5368_v51 = vmul.f32 %v15513_v1, %v15669_v35 }
 0x1e4   : > { %v22979_v27 = vrot.slane %v16010_v53, 2  ;;  %v16029_v59 = vmul.f32 %v15483_v8, %v15976_v22  ;;  %v4959_v13 = vrot.slane %v4664_v7, 1  ;;  %v6473_v17 = vmax.f32 %v6158_v5, %v6162_v26  ;;  %v23671_v5 = vld [vmem:[#allocation32_spill] sm:$0xff] }
 0x1e5   : > { %v2901_v62 = vadd.f32 %v2797_v54, %v2671_v43  ;;  %v4548_v3 = vadd.f32 %v4444_v44, %v4318_v57  ;;  %v16033_v50 = vmul.f32 %v15513_v1, %v15976_v22  ;;  %v16037_v60 = vmul.f32 %v15235_v25, %v23663_v29  ;;  %v23665_v43 = vld [vmem:[#allocation34_spill] sm:$0xff]  ;;  %v23667_v44 = vld [vmem:[#allocation31_spill] sm:$0xff] }
 0x1e6   : > { %v1690_v37 = vrot.slane %v1386_v33, 1  ;;  %v22982_v54 = vrot.slane %v16029_v59, 1  ;;  %6492 = vmatpush.msrb.mxu2 %v6473_v17  ;;  %6518 = vmatpush.msra.mxu3 %v6473_v17  ;;  %v23666_v14 = vrot.slane %v23665_v43, 2  ;;  %v22985_v57 = vrot.slane %v16020_v30, 1 }
 0x1e7   : > { %23664 = vst [vmem:[#allocation11_spill] sm:$0xff] %v16037_v60  ;;  %v3610_v48 = vadd.f32 %v3317_v23, %v2901_v62  ;;  %v16048_v46 = vmul.f32 %v15513_v1, %v15193_v47  ;;  %v16053_v33 = vmul.f32 %v15235_v25, %v15669_v35  ;;  %v4440_v26 = vmul.f32 %v15641_v18, %v15193_v47  ;;  %v23669_v35 = vld [vmem:[#allocation42_spill] sm:$0xff] }
 0x1e8   : > { %v4021_v7 = vsel %vm2297_vm1, %v22979_v27, %v23666_v14  ;;  %v23668_v62 = vrot.slane %v23667_v44, 1  ;;  %v22983_v43 = vrot.slane %v15947_v45, 1  ;;  %v5663_v14 = vrot.slane %v5368_v51, 2 }
 0x1e9   : > { %v4314_v23 = vadd.f32 %v4021_v7, %v3610_v48  ;;  %v4960_v36 = vsel %vm1592_vm0, %v22985_v57, %v4959_v13  ;;  %v23670_v48 = vld [vmem:[#allocation43_spill] sm:$0xff]  ;;  %v23672_v38 = vrot.slane %v23671_v5, 2  ;;  %v23673_v44 = vrot.slane %v16033_v50, 2 }
 0x1ea   : > { %v4969_v17 = vsel %vm1592_vm0, %v22982_v54, %v23668_v62  ;;  %v23674_v62 = vld [vmem:[#allocation46_spill] sm:$0xff]  ;;  %v1691_v51 = vsel %vm1592_vm0, %v22983_v43, %v1690_v37  ;;  %v22984_v13 = vrot.slane %v16048_v46, 2  ;;  %11080 = vmatmul.msk.f32.vlgmr.msrb.gmra.mxu1 %vm6281_vm2, %v16001_v61  ;;  %v16090_v37 = vmul.f32 %v15235_v25, %v15193_v47  ;;  %v16099_v43 = vpop.permute.xlu0 %683  ;;  %v23678_v54 = vld [vmem:[#allocation24_spill] sm:$0xff] }
 0x1eb   : > { %v5257_v24 = vadd.f32 %v4969_v17, %v4548_v3  ;;  %v4544_v27 = vadd.f32 %v4440_v26, %v4314_v23  ;;  %v5673_v21 = vsel %vm2297_vm1, %v23673_v44, %v23672_v38  ;;  %v1035_v38 = vmul.f32 %v15376_v2, %v15193_v47  ;;  %v23676_v44 = vld [vmem:[#allocation6_spill] sm:$0xff]  ;;  %v23685_v23 = vld [vmem:[#allocation25_spill] sm:$0xff] }
 0x1ec   : > { %11077 = vmatmul.msk.f32.gmra.mxu3 %vm6281_vm2, %v23676_v44  ;;  %v1030_v47 = vmul.f32 %v15376_v2, %v15117_v34  ;;  %v23684_v60 = vrot.slane %v23655_v12, 2  ;;  %v23687_v63 = vrot.slane %v15349_v49, 2  ;;  %v16140_v49 = vmul.f32 %v15307_v58, %v16099_v43 }
 0x1ed   : > { %v5961_v3 = vadd.f32 %v5673_v21, %v5257_v24  ;;  %v5253_v17 = vadd.f32 %v4960_v36, %v4544_v27  ;;  %v2395_v24 = vrot.slane %v16053_v33, 2  ;;  %v5664_v21 = vsel %vm2297_vm1, %v22984_v13, %v5663_v14 }
 0x1ee   : > { %v16097_v26 = vadd.f32 %v1691_v51, %v1035_v38  ;;  %v1026_v27 = vmul.f32 %v15376_v2, %v15200_v20  ;;  %v16107_v33 = vmul.f32 %v15943_v10, %v15976_v22  ;;  %v23677_v14 = vrot.slane %v23642_v56, 1  ;;  %v23680_v38 = vld [vmem:[#allocation35_spill] sm:$0xff] }
 0x1ef   : > { %v6069_v5 = vadd.f32 %v15740_v42, %v5961_v3  ;;  %v5957_v36 = vadd.f32 %v5664_v21, %v5253_v17  ;;  %v23679_v3 = vrot.slane %v23678_v54, 1  ;;  %v23681_v7 = vrot.slane %v23680_v38, 1  ;;  %v23682_v17 = vld [vmem:[#allocation5_spill] sm:$0xff] }
 0x1f0   : > { %v23683_v21 = vrot.slane %v23682_v17, 1  ;;  %v2796_v38 = vmul.f32 %v15426_v15, %v15117_v34 }
 0x1f1   : > { %v6173_v4 = vmax.f32 %v6069_v5, 0.0  ;;  %v1671_v51 = vsel %vm1592_vm0, %v23679_v3, %v23677_v14  ;;  %v6065_v13 = vadd.f32 %v15740_v42, %v5957_v36  ;;  %v23686_v5 = vrot.slane %v23685_v23, 2 }
 0x1f2   : > { %v1680_v20 = vsel %vm1592_vm0, %v23683_v21, %v23681_v7  ;;  %v1965_v57 = vadd.f32 %v1671_v51, %v1026_v27  ;;  %v23689_v14 = vrot.slane %v23688_v16, 2  ;;  %v2800_v7 = vmul.f32 %v15426_v15, %v16099_v43  ;;  %11081 = vmatmul.msk.f32.gmra.mxu1 %vm6281_vm2, %v23676_v44 }
 0x1f3   : > { %v1969_v40 = vadd.f32 %v1680_v20, %v1030_v47  ;;  %v2376_v56 = vsel %vm2297_vm1, %v23686_v5, %v23684_v60  ;;  %v16136_v36 = vmul.f32 %v15307_v58, %v15117_v34  ;;  %v6169_v12 = vmax.f32 %v6065_v13, 0.0 }
 0x1f4   : > { %v2385_v3 = vsel %vm2297_vm1, %v23689_v14, %v23687_v63  ;;  %v2670_v27 = vadd.f32 %v2376_v56, %v1965_v57  ;;  %v16144_v63 = vmul.f32 %v15235_v25, %v15976_v22  ;;  %v16149_v51 = vmul.f32 %v15315_v9, %v15117_v34  ;;  %6407 = vmatmul.f32.gmra.mxu3 %v23650_v39  ;;  %v16159_v25 = vpop.permute.xlu1 %673 }
 0x1f5   : > { %v2674_v47 = vadd.f32 %v2385_v3, %v1969_v40  ;;  %v22993_v60 = vrot.slane %v16136_v36, 1  ;;  %v16153_v21 = vmul.f32 %v15315_v9, %v16099_v43  ;;  %v6535_v40 = vmax.f32 %v6169_v12, %v6173_v4  ;;  %23690 = vst [vmem:[#allocation15_spill] sm:$0xff] %v16159_v25 }
 0x1f6   : > { %v2900_v57 = vadd.f32 %v2796_v38, %v2670_v27  ;;  %v22990_v20 = vrot.slane %v16140_v49, 1  ;;  %v23691_v34 = vrot.slane %v23661_v52, 1  ;;  %v22992_v56 = vrot.slane %v16149_v51, 2 }
 0x1f7   : > { %v2904_v13 = vadd.f32 %v2800_v7, %v2674_v47  ;;  %v22991_v4 = vrot.slane %v16153_v21, 2  ;;  %v4439_v14 = vmul.f32 %v15641_v18, %v16099_v43  ;;  %v22994_v3 = vrot.slane %v16090_v37, 2  ;;  %6548 = vmatpush.msra.mxu0 %v6535_v40  ;;  %6574 = vmatpush.msra.mxu1 %v6535_v40 }
 0x1f8   : > { %v3315_v5 = vsel %vm1592_vm0, %v22993_v60, %v23691_v34  ;;  %v23692_v38 = vrot.slane %v15687_v11, 1  ;;  %v16178_v12 = vmul.f32 %v15483_v8, %v16099_v43  ;;  %v23693_v47 = vrot.slane %v16010_v53, 2 }
 0x1f9   : > { %v3609_v7 = vadd.f32 %v3315_v5, %v2900_v57  ;;  %v23694_v40 = vrot.slane %v15725_v55, 2  ;;  %v16192_v57 = vmul.f32 %v15483_v8, %v16077_v31  ;;  %v435_v5 = vld [vmem:[%s13346_s25 + $0x348] sm:$0xff]  ;;  %v16204_v55 = vmul.f32 %v15513_v1, %v16077_v31 }
 0x1fa   : > { %v3324_v52 = vsel %vm1592_vm0, %v22990_v20, %v23692_v38  ;;  %v4019_v34 = vsel %vm2297_vm1, %v22992_v56, %v23693_v47  ;;  %v436_v38 = vld [vmem:[%s13346_s25 + $0x350] sm:$0xff]  ;;  %v443_v20 = vld [vmem:[%s13346_s25 + $0x388] sm:$0xff]  ;;  %v22998_v53 = vrot.slane %v16178_v12, 1  ;;  %893 = vperm.xlu1 %13095, %v435_v5   ;;  %v2396_v47 = vsel %vm2297_vm1, %v22994_v3, %v2395_v24  ;;  %6466 = vmatmul.f32.gmra.mxu1 %v23650_v39 }
 0x1fb   : > { %v3613_v27 = vadd.f32 %v3324_v52, %v2904_v13  ;;  %v4028_v11 = vsel %vm2297_vm1, %v22991_v4, %v23694_v40  ;;  %v4313_v13 = vadd.f32 %v4019_v34, %v3609_v7  ;;  %v16200_v52 = vmul.f32 %v15513_v1, %v16099_v43  ;;  %898 = vperm.xlu0 %13094, %v436_v38  }
 0x1fc   : > { %v4443_v7 = vmul.f32 %v15641_v18, %v16077_v31  ;;  %v22997_v34 = vrot.slane %v16192_v57, 1  ;;  %928 = vperm.xlu2 %13096, %v443_v20   ;;  %v23695_v56 = vrot.slane %v16020_v30, 1  ;;  %v22996_v38 = vrot.slane %v16204_v55, 2  ;;  %11084 = vmatmul.msk.f32.vlgmr.msra.gmra.mxu3 %vm6281_vm2, %v16001_v61 }
 0x1fd   : > { %v4317_v40 = vadd.f32 %v4028_v11, %v3613_v27  ;;  %v4543_v4 = vadd.f32 %v4439_v14, %v4313_v13  ;;  %v22995_v5 = vrot.slane %v16200_v52, 2  ;;  %v16220_v24 = vadd.f32 %v2396_v47, %v16097_v26  ;;  %v16227_v14 = vpop.permute.xlu2 %723 }
 0x1fe   : > { %v4958_v60 = vsel %vm1592_vm0, %v22998_v53, %v23695_v56  ;;  %v16224_v27 = vmul.f32 %v15376_v2, %v15976_v22  ;;  %v16233_v11 = vmul.f32 %v15307_v58, %v15976_v22  ;;  %v23696_v26 = vrot.slane %v16029_v59, 1 }
 0x1ff   : > { %v4547_v30 = vadd.f32 %v4443_v7, %v4317_v40  ;;  %v5252_v47 = vadd.f32 %v4958_v60, %v4543_v4  ;;  %v23697_v40 = vrot.slane %v16048_v46, 2  ;;  %v1025_v56 = vmul.f32 %v15376_v2, %v15198_v28  ;;  %v23700_v46 = vld [vmem:[#allocation22_spill] sm:$0xff] }
 0x200   : > { %v4967_v13 = vsel %vm1592_vm0, %v22997_v34, %v23696_v26  ;;  %v1029_v59 = vmul.f32 %v15376_v2, %v15369_v32  ;;  %v23698_v20 = vrot.slane %v16033_v50, 2  ;;  %v23701_v26 = vrot.slane %v23700_v46, 1  ;;  %v16270_v50 = vpop.permute.xlu1 %1263 }
 0x201   : > { %v5256_v3 = vadd.f32 %v4967_v13, %v4547_v30  ;;  %v5662_v7 = vsel %vm2297_vm1, %v22995_v5, %v23697_v40  ;;  %v23699_v30 = vrot.slane %v23678_v54, 1  ;;  %v23702_v40 = vrot.slane %v23682_v17, 1 }
 0x202   : > { %v5671_v60 = vsel %vm2297_vm1, %v22996_v38, %v23698_v20  ;;  %v5956_v4 = vadd.f32 %v5662_v7, %v5252_v47  ;;  %v23703_v28 = vrot.slane %v23670_v48, 1  ;;  %v16268_v2 = vmul.f32 %v15943_v10, %v16227_v14 }
 0x203   : > { %v1669_v13 = vsel %vm1592_vm0, %v23701_v26, %v23699_v30  ;;  %v5960_v20 = vadd.f32 %v5671_v60, %v5256_v3  ;;  %v23705_v38 = vrot.slane %v23685_v23, 2  ;;  %v23706_v30 = vld [vmem:[#allocation23_spill] sm:$0xff]  ;;  %v23708_v34 = vrot.slane %v23688_v16, 2  ;;  %v16288_v3 = vld [vmem:[%s22812_s1 + $0x2] ss:$0 sm:$0xff] }
 0x204   : > { %v1678_v5 = vsel %vm1592_vm0, %v23703_v28, %v23702_v40  ;;  %23704 = vst [vmem:[#allocation41_spill] sm:$0xff] %v16268_v2  ;;  %v1964_v47 = vadd.f32 %v1669_v13, %v1025_v56  ;;  %v6064_v54 = vadd.f32 %v15740_v42, %v5956_v4  ;;  %v23707_v26 = vrot.slane %v23706_v30, 2  ;;  %v16295_v56 = vpop.permute.xlu0 %698  ;;  %11085 = vmatmul.msk.f32.gmra.mxu3 %vm6281_vm2, %v23676_v44 }
 0x205   : > { %v1968_v7 = vadd.f32 %v1678_v5, %v1029_v59  ;;  %v23709_v40 = vrot.slane %v23674_v62, 2  ;;  %v2795_v53 = vmul.f32 %v15426_v15, %v15369_v32  ;;  %23710 = vst [vmem:[#allocation10_spill] sm:$0xff] %v16288_v3  ;;  %v16292_v23 = vmul.f32 %v16288_v3, %v16227_v14  ;;  %v23712_v59 = vld [vmem:[#allocation37_spill] sm:$0xff] }
 0x206   : > { %v2374_v17 = vsel %vm2297_vm1, %v23707_v26, %v23705_v38  ;;  %v6068_v5 = vadd.f32 %v15740_v42, %v5960_v20  ;;  %v16301_v60 = vmul.f32 %v15307_v58, %v15369_v32  ;;  %v16305_v4 = vmul.f32 %v15307_v58, %v23712_v59  ;;  %v16320_v58 = vpop.permute.xlu2 %748 }
 0x207   : > { %v2383_v28 = vsel %vm2297_vm1, %v23709_v40, %v23708_v34  ;;  %23711 = vst [vmem:[#allocation20_spill] sm:$0xff] %v16292_v23  ;;  %v2669_v38 = vadd.f32 %v2374_v17, %v1964_v47  ;;  %v2799_v34 = vmul.f32 %v15426_v15, %v23712_v59  ;;  %v16309_v13 = vmul.f32 %v15315_v9, %v15369_v32 }
 0x208   : > { %v2673_v16 = vadd.f32 %v2383_v28, %v1968_v7  ;;  %v6168_v20 = vmax.f32 %v6064_v54, 0.0  ;;  %v6172_v47 = vmax.f32 %v6068_v5, 0.0  ;;  %v16313_v26 = vmul.f32 %v15315_v9, %v23712_v59 }
 0x209   : > { %v2899_v7 = vadd.f32 %v2795_v53, %v2669_v38  ;;  %v22999_v17 = vrot.slane %v16301_v60, 1  ;;  %v23000_v40 = vrot.slane %v16305_v4, 1  ;;  %v23001_v28 = vrot.slane %v16309_v13, 2 }
 0x20a   : > { %v2903_v15 = vadd.f32 %v2799_v34, %v2673_v16  ;;  %v6534_v32 = vmax.f32 %v6168_v20, %v6172_v47  ;;  %v4442_v53 = vmul.f32 %v15641_v18, %v16295_v56  ;;  %v16327_v9 = vmul.f32 %v15483_v8, %v23712_v59 }
 0x20b   : > { %v23713_v5 = vrot.slane %v16136_v36, 1  ;;  %v23714_v16 = vrot.slane %v16140_v49, 1  ;;  %v23715_v20 = vrot.slane %v16149_v51, 2  ;;  %v16346_v36 = vmul.f32 %v15483_v8, %v16295_v56 }
 0x20c   : > { %6549 = vmatpush.msra.mxu0 %v6534_v32  ;;  %6575 = vmatpush.msra.mxu1 %v6534_v32  ;;  %v16358_v8 = vmul.f32 %v15513_v1, %v23712_v59  ;;  %v16362_v54 = vmul.f32 %v15513_v1, %v16295_v56  ;;  %v449_v32 = vld [vmem:[%s13346_s25 + $0x3b8] sm:$0xff]  ;;  %v16632_v23 = vmul.f32 %v15943_v10, %v16320_v58 }
 0x20d   : > { %v3313_v38 = vsel %vm1592_vm0, %v22999_v17, %v23713_v5  ;;  %v3322_v34 = vsel %vm1592_vm0, %v23000_v40, %v23714_v16  ;;  %v4017_v47 = vsel %vm2297_vm1, %v23001_v28, %v23715_v20  ;;  %v23716_v17 = vrot.slane %v16153_v21, 2  ;;  %1318 = vperm.xlu2 %13096, %v449_v32   ;;  %v23725_v32 = vld [vmem:[#allocation9_spill] sm:$0xff]  ;;  %6525 = vmatmul.f32.gmra.mxu3 %v23650_v39 }
 0x20e   : > { %v3608_v49 = vadd.f32 %v3313_v38, %v2899_v7  ;;  %v3612_v5 = vadd.f32 %v3322_v34, %v2903_v15  ;;  %v23717_v16 = vrot.slane %v16313_v26, 2  ;;  %v23008_v40 = vrot.slane %v16327_v9, 1  ;;  %v444_v7 = vld [vmem:[%s13346_s25 + $0x390] sm:$0xff]  ;;  %v16368_v38 = vpop.permute.xlu1 %713  ;;  %23757 = vst [vmem:[#allocation25_spill] sm:$0xff] %v16632_v23 }
 0x20f   : > { %v448_v15 = vld [vmem:[%s13346_s25 + $0x3b0] sm:$0xff]  ;;  %23718 = vst [vmem:[#allocation19_spill] sm:$0xff] %v16368_v38  ;;  %1313 = vperm.xlu1 %13095, %v444_v7   ;;  %v23719_v28 = vrot.slane %v16178_v12, 1  ;;  %v23720_v20 = vrot.slane %v16192_v57, 1  ;;  %v23721_v41 = vrot.slane %v16346_v36, 1  ;;  %v23007_v2 = vrot.slane %v16358_v8, 2 }
 0x210   : > { %v4026_v51 = vsel %vm2297_vm1, %v23717_v16, %v23716_v17  ;;  %v4312_v17 = vadd.f32 %v4017_v47, %v3608_v49  ;;  %v4438_v16 = vmul.f32 %v15641_v18, %v23712_v59  ;;  %v23006_v47 = vrot.slane %v16362_v54, 2  ;;  %948 = vperm.xlu0 %13094, %v448_v15   ;;  %v16391_v57 = vld [vmem:[%s22812_s1] ss:$0 sm:$0xff] }
 0x211   : > { %v4316_v34 = vadd.f32 %v4026_v51, %v3612_v5  ;;  %v4956_v1 = vsel %vm1592_vm0, %v23008_v40, %v23719_v28  ;;  %v4965_v21 = vsel %vm1592_vm0, %v23721_v41, %v23720_v20  ;;  %v16386_v49 = vmul.f32 %v15943_v10, %v16077_v31 }
 0x212   : > { %v4542_v12 = vadd.f32 %v4438_v16, %v4312_v17  ;;  %v1024_v41 = vmul.f32 %v16391_v57, %v15020_v19  ;;  %v23722_v28 = vrot.slane %v16200_v52, 2  ;;  %v23723_v20 = vrot.slane %v16204_v55, 2  ;;  %v16413_v17 = vpop.permute.xlu0 %728 }
 0x213   : > { %v4546_v5 = vadd.f32 %v4442_v53, %v4316_v34  ;;  %v1028_v7 = vmul.f32 %v16391_v57, %v15367_v0  ;;  %v23724_v15 = vrot.slane %v23700_v46, 1  ;;  %v23726_v19 = vrot.slane %v23725_v32, 1 }
 0x214   : > { %v5660_v51 = vsel %vm2297_vm1, %v23007_v2, %v23722_v28  ;;  %v5669_v53 = vsel %vm2297_vm1, %v23006_v47, %v23723_v20  ;;  %v5251_v34 = vadd.f32 %v4956_v1, %v4542_v12  ;;  %v23727_v16 = vrot.slane %v23670_v48, 1  ;;  %v23730_v2 = vld [vmem:[#allocation13_spill] sm:$0xff] }
 0x215   : > { %v1667_v52 = vsel %vm1592_vm0, %v23726_v19, %v23724_v15  ;;  %v5255_v55 = vadd.f32 %v4965_v21, %v4546_v5  ;;  %v23728_v28 = vrot.slane %v23638_v6, 1  ;;  %v23729_v32 = vrot.slane %v23706_v30, 2  ;;  %v16433_v6 = vld [vmem:[%s22812_s1 + $0x3] ss:$0 sm:$0xff]  ;;  %v447_v12 = vld [vmem:[%s13346_s25 + $0x3a8] sm:$0xff]  ;;  %v16438_v30 = vpop.permute.xlu2 %738 }
 0x216   : > { %v1963_v47 = vadd.f32 %v1667_v52, %v1024_v41  ;;  %v23731_v15 = vrot.slane %v23730_v2, 2  ;;  %v23732_v40 = vrot.slane %v23674_v62, 2  ;;  %v23733_v1 = vrot.slane %v23669_v35, 2  ;;  %23734 = vst [vmem:[#allocation7_spill] sm:$0xff] %v16438_v30  ;;  %v442_v35 = vld [vmem:[%s13346_s25 + $0x380] sm:$0xff]  ;;  %v16468_v59 = vpop.permute.xlu1 %743 }
 0x217   : > { %v1676_v20 = vsel %vm1592_vm0, %v23728_v28, %v23727_v16  ;;  %v2794_v48 = vmul.f32 %v16433_v6, %v15367_v0  ;;  %v5955_v2 = vadd.f32 %v5660_v51, %v5251_v34  ;;  %v5959_v5 = vadd.f32 %v5669_v53, %v5255_v55  ;;  %v16447_v52 = vld [vmem:[%s22812_s1 + $0x4] ss:$0 sm:$0xff]  ;;  %943 = vperm.xlu1 %13095, %v447_v12  }
 0x218   : > { %v1967_v46 = vadd.f32 %v1676_v20, %v1028_v7  ;;  %v2372_v19 = vsel %vm2297_vm1, %v23731_v15, %v23729_v32  ;;  %v2381_v21 = vsel %vm2297_vm1, %v23733_v1, %v23732_v40  ;;  %v2798_v62 = vmul.f32 %v16433_v6, %v16159_v25  ;;  %v441_v7 = vld [vmem:[%s13346_s25 + $0x378] sm:$0xff]  ;;  %923 = vperm.xlu0 %13094, %v442_v35  }
 0x219   : > { %v2668_v41 = vadd.f32 %v2372_v19, %v1963_v47  ;;  %v3017_v16 = vmul.f32 %v16447_v52, %v15367_v0  ;;  %v3022_v28 = vmul.f32 %v16447_v52, %v16159_v25  ;;  %v16456_v47 = vld [vmem:[%s22812_s1 + $0x5] ss:$0 sm:$0xff]  ;;  %v6063_v53 = vadd.f32 %v15740_v42, %v5955_v2  ;;  %918 = vperm.xlu2 %13096, %v441_v7  }
 0x21a   : > { %v2672_v40 = vadd.f32 %v2381_v21, %v1967_v46  ;;  %v3721_v51 = vmul.f32 %v16456_v47, %v15367_v0  ;;  %v6067_v34 = vadd.f32 %v15740_v42, %v5959_v5  ;;  %v3726_v20 = vmul.f32 %v16456_v47, %v16159_v25 }
 0x21b   : > { %v2898_v55 = vadd.f32 %v2794_v48, %v2668_v41  ;;  %v3309_v32 = vrot.slane %v3017_v16, 1  ;;  %v3318_v15 = vrot.slane %v3022_v28, 1  ;;  %v16466_v1 = vmul.f32 %v16288_v3, %v16077_v31 }
 0x21c   : > { %v2902_v46 = vadd.f32 %v2798_v62, %v2672_v40  ;;  %v4013_v19 = vrot.slane %v3721_v51, 2  ;;  %v6167_v0 = vmax.f32 %v6063_v53, 0.0  ;;  %v6171_v21 = vmax.f32 %v6067_v34, 0.0  ;;  %v16496_v34 = vld [vmem:[%s22812_s1 + $0x8] ss:$0 sm:$0xff] }
 0x21d   : > { %v4022_v2 = vrot.slane %v3726_v20, 2  ;;  %v23735_v48 = vrot.slane %v16301_v60, 1  ;;  %v23736_v12 = vrot.slane %v16305_v4, 1  ;;  %v23737_v62 = vrot.slane %v16309_v13, 2  ;;  %v16487_v4 = vld [vmem:[%s22812_s1 + $0x7] ss:$0 sm:$0xff] }
 0x21e   : > { %v4437_v7 = vmul.f32 %v15641_v18, %v16159_v25  ;;  %v6533_v40 = vmax.f32 %v6167_v0, %v6171_v21  ;;  %v23738_v51 = vrot.slane %v16313_v26, 2  ;;  %v4660_v13 = vmul.f32 %v16487_v4, %v16159_v25 }
 0x21f   : > { %v3311_v5 = vsel %vm1592_vm0, %v3309_v32, %v23735_v48  ;;  %v3320_v41 = vsel %vm1592_vm0, %v3318_v15, %v23736_v12  ;;  %v4015_v35 = vsel %vm2297_vm1, %v4013_v19, %v23737_v62  ;;  %v4665_v53 = vmul.f32 %v16487_v4, %v23663_v29 }
 0x220   : > { %v3607_v16 = vadd.f32 %v3311_v5, %v2898_v55  ;;  %v3611_v28 = vadd.f32 %v3320_v41, %v2902_v46  ;;  %v4024_v60 = vsel %vm2297_vm1, %v4022_v2, %v23738_v51  ;;  %v5364_v26 = vmul.f32 %v16496_v34, %v16159_v25  ;;  %v16503_v46 = vpop.permute.xlu0 %718  ;;  %6550 = vmatpush.msra.mxu0 %v6533_v40  ;;  %v16513_v41 = vpop.permute.xlu2 %788 }
 0x221   : > { %v5369_v55 = vmul.f32 %v16496_v34, %v23663_v29  ;;  %6576 = vmatpush.msra.mxu1 %v6533_v40  ;;  %v4441_v19 = vmul.f32 %v15641_v18, %v23663_v29  ;;  %v4952_v21 = vrot.slane %v4660_v13, 1  ;;  %v4961_v2 = vrot.slane %v4665_v53, 1  ;;  %23739 = vst [vmem:[#allocation21_spill] sm:$0xff] %v16513_v41 }
 0x222   : > { %v4311_v32 = vadd.f32 %v4015_v35, %v3607_v16  ;;  %v4315_v15 = vadd.f32 %v4024_v60, %v3611_v28  ;;  %v5656_v48 = vrot.slane %v5364_v26, 2  ;;  %v16511_v12 = vmul.f32 %v15943_v10, %v16099_v43 }
 0x223   : > { %v16517_v35 = vmul.f32 %v16288_v3, %v16099_v43  ;;  %v23740_v18 = vrot.slane %v16327_v9, 1  ;;  %v23741_v28 = vrot.slane %v16346_v36, 1  ;;  %v5665_v60 = vrot.slane %v5369_v55, 2 }
 0x224   : > { %v4541_v62 = vadd.f32 %v4437_v7, %v4311_v32  ;;  %v4545_v40 = vadd.f32 %v4441_v19, %v4315_v15  ;;  %v16527_v13 = vmul.f32 %v15943_v10, %v16159_v25  ;;  %v16531_v7 = vmul.f32 %v16288_v3, %v16159_v25 }
 0x225   : > { %v4954_v16 = vsel %vm1592_vm0, %v4952_v21, %v23740_v18  ;;  %v4963_v51 = vsel %vm1592_vm0, %v4961_v2, %v23741_v28  ;;  %v16535_v9 = vmul.f32 %v15943_v10, %v16295_v56  ;;  %v16539_v36 = vmul.f32 %v16288_v3, %v16295_v56  ;;  %v16553_v18 = vpop.permute.xlu1 %768 }
 0x226   : > { %23742 = vst [vmem:[#allocation26_spill] sm:$0xff] %v16527_v13  ;;  %v5250_v53 = vadd.f32 %v4954_v16, %v4541_v62  ;;  %v5254_v26 = vadd.f32 %v4963_v51, %v4545_v40  ;;  %v23744_v55 = vrot.slane %v16358_v8, 2  ;;  %v23745_v15 = vrot.slane %v16362_v54, 2 }
 0x227   : > { %23743 = vst [vmem:[#allocation33_spill] sm:$0xff] %v16531_v7  ;;  %v1396_v21 = vmul.f32 %v15943_v10, %v16270_v50  ;;  %v16551_v2 = vmul.f32 %v15943_v10, %v16413_v17  ;;  %v16559_v54 = vmul.f32 %v15943_v10, %v16438_v30  ;;  %v16606_v8 = vmul.f32 %v15943_v10, %v16368_v38 }
 0x228   : > { %v5658_v32 = vsel %vm2297_vm1, %v5656_v48, %v23744_v55  ;;  %v5667_v19 = vsel %vm2297_vm1, %v5665_v60, %v23745_v15  ;;  %23747 = vst [vmem:[#allocation34_spill] sm:$0xff] %v16553_v18  ;;  %v16563_v48 = vmul.f32 %v16288_v3, %v16438_v30  ;;  %v16575_v15 = vmul.f32 %v16447_v52, %v16270_v50  ;;  %v16578_v5 = vpop.permute.xlu0 %1268 }
 0x229   : > { %23746 = vst [vmem:[#allocation36_spill] sm:$0xff] %v16551_v2  ;;  %v5954_v62 = vadd.f32 %v5658_v32, %v5250_v53  ;;  %v5958_v40 = vadd.f32 %v5667_v19, %v5254_v26  ;;  %v2101_v32 = vmul.f32 %v16288_v3, %v16270_v50  ;;  %v1708_v19 = vrot.slane %v1396_v21, 1 }
 0x22a   : > { %23748 = vst [vmem:[#allocation31_spill] sm:$0xff] %v16559_v54  ;;  %v16588_v55 = vmul.f32 %v16487_v4, %v16270_v50  ;;  %v16592_v21 = vmul.f32 %v16496_v34, %v16270_v50  ;;  %v1401_v0 = vmul.f32 %v15943_v10, %v16578_v5  ;;  %v16617_v20 = vmul.f32 %v15943_v10, %v16503_v46 }
 0x22b   : > { %23749 = vst [vmem:[#allocation42_spill] sm:$0xff] %v16563_v48  ;;  %v6062_v60 = vadd.f32 %v15740_v42, %v5954_v62  ;;  %v6066_v53 = vadd.f32 %v15740_v42, %v5958_v40  ;;  %v16584_v40 = vmul.f32 %v16456_v47, %v16270_v50  ;;  %v16602_v62 = vpop.permute.xlu2 %763  ;;  %v2413_v26 = vrot.slane %v2101_v32, 2 }
 0x22c   : > { %23751 = vst [vmem:[#allocation32_spill] sm:$0xff] %v16602_v62  ;;  %v16610_v50 = vmul.f32 %v16288_v3, %v16368_v38  ;;  %v1043_v16 = vmul.f32 %v16391_v57, %v16413_v17  ;;  %v1717_v13 = vrot.slane %v1401_v0, 1  ;;  %v2106_v48 = vmul.f32 %v16288_v3, %v16578_v5 }
 0x22d   : > { %v6166_v28 = vmax.f32 %v6062_v60, 0.0  ;;  %v6170_v51 = vmax.f32 %v6066_v53, 0.0  ;;  %v16596_v60 = vmul.f32 %v16288_v3, %v16413_v17  ;;  %v16600_v53 = vmul.f32 %v16447_v52, %v16413_v17  ;;  %23752 = vst [vmem:[#allocation46_spill] sm:$0xff] %v16606_v8  ;;  %v16641_v54 = vpop.permute.xlu1 %1278 }
 0x22e   : > { %23753 = vst [vmem:[#allocation24_spill] sm:$0xff] %v16610_v50  ;;  %v16660_v0 = vmul.f32 %v16456_v47, %v16513_v41  ;;  %v16673_v29 = vmul.f32 %v16288_v3, %v16320_v58  ;;  %v23764_v8 = vrot.slane %v16632_v23, 1  ;;  %v16708_v18 = vmul.f32 %v16456_v47, %v16320_v58 }
 0x22f   : > { %23750 = vst [vmem:[#allocation43_spill] sm:$0xff] %v16596_v60  ;;  %v6532_v42 = vmax.f32 %v6166_v28, %v6170_v51  ;;  %v16621_v28 = vmul.f32 %v16288_v3, %v16503_v46  ;;  %v23756_v51 = vrot.slane %v16551_v2, 1  ;;  %v23762_v38 = vrot.slane %v16596_v60, 2 }
 0x230   : > { %23754 = vst [vmem:[#allocation35_spill] sm:$0xff] %v16617_v20  ;;  %v23037_v20 = vrot.slane %v16660_v0, 2 }
 0x231   : > { %23755 = vst [vmem:[#allocation5_spill] sm:$0xff] %v16621_v28  ;;  %6551 = vmatpush.msra.mxu0 %v6532_v42  ;;  %6577 = vmatpush.msra.mxu1 %v6532_v42  ;;  %v1709_v32 = vsel %vm1592_vm0, %v23756_v51, %v1708_v19  ;;  %v3041_v51 = vmul.f32 %v16447_v52, %v16578_v5 }
 0x232   : > { %11088 = vmatmul.msk.f32.vlgmr.msra.gmra.mxu1 %vm6281_vm2, %v16001_v61  ;;  %v1982_v7 = vadd.f32 %v1709_v32, %v1043_v16  ;;  %v16649_v42 = vmul.f32 %v15943_v10, %v16602_v62  ;;  %v16653_v19 = vmul.f32 %v16447_v52, %v16320_v58  ;;  %23760 = vst [vmem:[#allocation23_spill] sm:$0xff] %v16660_v0  ;;  %v23044_v0 = vrot.slane %v16673_v29, 2 }
 0x233   : > { %v3755_v16 = vmul.f32 %v16456_v47, %v16641_v54  ;;  %v16666_v32 = vmul.f32 %v16288_v3, %v16602_v62  ;;  %v2414_v61 = vsel %vm2297_vm1, %v23762_v38, %v2413_v26  ;;  %23763 = vst [vmem:[#allocation13_spill] sm:$0xff] %v16673_v29  ;;  %v3352_v2 = vrot.slane %v3041_v51, 1 }
 0x234   : > { %23758 = vst [vmem:[#allocation18_spill] sm:$0xff] %v16649_v42  ;;  %v2687_v50 = vadd.f32 %v2414_v61, %v1982_v7  ;;  %v1718_v28 = vsel %vm1592_vm0, %v23764_v8, %v1717_v13  ;;  %v16681_v62 = vmul.f32 %v15943_v10, %v16468_v59  ;;  %v1047_v38 = vmul.f32 %v16391_v57, %v16320_v58  ;;  %v16688_v61 = vpop.permute.xlu2 %778  ;;  %v23785_v42 = vld [vmem:[#allocation29_spill] sm:$0xff] }
 0x235   : > { %23759 = vst [vmem:[#allocation22_spill] sm:$0xff] %v16653_v19  ;;  %v4074_v25 = vrot.slane %v3755_v16, 2  ;;  %v3745_v51 = vmul.f32 %v16456_v47, %v16578_v5  ;;  %v16692_v13 = vmul.f32 %v16288_v3, %v16468_v59  ;;  %v2422_v7 = vrot.slane %v2106_v48, 2 }
 0x236   : > { %23761 = vst [vmem:[#allocation9_spill] sm:$0xff] %v16666_v32  ;;  %v2813_v8 = vmul.f32 %v16433_v6, %v16320_v58  ;;  %v1986_v26 = vadd.f32 %v1718_v28, %v1047_v38  ;;  %v23769_v60 = vrot.slane %v16653_v19, 1  ;;  %v16712_v48 = vmul.f32 %v16487_v4, %v16578_v5  ;;  %v16729_v19 = vpop.permute.xlu0 %733 }
 0x237   : > { %23765 = vst [vmem:[#allocation48_spill] sm:$0xff] %v16681_v62  ;;  %v16699_v16 = vsel %vm2297_vm1, %v23037_v20, %v4074_v25  ;;  %v16717_v20 = vmul.f32 %v16496_v34, %v16578_v5  ;;  %v16721_v28 = vmul.f32 %v15943_v10, %v16688_v61  ;;  %v4056_v38 = vrot.slane %v3745_v51, 2 }
 0x238   : > { %23766 = vst [vmem:[#allocation49_spill] sm:$0xff] %v16688_v61  ;;  %v3353_v23 = vsel %vm1592_vm0, %v23769_v60, %v3352_v2  ;;  %v2917_v25 = vadd.f32 %v2813_v8, %v2687_v50  ;;  %v2423_v8 = vsel %vm2297_vm1, %v23044_v0, %v2422_v7  ;;  %v23045_v60 = vrot.slane %v16708_v18, 2  ;;  %v23775_v7 = vld [vmem:[#allocation27_spill] sm:$0xff] }
 0x239   : > { %23767 = vst [vmem:[#allocation50_spill] sm:$0xff] %v16692_v13  ;;  %v16736_v30 = vadd.f32 %v2423_v8, %v1986_v26  ;;  %v4986_v51 = vrot.slane %v16712_v48, 1  ;;  %v16742_v2 = vmul.f32 %v15943_v10, %v16513_v41  ;;  %v5690_v32 = vrot.slane %v16717_v20, 2 }
 0x23a   : > { %23768 = vst [vmem:[#allocation51_spill] sm:$0xff] %v16699_v16  ;;  %11089 = vmatmul.msk.f32.gmra.mxu1 %vm6281_vm2, %v23676_v44  ;;  %v16727_v16 = vmul.f32 %v16288_v3, %v16688_v61  ;;  %v3626_v44 = vadd.f32 %v3353_v23, %v2917_v25  ;;  %v16748_v5 = vmul.f32 %v15943_v10, %v16729_v19  ;;  %v23776_v23 = vrot.slane %v23775_v7, 1 }
 0x23b   : > { %23770 = vst [vmem:[#allocation52_spill] sm:$0xff] %v16708_v18  ;;  %v23777_v26 = vrot.slane %v16107_v33, 1  ;;  %v4057_v48 = vsel %vm2297_vm1, %v23045_v60, %v4056_v38  ;;  %v16761_v20 = vmul.f32 %v16288_v3, %v16729_v19  ;;  %v16765_v50 = vmul.f32 %v16391_v57, %v16513_v41  ;;  %v23781_v60 = vld [vmem:[#allocation28_spill] sm:$0xff] }
 0x23c   : > { %23771 = vst [vmem:[#allocation53_spill] sm:$0xff] %v16721_v28  ;;  %v16767_v0 = vadd.f32 %v4057_v48, %v3626_v44  ;;  %v16771_v7 = vmul.f32 %v15943_v10, %v16641_v54  ;;  %v2805_v38 = vmul.f32 %v16433_v6, %v15976_v22  ;;  %v16780_v8 = vmul.f32 %v16288_v3, %v16513_v41 }
 0x23d   : > { %23772 = vst [vmem:[#allocation54_spill] sm:$0xff] %v16727_v16  ;;  %v1700_v25 = vsel %vm1592_vm0, %v23777_v26, %v23776_v23  ;;  %v23782_v44 = vrot.slane %v23781_v60, 2  ;;  %v23783_v48 = vrot.slane %v16144_v63, 2  ;;  %v16795_v26 = vmul.f32 %v16447_v52, %v16513_v41 }
 0x23e   : > { %23773 = vst [vmem:[#allocation55_spill] sm:$0xff] %v16742_v2  ;;  %v1978_v23 = vadd.f32 %v1700_v25, %v16224_v27  ;;  %v2809_v27 = vmul.f32 %v16433_v6, %v16413_v17  ;;  %v16791_v25 = vmul.f32 %v16288_v3, %v16641_v54  ;;  %v2909_v28 = vadd.f32 %v2805_v38, %v16220_v24 }
 0x23f   : > { %23774 = vst [vmem:[#allocation56_spill] sm:$0xff] %v16748_v5  ;;  %v2405_v10 = vsel %vm2297_vm1, %v23783_v48, %v23782_v44  ;;  %v23786_v60 = vrot.slane %v23785_v42, 1  ;;  %v23787_v61 = vrot.slane %v16233_v11, 1  ;;  %v23788_v48 = vrot.slane %v16575_v15, 1 }
 0x240   : > { %23778 = vst [vmem:[#allocation27_spill] sm:$0xff] %v16761_v20  ;;  %v2683_v16 = vadd.f32 %v2405_v10, %v1978_v23  ;;  %v23789_v18 = vrot.slane %v16600_v53, 1  ;;  %v16810_v29 = vmul.f32 %v16456_v47, %v15976_v22  ;;  %v16814_v23 = vmul.f32 %v16456_v47, %v16413_v17 }
 0x241   : > { %23779 = vst [vmem:[#allocation57_spill] sm:$0xff] %v16767_v0  ;;  %v3335_v44 = vsel %vm1592_vm0, %v23787_v61, %v23786_v60  ;;  %v16819_v42 = vmul.f32 %v16447_v52, %v16641_v54  ;;  %v16825_v22 = vmul.f32 %v16487_v4, %v16413_v17  ;;  %v16829_v10 = vmul.f32 %v16487_v4, %v16320_v58 }
 0x242   : > { %6584 = vmatmul.f32.gmra.mxu1 %v23650_v39  ;;  %23780 = vst [vmem:[#allocation58_spill] sm:$0xff] %v16780_v8  ;;  %v3344_v13 = vsel %vm1592_vm0, %v23789_v18, %v23788_v48  ;;  %v2913_v61 = vadd.f32 %v2809_v27, %v2683_v16  ;;  %v3618_v15 = vadd.f32 %v3335_v44, %v2909_v28  ;;  %v4036_v38 = vrot.slane %v16810_v29, 2  ;;  %v16834_v48 = vld [vmem:[%s22812_s1 + $0x6] ss:$0 sm:$0xff]  ;;  %v23790_v44 = vld [vmem:[#allocation30_spill] sm:$0xff] }
 0x243   : > { %23784 = vst [vmem:[#allocation28_spill] sm:$0xff] %v16795_v26  ;;  %v23069_v18 = vrot.slane %v16814_v23, 2  ;;  %v4448_v16 = vmul.f32 %v16834_v48, %v16413_v17  ;;  %v16840_v28 = vmul.f32 %v16496_v34, %v16413_v17  ;;  %v16844_v27 = vmul.f32 %v16496_v34, %v16320_v58 }
 0x244   : > { %v3622_v60 = vadd.f32 %v3344_v13, %v2913_v61  ;;  %v23791_v24 = vrot.slane %v23790_v44, 2  ;;  %v23792_v61 = vrot.slane %v16584_v40, 2  ;;  %v23068_v20 = vrot.slane %v16825_v22, 1 }
 0x245   : > { %v23065_v17 = vrot.slane %v16829_v10, 1  ;;  %v4452_v41 = vmul.f32 %v16834_v48, %v16320_v58  ;;  %v23067_v44 = vrot.slane %v16840_v28, 2  ;;  %v1038_v3 = vmul.f32 %v16391_v57, %v16077_v31 }
 0x246   : > { %v4039_v13 = vsel %vm2297_vm1, %v4036_v38, %v23791_v24  ;;  %v4048_v62 = vsel %vm2297_vm1, %v23069_v18, %v23792_v61  ;;  %v23793_v24 = vrot.slane %v16588_v55, 1  ;;  %v23801_v18 = vrot.slane %v16144_v63, 2 }
 0x247   : > { %v4322_v5 = vadd.f32 %v4039_v13, %v3618_v15  ;;  %v4326_v0 = vadd.f32 %v4048_v62, %v3622_v60  ;;  %v4987_v61 = vsel %vm1592_vm0, %v23065_v17, %v4986_v51  ;;  %v23066_v15 = vrot.slane %v16844_v27, 2 }
 0x248   : > { %v4978_v40 = vsel %vm1592_vm0, %v23068_v20, %v23793_v24  ;;  %v16873_v62 = vmul.f32 %v16487_v4, %v16641_v54  ;;  %v23794_v13 = vrot.slane %v16592_v21, 2  ;;  %v1034_v51 = vmul.f32 %v16391_v57, %v16099_v43 }
 0x249   : > { %v4552_v58 = vadd.f32 %v4448_v16, %v4322_v5  ;;  %v4556_v60 = vadd.f32 %v4452_v41, %v4326_v0  ;;  %v5691_v24 = vsel %vm2297_vm1, %v23066_v15, %v5690_v32  ;;  %v23795_v17 = vrot.slane %v15947_v45, 1 }
 0x24a   : > { %v5682_v55 = vsel %vm2297_vm1, %v23067_v44, %v23794_v13  ;;  %v23796_v41 = vrot.slane %v16511_v12, 1  ;;  %v23797_v16 = vrot.slane %v16107_v33, 1  ;;  %v23798_v13 = vrot.slane %v16386_v49, 1 }
 0x24b   : > { %v5261_v0 = vadd.f32 %v4978_v40, %v4552_v58  ;;  %v5265_v5 = vadd.f32 %v4987_v61, %v4556_v60  ;;  %v23799_v15 = vrot.slane %v16090_v37, 2  ;;  %v23800_v43 = vrot.slane %v16517_v35, 2 }
 0x24c   : > { %v1689_v21 = vsel %vm1592_vm0, %v23796_v41, %v23795_v17  ;;  %v1698_v32 = vsel %vm1592_vm0, %v23798_v13, %v23797_v16  ;;  %v23802_v17 = vrot.slane %v16466_v1, 2  ;;  %v2804_v33 = vmul.f32 %v16433_v6, %v16077_v31 }
 0x24d   : > { %v2394_v44 = vsel %vm2297_vm1, %v23800_v43, %v23799_v15  ;;  %v1973_v20 = vadd.f32 %v1689_v21, %v1034_v51  ;;  %v1977_v45 = vadd.f32 %v1698_v32, %v1038_v3  ;;  %v5965_v61 = vadd.f32 %v5682_v55, %v5261_v0  ;;  %v16926_v55 = vld [vmem:[%s22813_s2] ss:$0 sm:$0xff] }
 0x24e   : > { %v2403_v40 = vsel %vm2297_vm1, %v23802_v17, %v23801_v18  ;;  %v5969_v58 = vadd.f32 %v5691_v24, %v5265_v5  ;;  %v2808_v37 = vmul.f32 %v16433_v6, %v16227_v14  ;;  %v16913_v60 = vmul.f32 %v16447_v52, %v16077_v31  ;;  %v446_v17 = vld [vmem:[%s13346_s25 + $0x3a0] sm:$0xff] }
 0x24f   : > { %v2678_v15 = vadd.f32 %v2394_v44, %v1973_v20  ;;  %v2682_v3 = vadd.f32 %v2403_v40, %v1977_v45  ;;  %v16917_v63 = vmul.f32 %v16447_v52, %v16227_v14  ;;  %v16921_v18 = vmul.f32 %v16456_v47, %v16077_v31  ;;  %v440_v45 = vld [vmem:[%s13346_s25 + $0x370] sm:$0xff]  ;;  %v445_v40 = vld [vmem:[%s13346_s25 + $0x398] sm:$0xff]  ;;  %938 = vperm.xlu0 %13094, %v446_v17  }
 0x250   : > { %v6073_v24 = vadd.f32 %v16926_v55, %v5965_v61  ;;  %v6077_v20 = vadd.f32 %v16926_v55, %v5969_v58  ;;  %v3330_v44 = vrot.slane %v16913_v60, 1  ;;  %v16933_v51 = vmul.f32 %v16456_v47, %v16227_v14  ;;  %913 = vperm.xlu1 %13095, %v440_v45   ;;  %933 = vperm.xlu2 %13096, %v445_v40  }
 0x251   : > { %v2908_v41 = vadd.f32 %v2804_v33, %v2678_v15  ;;  %v2912_v21 = vadd.f32 %v2808_v37, %v2682_v3  ;;  %v3339_v31 = vrot.slane %v16917_v63, 1  ;;  %v4034_v0 = vrot.slane %v16921_v18, 2 }
 0x252   : > { %v6177_v5 = vmax.f32 %v6073_v24, 0.0  ;;  %v6181_v16 = vmax.f32 %v6077_v20, 0.0  ;;  %v23803_v13 = vrot.slane %v16233_v11, 1  ;;  %v23072_v43 = vrot.slane %v16933_v51, 2 }
 0x253   : > { %v23804_v33 = vrot.slane %v16600_v53, 1  ;;  %v4037_v11 = vsel %vm2297_vm1, %v4034_v0, %v4036_v38  ;;  %v4447_v37 = vmul.f32 %v16834_v48, %v16227_v14  ;;  %v23805_v24 = vrot.slane %v16814_v23, 2 }
 0x254   : > { %v3333_v32 = vsel %vm1592_vm0, %v3330_v44, %v23803_v13  ;;  %v6594_v15 = vmax.f32 %v6177_v5, %v6181_v16  ;;  %v4451_v20 = vmul.f32 %v16834_v48, %v16468_v59  ;;  %v16967_v38 = vmul.f32 %v16487_v4, %v16227_v14  ;;  %v23806_v13 = vld [vmem:[#allocation37_spill] sm:$0xff] }
 0x255   : > { %v3342_v61 = vsel %vm1592_vm0, %v3339_v31, %v23804_v33  ;;  %v3617_v58 = vadd.f32 %v3333_v32, %v2908_v41  ;;  %v4046_v53 = vsel %vm2297_vm1, %v23072_v43, %v23805_v24  ;;  %v16971_v41 = vmul.f32 %v16487_v4, %v16468_v59  ;;  %v23817_v43 = vld [vmem:[#allocation40_spill] sm:$0xff] }
 0x256   : > { %v3621_v3 = vadd.f32 %v3342_v61, %v2912_v21  ;;  %v16975_v23 = vmul.f32 %v16496_v34, %v16227_v14  ;;  %6607 = vmatpush.msra.mxu2 %v6594_v15  ;;  %6633 = vmatpush.msrb.mxu3 %v6594_v15  ;;  %v16980_v16 = vmul.f32 %v16496_v34, %v16468_v59  ;;  %v23071_v17 = vrot.slane %v16967_v38, 1 }
 0x257   : > { %v4321_v29 = vadd.f32 %v4037_v11, %v3617_v58  ;;  %v1033_v32 = vmul.f32 %v16391_v57, %v23806_v13  ;;  %v23070_v33 = vrot.slane %v16971_v41, 1  ;;  %v1037_v11 = vmul.f32 %v16391_v57, %v16295_v56 }
 0x258   : > { %v4325_v5 = vadd.f32 %v4046_v53, %v3621_v3  ;;  %v23073_v61 = vrot.slane %v16975_v23, 2  ;;  %v5686_v58 = vrot.slane %v16980_v16, 2  ;;  %v23807_v15 = vrot.slane %v16511_v12, 1  ;;  %v23808_v3 = vld [vmem:[#allocation38_spill] sm:$0xff]  ;;  %v23842_v16 = vld [vmem:[#allocation33_spill] sm:$0xff] }
 0x259   : > { %v4551_v45 = vadd.f32 %v4447_v37, %v4321_v29  ;;  %v23809_v24 = vrot.slane %v23808_v3, 1  ;;  %v23810_v37 = vrot.slane %v16825_v22, 1  ;;  %v23811_v13 = vrot.slane %v16829_v10, 1 }
 0x25a   : > { %v4555_v40 = vadd.f32 %v4451_v20, %v4325_v5  ;;  %v23812_v5 = vrot.slane %v16840_v28, 2  ;;  %v23814_v22 = vrot.slane %v16535_v9, 1  ;;  %v23815_v10 = vrot.slane %v16844_v27, 2 }
 0x25b   : > { %v1687_v53 = vsel %vm1592_vm0, %v23809_v24, %v23807_v15  ;;  %v4976_v29 = vsel %vm1592_vm0, %v23071_v17, %v23810_v37  ;;  %v4985_v20 = vsel %vm1592_vm0, %v23070_v33, %v23811_v13  ;;  %v23813_v15 = vrot.slane %v16386_v49, 1 }
 0x25c   : > { %v5680_v12 = vsel %vm2297_vm1, %v23073_v61, %v23812_v5  ;;  %v5260_v21 = vadd.f32 %v4976_v29, %v4551_v45  ;;  %v5264_v37 = vadd.f32 %v4985_v20, %v4555_v40  ;;  %v5689_v13 = vsel %vm2297_vm1, %v5686_v58, %v23815_v10 }
 0x25d   : > { %v1696_v24 = vsel %vm1592_vm0, %v23814_v22, %v23813_v15  ;;  %v1972_v33 = vadd.f32 %v1687_v53, %v1033_v32  ;;  %v23816_v17 = vrot.slane %v16517_v35, 2  ;;  %v23818_v5 = vrot.slane %v23817_v43, 2 }
 0x25e   : > { %v1976_v28 = vadd.f32 %v1696_v24, %v1037_v11  ;;  %v23819_v61 = vrot.slane %v16466_v1, 2  ;;  %v23820_v15 = vrot.slane %v16539_v36, 2  ;;  %v2803_v27 = vmul.f32 %v16433_v6, %v16295_v56 }
 0x25f   : > { %v2392_v49 = vsel %vm2297_vm1, %v23818_v5, %v23816_v17  ;;  %v5964_v40 = vadd.f32 %v5680_v12, %v5260_v21  ;;  %v5968_v29 = vadd.f32 %v5689_v13, %v5264_v37  ;;  %v2807_v32 = vmul.f32 %v16433_v6, %v16503_v46 }
 0x260   : > { %v2401_v45 = vsel %vm2297_vm1, %v23820_v15, %v23819_v61  ;;  %v2677_v20 = vadd.f32 %v2392_v49, %v1972_v33  ;;  %v17036_v11 = vmul.f32 %v16447_v52, %v16295_v56  ;;  %v17040_v1 = vmul.f32 %v16447_v52, %v16503_v46 }
 0x261   : > { %v2681_v35 = vadd.f32 %v2401_v45, %v1976_v28  ;;  %v17044_v17 = vmul.f32 %v16456_v47, %v16295_v56  ;;  %v6072_v21 = vadd.f32 %v16926_v55, %v5964_v40  ;;  %v6076_v33 = vadd.f32 %v16926_v55, %v5968_v29  ;;  %v23821_v45 = vld [vmem:[#allocation7_spill] sm:$0xff] }
 0x262   : > { %v2907_v61 = vadd.f32 %v2803_v27, %v2677_v20  ;;  %v17050_v53 = vmul.f32 %v16456_v47, %v16503_v46  ;;  %v23081_v22 = vrot.slane %v17036_v11, 1  ;;  %v23080_v24 = vrot.slane %v17040_v1, 1 }
 0x263   : > { %v2911_v12 = vadd.f32 %v2807_v32, %v2681_v35  ;;  %v23079_v37 = vrot.slane %v17044_v17, 2  ;;  %v6176_v10 = vmax.f32 %v6072_v21, 0.0  ;;  %v6180_v13 = vmax.f32 %v6076_v33, 0.0  ;;  %v23823_v21 = vld [vmem:[#allocation44_spill] sm:$0xff] }
 0x264   : > { %v23074_v56 = vrot.slane %v17050_v53, 2  ;;  %v4446_v28 = vmul.f32 %v16834_v48, %v16503_v46  ;;  %v3331_v5 = vsel %vm1592_vm0, %v23081_v22, %v3330_v44  ;;  %v3340_v49 = vsel %vm1592_vm0, %v23080_v24, %v3339_v31  ;;  %v23845_v22 = vld [vmem:[#allocation11_spill] sm:$0xff] }
 0x265   : > { %v4035_v15 = vsel %vm2297_vm1, %v23079_v37, %v4034_v0  ;;  %v4450_v60 = vmul.f32 %v16834_v48, %v23821_v45  ;;  %v6593_v27 = vmax.f32 %v6176_v10, %v6180_v13  ;;  %v3616_v44 = vadd.f32 %v3331_v5, %v2907_v61  ;;  %v23825_v61 = vld [vmem:[#allocation45_spill] sm:$0xff]  ;;  %v453_v10 = vld [vmem:[%s13346_s25 + $0x3d8] sm:$0xff]  ;;  %v452_v13 = vld [vmem:[%s13346_s25 + $0x3d0] sm:$0xff] }
 0x266   : > { %v3620_v40 = vadd.f32 %v3340_v49, %v2911_v12  ;;  %v23822_v63 = vrot.slane %v16933_v51, 2  ;;  %v17082_v18 = vmul.f32 %v16487_v4, %v16503_v46  ;;  %v17086_v0 = vmul.f32 %v16487_v4, %v23821_v45  ;;  %v454_v12 = vld [vmem:[%s13346_s25 + $0x3e0] sm:$0xff]  ;;  %968 = vperm.xlu0 %13094, %v453_v10   ;;  %963 = vperm.xlu2 %13096, %v452_v13  }
 0x267   : > { %v17090_v29 = vmul.f32 %v16496_v34, %v16503_v46  ;;  %v17094_v20 = vmul.f32 %v16496_v34, %v23821_v45  ;;  %6608 = vmatpush.msra.mxu2 %v6593_v27  ;;  %6634 = vmatpush.msrb.mxu3 %v6593_v27  ;;  %v4320_v32 = vadd.f32 %v4035_v15, %v3616_v44  ;;  %v23824_v33 = vmul.u32 2, %v23823_v21  ;;  %v23836_v27 = vld [vmem:[#allocation26_spill] sm:$0xff] }
 0x268   : > { %v4044_v31 = vsel %vm2297_vm1, %v23074_v56, %v23822_v63  ;;  %v23826_v5 = vrot.slane %v16771_v7, 1  ;;  %v23827_v49 = vrot.slane %v16742_v2, 1  ;;  %v23078_v56 = vrot.slane %v17082_v18, 1  ;;  %1323 = vperm.xlu1 %13095, %v454_v12   ;;  %v23907_v2 = vld [vmem:[#allocation22_spill] sm:$0xff] }
 0x269   : > { %v4324_v35 = vadd.f32 %v4044_v31, %v3620_v40  ;;  %vm6248_vm8 = vcmp.eq.s32.totalorder %v23825_v61, %v23824_v33  ;;  %v23075_v51 = vrot.slane %v17086_v0, 1  ;;  %v23076_v15 = vrot.slane %v17090_v29, 2  ;;  %v23829_v31 = vld [vmem:[#allocation34_spill] sm:$0xff] }
 0x26a   : > { %v1736_v63 = vsel %vm1592_vm0, %v23827_v49, %v23826_v5  ;;  %vm6254_vm9 = vmand %vm6248_vm8, %vm6251_vm3  ;;  %v4550_v44 = vadd.f32 %v4446_v28, %v4320_v32  ;;  %v17119_v33 = vmul.f32 %v16447_v52, %v23829_v31  ;;  %v23830_v5 = vrot.slane %v16967_v38, 1 }
 0x26b   : > { %v4554_v40 = vadd.f32 %v4450_v60, %v4324_v35  ;;  %v17115_v7 = vsel %vm6254_vm9, 1.0, %v23650_v39  ;;  %v23831_v12 = vrot.slane %v16971_v41, 1  ;;  %v23077_v60 = vrot.slane %v17094_v20, 2  ;;  %v17141_v35 = vpop.permute.xlu0 %1273 }
 0x26c   : > { %23828 = vst [vmem:[#allocation29_spill] sm:$0xff] %v17115_v7  ;;  %v4974_v21 = vsel %vm1592_vm0, %v23078_v56, %v23830_v5  ;;  %11071 = vmatmul.msk.f32.gmra.mxu0 %vm6281_vm2, %v17115_v7  ;;  %v17135_v32 = vadd.f32 %v1736_v63, %v16765_v50  ;;  %v17139_v38 = vmul.f32 %v16433_v6, %v23829_v31  ;;  %v23832_v50 = vrot.slane %v16975_v23, 2  ;;  %v458_v56 = vld [vmem:[%s13346_s25 + $0x400] sm:$0xff] }
 0x26d   : > { %v4983_v28 = vsel %vm1592_vm0, %v23075_v51, %v23831_v12  ;;  %v5259_v41 = vadd.f32 %v4974_v21, %v4550_v44  ;;  %11075 = vmatmul.msk.f32.gmra.mxu2 %vm6281_vm2, %v17115_v7  ;;  %v17147_v13 = vmul.f32 %v16456_v47, %v23829_v31  ;;  %v5687_v63 = vsel %vm2297_vm1, %v23077_v60, %v5686_v58  ;;  %v23833_v44 = vld [vmem:[#allocation15_spill] sm:$0xff]  ;;  %v23834_v12 = vld [vmem:[#allocation14_spill] sm:$0xff] }
 0x26e   : > { %v5263_v10 = vadd.f32 %v4983_v28, %v4554_v40  ;;  %v5678_v49 = vsel %vm2297_vm1, %v23076_v15, %v23832_v50  ;;  %v1032_v40 = vmul.f32 %v16391_v57, %v23833_v44  ;;  %v1036_v28 = vmul.f32 %v16391_v57, %v23834_v12  ;;  %v450_v15 = vld [vmem:[%s13346_s25 + $0x3c0] sm:$0xff]  ;;  %v23839_v44 = vld [vmem:[#allocation47_spill] sm:$0xff]  ;;  %988 = vperm.xlu2 %13096, %v458_v56  }
 0x26f   : > { %v5963_v5 = vadd.f32 %v5678_v49, %v5259_v41  ;;  %v23835_v23 = vrot.slane %v23808_v3, 1  ;;  %v23837_v51 = vrot.slane %v23836_v27, 1  ;;  %v3046_v58 = vmul.f32 %v16447_v52, %v17141_v35 }
 0x270   : > { %v5967_v21 = vadd.f32 %v5687_v63, %v5263_v10  ;;  %v23838_v60 = vrot.slane %v16535_v9, 1  ;;  %v23840_v41 = vrot.slane %v23839_v44, 1  ;;  %v451_v63 = vld [vmem:[%s13346_s25 + $0x3c8] sm:$0xff]  ;;  %v23843_v37 = vrot.slane %v23842_v16, 2  ;;  %953 = vperm.xlu1 %13095, %v450_v15  }
 0x271   : > { %v1685_v50 = vsel %vm1592_vm0, %v23837_v51, %v23835_v23  ;;  %v6071_v3 = vadd.f32 %v16926_v55, %v5963_v5  ;;  %v23841_v23 = vrot.slane %v23817_v43, 2  ;;  %v23844_v9 = vrot.slane %v16539_v36, 2  ;;  %v23847_v5 = vld [vmem:[#allocation19_spill] sm:$0xff]  ;;  %958 = vperm.xlu0 %13094, %v451_v63   ;;  %v17197_v36 = vpop.permute.xlu2 %808 }
 0x272   : > { %v1694_v10 = vsel %vm1592_vm0, %v23840_v41, %v23838_v60  ;;  %v1971_v49 = vadd.f32 %v1685_v50, %v1032_v40  ;;  %v6075_v27 = vadd.f32 %v16926_v55, %v5967_v21  ;;  %v23846_v44 = vrot.slane %v23845_v22, 2 }
 0x273   : > { %v1975_v51 = vadd.f32 %v1694_v10, %v1036_v28  ;;  %v2390_v24 = vsel %vm2297_vm1, %v23843_v37, %v23841_v23  ;;  %v2802_v50 = vmul.f32 %v16433_v6, %v23834_v12  ;;  %v2806_v21 = vmul.f32 %v16433_v6, %v23847_v5 }
 0x274   : > { %v2399_v60 = vsel %vm2297_vm1, %v23846_v44, %v23844_v9  ;;  %v2676_v40 = vadd.f32 %v2390_v24, %v1971_v49  ;;  %v6175_v28 = vmax.f32 %v6071_v3, 0.0  ;;  %v6179_v43 = vmax.f32 %v6075_v27, 0.0  ;;  %6313 = vmatmul.f32.gmra.mxu0 %v23650_v39 }
 0x275   : > { %v2680_v41 = vadd.f32 %v2399_v60, %v1975_v51  ;;  %v3027_v37 = vmul.f32 %v16447_v52, %v23834_v12  ;;  %v3032_v24 = vmul.f32 %v16447_v52, %v23847_v5  ;;  %v3731_v16 = vmul.f32 %v16456_v47, %v23834_v12  ;;  %6381 = vmatmul.f32.gmra.mxu2 %v23650_v39 }
 0x276   : > { %v2906_v22 = vadd.f32 %v2802_v50, %v2676_v40  ;;  %v3736_v15 = vmul.f32 %v16456_v47, %v23847_v5  ;;  %v3750_v10 = vmul.f32 %v16456_v47, %v17141_v35  ;;  %v6592_v49 = vmax.f32 %v6175_v28, %v6179_v43 }
 0x277   : > { %v2910_v63 = vadd.f32 %v2806_v21, %v2680_v41  ;;  %v3327_v56 = vrot.slane %v3027_v37, 1  ;;  %v3336_v3 = vrot.slane %v3032_v24, 1  ;;  %v4031_v27 = vrot.slane %v3731_v16, 2 }
 0x278   : > { %v4040_v51 = vrot.slane %v3736_v15, 2  ;;  %v4445_v52 = vmul.f32 %v16834_v48, %v23847_v5  ;;  %v3361_v12 = vrot.slane %v3046_v58, 1  ;;  %6609 = vmatpush.msra.mxu2 %v6592_v49  ;;  %6635 = vmatpush.msrb.mxu3 %v6592_v49  ;;  %v23848_v23 = vrot.slane %v17036_v11, 1 }
 0x279   : > { %v4670_v47 = vmul.f32 %v16487_v4, %v23847_v5  ;;  %v4675_v44 = vmul.f32 %v16487_v4, %v16729_v19  ;;  %v23849_v60 = vrot.slane %v17040_v1, 1  ;;  %v23850_v21 = vrot.slane %v17044_v17, 2  ;;  %v17231_v1 = vld [vmem:[%s22812_s1 + $0x1] ss:$0 sm:$0xff] }
 0x27a   : > { %v3329_v9 = vsel %vm1592_vm0, %v3327_v56, %v23848_v23  ;;  %v4449_v11 = vmul.f32 %v16834_v48, %v16729_v19  ;;  %v5374_v37 = vmul.f32 %v16496_v34, %v23847_v5  ;;  %v23851_v17 = vrot.slane %v17050_v53, 2 }
 0x27b   : > { %v3338_v40 = vsel %vm1592_vm0, %v3336_v3, %v23849_v60  ;;  %v3615_v50 = vadd.f32 %v3329_v9, %v2906_v22  ;;  %v4033_v58 = vsel %vm2297_vm1, %v4031_v27, %v23850_v21  ;;  %v4970_v43 = vrot.slane %v4670_v47, 1  ;;  %v23855_v60 = vld [vmem:[#allocation8_spill] sm:$0xff] }
 0x27c   : > { %v3619_v28 = vadd.f32 %v3338_v40, %v2910_v63  ;;  %v4979_v41 = vrot.slane %v4675_v44, 1  ;;  %v1406_v22 = vmul.f32 %v17231_v1, %v17141_v35  ;;  %v4042_v24 = vsel %vm2297_vm1, %v4040_v51, %v23851_v17  ;;  %11078 = vmatmul.msk.f32.vlgmr.msrb.gmra.mxu0 %vm6281_vm2, %v23855_v60 }
 0x27d   : > { %v4319_v16 = vadd.f32 %v4033_v58, %v3615_v50  ;;  %v5379_v15 = vmul.f32 %v16496_v34, %v16729_v19  ;;  %v23852_v49 = vrot.slane %v17119_v33, 1  ;;  %v23853_v3 = vrot.slane %v17082_v18, 1  ;;  %11082 = vmatmul.msk.f32.vlgmr.msrb.gmra.mxu2 %vm6281_vm2, %v23855_v60  ;;  %v17274_v58 = vpop.permute.xlu2 %798 }
 0x27e   : > { %v4323_v56 = vadd.f32 %v4042_v24, %v3619_v28  ;;  %v5674_v23 = vrot.slane %v5374_v37, 2  ;;  %v2921_v9 = vadd.f32 %v17139_v38, %v16736_v30  ;;  %v23854_v51 = vrot.slane %v17086_v0, 1  ;;  %23861 = vst [vmem:[#allocation38_spill] sm:$0xff] %v17274_v58 }
 0x27f   : > { %v3362_v63 = vsel %vm1592_vm0, %v23852_v49, %v3361_v12  ;;  %v4972_v27 = vsel %vm1592_vm0, %v4970_v43, %v23853_v3  ;;  %v4549_v53 = vadd.f32 %v4445_v52, %v4319_v16  ;;  %v5683_v44 = vrot.slane %v5379_v15, 2 }
 0x280   : > { %v4981_v47 = vsel %vm1592_vm0, %v4979_v41, %v23854_v51  ;;  %v23856_v12 = vrot.slane %v16791_v25, 2  ;;  %v23857_v40 = vrot.slane %v16780_v8, 2  ;;  %v17262_v50 = vmul.f32 %v17231_v1, %v23829_v31  ;;  %v23859_v25 = vld [vmem:[#allocation10_spill] sm:$0xff] }
 0x281   : > { %v4065_v30 = vrot.slane %v3750_v10, 2  ;;  %v4553_v38 = vadd.f32 %v4449_v11, %v4323_v56  ;;  %v17268_v0 = vmul.f32 %v16496_v34, %v16641_v54  ;;  %v17272_v52 = vmul.f32 %v23859_v25, %v23829_v31  ;;  %v17283_v54 = vld [vmem:[%s22812_s1 + $0x2] ss:$0 sm:$0xff] }
 0x282   : > { %v17258_v18 = vsel %vm2297_vm1, %v23857_v40, %v23856_v12  ;;  %23858 = vst [vmem:[#allocation30_spill] sm:$0xff] %v17262_v50  ;;  %v3630_v21 = vadd.f32 %v3362_v63, %v2921_v9  ;;  %v5258_v28 = vadd.f32 %v4972_v27, %v4549_v53  ;;  %v23088_v43 = vrot.slane %v17147_v13, 2 }
 0x283   : > { %23860 = vst [vmem:[#allocation37_spill] sm:$0xff] %v17272_v52  ;;  %v1726_v41 = vrot.slane %v1406_v22, 1  ;;  %v5262_v10 = vadd.f32 %v4981_v47, %v4553_v38  ;;  %v23862_v11 = vrot.slane %v17090_v29, 2  ;;  %v2111_v17 = vmul.f32 %v17283_v54, %v17141_v35 }
 0x284   : > { %v4684_v24 = vmul.f32 %v16487_v4, %v17141_v35  ;;  %v23863_v16 = vrot.slane %v17094_v20, 2  ;;  %v5004_v29 = vrot.slane %v16873_v62, 1  ;;  %v23083_v49 = vrot.slane %v17262_v50, 1  ;;  %11079 = vmatmul.msk.f32.gmra.mxu0 %vm6281_vm2, %v17115_v7 }
 0x285   : > { %v5676_v37 = vsel %vm2297_vm1, %v5674_v23, %v23862_v11  ;;  %v4066_v63 = vsel %vm2297_vm1, %v23088_v43, %v4065_v30  ;;  %v5708_v3 = vrot.slane %v17268_v0, 2  ;;  %v1051_v27 = vmul.f32 %v16391_v57, %v23829_v31  ;;  %v23864_v57 = vld [vmem:[#allocation21_spill] sm:$0xff]  ;;  %11083 = vmatmul.msk.f32.gmra.mxu2 %vm6281_vm2, %v17115_v7 }
 0x286   : > { %v5685_v22 = vsel %vm2297_vm1, %v5683_v44, %v23863_v16  ;;  %v5962_v15 = vadd.f32 %v5676_v37, %v5258_v28  ;;  %v4334_v23 = vadd.f32 %v4066_v63, %v3630_v21  ;;  %v23082_v9 = vrot.slane %v17272_v52, 2  ;;  %v17324_v21 = vpop.permute.xlu1 %758  ;;  %v17334_v37 = vpop.permute.xlu0 %783  ;;  %v23890_v43 = vld [vmem:[#allocation41_spill] sm:$0xff] }
 0x287   : > { %v5966_v56 = vadd.f32 %v5685_v22, %v5262_v10  ;;  %v1727_v62 = vsel %vm1592_vm0, %v23083_v49, %v1726_v41  ;;  %v5388_v53 = vmul.f32 %v16496_v34, %v17141_v35  ;;  %v2431_v47 = vrot.slane %v2111_v17, 2 }
 0x288   : > { %v6070_v20 = vadd.f32 %v16926_v55, %v5962_v15  ;;  %v4995_v44 = vrot.slane %v4684_v24, 1  ;;  %v4456_v12 = vmul.f32 %v16834_v48, %v23829_v31  ;;  %v4460_v40 = vmul.f32 %v16834_v48, %v23864_v57 }
 0x289   : > { %v6074_v51 = vadd.f32 %v16926_v55, %v5966_v56  ;;  %v17316_v0 = vmul.f32 %v16487_v4, %v23829_v31  ;;  %v17320_v35 = vmul.f32 %v16487_v4, %v23864_v57  ;;  %v1990_v25 = vadd.f32 %v1727_v62, %v1051_v27  ;;  %v1289_v27 = vpop.permute.xlu2 %1288 }
 0x28a   : > { %v6174_v30 = vmax.f32 %v6070_v20, 0.0  ;;  %v4564_v28 = vadd.f32 %v4460_v40, %v4334_v23  ;;  %v17328_v41 = vmul.f32 %v16496_v34, %v23829_v31  ;;  %v17332_v10 = vmul.f32 %v16496_v34, %v23864_v57  ;;  %v23868_v23 = vld [vmem:[#allocation57_spill] sm:$0xff] }
 0x28b   : > { %v6178_v38 = vmax.f32 %v6074_v51, 0.0  ;;  %v5699_v11 = vrot.slane %v5388_v53, 2  ;;  %v23087_v24 = vrot.slane %v17316_v0, 1  ;;  %v23086_v16 = vrot.slane %v17320_v35, 1  ;;  %v23870_v40 = vld [vmem:[#allocation17_spill] sm:$0xff] }
 0x28c   : > { %v23865_v22 = vrot.slane %v16819_v42, 1  ;;  %v23866_v15 = vrot.slane %v16795_v26, 1  ;;  %v2432_v31 = vsel %vm2297_vm1, %v23082_v9, %v2431_v47  ;;  %v2821_v56 = vmul.f32 %v16433_v6, %v23864_v57  ;;  %6440 = vmatmul.f32.gmra.mxu0 %v23650_v39  ;;  %v23904_v26 = vld [vmem:[#allocation50_spill] sm:$0xff] }
 0x28d   : > { %v6591_v17 = vmax.f32 %v6174_v30, %v6178_v38  ;;  %v4560_v20 = vadd.f32 %v4456_v12, %v23868_v23  ;;  %v4996_v42 = vsel %vm1592_vm0, %v23087_v24, %v4995_v44  ;;  %v5005_v62 = vsel %vm1592_vm0, %v23086_v16, %v5004_v29  ;;  %v456_v23 = vld [vmem:[%s13346_s25 + $0x3f0] sm:$0xff]  ;;  %6499 = vmatmul.f32.gmra.mxu2 %v23650_v39  ;;  %v23888_v16 = vld [vmem:[#allocation36_spill] sm:$0xff] }
 0x28e   : > { %v17343_v63 = vsel %vm1592_vm0, %v23866_v15, %v23865_v22  ;;  %v23085_v53 = vrot.slane %v17328_v41, 2  ;;  %v23084_v51 = vrot.slane %v17332_v10, 2  ;;  %v2695_v6 = vadd.f32 %v2432_v31, %v1990_v25  ;;  %v457_v15 = vld [vmem:[%s13346_s25 + $0x3f8] sm:$0xff]  ;;  %v459_v31 = vld [vmem:[%s13346_s25 + $0x408] sm:$0xff]  ;;  %978 = vperm.xlu2 %13096, %v456_v23  }
 0x28f   : > { %23867 = vst [vmem:[#allocation40_spill] sm:$0xff] %v17343_v63  ;;  %6610 = vmatpush.msra.mxu2 %v6591_v17  ;;  %6636 = vmatpush.msrb.mxu3 %v6591_v17  ;;  %v17361_v47 = vmul.f32 %v17231_v1, %v17274_v58  ;;  %v5269_v12 = vadd.f32 %v4996_v42, %v4560_v20  ;;  %v23886_v20 = vld [vmem:[#allocation6_spill] sm:$0xff]  ;;  %v23889_v24 = vrot.slane %v23888_v16, 1  ;;  %v23891_v61 = vrot.slane %v23890_v43, 1 }
 0x290   : > { %v5273_v57 = vadd.f32 %v5005_v62, %v4564_v28  ;;  %11092 = vmatmul.msk.f32.vlgmr.msrb.gmra.mxu3 %vm6281_vm2, %v23870_v40  ;;  %v17367_v29 = vmul.f32 %v17283_v54, %v17274_v58  ;;  %v17371_v44 = vmul.f32 %v17231_v1, %v17324_v21  ;;  %v5700_v30 = vsel %vm2297_vm1, %v23085_v53, %v5699_v11  ;;  %v23875_v11 = vld [vmem:[#allocation56_spill] sm:$0xff] }
 0x291   : > { %23869 = vst [vmem:[#allocation7_spill] sm:$0xff] %v17361_v47  ;;  %v5709_v38 = vsel %vm2297_vm1, %v23084_v51, %v5708_v3  ;;  %v17381_v25 = vmul.f32 %v17283_v54, %v17324_v21  ;;  %v17385_v28 = vmul.f32 %v17231_v1, %v17334_v37  ;;  %v5973_v17 = vadd.f32 %v5700_v30, %v5269_v12  ;;  %v23879_v12 = vld [vmem:[#allocation27_spill] sm:$0xff]  ;;  %v17446_v23 = vpop.permute.xlu2 %813  ;;  %v23892_v47 = vld [vmem:[#allocation25_spill] sm:$0xff] }
 0x292   : > { %23871 = vst [vmem:[#allocation44_spill] sm:$0xff] %v17367_v29  ;;  %v5977_v22 = vadd.f32 %v5709_v38, %v5273_v57  ;;  %v17394_v3 = vmul.f32 %v17283_v54, %v17334_v37  ;;  %v17397_v42 = vmul.f32 %v17231_v1, %v1289_v27  ;;  %v17400_v62 = vmul.f32 %v17283_v54, %v1289_v27  ;;  %v17430_v57 = vpop.permute.xlu0 %753 }
 0x293   : > { %23872 = vst [vmem:[#allocation34_spill] sm:$0xff] %v17371_v44  ;;  %983 = vperm.xlu1 %13095, %v457_v15   ;;  %1328 = vperm.xlu0 %13094, %v459_v31   ;;  %v17405_v30 = vadd.f32 %v17258_v18, %v17135_v32  ;;  %v6081_v38 = vadd.f32 %v16926_v55, %v5973_v17  ;;  %v17419_v32 = vld [vmem:[%s22812_s1 + $0x4] ss:$0 sm:$0xff]  ;;  %v17424_v17 = vpop.permute.xlu1 %773  ;;  %v17435_v31 = vld [vmem:[%s22812_s1 + $0x5] ss:$0 sm:$0xff]  ;;  %v23908_v50 = vrot.slane %v23907_v2, 1 }
 0x294   : > { %23873 = vst [vmem:[#allocation15_spill] sm:$0xff] %v17381_v25  ;;  %v6085_v9 = vadd.f32 %v16926_v55, %v5977_v22  ;;  %v17410_v49 = vadd.f32 %v2821_v56, %v2695_v6  ;;  %v17422_v18 = vmul.f32 %v17419_v32, %v1289_v27  ;;  %v17438_v51 = vmul.f32 %v17435_v31, %v1289_v27 }
 0x295   : > { %23874 = vst [vmem:[#allocation14_spill] sm:$0xff] %v17385_v28  ;;  %v6185_v56 = vmax.f32 %v6081_v38, 0.0  ;;  %v17444_v38 = vmul.f32 %v16496_v34, %v1289_v27  ;;  %v17452_v22 = vmul.f32 %v17231_v1, %v17424_v17  ;;  %v17456_v53 = vmul.f32 %v17283_v54, %v17424_v17  ;;  %11086 = vmatmul.msk.f32.vlgmr.msra.gmra.mxu0 %vm6281_vm2, %v23855_v60 }
 0x296   : > { %23876 = vst [vmem:[#allocation26_spill] sm:$0xff] %v17394_v3  ;;  %v6189_v6 = vmax.f32 %v6085_v9, 0.0  ;;  %v17441_v9 = vmul.f32 %v16487_v4, %v1289_v27  ;;  %v17461_v4 = vld [vmem:[%s22812_s1] ss:$0 sm:$0xff]  ;;  %v1707_v29 = vsel %vm1592_vm0, %v23891_v61, %v23889_v24  ;;  %v23898_v61 = vld [vmem:[#allocation43_spill] sm:$0xff]  ;;  %v23905_v3 = vrot.slane %v23904_v26, 2  ;;  %11090 = vmatmul.msk.f32.vlgmr.msra.gmra.mxu2 %vm6281_vm2, %v23855_v60 }
 0x297   : > { %23877 = vst [vmem:[#allocation47_spill] sm:$0xff] %v17397_v42  ;;  %v1042_v34 = vmul.f32 %v17461_v4, %v16227_v14  ;;  %v1046_v27 = vmul.f32 %v17461_v4, %v16468_v59  ;;  %v23894_v14 = vld [vmem:[#allocation48_spill] sm:$0xff]  ;;  %v23899_v24 = vrot.slane %v23898_v61, 2  ;;  %v23909_v2 = vrot.slane %v17119_v33, 1  ;;  %v17571_v33 = vld [vmem:[%s22812_s1 + $0x8] ss:$0 sm:$0xff] }
 0x298   : > { %23878 = vst [vmem:[#allocation33_spill] sm:$0xff] %v17400_v62  ;;  %v6653_v15 = vmax.f32 %v6185_v56, %v6189_v6  ;;  %11093 = vmatmul.msk.f32.gmra.mxu3 %vm6281_vm2, %v23886_v20  ;;  %v17470_v6 = vmul.f32 %v17231_v1, %v17430_v57  ;;  %v23893_v62 = vrot.slane %v23892_v47, 1  ;;  %v23895_v42 = vrot.slane %v23894_v14, 1  ;;  %v23900_v47 = vld [vmem:[#allocation20_spill] sm:$0xff] }
 0x299   : > { %23880 = vst [vmem:[#allocation11_spill] sm:$0xff] %v17410_v49  ;;  %v17484_v56 = vmul.f32 %v17283_v54, %v17430_v57  ;;  %v23901_v25 = vrot.slane %v23900_v47, 2  ;;  %v23906_v61 = vld [vmem:[#allocation32_spill] sm:$0xff] }
 0x29a   : > { %23881 = vst [vmem:[#allocation19_spill] sm:$0xff] %v17422_v18  ;;  %6666 = vmatpush.msrb.mxu0 %v6653_v15  ;;  %6692 = vmatpush.msrb.mxu1 %v6653_v15  ;;  %v1716_v58 = vsel %vm1592_vm0, %v23895_v42, %v23893_v62  ;;  %v17488_v18 = vmul.f32 %v17231_v1, %v17446_v23  ;;  %v23902_v42 = vld [vmem:[#allocation13_spill] sm:$0xff] }
 0x29b   : > { %23882 = vst [vmem:[#allocation10_spill] sm:$0xff] %v17424_v17  ;;  %v1981_v15 = vadd.f32 %v1707_v29, %v1042_v34  ;;  %v1985_v16 = vadd.f32 %v1716_v58, %v1046_v27  ;;  %v2412_v44 = vsel %vm2297_vm1, %v23901_v25, %v23899_v24  ;;  %v23903_v62 = vrot.slane %v23902_v42, 2  ;;  %v17505_v29 = vld [vmem:[%s22812_s1 + $0x3] ss:$0 sm:$0xff]  ;;  %v23928_v17 = vld [vmem:[#allocation31_spill] sm:$0xff] }
 0x29c   : > { %23883 = vst [vmem:[#allocation21_spill] sm:$0xff] %v17430_v57  ;;  %v2812_v58 = vmul.f32 %v17505_v29, %v16468_v59  ;;  %v17511_v34 = vmul.f32 %v17419_v32, %v16468_v59  ;;  %v17521_v24 = vmul.f32 %v17435_v31, %v16468_v59  ;;  %v2816_v42 = vmul.f32 %v17505_v29, %v23906_v61 }
 0x29d   : > { %23884 = vst [vmem:[#allocation57_spill] sm:$0xff] %v17438_v51  ;;  %v2421_v8 = vsel %vm2297_vm1, %v23905_v3, %v23903_v62  ;;  %v2686_v25 = vadd.f32 %v2412_v44, %v1981_v15  ;;  %v17517_v3 = vmul.f32 %v17419_v32, %v23906_v61  ;;  %v17528_v52 = vmul.f32 %v17435_v31, %v23906_v61 }
 0x29e   : > { %23885 = vst [vmem:[#allocation56_spill] sm:$0xff] %v17446_v23  ;;  %v2690_v27 = vadd.f32 %v2421_v8, %v1985_v16  ;;  %v23111_v62 = vrot.slane %v17511_v34, 1  ;;  %v4455_v8 = vmul.f32 %v16834_v48, %v23906_v61  ;;  %v4459_v59 = vmul.f32 %v16834_v48, %v17334_v37  ;;  %11091 = vmatmul.msk.f32.gmra.mxu2 %vm6281_vm2, %v17115_v7 }
 0x29f   : > { %23887 = vst [vmem:[#allocation27_spill] sm:$0xff] %v17456_v53  ;;  %v2916_v44 = vadd.f32 %v2812_v58, %v2686_v25  ;;  %v23117_v15 = vrot.slane %v17517_v3, 1  ;;  %v17544_v58 = vld [vmem:[%s22812_s1 + $0x7] ss:$0 sm:$0xff]  ;;  %v23912_v40 = vrot.slane %v17521_v24, 2  ;;  %v23122_v63 = vrot.slane %v17528_v52, 2  ;;  %11087 = vmatmul.msk.f32.gmra.mxu0 %vm6281_vm2, %v17115_v7 }
 0x2a0   : > { %23896 = vst [vmem:[#allocation36_spill] sm:$0xff] %v17484_v56  ;;  %v2920_v28 = vadd.f32 %v2816_v42, %v2690_v27  ;;  %v3351_v20 = vsel %vm1592_vm0, %v23111_v62, %v23908_v50  ;;  %v17548_v25 = vmul.f32 %v17544_v58, %v23906_v61  ;;  %v17552_v27 = vmul.f32 %v17544_v58, %v17334_v37  ;;  %v23910_v62 = vld [vmem:[#allocation52_spill] sm:$0xff] }
 0x2a1   : > { %23897 = vst [vmem:[#allocation41_spill] sm:$0xff] %v17488_v18  ;;  %6643 = vmatmul.f32.gmra.mxu3 %v23650_v39  ;;  %v3360_v50 = vsel %vm1592_vm0, %v23117_v15, %v23909_v2  ;;  %v3625_v42 = vadd.f32 %v3351_v20, %v2916_v44  ;;  %v23911_v16 = vrot.slane %v23910_v62, 2  ;;  %v17575_v20 = vmul.f32 %v17571_v33, %v23906_v61  ;;  %v463_v62 = vld [vmem:[%s13346_s25 + $0x428] sm:$0xff]  ;;  %v464_v2 = vld [vmem:[%s13346_s25 + $0x430] sm:$0xff] }
 0x2a2   : > { %v3629_v49 = vadd.f32 %v3360_v50, %v2920_v28  ;;  %v455_v44 = vld [vmem:[%s13346_s25 + $0x3e8] sm:$0xff]  ;;  %v23913_v28 = vrot.slane %v17147_v13, 2  ;;  %v17588_v15 = vmul.f32 %v17571_v33, %v17334_v37  ;;  %2758 = vperm.xlu1 %13095, %v463_v62   ;;  %v23915_v13 = vrot.slane %v17548_v25, 1  ;;  %2973 = vperm.xlu2 %13096, %v464_v2  }
 0x2a3   : > { %v4055_v60 = vsel %vm2297_vm1, %v23912_v40, %v23911_v16  ;;  %973 = vperm.xlu0 %13094, %v455_v44   ;;  %v23914_v40 = vrot.slane %v17316_v0, 1  ;;  %v23917_v62 = vrot.slane %v17320_v35, 1  ;;  %v23918_v44 = vrot.slane %v17552_v27, 1  ;;  %v23934_v18 = vld [vmem:[#allocation42_spill] sm:$0xff] }
 0x2a4   : > { %v4064_v16 = vsel %vm2297_vm1, %v23122_v63, %v23913_v28  ;;  %v4329_v50 = vadd.f32 %v4055_v60, %v3625_v42  ;;  %v17598_v42 = vpop.permute.xlu1 %803  ;;  %v17613_v2 = vmul.f32 %v17283_v54, %v17446_v23  ;;  %v23120_v35 = vrot.slane %v17575_v20, 2 }
 0x2a5   : > { %v4333_v61 = vadd.f32 %v4064_v16, %v3629_v49  ;;  %v4994_v51 = vsel %vm1592_vm0, %v23915_v13, %v23914_v40  ;;  %23916 = vst [vmem:[#allocation25_spill] sm:$0xff] %v17598_v42  ;;  %v5003_v57 = vsel %vm1592_vm0, %v23918_v44, %v23917_v62  ;;  %v23121_v49 = vrot.slane %v17588_v15, 2 }
 0x2a6   : > { %v4559_v28 = vadd.f32 %v4455_v8, %v4329_v50  ;;  %23919 = vst [vmem:[#allocation48_spill] sm:$0xff] %v17613_v2  ;;  %v17621_v62 = vmul.f32 %v17231_v1, %v17598_v42  ;;  %v17625_v44 = vmul.f32 %v17231_v1, %v17197_v36  ;;  %v23923_v16 = vrot.slane %v17332_v10, 2  ;;  %6617 = vmatmul.f32.gmra.mxu2 %v23650_v39 }
 0x2a7   : > { %v4563_v8 = vadd.f32 %v4459_v59, %v4333_v61  ;;  %v23922_v61 = vrot.slane %v17328_v41, 2  ;;  %v1041_v50 = vmul.f32 %v17461_v4, %v16503_v46  ;;  %v1045_v60 = vmul.f32 %v17461_v4, %v23821_v45  ;;  %6558 = vmatmul.f32.gmra.mxu0 %v23650_v39 }
 0x2a8   : > { %v5268_v13 = vadd.f32 %v4994_v51, %v4559_v28  ;;  %23920 = vst [vmem:[#allocation43_spill] sm:$0xff] %v17621_v62  ;;  %v5707_v51 = vsel %vm2297_vm1, %v23121_v49, %v23923_v16  ;;  %v23924_v41 = vrot.slane %v23890_v43, 1  ;;  %v23927_v10 = vrot.slane %v23894_v14, 1 }
 0x2a9   : > { %23921 = vst [vmem:[#allocation20_spill] sm:$0xff] %v17625_v44  ;;  %v5272_v0 = vadd.f32 %v5003_v57, %v4563_v8  ;;  %v5698_v59 = vsel %vm2297_vm1, %v23120_v35, %v23922_v61  ;;  %v23925_v8 = vld [vmem:[#allocation35_spill] sm:$0xff]  ;;  %v23929_v35 = vrot.slane %v23928_v17, 1  ;;  %v23933_v63 = vrot.slane %v23904_v26, 2 }
 0x2aa   : > { %v5972_v28 = vadd.f32 %v5698_v59, %v5268_v13  ;;  %v23926_v40 = vrot.slane %v23925_v8, 1  ;;  %v23930_v13 = vrot.slane %v23900_v47, 2  ;;  %v23931_v59 = vld [vmem:[#allocation5_spill] sm:$0xff]  ;;  %v2811_v47 = vmul.f32 %v17505_v29, %v23821_v45 }
 0x2ab   : > { %v5976_v57 = vadd.f32 %v5707_v51, %v5272_v0  ;;  %v1714_v16 = vsel %vm1592_vm0, %v23929_v35, %v23927_v10  ;;  %v23932_v46 = vrot.slane %v23931_v59, 2  ;;  %v2815_v10 = vmul.f32 %v17505_v29, %v17324_v21 }
 0x2ac   : > { %v1705_v61 = vsel %vm1592_vm0, %v23926_v40, %v23924_v41  ;;  %v6080_v0 = vadd.f32 %v16926_v55, %v5972_v28  ;;  %v1984_v43 = vadd.f32 %v1714_v16, %v1045_v60  ;;  %v23935_v40 = vrot.slane %v23934_v18, 2  ;;  %v17662_v41 = vpop.permute.xlu0 %1283 }
 0x2ad   : > { %v2410_v49 = vsel %vm2297_vm1, %v23932_v46, %v23930_v13  ;;  %v1980_v51 = vadd.f32 %v1705_v61, %v1041_v50  ;;  %v6084_v35 = vadd.f32 %v16926_v55, %v5976_v57  ;;  %v17671_v50 = vmul.f32 %v17419_v32, %v23821_v45 }
 0x2ae   : > { %v2419_v14 = vsel %vm2297_vm1, %v23935_v40, %v23933_v63  ;;  %v6184_v60 = vmax.f32 %v6080_v0, 0.0  ;;  %v17675_v63 = vmul.f32 %v17419_v32, %v17324_v21  ;;  %v17682_v16 = vmul.f32 %v17435_v31, %v23821_v45 }
 0x2af   : > { %v2685_v26 = vadd.f32 %v2410_v49, %v1980_v51  ;;  %v2689_v28 = vadd.f32 %v2419_v14, %v1984_v43  ;;  %v6188_v57 = vmax.f32 %v6084_v35, 0.0  ;;  %v23129_v61 = vrot.slane %v17671_v50, 1 }
 0x2b0   : > { %v17686_v13 = vmul.f32 %v17435_v31, %v17324_v21  ;;  %v17690_v49 = vmul.f32 %v17231_v1, %v17662_v41  ;;  %v23128_v51 = vrot.slane %v17675_v63, 1  ;;  %v23936_v40 = vrot.slane %v17511_v34, 1 }
 0x2b1   : > { %v2915_v46 = vadd.f32 %v2811_v47, %v2685_v26  ;;  %v2919_v0 = vadd.f32 %v2815_v10, %v2689_v28  ;;  %v6652_v43 = vmax.f32 %v6184_v60, %v6188_v57  ;;  %v23127_v14 = vrot.slane %v17682_v16, 2 }
 0x2b2   : > { %v3349_v45 = vsel %vm1592_vm0, %v23129_v61, %v23936_v40  ;;  %v23126_v35 = vrot.slane %v17686_v13, 2  ;;  %v23937_v23 = vrot.slane %v17517_v3, 1  ;;  %v4454_v60 = vmul.f32 %v16834_v48, %v17324_v21 }
 0x2b3   : > { %v3624_v10 = vadd.f32 %v3349_v45, %v2915_v46  ;;  %v17709_v34 = vmul.f32 %v17544_v58, %v17324_v21  ;;  %6667 = vmatpush.msrb.mxu0 %v6652_v43  ;;  %6693 = vmatpush.msrb.mxu1 %v6652_v43  ;;  %v23938_v28 = vrot.slane %v17521_v24, 2  ;;  %v23939_v57 = vrot.slane %v17528_v52, 2  ;;  %v23940_v45 = vld [vmem:[#allocation49_spill] sm:$0xff] }
 0x2b4   : > { %v3358_v47 = vsel %vm1592_vm0, %v23128_v51, %v23937_v23  ;;  %v17724_v26 = vmul.f32 %v17544_v58, %v23940_v45  ;;  %v17729_v24 = vmul.f32 %v17571_v33, %v17324_v21  ;;  %v2825_v2 = vmul.f32 %v17505_v29, %v17197_v36  ;;  %v17811_v56 = vpop.permute.xlu0 %793 }
 0x2b5   : > { %v3628_v3 = vadd.f32 %v3358_v47, %v2919_v0  ;;  %v4053_v23 = vsel %vm2297_vm1, %v23127_v14, %v23938_v28  ;;  %v4062_v46 = vsel %vm2297_vm1, %v23126_v35, %v23939_v57  ;;  %v23130_v43 = vrot.slane %v17709_v34, 1  ;;  %v461_v28 = vld [vmem:[%s13346_s25 + $0x418] sm:$0xff]  ;;  %v460_v57 = vld [vmem:[%s13346_s25 + $0x410] sm:$0xff] }
 0x2b6   : > { %v4328_v40 = vadd.f32 %v4053_v23, %v3624_v10  ;;  %v17733_v0 = vmul.f32 %v17283_v54, %v17197_v36  ;;  %v4458_v47 = vmul.f32 %v16834_v48, %v23940_v45  ;;  %v17739_v10 = vmul.f32 %v17571_v33, %v23940_v45  ;;  %v462_v23 = vld [vmem:[%s13346_s25 + $0x420] sm:$0xff]  ;;  %2748 = vperm.xlu1 %13095, %v461_v28  }
 0x2b7   : > { %v4332_v52 = vadd.f32 %v4062_v46, %v3628_v3  ;;  %v23942_v14 = vrot.slane %v17548_v25, 1  ;;  %v23134_v61 = vrot.slane %v17724_v26, 1  ;;  %2753 = vperm.xlu0 %13094, %v462_v23   ;;  %v17753_v48 = vmul.f32 %v17283_v54, %v17598_v42  ;;  %2743 = vperm.xlu2 %13096, %v460_v57  }
 0x2b8   : > { %23941 = vst [vmem:[#allocation13_spill] sm:$0xff] %v17733_v0  ;;  %v4558_v35 = vadd.f32 %v4454_v60, %v4328_v40  ;;  %v17757_v46 = vmul.f32 %v17283_v54, %v17662_v41  ;;  %v17761_v25 = vmul.f32 %v17419_v32, %v17197_v36  ;;  %v23944_v40 = vrot.slane %v17552_v27, 1 }
 0x2b9   : > { %v4992_v51 = vsel %vm1592_vm0, %v23130_v43, %v23942_v14  ;;  %23943 = vst [vmem:[#allocation50_spill] sm:$0xff] %v17753_v48  ;;  %v4562_v60 = vadd.f32 %v4458_v47, %v4332_v52  ;;  %v3056_v14 = vmul.f32 %v17419_v32, %v17662_v41  ;;  %v23135_v43 = vrot.slane %v17739_v10, 2 }
 0x2ba   : > { %v5001_v28 = vsel %vm1592_vm0, %v23134_v61, %v23944_v40  ;;  %v5267_v23 = vadd.f32 %v4992_v51, %v4558_v35  ;;  %v23945_v52 = vrot.slane %v17575_v20, 2  ;;  %v23946_v47 = vrot.slane %v17729_v24, 2 }
 0x2bb   : > { %v5271_v53 = vadd.f32 %v5001_v28, %v4562_v60  ;;  %v23947_v51 = vrot.slane %v17588_v15, 2  ;;  %v17788_v60 = vadd.f32 %v2825_v2, %v17405_v30  ;;  %v23141_v20 = vrot.slane %v17761_v25, 1  ;;  %v23949_v2 = vld [vmem:[#allocation46_spill] sm:$0xff] }
 0x2bc   : > { %v5696_v57 = vsel %vm2297_vm1, %v23946_v47, %v23945_v52  ;;  %v3379_v52 = vrot.slane %v3056_v14, 1  ;;  %v1040_v15 = vmul.f32 %v17461_v4, %v23847_v5  ;;  %v23950_v14 = vrot.slane %v23949_v2, 1 }
 0x2bd   : > { %v5705_v35 = vsel %vm2297_vm1, %v23135_v43, %v23947_v51  ;;  %v5971_v40 = vadd.f32 %v5696_v57, %v5267_v23  ;;  %v1044_v51 = vmul.f32 %v17461_v4, %v16729_v19  ;;  %v17798_v23 = vmul.f32 %v17435_v31, %v17197_v36 }
 0x2be   : > { %v5975_v28 = vadd.f32 %v5705_v35, %v5271_v53  ;;  %v23948_v53 = vrot.slane %v23925_v8, 1  ;;  %v23951_v35 = vrot.slane %v23928_v17, 1  ;;  %v23952_v5 = vrot.slane %v23875_v11, 1 }
 0x2bf   : > { %v6079_v47 = vadd.f32 %v16926_v55, %v5971_v40  ;;  %v23953_v27 = vrot.slane %v23931_v59, 2  ;;  %v23957_v17 = vrot.slane %v23879_v12, 2  ;;  %v467_v59 = vld [vmem:[%s13346_s25 + $0x448] sm:$0xff]  ;;  %v3760_v12 = vmul.f32 %v17435_v31, %v17662_v41 }
 0x2c0   : > { %v6083_v30 = vadd.f32 %v16926_v55, %v5975_v28  ;;  %v1703_v57 = vsel %vm1592_vm0, %v23950_v14, %v23948_v53  ;;  %v1712_v40 = vsel %vm1592_vm0, %v23952_v5, %v23951_v35  ;;  %v23954_v55 = vld [vmem:[#allocation24_spill] sm:$0xff]  ;;  %v23956_v53 = vrot.slane %v23934_v18, 2  ;;  %v23958_v14 = vld [vmem:[#allocation21_spill] sm:$0xff]  ;;  %4396 = vperm.xlu2 %13096, %v467_v59  }
 0x2c1   : > { %v6183_v43 = vmax.f32 %v6079_v47, 0.0  ;;  %v1979_v61 = vadd.f32 %v1703_v57, %v1040_v15  ;;  %v1983_v3 = vadd.f32 %v1712_v40, %v1044_v51  ;;  %v23955_v28 = vrot.slane %v23954_v55, 2  ;;  %v469_v51 = vld [vmem:[%s13346_s25 + $0x458] sm:$0xff]  ;;  %v468_v57 = vld [vmem:[%s13346_s25 + $0x450] sm:$0xff] }
 0x2c2   : > { %v6187_v2 = vmax.f32 %v6083_v30, 0.0  ;;  %v2417_v11 = vsel %vm2297_vm1, %v23957_v17, %v23956_v53  ;;  %v2810_v47 = vmul.f32 %v17505_v29, %v16729_v19  ;;  %v2814_v15 = vmul.f32 %v17505_v29, %v23958_v14  ;;  %4616 = vperm.xlu1 %13095, %v469_v51   ;;  %4401 = vperm.xlu0 %13094, %v468_v57   ;;  %v23961_v51 = vld [vmem:[#allocation10_spill] sm:$0xff] }
 0x2c3   : > { %v2408_v8 = vsel %vm2297_vm1, %v23955_v28, %v23953_v27  ;;  %v2688_v5 = vadd.f32 %v2417_v11, %v1983_v3  ;;  %v3037_v27 = vmul.f32 %v17419_v32, %v16729_v19  ;;  %v3042_v18 = vmul.f32 %v17419_v32, %v23958_v14 }
 0x2c4   : > { %v2684_v35 = vadd.f32 %v2408_v8, %v1979_v61  ;;  %v6651_v30 = vmax.f32 %v6183_v43, %v6187_v2  ;;  %v3741_v40 = vmul.f32 %v17435_v31, %v16729_v19  ;;  %v3746_v55 = vmul.f32 %v17435_v31, %v23958_v14 }
 0x2c5   : > { %v2918_v3 = vadd.f32 %v2814_v15, %v2688_v5  ;;  %v3345_v28 = vrot.slane %v3037_v27, 1  ;;  %v3354_v8 = vrot.slane %v3042_v18, 1  ;;  %v3380_v53 = vsel %vm1592_vm0, %v23141_v20, %v3379_v52  ;;  %v17865_v18 = vpop.permute.xlu1 %828 }
 0x2c6   : > { %v2914_v61 = vadd.f32 %v2810_v47, %v2684_v35  ;;  %6668 = vmatpush.msrb.mxu0 %v6651_v30  ;;  %6694 = vmatpush.msrb.mxu1 %v6651_v30  ;;  %v4049_v17 = vrot.slane %v3741_v40, 2  ;;  %v4058_v43 = vrot.slane %v3746_v55, 2  ;;  %v4680_v19 = vmul.f32 %v17544_v58, %v23958_v14  ;;  %23963 = vst [vmem:[#allocation22_spill] sm:$0xff] %v17865_v18 }
 0x2c7   : > { %v23959_v2 = vrot.slane %v17671_v50, 1  ;;  %v23960_v47 = vrot.slane %v17675_v63, 1  ;;  %v4685_v57 = vmul.f32 %v17544_v58, %v23961_v51  ;;  %v5384_v52 = vmul.f32 %v17571_v33, %v23958_v14  ;;  %v17861_v50 = vld [vmem:[%s22812_s1 + $0x6] ss:$0 sm:$0xff] }
 0x2c8   : > { %v23962_v5 = vrot.slane %v17682_v16, 2  ;;  %v4453_v63 = vmul.f32 %v17861_v50, %v23958_v14  ;;  %v23964_v30 = vrot.slane %v17686_v13, 2  ;;  %v4988_v55 = vrot.slane %v4680_v19, 1 }
 0x2c9   : > { %v3347_v11 = vsel %vm1592_vm0, %v3345_v28, %v23959_v2  ;;  %v3356_v15 = vsel %vm1592_vm0, %v3354_v8, %v23960_v47  ;;  %v5389_v16 = vmul.f32 %v17571_v33, %v23961_v51  ;;  %v23966_v28 = vrot.slane %v17625_v44, 1  ;;  %v24007_v44 = vld [vmem:[#allocation14_spill] sm:$0xff] }
 0x2ca   : > { %v3623_v59 = vadd.f32 %v3347_v11, %v2914_v61  ;;  %v3627_v35 = vadd.f32 %v3356_v15, %v2918_v3  ;;  %v4051_v27 = vsel %vm2297_vm1, %v4049_v17, %v23962_v5  ;;  %v4060_v40 = vsel %vm2297_vm1, %v4058_v43, %v23964_v30 }
 0x2cb   : > { %v4997_v61 = vrot.slane %v4685_v57, 1  ;;  %v23965_v3 = vrot.slane %v17690_v49, 1  ;;  %v4457_v11 = vmul.f32 %v17861_v50, %v23961_v51  ;;  %v4083_v47 = vrot.slane %v3760_v12, 2  ;;  %v17882_v57 = vpop.permute.xlu0 %823 }
 0x2cc   : > { %v4327_v17 = vadd.f32 %v4051_v27, %v3623_v59  ;;  %v4331_v2 = vadd.f32 %v4060_v40, %v3627_v35  ;;  %v23967_v13 = vrot.slane %v17709_v34, 1  ;;  %v5692_v19 = vrot.slane %v5384_v52, 2  ;;  %23968 = vst [vmem:[#allocation52_spill] sm:$0xff] %v17882_v57 }
 0x2cd   : > { %v1745_v8 = vsel %vm1592_vm0, %v23966_v28, %v23965_v3  ;;  %v5701_v15 = vrot.slane %v5389_v16, 2  ;;  %v3638_v49 = vadd.f32 %v3380_v53, %v17788_v60  ;;  %v4694_v5 = vmul.f32 %v17544_v58, %v17662_v41 }
 0x2ce   : > { %v4990_v43 = vsel %vm1592_vm0, %v4988_v55, %v23967_v13  ;;  %v4557_v30 = vadd.f32 %v4453_v63, %v4327_v17  ;;  %v4561_v59 = vadd.f32 %v4457_v11, %v4331_v2  ;;  %v1059_v35 = vmul.f32 %v17461_v4, %v17197_v36  ;;  %v1294_v55 = vpop.permute.xlu2 %1293 }
 0x2cf   : > { %v23136_v12 = vrot.slane %v17798_v23, 2  ;;  %v5398_v34 = vmul.f32 %v17571_v33, %v17662_v41  ;;  %v23969_v52 = vrot.slane %v17724_v26, 1  ;;  %v23970_v60 = vrot.slane %v17757_v46, 2 }
 0x2d0   : > { %v23971_v53 = vrot.slane %v17733_v0, 2  ;;  %v5266_v16 = vadd.f32 %v4990_v43, %v4557_v30  ;;  %v1998_v28 = vadd.f32 %v1745_v8, %v1059_v35  ;;  %v23972_v26 = vrot.slane %v17729_v24, 2  ;;  %v23975_v30 = vld [vmem:[#allocation40_spill] sm:$0xff]  ;;  %v23977_v35 = vld [vmem:[#allocation51_spill] sm:$0xff] }
 0x2d1   : > { %v4999_v27 = vsel %vm1592_vm0, %v4997_v61, %v23969_v52  ;;  %v4084_v41 = vsel %vm2297_vm1, %v23136_v12, %v4083_v47  ;;  %v23973_v17 = vrot.slane %v17739_v10, 2  ;;  %v5013_v11 = vrot.slane %v4694_v5, 1  ;;  %v23974_v47 = vld [vmem:[#allocation11_spill] sm:$0xff]  ;;  %v17924_v10 = vld [vmem:[%s22813_s2] ss:$0 sm:$0xff]  ;;  %v23986_v12 = vld [vmem:[#allocation17_spill] sm:$0xff] }
 0x2d2   : > { %v2450_v63 = vsel %vm2297_vm1, %v23971_v53, %v23970_v60  ;;  %v5270_v3 = vadd.f32 %v4999_v27, %v4561_v59  ;;  %v5694_v61 = vsel %vm2297_vm1, %v5692_v19, %v23972_v26  ;;  %v4342_v2 = vadd.f32 %v4084_v41, %v3638_v49  ;;  %v17930_v59 = vpop.permute.xlu1 %818 }
 0x2d3   : > { %v5703_v46 = vsel %vm2297_vm1, %v5701_v15, %v23973_v17  ;;  %v5970_v13 = vadd.f32 %v5694_v61, %v5266_v16  ;;  %v5717_v60 = vrot.slane %v5398_v34, 2  ;;  %v17911_v43 = vmul.f32 %v17231_v1, %v1294_v55 }
 0x2d4   : > { %v5974_v52 = vadd.f32 %v5703_v46, %v5270_v3  ;;  %v17914_v8 = vmul.f32 %v17283_v54, %v1294_v55  ;;  %v3634_v24 = vadd.f32 %v23975_v30, %v23974_v47  ;;  %v17919_v19 = vmul.f32 %v17419_v32, %v1294_v55  ;;  %v17950_v46 = vpop.permute.xlu0 %848 }
 0x2d5   : > { %v6078_v15 = vadd.f32 %v17924_v10, %v5970_v13  ;;  %v4468_v5 = vmul.f32 %v17861_v50, %v17865_v18  ;;  %v4464_v27 = vmul.f32 %v17861_v50, %v17197_v36  ;;  %v17937_v53 = vmul.f32 %v17544_v58, %v17197_v36 }
 0x2d6   : > { %23976 = vst [vmem:[#allocation35_spill] sm:$0xff] %v17919_v19  ;;  %v6082_v49 = vadd.f32 %v17924_v10, %v5974_v52  ;;  %v4338_v34 = vadd.f32 %v23977_v35, %v3634_v24  ;;  %v17941_v16 = vmul.f32 %v17544_v58, %v17865_v18  ;;  %v17945_v61 = vmul.f32 %v17571_v33, %v17197_v36  ;;  %v24015_v19 = vld [vmem:[#allocation26_spill] sm:$0xff] }
 0x2d7   : > { %v6182_v3 = vmax.f32 %v6078_v15, 0.0  ;;  %v4572_v26 = vadd.f32 %v4468_v5, %v4342_v2  ;;  %v17948_v17 = vmul.f32 %v17435_v31, %v1294_v55  ;;  %v23140_v13 = vrot.slane %v17937_v53, 1 }
 0x2d8   : > { %v6186_v41 = vmax.f32 %v6082_v49, 0.0  ;;  %v23139_v52 = vrot.slane %v17941_v16, 1  ;;  %v17956_v47 = vmul.f32 %v17571_v33, %v17865_v18  ;;  %v17959_v30 = vmul.f32 %v17544_v58, %v1294_v55 }
 0x2d9   : > { %23978 = vst [vmem:[#allocation31_spill] sm:$0xff] %v17948_v17  ;;  %v17962_v2 = vmul.f32 %v17571_v33, %v1294_v55  ;;  %v4568_v24 = vadd.f32 %v4464_v27, %v4338_v34  ;;  %v5014_v15 = vsel %vm1592_vm0, %v23140_v13, %v5013_v11  ;;  %v23981_v49 = vrot.slane %v17441_v9, 1 }
 0x2da   : > { %23979 = vst [vmem:[#allocation5_spill] sm:$0xff] %v17959_v30  ;;  %v6650_v36 = vmax.f32 %v6182_v3, %v6186_v41  ;;  %v23138_v35 = vrot.slane %v17945_v61, 2  ;;  %v23137_v40 = vrot.slane %v17956_v47, 2  ;;  %v17977_v55 = vmul.f32 %v17231_v1, %v17950_v46 }
 0x2db   : > { %23980 = vst [vmem:[#allocation42_spill] sm:$0xff] %v17962_v2  ;;  %v5023_v5 = vsel %vm1592_vm0, %v23139_v52, %v23981_v49  ;;  %v5277_v34 = vadd.f32 %v5014_v15, %v4568_v24  ;;  %v17979_v27 = vadd.f32 %v2450_v63, %v1998_v28  ;;  %v1762_v9 = vrot.slane %v17911_v43, 1  ;;  %v23985_v49 = vld [vmem:[#allocation8_spill] sm:$0xff]  ;;  %v18028_v24 = vpop.permute.xlu1 %868 }
 0x2dc   : > { %6669 = vmatpush.msrb.mxu0 %v6650_v36  ;;  %6695 = vmatpush.msrb.mxu1 %v6650_v36  ;;  %23982 = vst [vmem:[#allocation49_spill] sm:$0xff] %v17977_v55  ;;  %v5281_v11 = vadd.f32 %v5023_v5, %v4572_v26  ;;  %v5718_v3 = vsel %vm2297_vm1, %v23138_v35, %v5717_v60  ;;  %v23984_v41 = vrot.slane %v17444_v38, 2  ;;  %v2467_v63 = vrot.slane %v17914_v8, 2  ;;  %v18046_v8 = vpop.permute.xlu0 %1298  ;;  %v24000_v2 = vld [vmem:[#allocation32_spill] sm:$0xff] }
 0x2dd   : > { %23983 = vst [vmem:[#allocation46_spill] sm:$0xff] %v17979_v27  ;;  %11094 = vmatmul.msk.f32.vlgmr.msrb.gmra.mxu0 %vm6281_vm2, %v23985_v49  ;;  %11096 = vmatmul.msk.f32.vlgmr.msrb.gmra.mxu1 %vm6281_vm2, %v23986_v12  ;;  %v17997_v28 = vmul.f32 %v17283_v54, %v17950_v46  ;;  %v5981_v43 = vadd.f32 %v5718_v3, %v5277_v34  ;;  %v23996_v35 = vrot.slane %v17977_v55, 1  ;;  %v24016_v27 = vrot.slane %v24015_v19, 2 }
 0x2de   : > { %v5727_v36 = vsel %vm2297_vm1, %v23137_v40, %v23984_v41  ;;  %v18004_v15 = vmul.f32 %v17231_v1, %v17865_v18  ;;  %v18007_v41 = vpop.permute.xlu2 %863  ;;  %v18018_v3 = vmul.f32 %v17283_v54, %v17865_v18  ;;  %v18026_v5 = vmul.f32 %v17231_v1, %v17811_v56 }
 0x2df   : > { %23987 = vst [vmem:[#allocation24_spill] sm:$0xff] %v17997_v28  ;;  %v5985_v60 = vadd.f32 %v5727_v36, %v5281_v11  ;;  %v6089_v40 = vadd.f32 %v17924_v10, %v5981_v43  ;;  %v18014_v11 = vmul.f32 %v17461_v4, %v17865_v18  ;;  %v18022_v36 = vmul.f32 %v17419_v32, %v17865_v18  ;;  %v24040_v18 = vld [vmem:[#allocation54_spill] sm:$0xff] }
 0x2e0   : > { %23988 = vst [vmem:[#allocation21_spill] sm:$0xff] %v18007_v41  ;;  %v18032_v43 = vmul.f32 %v17283_v54, %v17811_v56  ;;  %v18038_v52 = vmul.f32 %v17231_v1, %v18007_v41  ;;  %v18042_v13 = vmul.f32 %v17283_v54, %v18007_v41  ;;  %v1067_v20 = vmul.f32 %v17461_v4, %v17950_v46 }
 0x2e1   : > { %v6093_v34 = vadd.f32 %v17924_v10, %v5985_v60  ;;  %23989 = vst [vmem:[#allocation10_spill] sm:$0xff] %v18022_v36  ;;  %v6193_v26 = vmax.f32 %v6089_v40, 0.0  ;;  %v18050_v40 = vmul.f32 %v17419_v32, %v18028_v24  ;;  %v1763_v60 = vsel %vm1592_vm0, %v23996_v35, %v1762_v9 }
 0x2e2   : > { %23990 = vst [vmem:[#allocation11_spill] sm:$0xff] %v18026_v5  ;;  %v2006_v62 = vadd.f32 %v1763_v60, %v1067_v20  ;;  %v23998_v55 = vrot.slane %v17997_v28, 2  ;;  %v3071_v9 = vmul.f32 %v17419_v32, %v18046_v8  ;;  %v3775_v20 = vmul.f32 %v17435_v31, %v18046_v8  ;;  %v24003_v5 = vld [vmem:[#allocation18_spill] sm:$0xff] }
 0x2e3   : > { %23991 = vst [vmem:[#allocation40_spill] sm:$0xff] %v18032_v43  ;;  %v6197_v38 = vmax.f32 %v6093_v34, 0.0  ;;  %v18054_v34 = vmul.f32 %v17435_v31, %v18028_v24  ;;  %v2837_v0 = vmul.f32 %v17505_v29, %v18028_v24  ;;  %v18086_v43 = vmul.f32 %v17283_v54, %v17930_v59 }
 0x2e4   : > { %23992 = vst [vmem:[#allocation51_spill] sm:$0xff] %v18038_v52  ;;  %v2468_v35 = vsel %vm2297_vm1, %v23998_v55, %v2467_v63  ;;  %v3406_v28 = vrot.slane %v3071_v9, 1  ;;  %v4110_v55 = vrot.slane %v3775_v20, 2  ;;  %v18082_v63 = vmul.f32 %v17231_v1, %v17930_v59  ;;  %v24001_v20 = vld [vmem:[#allocation30_spill] sm:$0xff] }
 0x2e5   : > { %23993 = vst [vmem:[#allocation59_spill] sm:$0xff] %v18042_v13  ;;  %v6712_v48 = vmax.f32 %v6193_v26, %v6197_v38  ;;  %11095 = vmatmul.msk.f32.gmra.mxu0 %vm6281_vm2, %v17115_v7  ;;  %v23997_v38 = vld [vmem:[#allocation6_spill] sm:$0xff]  ;;  %v2711_v26 = vadd.f32 %v2468_v35, %v2006_v62  ;;  %v23165_v41 = vrot.slane %v18054_v34, 2  ;;  %v1050_v13 = vmul.f32 %v17461_v4, %v24000_v2  ;;  %v24005_v7 = vld [vmem:[#allocation55_spill] sm:$0xff] }
 0x2e6   : > { %23994 = vst [vmem:[#allocation60_spill] sm:$0xff] %v18050_v40  ;;  %11097 = vmatmul.msk.f32.gmra.mxu1 %vm6281_vm2, %v23997_v38  ;;  %v1054_v9 = vmul.f32 %v17461_v4, %v17334_v37  ;;  %v24002_v52 = vrot.slane %v24001_v20, 1  ;;  %v24004_v38 = vrot.slane %v24003_v5, 1  ;;  %v24006_v2 = vrot.slane %v24005_v7, 1  ;;  %v24013_v20 = vld [vmem:[#allocation58_spill] sm:$0xff] }
 0x2e7   : > { %23995 = vst [vmem:[#allocation61_spill] sm:$0xff] %v18054_v34  ;;  %6725 = vmatpush.msrb.mxu2 %v6712_v48  ;;  %6751 = vmatpush.msra.mxu3 %v6712_v48  ;;  %v23162_v48 = vrot.slane %v18050_v40, 1  ;;  %v2941_v60 = vadd.f32 %v2837_v0, %v2711_v26  ;;  %v4111_v35 = vsel %vm2297_vm1, %v23165_v41, %v4110_v55  ;;  %v24008_v40 = vrot.slane %v24007_v44, 1  ;;  %v24009_v34 = vld [vmem:[#allocation37_spill] sm:$0xff] }
 0x2e8   : > { %23999 = vst [vmem:[#allocation62_spill] sm:$0xff] %v18082_v63  ;;  %v1725_v0 = vsel %vm1592_vm0, %v24004_v38, %v24002_v52  ;;  %v24010_v30 = vrot.slane %v24009_v34, 2  ;;  %v24011_v55 = vld [vmem:[#allocation9_spill] sm:$0xff]  ;;  %v24014_v49 = vrot.slane %v24013_v20, 2  ;;  %v2820_v7 = vmul.f32 %v17505_v29, %v17334_v37 }
 0x2e9   : > { %v3407_v62 = vsel %vm1592_vm0, %v23162_v48, %v3406_v28  ;;  %v1734_v28 = vsel %vm1592_vm0, %v24008_v40, %v24006_v2  ;;  %v1989_v48 = vadd.f32 %v1725_v0, %v1050_v13  ;;  %v24012_v41 = vrot.slane %v24011_v55, 2 }
 0x2ea   : > { %v3650_v26 = vadd.f32 %v3407_v62, %v2941_v60  ;;  %v1993_v12 = vadd.f32 %v1734_v28, %v1054_v9  ;;  %v2439_v52 = vsel %vm2297_vm1, %v24016_v27, %v24014_v49  ;;  %v2824_v40 = vmul.f32 %v17505_v29, %v17598_v42 }
 0x2eb   : > { %v2430_v17 = vsel %vm2297_vm1, %v24012_v41, %v24010_v30  ;;  %v18126_v38 = vmul.f32 %v17419_v32, %v17334_v37  ;;  %v18130_v30 = vmul.f32 %v17419_v32, %v17598_v42  ;;  %v18135_v49 = vmul.f32 %v17435_v31, %v17334_v37 }
 0x2ec   : > { %v18122_v13 = vadd.f32 %v4111_v35, %v3650_v26  ;;  %v2694_v34 = vadd.f32 %v2430_v17, %v1989_v48  ;;  %v2698_v27 = vadd.f32 %v2439_v52, %v1993_v12  ;;  %v18139_v41 = vmul.f32 %v17435_v31, %v17598_v42  ;;  %v24018_v26 = vld [vmem:[#allocation28_spill] sm:$0xff] }
 0x2ed   : > { %6676 = vmatmul.f32.gmra.mxu0 %v23650_v39  ;;  %v4463_v17 = vmul.f32 %v17861_v50, %v17598_v42  ;;  %v23169_v48 = vrot.slane %v18126_v38, 1  ;;  %v23168_v62 = vrot.slane %v18130_v30, 1  ;;  %v4467_v12 = vmul.f32 %v17861_v50, %v17882_v57 }
 0x2ee   : > { %24017 = vst [vmem:[#allocation32_spill] sm:$0xff] %v18122_v13  ;;  %6702 = vmatmul.f32.gmra.mxu1 %v23650_v39  ;;  %v2924_v60 = vadd.f32 %v2820_v7, %v2694_v34  ;;  %v2928_v35 = vadd.f32 %v2824_v40, %v2698_v27  ;;  %v23171_v37 = vrot.slane %v18135_v49, 2  ;;  %v18152_v0 = vmul.f32 %v17544_v58, %v17598_v42 }
 0x2ef   : > { %v24019_v2 = vrot.slane %v24018_v26, 1  ;;  %v24020_v20 = vrot.slane %v17761_v25, 1  ;;  %v18166_v7 = vmul.f32 %v17544_v58, %v17882_v57  ;;  %v18170_v40 = vmul.f32 %v17571_v33, %v17598_v42  ;;  %v24021_v26 = vld [vmem:[#allocation23_spill] sm:$0xff] }
 0x2f0   : > { %v24022_v9 = vrot.slane %v24021_v26, 2  ;;  %v23174_v13 = vrot.slane %v18152_v0, 1  ;;  %v18198_v26 = vmul.f32 %v17283_v54, %v17882_v57  ;;  %v24039_v36 = vrot.slane %v24015_v19, 2 }
 0x2f1   : > { %v3369_v28 = vsel %vm1592_vm0, %v23169_v48, %v24019_v2  ;;  %v3378_v52 = vsel %vm1592_vm0, %v23168_v62, %v24020_v20  ;;  %v24023_v2 = vrot.slane %v17798_v23, 2  ;;  %v24024_v20 = vrot.slane %v18139_v41, 2  ;;  %v18182_v48 = vpop.permute.xlu2 %833 }
 0x2f2   : > { %v3633_v34 = vadd.f32 %v3369_v28, %v2924_v60  ;;  %v3637_v27 = vadd.f32 %v3378_v52, %v2928_v35  ;;  %v4073_v25 = vsel %vm2297_vm1, %v23171_v37, %v24022_v9  ;;  %v23172_v39 = vrot.slane %v18166_v7, 1 }
 0x2f3   : > { %v4082_v62 = vsel %vm2297_vm1, %v24024_v20, %v24023_v2  ;;  %v18188_v60 = vmul.f32 %v17571_v33, %v17882_v57  ;;  %v23173_v35 = vrot.slane %v18170_v40, 2  ;;  %v18194_v23 = vmul.f32 %v17231_v1, %v17882_v57 }
 0x2f4   : > { %v4337_v28 = vadd.f32 %v4073_v25, %v3633_v34  ;;  %v4341_v52 = vadd.f32 %v4082_v62, %v3637_v27  ;;  %v24025_v2 = vrot.slane %v17937_v53, 1  ;;  %v24026_v37 = vrot.slane %v17941_v16, 1  ;;  %v18214_v62 = vld [vmem:[%s22812_s1 + $0x1] ss:$0 sm:$0xff] }
 0x2f5   : > { %v23175_v1 = vrot.slane %v18188_v60, 2  ;;  %v18218_v54 = vmul.f32 %v18214_v62, %v18182_v48  ;;  %v24028_v27 = vrot.slane %v17945_v61, 2 }
 0x2f6   : > { %v5012_v20 = vsel %vm1592_vm0, %v23174_v13, %v24025_v2  ;;  %v5021_v9 = vsel %vm1592_vm0, %v23172_v39, %v24026_v37  ;;  %v4567_v53 = vadd.f32 %v4463_v17, %v4337_v28  ;;  %v4571_v34 = vadd.f32 %v4467_v12, %v4341_v52  ;;  %v24031_v12 = vld [vmem:[#allocation34_spill] sm:$0xff] }
 0x2f7   : > { %24027 = vst [vmem:[#allocation30_spill] sm:$0xff] %v18218_v54  ;;  %v5716_v16 = vsel %vm2297_vm1, %v23173_v35, %v24028_v27  ;;  %v24029_v37 = vrot.slane %v17956_v47, 2  ;;  %v1049_v2 = vmul.f32 %v17461_v4, %v17324_v21  ;;  %v1053_v39 = vmul.f32 %v17461_v4, %v23940_v45  ;;  %v24034_v35 = vld [vmem:[#allocation53_spill] sm:$0xff]  ;;  %v24037_v21 = vld [vmem:[#allocation15_spill] sm:$0xff] }
 0x2f8   : > { %v24030_v17 = vrot.slane %v24003_v5, 1  ;;  %v24032_v61 = vrot.slane %v24031_v12, 1  ;;  %v5276_v52 = vadd.f32 %v5012_v20, %v4567_v53  ;;  %v5280_v27 = vadd.f32 %v5021_v9, %v4571_v34 }
 0x2f9   : > { %v5725_v25 = vsel %vm2297_vm1, %v23175_v1, %v24029_v37  ;;  %v24033_v47 = vrot.slane %v24007_v44, 1  ;;  %v24035_v13 = vrot.slane %v24034_v35, 1  ;;  %v24036_v1 = vrot.slane %v24011_v55, 2 }
 0x2fa   : > { %v1723_v28 = vsel %vm1592_vm0, %v24032_v61, %v24030_v17  ;;  %v24038_v63 = vrot.slane %v24037_v21, 2  ;;  %v24041_v17 = vrot.slane %v24040_v18, 2  ;;  %v2819_v44 = vmul.f32 %v17505_v29, %v23940_v45 }
 0x2fb   : > { %v1732_v37 = vsel %vm1592_vm0, %v24035_v13, %v24033_v47  ;;  %v1988_v42 = vadd.f32 %v1723_v28, %v1049_v2  ;;  %v5980_v20 = vadd.f32 %v5716_v16, %v5276_v52  ;;  %v5984_v53 = vadd.f32 %v5725_v25, %v5280_v27  ;;  %v24042_v13 = vld [vmem:[#allocation38_spill] sm:$0xff] }
 0x2fc   : > { %v2428_v57 = vsel %vm2297_vm1, %v24038_v63, %v24036_v1  ;;  %v1992_v5 = vadd.f32 %v1732_v37, %v1053_v39  ;;  %v2437_v9 = vsel %vm2297_vm1, %v24041_v17, %v24039_v36  ;;  %v2823_v55 = vmul.f32 %v17505_v29, %v24042_v13  ;;  %v466_v17 = vld [vmem:[%s13346_s25 + $0x440] sm:$0xff] }
 0x2fd   : > { %v18260_v34 = vmul.f32 %v17419_v32, %v23940_v45  ;;  %v2693_v63 = vadd.f32 %v2428_v57, %v1988_v42  ;;  %v18264_v19 = vmul.f32 %v17419_v32, %v24042_v13  ;;  %v18268_v36 = vmul.f32 %v17435_v31, %v23940_v45  ;;  %4391 = vperm.xlu0 %13094, %v466_v17  }
 0x2fe   : > { %v2697_v39 = vadd.f32 %v2437_v9, %v1992_v5  ;;  %v6088_v1 = vadd.f32 %v17924_v10, %v5980_v20  ;;  %v6092_v16 = vadd.f32 %v17924_v10, %v5984_v53  ;;  %v18275_v42 = vmul.f32 %v17435_v31, %v24042_v13  ;;  %v465_v5 = vld [vmem:[%s13346_s25 + $0x438] sm:$0xff]  ;;  %s13197_s25 = scalar_lea.hbm %s22820_s9, 2 }
 0x2ff   : > { %v3364_v25 = vrot.slane %v18260_v34, 1  ;;  %v2923_v57 = vadd.f32 %v2819_v44, %v2693_v63  ;;  %v3373_v61 = vrot.slane %v18264_v19, 1  ;;  %v4068_v28 = vrot.slane %v18268_v36, 2  ;;  %4386 = vperm.xlu1 %13095, %v465_v5   ;;  %p13199_p1 = scmp.lt.s32.totalorder %s13197_s25, %s13193_s23 }
 0x300   : > { %v2927_v2 = vadd.f32 %v2823_v55, %v2697_v39  ;;  %v6192_v52 = vmax.f32 %v6088_v1, 0.0  ;;  %v6196_v27 = vmax.f32 %v6092_v16, 0.0  ;;  %v24043_v45 = vrot.slane %v18126_v38, 1 }
 0x301   : > { %v4077_v37 = vrot.slane %v18275_v42, 2  ;;  %v24044_v9 = vrot.slane %v18130_v30, 1  ;;  %v24045_v53 = vrot.slane %v18135_v49, 2  ;;  %v4462_v55 = vmul.f32 %v17861_v50, %v24042_v13  ;;  %p13200_p2 = por %p13199_p1, %p13198_p0 }
 0x302   : > { %v3367_v47 = vsel %vm1592_vm0, %v3364_v25, %v24043_v45  ;;  %v6711_v63 = vmax.f32 %v6192_v52, %v6196_v27  ;;  %v24046_v1 = vrot.slane %v18139_v41, 2  ;;  %v4466_v16 = vmul.f32 %v17861_v50, %v17930_v59 }
 0x303   : > { %v3376_v44 = vsel %vm1592_vm0, %v3373_v61, %v24044_v9  ;;  %v3632_v20 = vadd.f32 %v3367_v47, %v2923_v57  ;;  %v4071_v38 = vsel %vm2297_vm1, %v4068_v28, %v24045_v53  ;;  %v18308_v57 = vmul.f32 %v17544_v58, %v24042_v13  ;;  %p13201_p3 = pnand %p13200_p2, %p13196_p13 }
 0x304   : > { %v3636_v39 = vadd.f32 %v3376_v44, %v2927_v2  ;;  %v4080_v30 = vsel %vm2297_vm1, %v4077_v37, %v24046_v1  ;;  %v18312_v45 = vmul.f32 %v17544_v58, %v17930_v59  ;;  %v18316_v41 = vmul.f32 %v17571_v33, %v24042_v13  ;;  %6726 = vmatpush.msrb.mxu2 %v6711_v63  ;;  %v24056_v2 = vld [vmem:[#allocation36_spill] sm:$0xff] }
 0x305   : > { %v4336_v49 = vadd.f32 %v4071_v38, %v3632_v20  ;;  %6752 = vmatpush.msra.mxu3 %v6711_v63  ;;  %v18321_v27 = vmul.f32 %v17571_v33, %v17930_v59  ;;  %v1048_v47 = vmul.f32 %v17461_v4, %v23958_v14  ;;  %v5007_v17 = vrot.slane %v18308_v57, 1 }
 0x306   : > { %v4340_v52 = vadd.f32 %v4080_v30, %v3636_v39  ;;  %v5016_v9 = vrot.slane %v18312_v45, 1  ;;  %v23185_v44 = vrot.slane %v18316_v41, 2  ;;  %v1052_v38 = vmul.f32 %v17461_v4, %v23961_v51 }
 0x307   : > { %v4566_v5 = vadd.f32 %v4462_v55, %v4336_v49  ;;  %v5720_v53 = vrot.slane %v18321_v27, 2  ;;  %v24047_v63 = vrot.slane %v24031_v12, 1  ;;  %v24048_v39 = vrot.slane %v17470_v6, 1  ;;  %v18471_v27 = vld [vmem:[%s22812_s1 + $0x5] ss:$0 sm:$0xff] }
 0x308   : > { %v4570_v20 = vadd.f32 %v4466_v16, %v4340_v52  ;;  %v24049_v14 = vrot.slane %v18152_v0, 1  ;;  %v24050_v30 = vrot.slane %v18166_v7, 1  ;;  %v24051_v4 = vrot.slane %v18170_v40, 2 }
 0x309   : > { %v1721_v1 = vsel %vm1592_vm0, %v24048_v39, %v24047_v63  ;;  %v24052_v12 = vrot.slane %v24034_v35, 1  ;;  %v24053_v0 = vrot.slane %v17452_v22, 1  ;;  %v24054_v7 = vrot.slane %v18188_v60, 2 }
 0x30a   : > { %v5010_v55 = vsel %vm1592_vm0, %v5007_v17, %v24049_v14  ;;  %v5019_v16 = vsel %vm1592_vm0, %v5016_v9, %v24050_v30  ;;  %v5714_v6 = vsel %vm2297_vm1, %v23185_v44, %v24051_v4  ;;  %v1987_v14 = vadd.f32 %v1721_v1, %v1048_v47  ;;  %v24059_v44 = vld [vmem:[#allocation27_spill] sm:$0xff] }
 0x30b   : > { %v1730_v49 = vsel %vm1592_vm0, %v24053_v0, %v24052_v12  ;;  %v5275_v52 = vadd.f32 %v5010_v55, %v4566_v5  ;;  %v5279_v63 = vadd.f32 %v5019_v16, %v4570_v20  ;;  %v5723_v39 = vsel %vm2297_vm1, %v5720_v53, %v24054_v7  ;;  %v18388_v7 = vld [vmem:[%s22812_s1 + $0x2] ss:$0 sm:$0xff] }
 0x30c   : > { %v1991_v40 = vadd.f32 %v1730_v49, %v1052_v38  ;;  %v24055_v30 = vrot.slane %v24037_v21, 2  ;;  %v24057_v4 = vrot.slane %v24056_v2, 2  ;;  %v24058_v22 = vrot.slane %v24040_v18, 2 }
 0x30d   : > { %v24060_v12 = vrot.slane %v24059_v44, 2  ;;  %v2818_v60 = vmul.f32 %v17505_v29, %v23961_v51  ;;  %v5979_v20 = vadd.f32 %v5714_v6, %v5275_v52  ;;  %v5983_v55 = vadd.f32 %v5723_v39, %v5279_v63 }
 0x30e   : > { %v2426_v35 = vsel %vm2297_vm1, %v24057_v4, %v24055_v30  ;;  %v2822_v47 = vmul.f32 %v17505_v29, %v17811_v56  ;;  %v3047_v2 = vmul.f32 %v17419_v32, %v23961_v51  ;;  %v3052_v18 = vmul.f32 %v17419_v32, %v17811_v56 }
 0x30f   : > { %v2435_v5 = vsel %vm2297_vm1, %v24060_v12, %v24058_v22  ;;  %v2692_v16 = vadd.f32 %v2426_v35, %v1987_v14  ;;  %v3751_v44 = vmul.f32 %v17435_v31, %v23961_v51  ;;  %v6087_v38 = vadd.f32 %v17924_v10, %v5979_v20 }
 0x310   : > { %v2696_v21 = vadd.f32 %v2435_v5, %v1991_v40  ;;  %v6091_v1 = vadd.f32 %v17924_v10, %v5983_v55  ;;  %v3756_v0 = vmul.f32 %v17435_v31, %v17811_v56  ;;  %v3363_v29 = vrot.slane %v3047_v2, 1  ;;  %v1304_v5 = vpop.permute.xlu2 %1303  ;;  %v18422_v55 = vld [vmem:[%s22812_s1 + $0x4] ss:$0 sm:$0xff] }
 0x311   : > { %v2922_v6 = vadd.f32 %v2818_v60, %v2692_v16  ;;  %v3372_v52 = vrot.slane %v3052_v18, 1  ;;  %v4067_v63 = vrot.slane %v3751_v44, 2  ;;  %v18392_v32 = vmul.f32 %v18388_v7, %v18182_v48 }
 0x312   : > { %v2926_v49 = vadd.f32 %v2822_v47, %v2696_v21  ;;  %v6191_v51 = vmax.f32 %v6087_v38, 0.0  ;;  %v6195_v39 = vmax.f32 %v6091_v1, 0.0  ;;  %v4076_v14 = vrot.slane %v3756_v0, 2 }
 0x313   : > { %24061 = vst [vmem:[#allocation18_spill] sm:$0xff] %v18392_v32  ;;  %v3365_v31 = vsel %vm1592_vm0, %v3363_v29, %v3364_v25  ;;  %v3374_v40 = vsel %vm1592_vm0, %v3372_v52, %v3373_v61  ;;  %v4069_v30 = vsel %vm2297_vm1, %v4067_v63, %v4068_v28  ;;  %v4461_v4 = vmul.f32 %v17861_v50, %v17811_v56  ;;  %v24062_v25 = vld [vmem:[#allocation56_spill] sm:$0xff] }
 0x314   : > { %v6710_v35 = vmax.f32 %v6191_v51, %v6195_v39  ;;  %v3631_v22 = vadd.f32 %v3365_v31, %v2922_v6  ;;  %v3635_v12 = vadd.f32 %v3374_v40, %v2926_v49  ;;  %v4078_v34 = vsel %vm2297_vm1, %v4076_v14, %v4077_v37  ;;  %v24091_v52 = vld [vmem:[#allocation52_spill] sm:$0xff] }
 0x315   : > { %v4690_v19 = vmul.f32 %v17544_v58, %v17811_v56  ;;  %v4695_v61 = vmul.f32 %v17544_v58, %v24062_v25  ;;  %v5394_v36 = vmul.f32 %v17571_v33, %v17811_v56  ;;  %v5399_v28 = vmul.f32 %v17571_v33, %v24062_v25 }
 0x316   : > { %6727 = vmatpush.msrb.mxu2 %v6710_v35  ;;  %6753 = vmatpush.msra.mxu3 %v6710_v35  ;;  %v4335_v42 = vadd.f32 %v4069_v30, %v3631_v22  ;;  %v4339_v20 = vadd.f32 %v4078_v34, %v3635_v12  ;;  %v4465_v37 = vmul.f32 %v17861_v50, %v24062_v25  ;;  %v24066_v57 = vrot.slane %v18316_v41, 2  ;;  %v24088_v22 = vld [vmem:[#allocation25_spill] sm:$0xff] }
 0x317   : > { %v18426_v16 = vmul.f32 %v18422_v55, %v17950_v46  ;;  %v5006_v47 = vrot.slane %v4690_v19, 1  ;;  %v5015_v21 = vrot.slane %v4695_v61, 1  ;;  %v5710_v2 = vrot.slane %v5394_v36, 2 }
 0x318   : > { %v18429_v18 = vmul.f32 %v18214_v62, %v1304_v5  ;;  %v18432_v44 = vmul.f32 %v18388_v7, %v1304_v5  ;;  %v4565_v38 = vadd.f32 %v4461_v4, %v4335_v42  ;;  %v4569_v1 = vadd.f32 %v4465_v37, %v4339_v20  ;;  %v24068_v20 = vld [vmem:[#allocation47_spill] sm:$0xff] }
 0x319   : > { %v18435_v6 = vmul.f32 %v18422_v55, %v1304_v5  ;;  %v5008_v0 = vsel %vm1592_vm0, %v5006_v47, %v5007_v17  ;;  %v5017_v49 = vsel %vm1592_vm0, %v5015_v21, %v5016_v9  ;;  %v5719_v29 = vrot.slane %v5399_v28, 2 }
 0x31a   : > { %24063 = vst [vmem:[#allocation55_spill] sm:$0xff] %v18429_v18  ;;  %v5274_v51 = vadd.f32 %v5008_v0, %v4565_v38  ;;  %v5278_v39 = vadd.f32 %v5017_v49, %v4569_v1  ;;  %v18448_v31 = vmul.f32 %v18214_v62, %v18028_v24  ;;  %v5712_v17 = vsel %vm2297_vm1, %v5710_v2, %v24066_v57  ;;  %v24071_v49 = vld [vmem:[#allocation33_spill] sm:$0xff] }
 0x31b   : > { %24064 = vst [vmem:[#allocation14_spill] sm:$0xff] %v18432_v44  ;;  %v5721_v45 = vsel %vm2297_vm1, %v5719_v29, %v5720_v53  ;;  %v23187_v9 = vrot.slane %v18426_v16, 1  ;;  %v18462_v12 = vmul.f32 %v18214_v62, %v18046_v8  ;;  %v18466_v41 = vmul.f32 %v17544_v58, %v18046_v8  ;;  %v18507_v57 = vld [vmem:[%s22812_s1 + $0x3] ss:$0 sm:$0xff]  ;;  %v24092_v44 = vld [vmem:[#allocation20_spill] sm:$0xff] }
 0x31c   : > { %24065 = vst [vmem:[#allocation37_spill] sm:$0xff] %v18435_v6  ;;  %v5978_v30 = vadd.f32 %v5712_v17, %v5274_v51  ;;  %v5982_v4 = vadd.f32 %v5721_v45, %v5278_v39  ;;  %v18474_v53 = vmul.f32 %v18471_v27, %v1304_v5  ;;  %v18477_v34 = vmul.f32 %v17544_v58, %v1304_v5 }
 0x31d   : > { %v18482_v36 = vmul.f32 %v17571_v33, %v1304_v5  ;;  %v18487_v42 = vmul.f32 %v18388_v7, %v18028_v24  ;;  %v24069_v37 = vrot.slane %v24068_v20, 1  ;;  %v24070_v47 = vrot.slane %v18004_v15, 1 }
 0x31e   : > { %v6086_v19 = vadd.f32 %v17924_v10, %v5978_v30  ;;  %v6090_v61 = vadd.f32 %v17924_v10, %v5982_v4  ;;  %v5413_v21 = vmul.f32 %v17571_v33, %v18046_v8  ;;  %v5040_v0 = vrot.slane %v18466_v41, 1  ;;  %v24074_v33 = vld [vmem:[#allocation22_spill] sm:$0xff]  ;;  %v24075_v4 = vld [vmem:[#allocation19_spill] sm:$0xff] }
 0x31f   : > { %24067 = vst [vmem:[#allocation9_spill] sm:$0xff] %v18487_v42  ;;  %v1754_v58 = vsel %vm1592_vm0, %v24070_v47, %v24069_v37  ;;  %v24072_v29 = vrot.slane %v24071_v49, 2  ;;  %v24073_v51 = vrot.slane %v18018_v3, 2  ;;  %v2829_v17 = vmul.f32 %v18507_v57, %v24074_v33  ;;  %v24079_v37 = vld [vmem:[#allocation46_spill] sm:$0xff] }
 0x320   : > { %v6190_v2 = vmax.f32 %v6086_v19, 0.0  ;;  %v6194_v38 = vmax.f32 %v6090_v61, 0.0  ;;  %v2002_v5 = vadd.f32 %v1754_v58, %v18014_v11  ;;  %v2833_v30 = vmul.f32 %v18507_v57, %v17950_v46  ;;  %v24077_v19 = vld [vmem:[#allocation10_spill] sm:$0xff]  ;;  %v24080_v58 = vld [vmem:[#allocation35_spill] sm:$0xff] }
 0x321   : > { %v2459_v39 = vsel %vm2297_vm1, %v24073_v51, %v24072_v29  ;;  %v24076_v41 = vrot.slane %v24075_v4, 1  ;;  %v24078_v61 = vrot.slane %v24077_v19, 1  ;;  %v2933_v47 = vadd.f32 %v2829_v17, %v24079_v37  ;;  %v18558_v37 = vld [vmem:[%s22812_s1 + $0x8] ss:$0 sm:$0xff] }
 0x322   : > { %v6709_v45 = vmax.f32 %v6190_v2, %v6194_v38  ;;  %v2707_v11 = vadd.f32 %v2459_v39, %v2002_v5  ;;  %v24081_v49 = vrot.slane %v24080_v58, 1  ;;  %v18526_v2 = vmul.f32 %v18471_v27, %v24074_v33 }
 0x323   : > { %v3389_v20 = vsel %vm1592_vm0, %v24078_v61, %v24076_v41  ;;  %v18530_v38 = vmul.f32 %v18471_v27, %v17950_v46  ;;  %v5744_v5 = vrot.slane %v5413_v21, 2  ;;  %v4472_v39 = vmul.f32 %v17861_v50, %v17950_v46  ;;  %v18541_v61 = vld [vmem:[%s22812_s1 + $0x7] ss:$0 sm:$0xff] }
 0x324   : > { %v3398_v29 = vsel %vm1592_vm0, %v23187_v9, %v24081_v49  ;;  %6728 = vmatpush.msrb.mxu2 %v6709_v45  ;;  %6754 = vmatpush.msra.mxu3 %v6709_v45  ;;  %v2937_v51 = vadd.f32 %v2833_v30, %v2707_v11  ;;  %v4476_v17 = vmul.f32 %v17861_v50, %v18028_v24  ;;  %v23186_v41 = vrot.slane %v18526_v2, 2  ;;  %v24082_v45 = vld [vmem:[#allocation8_spill] sm:$0xff]  ;;  %v24083_v11 = vld [vmem:[#allocation17_spill] sm:$0xff] }
 0x325   : > { %v3642_v4 = vadd.f32 %v3389_v20, %v2933_v47  ;;  %v23188_v33 = vrot.slane %v18530_v38, 2  ;;  %v18545_v21 = vmul.f32 %v18541_v61, %v17950_v46  ;;  %11098 = vmatmul.msk.f32.vlgmr.msrb.gmra.mxu2 %vm6281_vm2, %v24082_v45  ;;  %11100 = vmatmul.msk.f32.vlgmr.msra.gmra.mxu3 %vm6281_vm2, %v24083_v11  ;;  %v18553_v20 = vmul.f32 %v18541_v61, %v18028_v24  ;;  %v24084_v49 = vld [vmem:[#allocation57_spill] sm:$0xff] }
 0x326   : > { %v3646_v30 = vadd.f32 %v3398_v29, %v2937_v51  ;;  %v18562_v47 = vmul.f32 %v18558_v37, %v17950_v46  ;;  %v18566_v58 = vmul.f32 %v18558_v37, %v18028_v24  ;;  %v24085_v35 = vrot.slane %v24084_v49, 2  ;;  %v24086_v51 = vld [vmem:[#allocation31_spill] sm:$0xff]  ;;  %v18582_v46 = vld [vmem:[%s22812_s1] ss:$0 sm:$0xff] }
 0x327   : > { %v24087_v40 = vrot.slane %v24086_v51, 2  ;;  %v23191_v63 = vrot.slane %v18545_v21, 1  ;;  %v1058_v49 = vmul.f32 %v18582_v46, %v24088_v22  ;;  %v1062_v60 = vmul.f32 %v18582_v46, %v24091_v52  ;;  %v24094_v22 = vld [vmem:[#allocation43_spill] sm:$0xff] }
 0x328   : > { %v4093_v29 = vsel %vm2297_vm1, %v23186_v41, %v24085_v35  ;;  %v23194_v35 = vrot.slane %v18553_v20, 1  ;;  %v24089_v41 = vld [vmem:[#allocation5_spill] sm:$0xff]  ;;  %v24093_v18 = vrot.slane %v24092_v44, 1  ;;  %v24099_v44 = vrot.slane %v18566_v58, 2 }
 0x329   : > { %v4102_v14 = vsel %vm2297_vm1, %v23188_v33, %v24087_v40  ;;  %v4346_v28 = vadd.f32 %v4093_v29, %v3642_v4  ;;  %v24090_v9 = vrot.slane %v24089_v41, 1  ;;  %v24095_v4 = vrot.slane %v24094_v22, 1 }
 0x32a   : > { %v4350_v1 = vadd.f32 %v4102_v14, %v3646_v30  ;;  %v18601_v30 = vpop.permute.xlu1 %843  ;;  %v5041_v41 = vsel %vm1592_vm0, %v23194_v35, %v5040_v0  ;;  %v24098_v33 = vrot.slane %v18562_v47, 2  ;;  %v5745_v54 = vsel %vm2297_vm1, %v24099_v44, %v5744_v5  ;;  %v24104_v0 = vld [vmem:[#allocation50_spill] sm:$0xff] }
 0x32b   : > { %v5032_v40 = vsel %vm1592_vm0, %v23191_v63, %v24090_v9  ;;  %v1743_v14 = vsel %vm1592_vm0, %v24095_v4, %v24093_v18  ;;  %v4576_v29 = vadd.f32 %v4472_v39, %v4346_v28  ;;  %v24096_v9 = vld [vmem:[#allocation42_spill] sm:$0xff]  ;;  %v24100_v18 = vrot.slane %v18004_v15, 1  ;;  %v24102_v39 = vld [vmem:[#allocation13_spill] sm:$0xff] }
 0x32c   : > { %v4580_v51 = vadd.f32 %v4476_v17, %v4350_v1  ;;  %v24097_v63 = vrot.slane %v24096_v9, 2  ;;  %v24101_v4 = vrot.slane %v18194_v23, 1  ;;  %v1997_v1 = vadd.f32 %v1743_v14, %v1058_v49 }
 0x32d   : > { %v24103_v17 = vrot.slane %v24102_v39, 2  ;;  %v24105_v35 = vrot.slane %v24104_v0, 2  ;;  %v5285_v6 = vadd.f32 %v5032_v40, %v4576_v29  ;;  %v24107_v5 = vrot.slane %v18198_v26, 2  ;;  %v24109_v29 = vld [vmem:[#allocation6_spill] sm:$0xff] }
 0x32e   : > { %v5736_v32 = vsel %vm2297_vm1, %v24098_v33, %v24097_v63  ;;  %v1752_v28 = vsel %vm1592_vm0, %v24101_v4, %v24100_v18  ;;  %v5289_v11 = vadd.f32 %v5041_v41, %v4580_v51  ;;  %v24106_v33 = vrot.slane %v18018_v3, 2  ;;  %11101 = vmatmul.msk.f32.gmra.mxu3 %vm6281_vm2, %v24109_v29 }
 0x32f   : > { %v2448_v9 = vsel %vm2297_vm1, %v24105_v35, %v24103_v17  ;;  %v2001_v63 = vadd.f32 %v1752_v28, %v1062_v60  ;;  %v2828_v18 = vmul.f32 %v18507_v57, %v24091_v52  ;;  %v2832_v49 = vmul.f32 %v18507_v57, %v18601_v30  ;;  %v24108_v35 = vld [vmem:[#allocation29_spill] sm:$0xff] }
 0x330   : > { %v2457_v15 = vsel %vm2297_vm1, %v24107_v5, %v24106_v33  ;;  %v2702_v44 = vadd.f32 %v2448_v9, %v1997_v1  ;;  %v18635_v14 = vmul.f32 %v18422_v55, %v24091_v52  ;;  %11099 = vmatmul.msk.f32.gmra.mxu2 %vm6281_vm2, %v24108_v35  ;;  %v5989_v60 = vadd.f32 %v5736_v32, %v5285_v6 }
 0x331   : > { %v5993_v3 = vadd.f32 %v5745_v54, %v5289_v11  ;;  %v2706_v51 = vadd.f32 %v2457_v15, %v2001_v63  ;;  %v18641_v40 = vmul.f32 %v18422_v55, %v18601_v30  ;;  %v18648_v28 = vmul.f32 %v18471_v27, %v24091_v52 }
 0x332   : > { %v2932_v41 = vadd.f32 %v2828_v18, %v2702_v44  ;;  %v23204_v4 = vrot.slane %v18635_v14, 1  ;;  %v18652_v1 = vmul.f32 %v18471_v27, %v18601_v30  ;;  %v6097_v54 = vadd.f32 %v17924_v10, %v5989_v60 }
 0x333   : > { %v6101_v32 = vadd.f32 %v17924_v10, %v5993_v3  ;;  %v2936_v6 = vadd.f32 %v2832_v49, %v2706_v51  ;;  %v23203_v11 = vrot.slane %v18641_v40, 1  ;;  %v24110_v39 = vrot.slane %v24077_v19, 1 }
 0x334   : > { %v23202_v52 = vrot.slane %v18648_v28, 2  ;;  %v23196_v9 = vrot.slane %v18652_v1, 2  ;;  %v4471_v63 = vmul.f32 %v17861_v50, %v18601_v30  ;;  %v6201_v33 = vmax.f32 %v6097_v54, 0.0 }
 0x335   : > { %v3387_v17 = vsel %vm1592_vm0, %v23204_v4, %v24110_v39  ;;  %v6205_v5 = vmax.f32 %v6101_v32, 0.0  ;;  %v24111_v15 = vrot.slane %v18426_v16, 1  ;;  %v2136_v18 = vmul.f32 %v18388_v7, %v18046_v8  ;;  %v24114_v8 = vld [vmem:[#allocation21_spill] sm:$0xff] }
 0x336   : > { %v3641_v19 = vadd.f32 %v3387_v17, %v2932_v41  ;;  %v24112_v60 = vrot.slane %v18526_v2, 2  ;;  %v24113_v51 = vrot.slane %v18530_v38, 2  ;;  %v18685_v41 = vmul.f32 %v18541_v61, %v18601_v30 }
 0x337   : > { %v3396_v44 = vsel %vm1592_vm0, %v23203_v11, %v24111_v15  ;;  %v6771_v54 = vmax.f32 %v6201_v33, %v6205_v5  ;;  %v4475_v39 = vmul.f32 %v17861_v50, %v24114_v8  ;;  %v18695_v38 = vmul.f32 %v18558_v37, %v18601_v30 }
 0x338   : > { %v3645_v49 = vadd.f32 %v3396_v44, %v2936_v6  ;;  %v4091_v3 = vsel %vm2297_vm1, %v23202_v52, %v24112_v60  ;;  %v4100_v16 = vsel %vm2297_vm1, %v23196_v9, %v24113_v51  ;;  %v18689_v6 = vmul.f32 %v18541_v61, %v24114_v8  ;;  %v18715_v51 = vpop.permute.xlu2 %873 }
 0x339   : > { %v4345_v32 = vadd.f32 %v4091_v3, %v3641_v19  ;;  %v18699_v17 = vmul.f32 %v18558_v37, %v24114_v8  ;;  %v24115_v33 = vmov 0.0   ;;  %v24116_v5 = vrot.slane %v18462_v12, 1  ;;  %6784 = vmatpush.msra.mxu0 %v6771_v54  ;;  %6810 = vmatpush.msra.mxu1 %v6771_v54  ;;  %24118 = vst [vmem:[#allocation58_spill] sm:$0xff] %v18715_v51 }
 0x33a   : > { %v4349_v2 = vadd.f32 %v4100_v16, %v3645_v49  ;;  %6735 = vmatmul.f32.gmra.mxu2 %v24115_v33  ;;  %v24117_v15 = vrot.slane %v18448_v31, 1  ;;  %v23198_v50 = vrot.slane %v18685_v41, 1  ;;  %v23197_v49 = vrot.slane %v18689_v6, 1  ;;  %6761 = vmatmul.f32.gmra.mxu3 %v24115_v33 }
 0x33b   : > { %v4575_v19 = vadd.f32 %v4471_v63, %v4345_v32  ;;  %v18711_v60 = vmul.f32 %v18214_v62, %v18601_v30  ;;  %v1071_v3 = vmul.f32 %v18582_v46, %v18028_v24  ;;  %v23201_v16 = vrot.slane %v18695_v38, 2 }
 0x33c   : > { %v1772_v44 = vsel %vm1592_vm0, %v24117_v15, %v24116_v5  ;;  %v4579_v12 = vadd.f32 %v4475_v39, %v4349_v2  ;;  %v2476_v54 = vrot.slane %v2136_v18, 2  ;;  %v24119_v63 = vrot.slane %v18545_v21, 1 }
 0x33d   : > { %v24120_v5 = vrot.slane %v18553_v20, 1  ;;  %v23200_v15 = vrot.slane %v18699_v17, 2  ;;  %v18732_v2 = vmul.f32 %v18388_v7, %v18601_v30  ;;  %v2010_v39 = vadd.f32 %v1772_v44, %v1071_v3 }
 0x33e   : > { %v5030_v32 = vsel %vm1592_vm0, %v23198_v50, %v24119_v63  ;;  %v23199_v21 = vrot.slane %v18487_v42, 2  ;;  %v18737_v63 = vmul.f32 %v18214_v62, %v18715_v51  ;;  %v24122_v20 = vrot.slane %v18562_v47, 2  ;;  %v24132_v50 = vld [vmem:[#allocation62_spill] sm:$0xff] }
 0x33f   : > { %v5039_v24 = vsel %vm1592_vm0, %v23197_v49, %v24120_v5  ;;  %v5284_v18 = vadd.f32 %v5030_v32, %v4575_v19  ;;  %v24123_v49 = vrot.slane %v18566_v58, 2  ;;  %v24133_v47 = vrot.slane %v24132_v50, 1 }
 0x340   : > { %v5288_v9 = vadd.f32 %v5039_v24, %v4579_v12  ;;  %24121 = vst [vmem:[#allocation26_spill] sm:$0xff] %v18737_v63  ;;  %v5734_v5 = vsel %vm2297_vm1, %v23201_v16, %v24122_v20  ;;  %v18751_v12 = vpop.permute.xlu1 %858  ;;  %v2477_v58 = vsel %vm2297_vm1, %v23199_v21, %v2476_v54  ;;  %v18760_v20 = vmul.f32 %v18388_v7, %v18715_v51 }
 0x341   : > { %v5743_v44 = vsel %vm2297_vm1, %v23200_v15, %v24123_v49  ;;  %24124 = vst [vmem:[#allocation28_spill] sm:$0xff] %v18751_v12  ;;  %v5988_v32 = vadd.f32 %v5734_v5, %v5284_v18  ;;  %v18763_v19 = vadd.f32 %v2477_v58, %v2010_v39  ;;  %v18770_v5 = vmul.f32 %v18214_v62, %v18751_v12  ;;  %v24129_v49 = vld [vmem:[#allocation7_spill] sm:$0xff] }
 0x342   : > { %v5992_v24 = vadd.f32 %v5743_v44, %v5288_v9  ;;  %24125 = vst [vmem:[#allocation23_spill] sm:$0xff] %v18760_v20  ;;  %v18772_v44 = vpop.permute.xlu0 %838  ;;  %v1057_v54 = vmul.f32 %v18582_v46, %v24042_v13  ;;  %v1061_v21 = vmul.f32 %v18582_v46, %v17930_v59  ;;  %v24131_v18 = vrot.slane %v18194_v23, 1 }
 0x343   : > { %v6096_v3 = vadd.f32 %v17924_v10, %v5988_v32  ;;  %24126 = vst [vmem:[#allocation34_spill] sm:$0xff] %v18770_v5  ;;  %v24128_v32 = vrot.slane %v24094_v22, 1  ;;  %v24134_v11 = vrot.slane %v24104_v0, 2  ;;  %v24137_v63 = vrot.slane %v18198_v26, 2 }
 0x344   : > { %v6100_v9 = vadd.f32 %v17924_v10, %v5992_v24  ;;  %24127 = vst [vmem:[#allocation53_spill] sm:$0xff] %v18772_v44  ;;  %v24130_v10 = vrot.slane %v24129_v49, 1  ;;  %v1750_v15 = vsel %vm1592_vm0, %v24133_v47, %v24131_v18  ;;  %v2827_v47 = vmul.f32 %v18507_v57, %v17930_v59 }
 0x345   : > { %v6200_v39 = vmax.f32 %v6096_v3, 0.0  ;;  %v2000_v52 = vadd.f32 %v1750_v15, %v1061_v21  ;;  %v24135_v3 = vld [vmem:[#allocation44_spill] sm:$0xff]  ;;  %v2831_v18 = vmul.f32 %v18507_v57, %v18772_v44  ;;  %v18803_v15 = vpop.permute.xlu2 %903  ;;  %v18811_v26 = vmul.f32 %v18422_v55, %v18772_v44 }
 0x346   : > { %v6204_v58 = vmax.f32 %v6100_v9, 0.0  ;;  %v1741_v24 = vsel %vm1592_vm0, %v24130_v10, %v24128_v32  ;;  %v24136_v9 = vrot.slane %v24135_v3, 2  ;;  %v24138_v32 = vrot.slane %v18086_v43, 2  ;;  %24139 = vst [vmem:[#allocation15_spill] sm:$0xff] %v18803_v15 }
 0x347   : > { %v1996_v13 = vadd.f32 %v1741_v24, %v1057_v54  ;;  %v18816_v54 = vmul.f32 %v18388_v7, %v18751_v12  ;;  %v24154_v5 = vrot.slane %v18689_v6, 1 }
 0x348   : > { %v2446_v22 = vsel %vm2297_vm1, %v24136_v9, %v24134_v11  ;;  %v6770_v4 = vmax.f32 %v6200_v39, %v6204_v58  ;;  %v2455_v23 = vsel %vm2297_vm1, %v24138_v32, %v24137_v63  ;;  %v18807_v11 = vmul.f32 %v18422_v55, %v17930_v59  ;;  %v18856_v16 = vpop.permute.xlu1 %888 }
 0x349   : > { %v2701_v0 = vadd.f32 %v2446_v22, %v1996_v13  ;;  %v2705_v21 = vadd.f32 %v2455_v23, %v2000_v52  ;;  %24140 = vst [vmem:[#allocation54_spill] sm:$0xff] %v18816_v54  ;;  %v18820_v39 = vmul.f32 %v18471_v27, %v17930_v59  ;;  %v18824_v52 = vmul.f32 %v18471_v27, %v18772_v44 }
 0x34a   : > { %6785 = vmatpush.msra.mxu0 %v6770_v4  ;;  %6811 = vmatpush.msra.mxu1 %v6770_v4  ;;  %v23207_v24 = vrot.slane %v18807_v11, 1  ;;  %v23206_v13 = vrot.slane %v18811_v26, 1  ;;  %v18830_v9 = vmul.f32 %v18214_v62, %v18772_v44  ;;  %v18836_v59 = vmul.f32 %v18541_v61, %v18772_v44 }
 0x34b   : > { %v2931_v58 = vadd.f32 %v2827_v47, %v2701_v0  ;;  %v2935_v10 = vadd.f32 %v2831_v18, %v2705_v21  ;;  %v23208_v4 = vrot.slane %v18820_v39, 2  ;;  %v24142_v32 = vrot.slane %v18635_v14, 1 }
 0x34c   : > { %24141 = vst [vmem:[#allocation38_spill] sm:$0xff] %v18830_v9  ;;  %v24143_v47 = vrot.slane %v18641_v40, 1  ;;  %v18850_v0 = vmul.f32 %v18541_v61, %v18751_v12  ;;  %v18854_v21 = vmul.f32 %v18558_v37, %v18772_v44  ;;  %v24145_v22 = vrot.slane %v18652_v1, 2 }
 0x34d   : > { %v3385_v23 = vsel %vm1592_vm0, %v23207_v24, %v24142_v32  ;;  %v24144_v32 = vrot.slane %v18648_v28, 2  ;;  %v18870_v24 = vpop.permute.xlu0 %853  ;;  %v24156_v54 = vrot.slane %v18695_v38, 2 }
 0x34e   : > { %v3394_v18 = vsel %vm1592_vm0, %v23206_v13, %v24143_v47  ;;  %v3640_v14 = vadd.f32 %v3385_v23, %v2931_v58  ;;  %v18866_v47 = vld [vmem:[%s22812_s1 + $0x6] ss:$0 sm:$0xff]  ;;  %v24146_v58 = vrot.slane %v18824_v52, 2  ;;  %v24155_v51 = vrot.slane %v18850_v0, 1 }
 0x34f   : > { %v3644_v63 = vadd.f32 %v3394_v18, %v2935_v10  ;;  %v4089_v40 = vsel %vm2297_vm1, %v23208_v4, %v24144_v32  ;;  %v4470_v13 = vmul.f32 %v18866_v47, %v18772_v44  ;;  %v23216_v10 = vrot.slane %v18836_v59, 1 }
 0x350   : > { %v4098_v28 = vsel %vm2297_vm1, %v24146_v58, %v24145_v22  ;;  %v18881_v18 = vmul.f32 %v18558_v37, %v18751_v12  ;;  %v18885_v32 = vmul.f32 %v18388_v7, %v18772_v44  ;;  %v4344_v4 = vadd.f32 %v4089_v40, %v3640_v14 }
 0x351   : > { %v4348_v20 = vadd.f32 %v4098_v28, %v3644_v63  ;;  %v4474_v1 = vmul.f32 %v18866_v47, %v18751_v12  ;;  %v18891_v22 = vmul.f32 %v18214_v62, %v18803_v15  ;;  %v24149_v58 = vrot.slane %v18685_v41, 1  ;;  %v24171_v41 = vld [vmem:[#allocation48_spill] sm:$0xff] }
 0x352   : > { %24147 = vst [vmem:[#allocation36_spill] sm:$0xff] %v18885_v32  ;;  %v18902_v63 = vmul.f32 %v18388_v7, %v18803_v15  ;;  %v18906_v14 = vmul.f32 %v18214_v62, %v18856_v16  ;;  %v4574_v40 = vadd.f32 %v4470_v13, %v4344_v4  ;;  %v18911_v12 = vmul.f32 %v18582_v46, %v18856_v16 }
 0x353   : > { %24148 = vst [vmem:[#allocation27_spill] sm:$0xff] %v18891_v22  ;;  %v5028_v23 = vsel %vm1592_vm0, %v23216_v10, %v24149_v58  ;;  %v4578_v28 = vadd.f32 %v4474_v1, %v4348_v20  ;;  %v18915_v58 = vmul.f32 %v18388_v7, %v18856_v16  ;;  %v18917_v10 = vpop.permute.xlu2 %928  ;;  %v5037_v44 = vsel %vm1592_vm0, %v24155_v51, %v24154_v5 }
 0x354   : > { %24150 = vst [vmem:[#allocation56_spill] sm:$0xff] %v18902_v63  ;;  %v5283_v4 = vadd.f32 %v5028_v23, %v4574_v40  ;;  %v24157_v6 = vrot.slane %v18854_v21, 2  ;;  %v24158_v51 = vrot.slane %v18699_v17, 2  ;;  %v24159_v5 = vrot.slane %v18881_v18, 2  ;;  %v24165_v63 = vld [vmem:[#allocation41_spill] sm:$0xff] }
 0x355   : > { %24151 = vst [vmem:[#allocation47_spill] sm:$0xff] %v18906_v14  ;;  %v5287_v1 = vadd.f32 %v5037_v44, %v4578_v28  ;;  %v18946_v38 = vmul.f32 %v18214_v62, %v18870_v24  ;;  %v1056_v17 = vmul.f32 %v18582_v46, %v17811_v56  ;;  %v18971_v23 = vpop.permute.xlu0 %883  ;;  %v24164_v20 = vrot.slane %v24132_v50, 1  ;;  %v24168_v14 = vld [vmem:[#allocation40_spill] sm:$0xff] }
 0x356   : > { %24152 = vst [vmem:[#allocation33_spill] sm:$0xff] %v18911_v12  ;;  %v18929_v12 = vmul.f32 %v18422_v55, %v18856_v16  ;;  %v5732_v15 = vsel %vm2297_vm1, %v24157_v6, %v24156_v54  ;;  %v5741_v13 = vsel %vm2297_vm1, %v24159_v5, %v24158_v51  ;;  %v18950_v54 = vmul.f32 %v18388_v7, %v18870_v24  ;;  %v18954_v6 = vpop.permute.xlu1 %878  ;;  %v24161_v5 = vld [vmem:[#allocation11_spill] sm:$0xff] }
 0x357   : > { %24153 = vst [vmem:[#allocation22_spill] sm:$0xff] %v18915_v58  ;;  %v5987_v40 = vadd.f32 %v5732_v15, %v5283_v4  ;;  %v5991_v28 = vadd.f32 %v5741_v13, %v5287_v1  ;;  %v18959_v15 = vld [vmem:[%s22813_s2] ss:$0 sm:$0xff]  ;;  %v1060_v1 = vmul.f32 %v18582_v46, %v24062_v25  ;;  %v24160_v51 = vrot.slane %v24129_v49, 1 }
 0x358   : > { %v24162_v44 = vrot.slane %v24161_v5, 1  ;;  %24163 = vst [vmem:[#allocation19_spill] sm:$0xff] %v18971_v23  ;;  %v24166_v22 = vrot.slane %v24165_v63, 1  ;;  %v24167_v58 = vrot.slane %v24135_v3, 2  ;;  %v24169_v32 = vrot.slane %v24168_v14, 2 }
 0x359   : > { %v6095_v13 = vadd.f32 %v18959_v15, %v5987_v40  ;;  %v6099_v4 = vadd.f32 %v18959_v15, %v5991_v28  ;;  %v24172_v33 = vrot.slane %v24171_v41, 2  ;;  %v2830_v3 = vmul.f32 %v18507_v57, %v18182_v48 }
 0x35a   : > { %v1739_v56 = vsel %vm1592_vm0, %v24162_v44, %v24160_v51  ;;  %v1748_v40 = vsel %vm1592_vm0, %v24166_v22, %v24164_v20  ;;  %v2444_v49 = vsel %vm2297_vm1, %v24169_v32, %v24167_v58  ;;  %v24170_v51 = vrot.slane %v18086_v43, 2 }
 0x35b   : > { %v1995_v28 = vadd.f32 %v1739_v56, %v1056_v17  ;;  %v6199_v5 = vmax.f32 %v6095_v13, 0.0  ;;  %v6203_v9 = vmax.f32 %v6099_v4, 0.0  ;;  %v1999_v44 = vadd.f32 %v1748_v40, %v1060_v1  ;;  %v1319_v20 = vpop.permute.xlu2 %1318 }
 0x35c   : > { %v2453_v50 = vsel %vm2297_vm1, %v24172_v33, %v24170_v51  ;;  %v2826_v22 = vmul.f32 %v18507_v57, %v24062_v25  ;;  %v3057_v63 = vmul.f32 %v18422_v55, %v24062_v25  ;;  %v3062_v58 = vmul.f32 %v18422_v55, %v18182_v48 }
 0x35d   : > { %v2700_v42 = vadd.f32 %v2444_v49, %v1995_v28  ;;  %v6769_v32 = vmax.f32 %v6199_v5, %v6203_v9  ;;  %v2704_v14 = vadd.f32 %v2453_v50, %v1999_v44  ;;  %v3761_v43 = vmul.f32 %v18471_v27, %v24062_v25 }
 0x35e   : > { %v3381_v17 = vrot.slane %v3057_v63, 1  ;;  %v3766_v13 = vmul.f32 %v18471_v27, %v18182_v48  ;;  %v3390_v1 = vrot.slane %v3062_v58, 1  ;;  %v24173_v40 = vrot.slane %v18807_v11, 1  ;;  %v1309_v58 = vpop.permute.xlu1 %1308 }
 0x35f   : > { %6786 = vmatpush.msra.mxu0 %v6769_v32  ;;  %6812 = vmatpush.msra.mxu1 %v6769_v32  ;;  %v2930_v4 = vadd.f32 %v2826_v22, %v2700_v42  ;;  %v2934_v9 = vadd.f32 %v2830_v3, %v2704_v14  ;;  %v4085_v56 = vrot.slane %v3761_v43, 2  ;;  %v4473_v25 = vmul.f32 %v18866_v47, %v18870_v24 }
 0x360   : > { %v3383_v28 = vsel %vm1592_vm0, %v3381_v17, %v24173_v40  ;;  %v4700_v49 = vmul.f32 %v18541_v61, %v18182_v48  ;;  %v4705_v5 = vmul.f32 %v18541_v61, %v18870_v24  ;;  %v24174_v44 = vrot.slane %v18811_v26, 1 }
 0x361   : > { %v3639_v51 = vadd.f32 %v3383_v28, %v2930_v4  ;;  %v24175_v50 = vrot.slane %v18820_v39, 2  ;;  %v4094_v22 = vrot.slane %v3766_v13, 2  ;;  %v5404_v14 = vmul.f32 %v18558_v37, %v18182_v48 }
 0x362   : > { %v3392_v42 = vsel %vm1592_vm0, %v3390_v1, %v24174_v44  ;;  %v5024_v63 = vrot.slane %v4700_v49, 1  ;;  %v5033_v32 = vrot.slane %v4705_v5, 1  ;;  %v24176_v43 = vrot.slane %v18824_v52, 2  ;;  %v19034_v1 = vpop.permute.xlu0 %908 }
 0x363   : > { %v4087_v11 = vsel %vm2297_vm1, %v4085_v56, %v24175_v50  ;;  %v3643_v3 = vadd.f32 %v3392_v42, %v2934_v9  ;;  %v4469_v4 = vmul.f32 %v18866_v47, %v18182_v48  ;;  %v5409_v39 = vmul.f32 %v18558_v37, %v18870_v24 }
 0x364   : > { %v4096_v17 = vsel %vm2297_vm1, %v4094_v22, %v24176_v43  ;;  %v4343_v26 = vadd.f32 %v4087_v11, %v3639_v51  ;;  %v19028_v13 = vmul.f32 %v18214_v62, %v18954_v6  ;;  %v19032_v9 = vmul.f32 %v18388_v7, %v18954_v6 }
 0x365   : > { %v4347_v52 = vadd.f32 %v4096_v17, %v3643_v3  ;;  %v24179_v56 = vrot.slane %v18836_v59, 1  ;;  %v19041_v28 = vmul.f32 %v18214_v62, %v18971_v23  ;;  %v24181_v5 = vrot.slane %v18850_v0, 1 }
 0x366   : > { %24177 = vst [vmem:[#allocation10_spill] sm:$0xff] %v19028_v13  ;;  %v4573_v49 = vadd.f32 %v4469_v4, %v4343_v26  ;;  %v5737_v42 = vrot.slane %v5409_v39, 2  ;;  %v19048_v51 = vmul.f32 %v18388_v7, %v18971_v23  ;;  %v19051_v50 = vmul.f32 %v18214_v62, %v1319_v20 }
 0x367   : > { %24178 = vst [vmem:[#allocation46_spill] sm:$0xff] %v19032_v9  ;;  %v5026_v40 = vsel %vm1592_vm0, %v5024_v63, %v24179_v56  ;;  %v5035_v44 = vsel %vm1592_vm0, %v5033_v32, %v24181_v5  ;;  %v4577_v59 = vadd.f32 %v4473_v25, %v4347_v52  ;;  %v5728_v11 = vrot.slane %v5404_v14, 2  ;;  %v19069_v14 = vpop.permute.xlu2 %918 }
 0x368   : > { %24180 = vst [vmem:[#allocation35_spill] sm:$0xff] %v19041_v28  ;;  %v19054_v22 = vmul.f32 %v18388_v7, %v1319_v20  ;;  %v19057_v3 = vmul.f32 %v18422_v55, %v1319_v20  ;;  %v19060_v0 = vmul.f32 %v18471_v27, %v1319_v20  ;;  %v5282_v63 = vadd.f32 %v5026_v40, %v4573_v49 }
 0x369   : > { %24182 = vst [vmem:[#allocation57_spill] sm:$0xff] %v19048_v51  ;;  %v19064_v43 = vmul.f32 %v18541_v61, %v1319_v20  ;;  %v5286_v17 = vadd.f32 %v5035_v44, %v4577_v59  ;;  %v24187_v26 = vrot.slane %v18854_v21, 2  ;;  %v1441_v39 = vmul.f32 %v18214_v62, %v1309_v58 }
 0x36a   : > { %24183 = vst [vmem:[#allocation31_spill] sm:$0xff] %v19051_v50  ;;  %v24189_v52 = vrot.slane %v18881_v18, 2  ;;  %v19115_v32 = vmul.f32 %v18422_v55, %v19034_v1  ;;  %v19119_v5 = vmul.f32 %v18214_v62, %v19069_v14  ;;  %v19201_v13 = vmul.f32 %v18541_v61, %v18856_v16 }
 0x36b   : > { %24184 = vst [vmem:[#allocation25_spill] sm:$0xff] %v19054_v22  ;;  %v5730_v25 = vsel %vm2297_vm1, %v5728_v11, %v24187_v26  ;;  %v19097_v26 = vmul.f32 %v18471_v27, %v1309_v58  ;;  %v19105_v11 = vmul.f32 %v18558_v37, %v1309_v58 }
 0x36c   : > { %24185 = vst [vmem:[#allocation5_spill] sm:$0xff] %v19057_v3  ;;  %v5739_v56 = vsel %vm2297_vm1, %v5737_v42, %v24189_v52  ;;  %v5986_v40 = vadd.f32 %v5730_v25, %v5282_v63  ;;  %v19085_v42 = vmul.f32 %v18558_v37, %v1319_v20  ;;  %v19089_v63 = vmul.f32 %v18214_v62, %v19034_v1 }
 0x36d   : > { %24186 = vst [vmem:[#allocation52_spill] sm:$0xff] %v19060_v0  ;;  %v5990_v21 = vadd.f32 %v5739_v56, %v5286_v17  ;;  %v1789_v17 = vrot.slane %v1441_v39, 1  ;;  %v2146_v52 = vmul.f32 %v18388_v7, %v1309_v58  ;;  %v19094_v56 = vmul.f32 %v18422_v55, %v1309_v58 }
 0x36e   : > { %24188 = vst [vmem:[#allocation20_spill] sm:$0xff] %v19069_v14  ;;  %v6094_v4 = vadd.f32 %v18959_v15, %v5986_v40  ;;  %v19099_v40 = vpop.permute.xlu1 %893  ;;  %v19102_v20 = vmul.f32 %v18541_v61, %v1309_v58  ;;  %v19111_v39 = vmul.f32 %v18388_v7, %v19034_v1  ;;  %v19123_v58 = vmul.f32 %v18388_v7, %v19069_v14 }
 0x36f   : > { %24190 = vst [vmem:[#allocation43_spill] sm:$0xff] %v19089_v63  ;;  %v6098_v25 = vadd.f32 %v18959_v15, %v5990_v21  ;;  %v19107_v21 = vpop.permute.xlu0 %898  ;;  %v19128_v49 = vmul.f32 %v18214_v62, %v19099_v40  ;;  %v19132_v18 = vmul.f32 %v18388_v7, %v19099_v40  ;;  %v2494_v33 = vrot.slane %v2146_v52, 2  ;;  %v19145_v50 = vpop.permute.xlu2 %933 }
 0x370   : > { %v6198_v59 = vmax.f32 %v6094_v4, 0.0  ;;  %24191 = vst [vmem:[#allocation42_spill] sm:$0xff] %v19111_v39  ;;  %v1079_v0 = vmul.f32 %v18582_v46, %v19034_v1  ;;  %v19139_v3 = vmul.f32 %v18214_v62, %v19107_v21  ;;  %v5058_v4 = vrot.slane %v19102_v20, 1 }
 0x371   : > { %v6202_v44 = vmax.f32 %v6098_v25, 0.0  ;;  %24192 = vst [vmem:[#allocation13_spill] sm:$0xff] %v19119_v5  ;;  %v5762_v22 = vrot.slane %v19105_v11, 2  ;;  %v24200_v41 = vrot.slane %v19089_v63, 1  ;;  %v19171_v52 = vmul.f32 %v18388_v7, %v19145_v50 }
 0x372   : > { %24193 = vst [vmem:[#allocation50_spill] sm:$0xff] %v19123_v58  ;;  %v2841_v20 = vmul.f32 %v18507_v57, %v18856_v16  ;;  %v19177_v11 = vmul.f32 %v18582_v46, %v18917_v10  ;;  %v24206_v58 = vrot.slane %v18929_v12, 1  ;;  %v23263_v51 = vrot.slane %v19201_v13, 1 }
 0x373   : > { %v6768_v25 = vmax.f32 %v6198_v59, %v6202_v44  ;;  %24194 = vst [vmem:[#allocation21_spill] sm:$0xff] %v19128_v49  ;;  %v24198_v59 = vld [vmem:[#allocation17_spill] sm:$0xff]  ;;  %v1790_v14 = vsel %vm1592_vm0, %v24200_v41, %v1789_v17  ;;  %v19167_v44 = vmul.f32 %v18214_v62, %v19145_v50  ;;  %v19181_v41 = vmul.f32 %v18214_v62, %v18917_v10 }
 0x374   : > { %24195 = vst [vmem:[#allocation7_spill] sm:$0xff] %v19132_v18  ;;  %v24204_v17 = vld [vmem:[#allocation37_spill] sm:$0xff]  ;;  %v24207_v18 = vrot.slane %v19111_v39, 2  ;;  %v4480_v62 = vmul.f32 %v18866_v47, %v18856_v16 }
 0x375   : > { %24196 = vst [vmem:[#allocation62_spill] sm:$0xff] %v19139_v3  ;;  %6787 = vmatpush.msra.mxu0 %v6768_v25  ;;  %6813 = vmatpush.msra.mxu1 %v6768_v25  ;;  %v19159_v25 = vmul.f32 %v18388_v7, %v19107_v21  ;;  %v24205_v9 = vrot.slane %v24204_v17, 1  ;;  %v19190_v7 = vmul.f32 %v18471_v27, %v18856_v16 }
 0x376   : > { %24197 = vst [vmem:[#allocation44_spill] sm:$0xff] %v19145_v50  ;;  %11102 = vmatmul.msk.f32.vlgmr.msra.gmra.mxu0 %vm6281_vm2, %v24082_v45  ;;  %11104 = vmatmul.msk.f32.vlgmr.msra.gmra.mxu1 %vm6281_vm2, %v24198_v59  ;;  %v2018_v50 = vadd.f32 %v1790_v14, %v1079_v0  ;;  %v2495_v49 = vsel %vm2297_vm1, %v24207_v18, %v2494_v33  ;;  %v24208_v14 = vld [vmem:[#allocation32_spill] sm:$0xff] }
 0x377   : > { %24199 = vst [vmem:[#allocation11_spill] sm:$0xff] %v19159_v25  ;;  %v3416_v5 = vsel %vm1592_vm0, %v24206_v58, %v24205_v9  ;;  %v2945_v3 = vadd.f32 %v2841_v20, %v18763_v19  ;;  %v23260_v17 = vrot.slane %v19190_v7, 2  ;;  %v19205_v9 = vmul.f32 %v18541_v61, %v19034_v1  ;;  %v24225_v25 = vld [vmem:[#allocation59_spill] sm:$0xff] }
 0x378   : > { %24201 = vst [vmem:[#allocation41_spill] sm:$0xff] %v19167_v44  ;;  %v19209_v0 = vmul.f32 %v18558_v37, %v18856_v16  ;;  %v4484_v19 = vmul.f32 %v18866_v47, %v19034_v1  ;;  %v4584_v18 = vadd.f32 %v4480_v62, %v24208_v14  ;;  %v19216_v58 = vmul.f32 %v18558_v37, %v19034_v1 }
 0x379   : > { %24202 = vst [vmem:[#allocation40_spill] sm:$0xff] %v19171_v52  ;;  %v3654_v33 = vadd.f32 %v3416_v5, %v2945_v3  ;;  %v24209_v20 = vrot.slane %v18474_v53, 2  ;;  %v23264_v16 = vrot.slane %v19205_v9, 1  ;;  %v19226_v5 = vadd.f32 %v2495_v49, %v2018_v50 }
 0x37a   : > { %24203 = vst [vmem:[#allocation48_spill] sm:$0xff] %v19181_v41  ;;  %v23265_v3 = vrot.slane %v19209_v0, 2  ;;  %v19230_v62 = vmul.f32 %v18507_v57, %v18917_v10  ;;  %v19239_v53 = vmul.f32 %v18422_v55, %v18917_v10  ;;  %v24211_v50 = vrot.slane %v18477_v34, 1 }
 0x37b   : > { %v4120_v39 = vsel %vm2297_vm1, %v23260_v17, %v24209_v20  ;;  %v24226_v59 = vrot.slane %v24225_v25, 2 }
 0x37c   : > { %v4358_v14 = vadd.f32 %v4120_v39, %v3654_v33  ;;  %24210 = vst [vmem:[#allocation37_spill] sm:$0xff] %v19239_v53  ;;  %v5050_v49 = vsel %vm1592_vm0, %v23263_v51, %v24211_v50  ;;  %v5059_v39 = vsel %vm1592_vm0, %v23264_v16, %v5058_v4  ;;  %v24212_v33 = vrot.slane %v18482_v36, 2  ;;  %v24214_v51 = vld [vmem:[#allocation49_spill] sm:$0xff] }
 0x37d   : > { %v5293_v63 = vadd.f32 %v5050_v49, %v4584_v18  ;;  %v1070_v50 = vmul.f32 %v18582_v46, %v24114_v8  ;;  %v24215_v4 = vrot.slane %v24214_v51, 1  ;;  %v24216_v36 = vrot.slane %v18711_v60, 1  ;;  %v24220_v49 = vld [vmem:[#allocation24_spill] sm:$0xff]  ;;  %v24223_v51 = vld [vmem:[#allocation9_spill] sm:$0xff] }
 0x37e   : > { %11103 = vmatmul.msk.f32.gmra.mxu0 %vm6281_vm2, %v24108_v35  ;;  %11105 = vmatmul.msk.f32.gmra.mxu1 %vm6281_vm2, %v24109_v29  ;;  %v5754_v20 = vsel %vm2297_vm1, %v23265_v3, %v24212_v33  ;;  %v4588_v17 = vadd.f32 %v4484_v19, %v4358_v14  ;;  %v24213_v29 = vrot.slane %v19216_v58, 2  ;;  %v1066_v35 = vmul.f32 %v18582_v46, %v18601_v30  ;;  %v24218_v19 = vld [vmem:[#allocation51_spill] sm:$0xff] }
 0x37f   : > { %v1761_v16 = vsel %vm1592_vm0, %v24216_v36, %v24215_v4  ;;  %v24217_v33 = vrot.slane %v18448_v31, 1  ;;  %v24219_v18 = vrot.slane %v24218_v19, 1  ;;  %v5997_v28 = vadd.f32 %v5754_v20, %v5293_v63 }
 0x380   : > { %v5763_v34 = vsel %vm2297_vm1, %v24213_v29, %v5762_v22  ;;  %v24221_v29 = vrot.slane %v24220_v49, 2  ;;  %v24222_v22 = vrot.slane %v18732_v2, 2  ;;  %v5297_v3 = vadd.f32 %v5059_v39, %v4588_v17 }
 0x381   : > { %v1770_v14 = vsel %vm1592_vm0, %v24219_v18, %v24217_v33  ;;  %v2005_v52 = vadd.f32 %v1761_v16, %v1066_v35  ;;  %v24224_v44 = vrot.slane %v24223_v51, 2  ;;  %v2836_v36 = vmul.f32 %v18507_v57, %v24114_v8 }
 0x382   : > { %v2466_v30 = vsel %vm2297_vm1, %v24222_v22, %v24221_v29  ;;  %v2009_v31 = vadd.f32 %v1770_v14, %v1070_v50  ;;  %v2840_v33 = vmul.f32 %v18507_v57, %v18971_v23  ;;  %v19287_v18 = vmul.f32 %v18422_v55, %v24114_v8  ;;  %v19303_v50 = vpop.permute.xlu1 %1313  ;;  %v24228_v29 = vld [vmem:[#allocation60_spill] sm:$0xff] }
 0x383   : > { %v2475_v4 = vsel %vm2297_vm1, %v24226_v59, %v24224_v44  ;;  %v6001_v17 = vadd.f32 %v5763_v34, %v5297_v3  ;;  %v6105_v35 = vadd.f32 %v18959_v15, %v5997_v28  ;;  %v2710_v63 = vadd.f32 %v2466_v30, %v2005_v52 }
 0x384   : > { %v19292_v16 = vmul.f32 %v18422_v55, %v18971_v23  ;;  %v2714_v44 = vadd.f32 %v2475_v4, %v2009_v31  ;;  %v23274_v59 = vrot.slane %v19287_v18, 1  ;;  %v19297_v39 = vmul.f32 %v18471_v27, %v24114_v8 }
 0x385   : > { %v19301_v20 = vmul.f32 %v18471_v27, %v18971_v23  ;;  %v6109_v28 = vadd.f32 %v18959_v15, %v6001_v17  ;;  %v6209_v52 = vmax.f32 %v6105_v35, 0.0  ;;  %v2940_v3 = vadd.f32 %v2836_v36, %v2710_v63 }
 0x386   : > { %v23271_v34 = vrot.slane %v19292_v16, 1  ;;  %v24227_v14 = vmov 0.0   ;;  %v2944_v49 = vadd.f32 %v2840_v33, %v2714_v44  ;;  %v24229_v8 = vrot.slane %v24228_v29, 1  ;;  %v24231_v44 = vld [vmem:[#allocation61_spill] sm:$0xff] }
 0x387   : > { %6794 = vmatmul.f32.gmra.mxu0 %v24227_v14  ;;  %6820 = vmatmul.f32.gmra.mxu1 %v24227_v14  ;;  %v23273_v30 = vrot.slane %v19297_v39, 2  ;;  %v23272_v51 = vrot.slane %v19301_v20, 2  ;;  %v6213_v4 = vmax.f32 %v6109_v28, 0.0  ;;  %v24230_v31 = vrot.slane %v18929_v12, 1 }
 0x388   : > { %v3405_v22 = vsel %vm1592_vm0, %v23274_v59, %v24229_v8  ;;  %v4479_v33 = vmul.f32 %v18866_v47, %v18971_v23  ;;  %v3086_v35 = vmul.f32 %v18422_v55, %v19303_v50  ;;  %v24232_v29 = vrot.slane %v24231_v44, 2 }
 0x389   : > { %v3414_v36 = vsel %vm1592_vm0, %v23271_v34, %v24230_v31  ;;  %v3649_v17 = vadd.f32 %v3405_v22, %v2940_v3  ;;  %v24233_v12 = vrot.slane %v19190_v7, 2  ;;  %v6830_v3 = vmax.f32 %v6209_v52, %v6213_v4  ;;  %v24234_v34 = vld [vmem:[#allocation15_spill] sm:$0xff]  ;;  %v19356_v4 = vld [vmem:[%s22812_s1 + $0x1] ss:$0 sm:$0xff] }
 0x38a   : > { %v3653_v63 = vadd.f32 %v3414_v36, %v2944_v49  ;;  %v4109_v28 = vsel %vm2297_vm1, %v23273_v30, %v24232_v29  ;;  %v19337_v31 = vmul.f32 %v18541_v61, %v18971_v23  ;;  %v19341_v49 = vmul.f32 %v18541_v61, %v24234_v34 }
 0x38b   : > { %v4118_v8 = vsel %vm2297_vm1, %v23272_v51, %v24233_v12  ;;  %v4353_v22 = vadd.f32 %v4109_v28, %v3649_v17  ;;  %v4483_v44 = vmul.f32 %v18866_v47, %v24234_v34  ;;  %v19347_v7 = vmul.f32 %v18558_v37, %v18971_v23  ;;  %6843 = vmatpush.msra.mxu2 %v6830_v3 }
 0x38c   : > { %v4357_v36 = vadd.f32 %v4118_v8, %v3653_v63  ;;  %v19351_v52 = vmul.f32 %v18558_v37, %v24234_v34  ;;  %v19360_v17 = vmul.f32 %v19356_v4, %v19303_v50  ;;  %6869 = vmatpush.msrb.mxu3 %v6830_v3  ;;  %v23277_v29 = vrot.slane %v19337_v31, 1 }
 0x38d   : > { %v4583_v63 = vadd.f32 %v4479_v33, %v4353_v22  ;;  %v23276_v28 = vrot.slane %v19341_v49, 1  ;;  %v19366_v12 = vadd.f32 %v19230_v62, %v19226_v5  ;;  %v19370_v8 = vmul.f32 %v18471_v27, %v18917_v10  ;;  %v24240_v22 = vld [vmem:[#allocation28_spill] sm:$0xff] }
 0x38e   : > { %v4587_v51 = vadd.f32 %v4483_v44, %v4357_v36  ;;  %v23279_v30 = vrot.slane %v19347_v7, 2  ;;  %v3433_v59 = vrot.slane %v3086_v35, 1  ;;  %v24235_v14 = vrot.slane %v19201_v13, 1 }
 0x38f   : > { %v24236_v3 = vrot.slane %v19205_v9, 1  ;;  %v23281_v62 = vrot.slane %v19351_v52, 2  ;;  %v19387_v36 = vmul.f32 %v18471_v27, %v19303_v50  ;;  %v24237_v44 = vrot.slane %v19209_v0, 2 }
 0x390   : > { %v5048_v33 = vsel %vm1592_vm0, %v23277_v29, %v24235_v14  ;;  %v24238_v14 = vrot.slane %v19216_v58, 2  ;;  %v1069_v34 = vmul.f32 %v18582_v46, %v24240_v22  ;;  %v24241_v0 = vrot.slane %v18711_v60, 1  ;;  %v24249_v60 = vld [vmem:[#allocation36_spill] sm:$0xff] }
 0x391   : > { %v5057_v5 = vsel %vm1592_vm0, %v23276_v28, %v24236_v3  ;;  %v5292_v35 = vadd.f32 %v5048_v33, %v4583_v63  ;;  %v5752_v9 = vsel %vm2297_vm1, %v23279_v30, %v24237_v44  ;;  %v24239_v28 = vld [vmem:[#allocation53_spill] sm:$0xff]  ;;  %v24242_v33 = vld [vmem:[#allocation38_spill] sm:$0xff]  ;;  %v24244_v58 = vrot.slane %v24218_v19, 1 }
 0x392   : > { %v5296_v13 = vadd.f32 %v5057_v5, %v4587_v51  ;;  %v5761_v3 = vsel %vm2297_vm1, %v23281_v62, %v24238_v14  ;;  %v1065_v29 = vmul.f32 %v18582_v46, %v24239_v28  ;;  %v24243_v5 = vrot.slane %v24242_v33, 1  ;;  %v24245_v30 = vld [vmem:[#allocation34_spill] sm:$0xff] }
 0x393   : > { %v5996_v63 = vadd.f32 %v5752_v9, %v5292_v35  ;;  %v24246_v23 = vrot.slane %v24245_v30, 1  ;;  %v24247_v62 = vrot.slane %v19239_v53, 1  ;;  %v24250_v9 = vrot.slane %v24249_v60, 2 }
 0x394   : > { %v6000_v51 = vadd.f32 %v5761_v3, %v5296_v13  ;;  %v1759_v44 = vsel %vm1592_vm0, %v24243_v5, %v24241_v0  ;;  %v24248_v13 = vrot.slane %v18732_v2, 2  ;;  %v24251_v5 = vrot.slane %v24225_v25, 2 }
 0x395   : > { %v1768_v14 = vsel %vm1592_vm0, %v24246_v23, %v24244_v58  ;;  %v19416_v28 = vsel %vm1592_vm0, %v24247_v62, %v3433_v59  ;;  %v2004_v45 = vadd.f32 %v1759_v44, %v1065_v29  ;;  %v6104_v0 = vadd.f32 %v18959_v15, %v5996_v63  ;;  %v24252_v23 = vld [vmem:[#allocation54_spill] sm:$0xff] }
 0x396   : > { %v2008_v35 = vadd.f32 %v1768_v14, %v1069_v34  ;;  %v2464_v3 = vsel %vm2297_vm1, %v24250_v9, %v24248_v13  ;;  %v6108_v19 = vadd.f32 %v18959_v15, %v6000_v51  ;;  %v24253_v58 = vrot.slane %v24252_v23, 2 }
 0x397   : > { %v2835_v59 = vmul.f32 %v18507_v57, %v24240_v22  ;;  %v2709_v34 = vadd.f32 %v2464_v3, %v2004_v45  ;;  %v2839_v2 = vmul.f32 %v18507_v57, %v18954_v6  ;;  %v19436_v62 = vmul.f32 %v18422_v55, %v24240_v22 }
 0x398   : > { %v2473_v53 = vsel %vm2297_vm1, %v24253_v58, %v24251_v5  ;;  %v6208_v63 = vmax.f32 %v6104_v0, 0.0  ;;  %v6212_v51 = vmax.f32 %v6108_v19, 0.0  ;;  %v19440_v25 = vmul.f32 %v18422_v55, %v18954_v6 }
 0x399   : > { %v2713_v29 = vadd.f32 %v2473_v53, %v2008_v35  ;;  %v19444_v44 = vmul.f32 %v18471_v27, %v24240_v22  ;;  %v2939_v14 = vadd.f32 %v2835_v59, %v2709_v34  ;;  %v3400_v53 = vrot.slane %v19436_v62, 1  ;;  %v19590_v62 = vld [vmem:[%s22812_s1 + $0x7] ss:$0 sm:$0xff] }
 0x39a   : > { %v19449_v35 = vmul.f32 %v18471_v27, %v18954_v6  ;;  %v6829_v13 = vmax.f32 %v6208_v63, %v6212_v51  ;;  %v3409_v9 = vrot.slane %v19440_v25, 1  ;;  %v4478_v55 = vmul.f32 %v18866_v47, %v18954_v6 }
 0x39b   : > { %v2943_v45 = vadd.f32 %v2839_v2, %v2713_v29  ;;  %v4104_v3 = vrot.slane %v19444_v44, 2  ;;  %v24254_v0 = vrot.slane %v19287_v18, 1  ;;  %v4482_v27 = vmul.f32 %v18866_v47, %v19107_v21 }
 0x39c   : > { %v23285_v19 = vrot.slane %v19449_v35, 2  ;;  %v19465_v5 = vmul.f32 %v18541_v61, %v18954_v6  ;;  %6844 = vmatpush.msra.mxu2 %v6829_v13  ;;  %6870 = vmatpush.msrb.mxu3 %v6829_v13  ;;  %v24255_v59 = vrot.slane %v19292_v16, 1  ;;  %v24256_v29 = vrot.slane %v19297_v39, 2 }
 0x39d   : > { %v3403_v22 = vsel %vm1592_vm0, %v3400_v53, %v24254_v0  ;;  %v24257_v51 = vrot.slane %v19301_v20, 2  ;;  %v19485_v16 = vmul.f32 %v18541_v61, %v19107_v21  ;;  %v19490_v39 = vmul.f32 %v18558_v37, %v18954_v6 }
 0x39e   : > { %v3412_v18 = vsel %vm1592_vm0, %v3409_v9, %v24255_v59  ;;  %v3648_v34 = vadd.f32 %v3403_v22, %v2939_v14  ;;  %v4107_v2 = vsel %vm2297_vm1, %v4104_v3, %v24256_v29  ;;  %v23284_v0 = vrot.slane %v19465_v5, 1 }
 0x39f   : > { %v3652_v63 = vadd.f32 %v3412_v18, %v2943_v45  ;;  %v4116_v13 = vsel %vm2297_vm1, %v23285_v19, %v24257_v51  ;;  %v19494_v45 = vmul.f32 %v18558_v37, %v19107_v21  ;;  %v1064_v20 = vmul.f32 %v18582_v46, %v18182_v48  ;;  %v24260_v48 = vld [vmem:[#allocation30_spill] sm:$0xff] }
 0x3a0   : > { %v4352_v14 = vadd.f32 %v4107_v2, %v3648_v34  ;;  %v24258_v59 = vrot.slane %v19337_v31, 1  ;;  %v5052_v18 = vrot.slane %v19485_v16, 1  ;;  %v1068_v34 = vmul.f32 %v18582_v46, %v18870_v24 }
 0x3a1   : > { %v4356_v22 = vadd.f32 %v4116_v13, %v3652_v63  ;;  %v5747_v2 = vrot.slane %v19490_v39, 2  ;;  %v5756_v37 = vrot.slane %v19494_v45, 2  ;;  %v24259_v51 = vrot.slane %v24242_v33, 1 }
 0x3a2   : > { %v5046_v61 = vsel %vm1592_vm0, %v23284_v0, %v24258_v59  ;;  %v4582_v29 = vadd.f32 %v4478_v55, %v4352_v14  ;;  %v24261_v63 = vrot.slane %v24260_v48, 1  ;;  %v24262_v58 = vrot.slane %v19341_v49, 1 }
 0x3a3   : > { %v4586_v13 = vadd.f32 %v4482_v27, %v4356_v22  ;;  %v24263_v46 = vrot.slane %v24245_v30, 1  ;;  %v24264_v55 = vrot.slane %v18946_v38, 1  ;;  %v4137_v33 = vrot.slane %v19387_v36, 2  ;;  %v24279_v36 = vld [vmem:[#allocation47_spill] sm:$0xff] }
 0x3a4   : > { %v1757_v31 = vsel %vm1592_vm0, %v24261_v63, %v24259_v51  ;;  %v5055_v59 = vsel %vm1592_vm0, %v5052_v18, %v24262_v58  ;;  %v5291_v19 = vadd.f32 %v5046_v61, %v4582_v29  ;;  %v24265_v48 = vrot.slane %v19347_v7, 2  ;;  %v24267_v51 = vld [vmem:[#allocation18_spill] sm:$0xff] }
 0x3a5   : > { %v1766_v14 = vsel %vm1592_vm0, %v24264_v55, %v24263_v46  ;;  %v2003_v0 = vadd.f32 %v1757_v31, %v1064_v20  ;;  %v5295_v22 = vadd.f32 %v5055_v59, %v4586_v13  ;;  %v24266_v58 = vrot.slane %v24249_v60, 2  ;;  %v24272_v46 = vld [vmem:[#allocation58_spill] sm:$0xff]  ;;  %v19566_v55 = vld [vmem:[%s22812_s1 + $0x3] ss:$0 sm:$0xff] }
 0x3a6   : > { %v5750_v49 = vsel %vm2297_vm1, %v5747_v2, %v24265_v48  ;;  %v2007_v27 = vadd.f32 %v1766_v14, %v1068_v34  ;;  %v24268_v30 = vrot.slane %v24267_v51, 2  ;;  %v24269_v63 = vrot.slane %v24252_v23, 2  ;;  %v19549_v23 = vld [vmem:[%s22812_s1 + $0x4] ss:$0 sm:$0xff] }
 0x3a7   : > { %v24270_v20 = vrot.slane %v18950_v54, 2  ;;  %v2834_v7 = vmul.f32 %v18507_v57, %v18870_v24  ;;  %v24271_v29 = vrot.slane %v19351_v52, 2  ;;  %v5995_v60 = vadd.f32 %v5750_v49, %v5291_v19  ;;  %v19558_v52 = vld [vmem:[%s22812_s1 + $0x5] ss:$0 sm:$0xff] }
 0x3a8   : > { %v2462_v38 = vsel %vm2297_vm1, %v24268_v30, %v24266_v58  ;;  %v3067_v54 = vmul.f32 %v19549_v23, %v18870_v24  ;;  %v3072_v57 = vmul.f32 %v19549_v23, %v24272_v46  ;;  %v3771_v19 = vmul.f32 %v19558_v52, %v18870_v24 }
 0x3a9   : > { %v2471_v61 = vsel %vm2297_vm1, %v24270_v20, %v24269_v63  ;;  %v5759_v34 = vsel %vm2297_vm1, %v5756_v37, %v24271_v29  ;;  %v2708_v31 = vadd.f32 %v2462_v38, %v2003_v0  ;;  %v6103_v0 = vadd.f32 %v18959_v15, %v5995_v60 }
 0x3aa   : > { %v2712_v13 = vadd.f32 %v2471_v61, %v2007_v27  ;;  %v5999_v59 = vadd.f32 %v5759_v34, %v5295_v22  ;;  %v2838_v14 = vmul.f32 %v19566_v55, %v24272_v46  ;;  %v3776_v49 = vmul.f32 %v19558_v52, %v24272_v46 }
 0x3ab   : > { %v2938_v48 = vadd.f32 %v2834_v7, %v2708_v31  ;;  %v3399_v22 = vrot.slane %v3067_v54, 1  ;;  %v3408_v58 = vrot.slane %v3072_v57, 1  ;;  %v4103_v51 = vrot.slane %v3771_v19, 2 }
 0x3ac   : > { %v6107_v27 = vadd.f32 %v18959_v15, %v5999_v59  ;;  %v6207_v24 = vmax.f32 %v6103_v0, 0.0  ;;  %v2942_v30 = vadd.f32 %v2838_v14, %v2712_v13  ;;  %v4112_v38 = vrot.slane %v3776_v49, 2 }
 0x3ad   : > { %v4481_v63 = vmul.f32 %v18866_v47, %v19099_v40  ;;  %v3401_v61 = vsel %vm1592_vm0, %v3399_v22, %v3400_v53  ;;  %v3410_v7 = vsel %vm1592_vm0, %v3408_v58, %v3409_v9  ;;  %v4105_v29 = vsel %vm2297_vm1, %v4103_v51, %v4104_v3  ;;  %v19599_v9 = vld [vmem:[%s22812_s1 + $0x8] ss:$0 sm:$0xff] }
 0x3ae   : > { %v6211_v20 = vmax.f32 %v6107_v27, 0.0  ;;  %v3647_v34 = vadd.f32 %v3401_v61, %v2938_v48  ;;  %v3651_v60 = vadd.f32 %v3410_v7, %v2942_v30  ;;  %v24273_v31 = vrot.slane %v19449_v35, 2  ;;  %v19617_v30 = vld [vmem:[%s22812_s1 + $0x2] ss:$0 sm:$0xff]  ;;  %v19640_v7 = vpop.permute.xlu0 %948 }
 0x3af   : > { %v4710_v25 = vmul.f32 %v19590_v62, %v24272_v46  ;;  %v4715_v44 = vmul.f32 %v19590_v62, %v19099_v40  ;;  %v5414_v35 = vmul.f32 %v19599_v9, %v24272_v46  ;;  %v5419_v3 = vmul.f32 %v19599_v9, %v19099_v40 }
 0x3b0   : > { %v4114_v13 = vsel %vm2297_vm1, %v4112_v38, %v24273_v31  ;;  %v6828_v53 = vmax.f32 %v6207_v24, %v6211_v20  ;;  %v4351_v59 = vadd.f32 %v4105_v29, %v3647_v34  ;;  %v4477_v57 = vmul.f32 %v18866_v47, %v24272_v46 }
 0x3b1   : > { %v4355_v54 = vadd.f32 %v4114_v13, %v3651_v60  ;;  %v5042_v19 = vrot.slane %v4710_v25, 1  ;;  %v23287_v0 = vrot.slane %v19181_v41, 1  ;;  %v3662_v14 = vadd.f32 %v19416_v28, %v19366_v12  ;;  %v24277_v60 = vld [vmem:[#allocation55_spill] sm:$0xff] }
 0x3b2   : > { %6845 = vmatpush.msra.mxu2 %v6828_v53  ;;  %6871 = vmatpush.msrb.mxu3 %v6828_v53  ;;  %v5051_v48 = vrot.slane %v4715_v44, 1  ;;  %v5755_v49 = vrot.slane %v5419_v3, 2  ;;  %v23292_v27 = vrot.slane %v19370_v8, 2  ;;  %v4581_v22 = vadd.f32 %v4477_v57, %v4351_v59 }
 0x3b3   : > { %v4585_v58 = vadd.f32 %v4481_v63, %v4355_v54  ;;  %v24274_v51 = vrot.slane %v19465_v5, 1  ;;  %v19621_v12 = vmul.f32 %v19617_v30, %v18917_v10  ;;  %v19625_v28 = vmul.f32 %v19617_v30, %v19303_v50 }
 0x3b4   : > { %v5053_v38 = vsel %vm1592_vm0, %v5051_v48, %v5052_v18  ;;  %v5746_v5 = vrot.slane %v5414_v35, 2  ;;  %v24276_v63 = vrot.slane %v19360_v17, 1  ;;  %v4138_v61 = vsel %vm2297_vm1, %v23292_v27, %v4137_v33 }
 0x3b5   : > { %v5044_v24 = vsel %vm1592_vm0, %v5042_v19, %v24274_v51  ;;  %24275 = vst [vmem:[#allocation32_spill] sm:$0xff] %v19621_v12  ;;  %v5294_v34 = vadd.f32 %v5053_v38, %v4585_v58  ;;  %v4366_v16 = vadd.f32 %v4138_v61, %v3662_v14  ;;  %v5757_v17 = vsel %vm2297_vm1, %v5755_v49, %v5756_v37  ;;  %v24284_v19 = vld [vmem:[#allocation22_spill] sm:$0xff] }
 0x3b6   : > { %v1799_v20 = vsel %vm1592_vm0, %v23287_v0, %v24276_v63  ;;  %v5290_v29 = vadd.f32 %v5044_v24, %v4581_v22  ;;  %v5748_v18 = vsel %vm2297_vm1, %v5746_v5, %v5747_v2  ;;  %v24278_v31 = vrot.slane %v24277_v60, 1  ;;  %v24281_v2 = vld [vmem:[#allocation33_spill] sm:$0xff]  ;;  %v24305_v0 = vld [vmem:[#allocation35_spill] sm:$0xff] }
 0x3b7   : > { %v24280_v13 = vrot.slane %v24279_v36, 1  ;;  %v4724_v33 = vmul.f32 %v19590_v62, %v19303_v50  ;;  %v19657_v53 = vmul.f32 %v19599_v9, %v19303_v50  ;;  %v5998_v44 = vadd.f32 %v5757_v17, %v5294_v34  ;;  %v24282_v50 = vld [vmem:[#allocation14_spill] sm:$0xff] }
 0x3b8   : > { %v5994_v39 = vadd.f32 %v5748_v18, %v5290_v29  ;;  %v2845_v45 = vmul.f32 %v19566_v55, %v19034_v1  ;;  %v19664_v37 = vmul.f32 %v19558_v52, %v19034_v1  ;;  %v4492_v3 = vmul.f32 %v18866_v47, %v19640_v7 }
 0x3b9   : > { %v1781_v25 = vsel %vm1592_vm0, %v24280_v13, %v24278_v31  ;;  %v6106_v54 = vadd.f32 %v18959_v15, %v5998_v44  ;;  %v24283_v57 = vrot.slane %v24282_v50, 2  ;;  %v24285_v14 = vrot.slane %v24284_v19, 2  ;;  %v24292_v50 = vld [vmem:[#allocation8_spill] sm:$0xff] }
 0x3ba   : > { %v2014_v35 = vadd.f32 %v1781_v25, %v24281_v2  ;;  %v6102_v59 = vadd.f32 %v18959_v15, %v5994_v39  ;;  %v19677_v49 = vmul.f32 %v19590_v62, %v19640_v7  ;;  %v24286_v1 = vrot.slane %v19094_v56, 1 }
 0x3bb   : > { %v2486_v48 = vsel %vm2297_vm1, %v24285_v14, %v24283_v57  ;;  %v24287_v58 = vrot.slane %v19115_v32, 1  ;;  %v4596_v24 = vadd.f32 %v4492_v3, %v4366_v16  ;;  %v19686_v38 = vmul.f32 %v19590_v62, %v18917_v10 }
 0x3bc   : > { %v2719_v22 = vadd.f32 %v2486_v48, %v2014_v35  ;;  %v6206_v5 = vmax.f32 %v6102_v59, 0.0  ;;  %v6210_v63 = vmax.f32 %v6106_v54, 0.0  ;;  %v23293_v61 = vrot.slane %v19664_v37, 2  ;;  %v24294_v48 = vld [vmem:[#allocation17_spill] sm:$0xff] }
 0x3bd   : > { %v3425_v51 = vsel %vm1592_vm0, %v24287_v58, %v24286_v1  ;;  %v23290_v29 = vrot.slane %v19677_v49, 1  ;;  %v23286_v34 = vrot.slane %v19621_v12, 2  ;;  %v2503_v18 = vrot.slane %v19625_v28, 2  ;;  %v19706_v28 = vpop.permute.xlu2 %963 }
 0x3be   : > { %v2949_v56 = vadd.f32 %v2845_v45, %v2719_v22  ;;  %v19694_v17 = vmul.f32 %v19599_v9, %v19640_v7  ;;  %v2022_v16 = vadd.f32 %v1799_v20, %v19177_v11  ;;  %v5067_v60 = vrot.slane %v4724_v33, 1  ;;  %24289 = vst [vmem:[#allocation49_spill] sm:$0xff] %v19706_v28  ;;  %v24295_v22 = vld [vmem:[#allocation11_spill] sm:$0xff] }
 0x3bf   : > { %v6827_v31 = vmax.f32 %v6206_v5, %v6210_v63  ;;  %v24288_v13 = vrot.slane %v19064_v43, 1  ;;  %v19704_v39 = vmul.f32 %v19356_v4, %v19640_v7  ;;  %v5771_v11 = vrot.slane %v19657_v53, 2 }
 0x3c0   : > { %v3658_v44 = vadd.f32 %v3425_v51, %v2949_v56  ;;  %v23288_v35 = vrot.slane %v19694_v17, 2  ;;  %v24290_v43 = vrot.slane %v19097_v26, 2  ;;  %v23291_v33 = vrot.slane %v19686_v38, 1 }
 0x3c1   : > { %v5077_v25 = vsel %vm1592_vm0, %v23290_v29, %v24288_v13  ;;  %6846 = vmatpush.msra.mxu2 %v6827_v31  ;;  %6872 = vmatpush.msrb.mxu3 %v6827_v31  ;;  %v19718_v45 = vmul.f32 %v19599_v9, %v18917_v10  ;;  %v19722_v3 = vmul.f32 %v19617_v30, %v19640_v7  ;;  %v24291_v26 = vrot.slane %v19085_v42, 2  ;;  %v19758_v13 = vpop.permute.xlu1 %943 }
 0x3c2   : > { %v5305_v2 = vadd.f32 %v5077_v25, %v4596_v24  ;;  %v4129_v20 = vsel %vm2297_vm1, %v23293_v61, %v24290_v43  ;;  %v4488_v53 = vmul.f32 %v18866_v47, %v18917_v10  ;;  %11106 = vmatmul.msk.f32.vlgmr.msra.gmra.mxu2 %vm6281_vm2, %v24292_v50  ;;  %v19735_v57 = vmul.f32 %v19549_v23, %v19640_v7  ;;  %v19771_v43 = vpop.permute.xlu0 %923 }
 0x3c3   : > { %v4362_v59 = vadd.f32 %v4129_v20, %v3658_v44  ;;  %v5781_v54 = vsel %vm2297_vm1, %v23288_v35, %v24291_v26  ;;  %v19739_v14 = vmul.f32 %v19356_v4, %v19706_v28  ;;  %v5068_v10 = vsel %vm1592_vm0, %v23291_v33, %v5067_v60  ;;  %11108 = vmatmul.msk.f32.vlgmr.msrb.gmra.mxu3 %vm6281_vm2, %v24294_v48  ;;  %v19764_v44 = vld [vmem:[%s22812_s1] ss:$0 sm:$0xff]  ;;  %v24302_v26 = vld [vmem:[#allocation19_spill] sm:$0xff]  ;;  %v24312_v33 = vld [vmem:[#allocation57_spill] sm:$0xff] }
 0x3c4   : > { %v6009_v42 = vadd.f32 %v5781_v54, %v5305_v2  ;;  %v2504_v58 = vsel %vm2297_vm1, %v23286_v34, %v2503_v18  ;;  %v19752_v51 = vmul.f32 %v19617_v30, %v19706_v28  ;;  %v23289_v25 = vrot.slane %v19718_v45, 2  ;;  %v24303_v34 = vld [vmem:[#allocation15_spill] sm:$0xff] }
 0x3c5   : > { %24293 = vst [vmem:[#allocation51_spill] sm:$0xff] %v19739_v14  ;;  %v4592_v24 = vadd.f32 %v4488_v53, %v4362_v59  ;;  %v19756_v60 = vadd.f32 %v2504_v58, %v2022_v16  ;;  %v19768_v18 = vmul.f32 %v19764_v44, %v19640_v7  ;;  %v19783_v31 = vmul.f32 %v19356_v4, %v19758_v13  ;;  %v24309_v35 = vld [vmem:[#allocation27_spill] sm:$0xff] }
 0x3c6   : > { %24296 = vst [vmem:[#allocation24_spill] sm:$0xff] %v19752_v51  ;;  %v6117_v16 = vadd.f32 %v18959_v15, %v6009_v42  ;;  %v5772_v54 = vsel %vm2297_vm1, %v23289_v25, %v5771_v11  ;;  %v1074_v63 = vmul.f32 %v19764_v44, %v24302_v26  ;;  %v1078_v11 = vmul.f32 %v19764_v44, %v24303_v34 }
 0x3c7   : > { %v5301_v20 = vadd.f32 %v5068_v10, %v4592_v24  ;;  %24299 = vst [vmem:[#allocation9_spill] sm:$0xff] %v19783_v31  ;;  %v19787_v10 = vmul.f32 %v19617_v30, %v19758_v13  ;;  %v19791_v24 = vmul.f32 %v19356_v4, %v19771_v43  ;;  %v24304_v58 = vrot.slane %v24279_v36, 1  ;;  %v24314_v36 = vld [vmem:[#allocation29_spill] sm:$0xff] }
 0x3c8   : > { %v24306_v53 = vrot.slane %v24305_v0, 1  ;;  %v6221_v1 = vmax.f32 %v6117_v16, 0.0  ;;  %v24310_v25 = vrot.slane %v24309_v35, 1  ;;  %v24311_v26 = vrot.slane %v24284_v19, 2  ;;  %v24317_v16 = vld [vmem:[#allocation56_spill] sm:$0xff] }
 0x3c9   : > { %24300 = vst [vmem:[#allocation59_spill] sm:$0xff] %v19787_v10  ;;  %v6005_v42 = vadd.f32 %v5772_v54, %v5301_v20  ;;  %v24307_v20 = vld [vmem:[#allocation43_spill] sm:$0xff]  ;;  %v24313_v27 = vrot.slane %v24312_v33, 2  ;;  %v24318_v14 = vrot.slane %v24317_v16, 2  ;;  %v24336_v31 = vrot.slane %v19694_v17, 2 }
 0x3ca   : > { %24301 = vst [vmem:[#allocation60_spill] sm:$0xff] %v19791_v24  ;;  %v1779_v59 = vsel %vm1592_vm0, %v24306_v53, %v24304_v58  ;;  %v24308_v54 = vrot.slane %v24307_v20, 1  ;;  %11107 = vmatmul.msk.f32.gmra.mxu2 %vm6281_vm2, %v24314_v36  ;;  %v24315_v58 = vld [vmem:[#allocation42_spill] sm:$0xff]  ;;  %v24345_v41 = vrot.slane %v24312_v33, 2 }
 0x3cb   : > { %v6113_v2 = vadd.f32 %v18959_v15, %v6005_v42  ;;  %v2484_v61 = vsel %vm2297_vm1, %v24313_v27, %v24311_v26  ;;  %v2013_v51 = vadd.f32 %v1779_v59, %v1074_v63  ;;  %v24316_v42 = vrot.slane %v24315_v58, 2 }
 0x3cc   : > { %v1788_v29 = vsel %vm1592_vm0, %v24310_v25, %v24308_v54  ;;  %v2844_v25 = vmul.f32 %v19566_v55, %v24303_v34  ;;  %v24319_v54 = vld [vmem:[#allocation6_spill] sm:$0xff]  ;;  %v2848_v27 = vmul.f32 %v19566_v55, %v19771_v43  ;;  %v19828_v63 = vmul.f32 %v19549_v23, %v24303_v34 }
 0x3cd   : > { %v2017_v53 = vadd.f32 %v1788_v29, %v1078_v11  ;;  %v2493_v20 = vsel %vm2297_vm1, %v24318_v14, %v24316_v42  ;;  %11109 = vmatmul.msk.f32.gmra.mxu3 %vm6281_vm2, %v24319_v54  ;;  %v6217_v19 = vmax.f32 %v6113_v2, 0.0  ;;  %v19832_v29 = vmul.f32 %v19549_v23, %v19771_v43 }
 0x3ce   : > { %v2718_v59 = vadd.f32 %v2484_v61, %v2013_v51  ;;  %v19836_v11 = vmul.f32 %v19558_v52, %v24303_v34  ;;  %v19840_v2 = vmul.f32 %v19558_v52, %v19771_v43  ;;  %v19844_v26 = vmul.f32 %v19617_v30, %v19771_v43 }
 0x3cf   : > { %v2722_v14 = vadd.f32 %v2493_v20, %v2017_v53  ;;  %v6889_v58 = vmax.f32 %v6217_v19, %v6221_v1  ;;  %v23303_v42 = vrot.slane %v19828_v63, 1  ;;  %v23302_v56 = vrot.slane %v19832_v29, 1  ;;  %v24322_v19 = vld [vmem:[#allocation37_spill] sm:$0xff] }
 0x3d0   : > { %24320 = vst [vmem:[#allocation61_spill] sm:$0xff] %v19844_v26  ;;  %v2948_v5 = vadd.f32 %v2844_v25, %v2718_v59  ;;  %v23301_v51 = vrot.slane %v19836_v11, 2  ;;  %v23300_v34 = vrot.slane %v19840_v2, 2  ;;  %v24321_v20 = vrot.slane %v19115_v32, 1 }
 0x3d1   : > { %v2952_v61 = vadd.f32 %v2848_v27, %v2722_v14  ;;  %6902 = vmatpush.msrb.mxu0 %v6889_v58  ;;  %6928 = vmatpush.msrb.mxu1 %v6889_v58  ;;  %v24323_v28 = vrot.slane %v24322_v19, 1  ;;  %v4487_v27 = vmul.f32 %v18866_v47, %v19771_v43  ;;  %v24324_v53 = vrot.slane %v19664_v37, 2  ;;  %v19873_v19 = vpop.permute.xlu1 %913 }
 0x3d2   : > { %v3423_v1 = vsel %vm1592_vm0, %v23303_v42, %v24321_v20  ;;  %v24325_v58 = vrot.slane %v19370_v8, 2  ;;  %v19881_v47 = vmul.f32 %v19590_v62, %v19758_v13  ;;  %v19885_v37 = vmul.f32 %v19599_v9, %v19771_v43 }
 0x3d3   : > { %v3432_v25 = vsel %vm1592_vm0, %v23302_v56, %v24323_v28  ;;  %v3657_v59 = vadd.f32 %v3423_v1, %v2948_v5  ;;  %v4127_v32 = vsel %vm2297_vm1, %v23301_v51, %v24324_v53  ;;  %v19877_v28 = vmul.f32 %v19590_v62, %v19771_v43 }
 0x3d4   : > { %v3661_v14 = vadd.f32 %v3432_v25, %v2952_v61  ;;  %v4136_v20 = vsel %vm2297_vm1, %v23300_v34, %v24325_v58  ;;  %v19889_v8 = vmul.f32 %v19599_v9, %v19758_v13  ;;  %v24326_v5 = vmov 0.0   ;;  %v19896_v25 = vld [vmem:[%s22812_s1 + $0x6] ss:$0 sm:$0xff]  ;;  %v19915_v34 = vpop.permute.xlu0 %938 }
 0x3d5   : > { %6853 = vmatmul.f32.gmra.mxu2 %v24326_v5  ;;  %v4361_v53 = vadd.f32 %v4127_v32, %v3657_v59  ;;  %v4491_v58 = vmul.f32 %v19896_v25, %v19758_v13  ;;  %6879 = vmatmul.f32.gmra.mxu3 %v24326_v5  ;;  %v19913_v10 = vmul.f32 %v19617_v30, %v19873_v19  ;;  %v24330_v56 = vrot.slane %v19686_v38, 1  ;;  %v24346_v5 = vld [vmem:[#allocation46_spill] sm:$0xff] }
 0x3d6   : > { %v4365_v1 = vadd.f32 %v4136_v20, %v3661_v14  ;;  %v19908_v14 = vmul.f32 %v19356_v4, %v19873_v19  ;;  %24329 = vst [vmem:[#allocation38_spill] sm:$0xff] %v19915_v34  ;;  %v24331_v61 = vrot.slane %v19877_v28, 1  ;;  %v24332_v51 = vrot.slane %v19677_v49, 1 }
 0x3d7   : > { %v4591_v32 = vadd.f32 %v4487_v27, %v4361_v53  ;;  %24328 = vst [vmem:[#allocation28_spill] sm:$0xff] %v19913_v10  ;;  %v24333_v12 = vrot.slane %v19881_v47, 1  ;;  %v19927_v53 = vpop.permute.xlu2 %988  ;;  %v24334_v42 = vrot.slane %v19718_v45, 2  ;;  %v24335_v26 = vrot.slane %v19885_v37, 2 }
 0x3d8   : > { %24327 = vst [vmem:[#allocation53_spill] sm:$0xff] %v19908_v14  ;;  %v4595_v20 = vadd.f32 %v4491_v58, %v4365_v1  ;;  %v5066_v59 = vsel %vm1592_vm0, %v24331_v61, %v24330_v56  ;;  %v24337_v56 = vrot.slane %v19889_v8, 2  ;;  %v1073_v61 = vmul.f32 %v19764_v44, %v18954_v6 }
 0x3d9   : > { %v5075_v27 = vsel %vm1592_vm0, %v24333_v12, %v24332_v51  ;;  %v5300_v1 = vadd.f32 %v5066_v59, %v4591_v32  ;;  %v5770_v38 = vsel %vm2297_vm1, %v24335_v26, %v24334_v42  ;;  %v1077_v12 = vmul.f32 %v19764_v44, %v19107_v21  ;;  %v24339_v59 = vld [vmem:[#allocation10_spill] sm:$0xff] }
 0x3da   : > { %v5304_v58 = vadd.f32 %v5075_v27, %v4595_v20  ;;  %v5779_v49 = vsel %vm2297_vm1, %v24337_v56, %v24336_v31  ;;  %v24338_v51 = vrot.slane %v24305_v0, 1  ;;  %v24340_v45 = vrot.slane %v24339_v59, 1  ;;  %v24342_v42 = vld [vmem:[#allocation62_spill] sm:$0xff] }
 0x3db   : > { %v24341_v26 = vrot.slane %v24309_v35, 1  ;;  %v24343_v17 = vrot.slane %v24342_v42, 1  ;;  %v19956_v6 = vmul.f32 %v19356_v4, %v19915_v34  ;;  %v6004_v27 = vadd.f32 %v5770_v38, %v5300_v1 }
 0x3dc   : > { %v1777_v32 = vsel %vm1592_vm0, %v24340_v45, %v24338_v51  ;;  %v6008_v56 = vadd.f32 %v5779_v49, %v5304_v58  ;;  %v24347_v51 = vrot.slane %v24346_v5, 2  ;;  %v24348_v45 = vrot.slane %v24317_v16, 2  ;;  %v24350_v58 = vld [vmem:[#allocation20_spill] sm:$0xff] }
 0x3dd   : > { %v1786_v20 = vsel %vm1592_vm0, %v24343_v17, %v24341_v26  ;;  %24344 = vst [vmem:[#allocation34_spill] sm:$0xff] %v19956_v6  ;;  %v2012_v24 = vadd.f32 %v1777_v32, %v1073_v61  ;;  %v24349_v26 = vrot.slane %v24295_v22, 2  ;;  %v6112_v31 = vadd.f32 %v18959_v15, %v6004_v27 }
 0x3de   : > { %v2016_v0 = vadd.f32 %v1786_v20, %v1077_v12  ;;  %v2482_v35 = vsel %vm2297_vm1, %v24347_v51, %v24345_v41  ;;  %v6116_v14 = vadd.f32 %v18959_v15, %v6008_v56  ;;  %v2843_v1 = vmul.f32 %v19566_v55, %v19107_v21 }
 0x3df   : > { %v2491_v17 = vsel %vm2297_vm1, %v24349_v26, %v24348_v45  ;;  %v2847_v33 = vmul.f32 %v19566_v55, %v24350_v58  ;;  %v2717_v38 = vadd.f32 %v2482_v35, %v2012_v24  ;;  %v19976_v41 = vmul.f32 %v19549_v23, %v19107_v21 }
 0x3e0   : > { %v2721_v49 = vadd.f32 %v2491_v17, %v2016_v0  ;;  %v19980_v16 = vmul.f32 %v19549_v23, %v24350_v58  ;;  %v6216_v61 = vmax.f32 %v6112_v31, 0.0  ;;  %v6220_v12 = vmax.f32 %v6116_v14, 0.0 }
 0x3e1   : > { %v19984_v15 = vmul.f32 %v19558_v52, %v19107_v21  ;;  %v19988_v32 = vmul.f32 %v19558_v52, %v24350_v58  ;;  %v19992_v24 = vmul.f32 %v19617_v30, %v19915_v34  ;;  %v2947_v20 = vadd.f32 %v2843_v1, %v2717_v38 }
 0x3e2   : > { %v23320_v27 = vrot.slane %v19976_v41, 1  ;;  %v23319_v56 = vrot.slane %v19980_v16, 1  ;;  %v6888_v0 = vmax.f32 %v6216_v61, %v6220_v12  ;;  %v2951_v31 = vadd.f32 %v2847_v33, %v2721_v49  ;;  %v20022_v12 = vpop.permute.xlu1 %1323 }
 0x3e3   : > { %24351 = vst [vmem:[#allocation36_spill] sm:$0xff] %v19992_v24  ;;  %v23317_v14 = vrot.slane %v19984_v15, 2  ;;  %v23316_v21 = vrot.slane %v19988_v32, 2  ;;  %v24352_v51 = vrot.slane %v19828_v63, 1  ;;  %v24353_v45 = vrot.slane %v19832_v29, 1  ;;  %v20015_v63 = vpop.permute.xlu2 %978 }
 0x3e4   : > { %v4490_v17 = vmul.f32 %v19896_v25, %v19915_v34  ;;  %v20012_v1 = vmul.f32 %v19590_v62, %v24350_v58  ;;  %24354 = vst [vmem:[#allocation54_spill] sm:$0xff] %v20015_v63  ;;  %6903 = vmatpush.msrb.mxu0 %v6888_v0  ;;  %6929 = vmatpush.msrb.mxu1 %v6888_v0  ;;  %v24355_v29 = vrot.slane %v19836_v11, 2  ;;  %v24364_v63 = vrot.slane %v24342_v42, 1 }
 0x3e5   : > { %v3421_v35 = vsel %vm1592_vm0, %v23320_v27, %v24352_v51  ;;  %v3430_v26 = vsel %vm1592_vm0, %v23319_v56, %v24353_v45  ;;  %v24356_v51 = vrot.slane %v19840_v2, 2  ;;  %v20031_v33 = vmul.f32 %v19590_v62, %v19915_v34 }
 0x3e6   : > { %v3656_v38 = vadd.f32 %v3421_v35, %v2947_v20  ;;  %v3660_v49 = vadd.f32 %v3430_v26, %v2951_v31  ;;  %v4125_v61 = vsel %vm2297_vm1, %v23317_v14, %v24355_v29  ;;  %v23318_v20 = vrot.slane %v20012_v1, 1 }
 0x3e7   : > { %v4134_v45 = vsel %vm2297_vm1, %v23316_v21, %v24356_v51  ;;  %v20036_v11 = vmul.f32 %v19599_v9, %v24350_v58  ;;  %v4486_v35 = vmul.f32 %v19896_v25, %v24350_v58  ;;  %v20042_v2 = vmul.f32 %v19599_v9, %v19915_v34  ;;  %v24371_v58 = vld [vmem:[#allocation7_spill] sm:$0xff] }
 0x3e8   : > { %v4360_v0 = vadd.f32 %v4125_v61, %v3656_v38  ;;  %v4364_v31 = vadd.f32 %v4134_v45, %v3660_v49  ;;  %v24357_v51 = vrot.slane %v19877_v28, 1  ;;  %v23321_v38 = vrot.slane %v20031_v33, 1 }
 0x3e9   : > { %v20054_v49 = vmul.f32 %v19356_v4, %v20022_v12  ;;  %v23329_v14 = vrot.slane %v20042_v2, 2  ;;  %v20059_v26 = vmul.f32 %v19617_v30, %v20022_v12  ;;  %v20063_v28 = vmul.f32 %v19549_v23, %v20022_v12 }
 0x3ea   : > { %v5064_v21 = vsel %vm1592_vm0, %v23318_v20, %v24357_v51  ;;  %v4590_v61 = vadd.f32 %v4486_v35, %v4360_v0  ;;  %v4594_v45 = vadd.f32 %v4490_v17, %v4364_v31  ;;  %v24358_v51 = vrot.slane %v19881_v47, 1  ;;  %v20075_v0 = vpop.permute.xlu0 %968 }
 0x3eb   : > { %v23324_v20 = vrot.slane %v20036_v11, 2  ;;  %v20073_v17 = vmul.f32 %v19558_v52, %v20022_v12  ;;  %v1072_v56 = vmul.f32 %v19764_v44, %v24272_v46  ;;  %v24359_v27 = vrot.slane %v19885_v37, 2 }
 0x3ec   : > { %v5073_v29 = vsel %vm1592_vm0, %v23321_v38, %v24358_v51  ;;  %v5299_v31 = vadd.f32 %v5064_v21, %v4590_v61  ;;  %v24360_v51 = vrot.slane %v19889_v8, 2  ;;  %v1076_v10 = vmul.f32 %v19764_v44, %v19099_v40 }
 0x3ed   : > { %v5303_v35 = vadd.f32 %v5073_v29, %v4594_v45  ;;  %v5768_v47 = vsel %vm2297_vm1, %v23324_v20, %v24359_v27  ;;  %v24361_v21 = vrot.slane %v24339_v59, 1  ;;  %v24362_v29 = vld [vmem:[#allocation26_spill] sm:$0xff]  ;;  %v24365_v27 = vld [vmem:[#allocation21_spill] sm:$0xff]  ;;  %v2842_v42 = vmul.f32 %v19566_v55, %v19099_v40 }
 0x3ee   : > { %v5777_v38 = vsel %vm2297_vm1, %v23329_v14, %v24360_v51  ;;  %v24363_v61 = vrot.slane %v24362_v29, 1  ;;  %v6003_v37 = vadd.f32 %v5768_v47, %v5299_v31  ;;  %v24366_v20 = vrot.slane %v24365_v27, 1  ;;  %v24368_v14 = vld [vmem:[#allocation23_spill] sm:$0xff]  ;;  %v20113_v31 = vpop.permute.xlu2 %2973 }
 0x3ef   : > { %v6007_v45 = vadd.f32 %v5777_v38, %v5303_v35  ;;  %v24367_v51 = vrot.slane %v24346_v5, 2  ;;  %v24369_v34 = vrot.slane %v24368_v14, 2  ;;  %v24370_v29 = vrot.slane %v24295_v22, 2 }
 0x3f0   : > { %v1775_v46 = vsel %vm1592_vm0, %v24363_v61, %v24361_v21  ;;  %v1784_v8 = vsel %vm1592_vm0, %v24366_v20, %v24364_v63  ;;  %v24372_v21 = vrot.slane %v24371_v58, 2  ;;  %v2846_v22 = vmul.f32 %v19566_v55, %v19873_v19 }
 0x3f1   : > { %v2011_v24 = vadd.f32 %v1775_v46, %v1072_v56  ;;  %v2015_v6 = vadd.f32 %v1784_v8, %v1076_v10  ;;  %v2480_v59 = vsel %vm2297_vm1, %v24369_v34, %v24367_v51  ;;  %v20118_v10 = vld [vmem:[%s22813_s2] ss:$0 sm:$0xff]  ;;  %v3077_v14 = vmul.f32 %v19549_v23, %v19099_v40 }
 0x3f2   : > { %v2489_v38 = vsel %vm2297_vm1, %v24372_v21, %v24370_v29  ;;  %v6111_v5 = vadd.f32 %v20118_v10, %v6003_v37  ;;  %v6115_v34 = vadd.f32 %v20118_v10, %v6007_v45  ;;  %v3082_v63 = vmul.f32 %v19549_v23, %v19873_v19 }
 0x3f3   : > { %v2716_v56 = vadd.f32 %v2480_v59, %v2011_v24  ;;  %v2720_v58 = vadd.f32 %v2489_v38, %v2015_v6  ;;  %v3781_v20 = vmul.f32 %v19558_v52, %v19099_v40  ;;  %v3786_v46 = vmul.f32 %v19558_v52, %v19873_v19  ;;  %v20132_v24 = vpop.permute.xlu1 %953 }
 0x3f4   : > { %v6215_v35 = vmax.f32 %v6111_v5, 0.0  ;;  %v6219_v47 = vmax.f32 %v6115_v34, 0.0  ;;  %24373 = vst [vmem:[#allocation30_spill] sm:$0xff] %v20132_v24  ;;  %v3417_v45 = vrot.slane %v3077_v14, 1  ;;  %v3426_v6 = vrot.slane %v3082_v63, 1 }
 0x3f5   : > { %v2946_v61 = vadd.f32 %v2842_v42, %v2716_v56  ;;  %v2950_v37 = vadd.f32 %v2846_v22, %v2720_v58  ;;  %v4121_v27 = vrot.slane %v3781_v20, 2  ;;  %v20136_v8 = vmul.f32 %v19590_v62, %v20022_v12  ;;  %v20152_v58 = vpop.permute.xlu0 %958  ;;  %v24379_v20 = vld [vmem:[#allocation44_spill] sm:$0xff] }
 0x3f6   : > { %v6887_v51 = vmax.f32 %v6215_v35, %v6219_v47  ;;  %v4130_v59 = vrot.slane %v3786_v46, 2  ;;  %v4485_v40 = vmul.f32 %v19896_v25, %v19873_v19  ;;  %v24374_v29 = vrot.slane %v19976_v41, 1  ;;  %24377 = vst [vmem:[#allocation18_spill] sm:$0xff] %v20152_v58 }
 0x3f7   : > { %v24375_v38 = vrot.slane %v19980_v16, 1  ;;  %v24376_v5 = vrot.slane %v19984_v15, 2  ;;  %v4720_v56 = vmul.f32 %v19590_v62, %v19873_v19  ;;  %v1816_v22 = vrot.slane %v20054_v49, 1 }
 0x3f8   : > { %v3419_v21 = vsel %vm1592_vm0, %v3417_v45, %v24374_v29  ;;  %6904 = vmatpush.msrb.mxu0 %v6887_v51  ;;  %6930 = vmatpush.msrb.mxu1 %v6887_v51  ;;  %v24378_v63 = vrot.slane %v19988_v32, 2  ;;  %v4725_v15 = vmul.f32 %v19590_v62, %v24379_v20  ;;  %v5424_v47 = vmul.f32 %v19599_v9, %v19873_v19 }
 0x3f9   : > { %v3428_v42 = vsel %vm1592_vm0, %v3426_v6, %v24375_v38  ;;  %v4123_v34 = vsel %vm2297_vm1, %v4121_v27, %v24376_v5  ;;  %v3655_v41 = vadd.f32 %v3419_v21, %v2946_v61  ;;  %v5060_v35 = vrot.slane %v4720_v56, 1  ;;  %v20175_v38 = vpop.permute.xlu2 %2743 }
 0x3fa   : > { %v3659_v14 = vadd.f32 %v3428_v42, %v2950_v37  ;;  %v4132_v16 = vsel %vm2297_vm1, %v4130_v59, %v24378_v63  ;;  %v5429_v49 = vmul.f32 %v19599_v9, %v24379_v20  ;;  %v20165_v46 = vmul.f32 %v19599_v9, %v20022_v12  ;;  %24381 = vst [vmem:[#allocation58_spill] sm:$0xff] %v20175_v38 }
 0x3fb   : > { %v4359_v61 = vadd.f32 %v4123_v34, %v3655_v41  ;;  %v4489_v32 = vmul.f32 %v19896_v25, %v24379_v20  ;;  %v24380_v6 = vrot.slane %v20012_v1, 1  ;;  %v5069_v51 = vrot.slane %v4725_v15, 1 }
 0x3fc   : > { %v4363_v37 = vadd.f32 %v4132_v16, %v3659_v14  ;;  %v5764_v59 = vrot.slane %v5424_v47, 2  ;;  %v20180_v34 = vmul.f32 %v19356_v4, %v20075_v0  ;;  %v24383_v1 = vrot.slane %v20031_v33, 1 }
 0x3fd   : > { %v5062_v27 = vsel %vm1592_vm0, %v5060_v35, %v24380_v6  ;;  %v4589_v12 = vadd.f32 %v4485_v40, %v4359_v61  ;;  %v5773_v41 = vrot.slane %v5429_v49, 2  ;;  %v20187_v14 = vmul.f32 %v19617_v30, %v20075_v0 }
 0x3fe   : > { %v4593_v42 = vadd.f32 %v4489_v32, %v4363_v37  ;;  %24382 = vst [vmem:[#allocation55_spill] sm:$0xff] %v20180_v34  ;;  %v5071_v56 = vsel %vm1592_vm0, %v5069_v51, %v24383_v1  ;;  %v20191_v63 = vmul.f32 %v19549_v23, %v20075_v0  ;;  %v20195_v15 = vmul.f32 %v19549_v23, %v20113_v31  ;;  %v20207_v37 = vpop.permute.xlu1 %983 }
 0x3ff   : > { %24384 = vst [vmem:[#allocation47_spill] sm:$0xff] %v20187_v14  ;;  %v5298_v40 = vadd.f32 %v5062_v27, %v4589_v12  ;;  %v20199_v33 = vmul.f32 %v19558_v52, %v20113_v31  ;;  %v24387_v35 = vrot.slane %v20036_v11, 2  ;;  %v24388_v49 = vrot.slane %v20042_v2, 2 }
 0x400   : > { %v5302_v16 = vadd.f32 %v5071_v56, %v4593_v42  ;;  %24385 = vst [vmem:[#allocation33_spill] sm:$0xff] %v20195_v15  ;;  %v20212_v6 = vmul.f32 %v19590_v62, %v20113_v31  ;;  %v1091_v12 = vmul.f32 %v19764_v44, %v20075_v0  ;;  %v23333_v11 = vrot.slane %v20180_v34, 1 }
 0x401   : > { %24386 = vst [vmem:[#allocation14_spill] sm:$0xff] %v20199_v33  ;;  %v5766_v47 = vsel %vm2297_vm1, %v5764_v59, %v24387_v35  ;;  %v5775_v61 = vsel %vm2297_vm1, %v5773_v41, %v24388_v49  ;;  %v20219_v2 = vmul.f32 %v19599_v9, %v20113_v31  ;;  %v20223_v59 = vmul.f32 %v19356_v4, %v20132_v24 }
 0x402   : > { %24389 = vst [vmem:[#allocation22_spill] sm:$0xff] %v20212_v6  ;;  %v6002_v27 = vadd.f32 %v5766_v47, %v5298_v40  ;;  %v6006_v51 = vadd.f32 %v5775_v61, %v5302_v16  ;;  %v20228_v1 = vmul.f32 %v19617_v30, %v20132_v24  ;;  %v1329_v40 = vpop.permute.xlu0 %1328  ;;  %v20237_v47 = vmul.f32 %v19356_v4, %v20152_v58 }
 0x403   : > { %24390 = vst [vmem:[#allocation11_spill] sm:$0xff] %v20219_v2  ;;  %v20242_v61 = vmul.f32 %v19617_v30, %v20152_v58  ;;  %v3101_v31 = vmul.f32 %v19549_v23, %v1329_v40  ;;  %v1817_v35 = vsel %vm1592_vm0, %v23333_v11, %v1816_v22  ;;  %v20253_v49 = vmul.f32 %v19549_v23, %v20175_v38 }
 0x404   : > { %24391 = vst [vmem:[#allocation19_spill] sm:$0xff] %v20223_v59  ;;  %v6110_v56 = vadd.f32 %v20118_v10, %v6002_v27  ;;  %v6114_v41 = vadd.f32 %v20118_v10, %v6006_v51  ;;  %v4397_v51 = vpop.permute.xlu2 %4396  ;;  %v20261_v16 = vmul.f32 %v19356_v4, %v1329_v40  ;;  %v20264_v29 = vmul.f32 %v19617_v30, %v1329_v40 }
 0x405   : > { %24392 = vst [vmem:[#allocation15_spill] sm:$0xff] %v20228_v1  ;;  %v20268_v22 = vmul.f32 %v19549_v23, %v19927_v53  ;;  %v20273_v11 = vmul.f32 %v19896_v25, %v20175_v38  ;;  %v3460_v5 = vrot.slane %v3101_v31, 1  ;;  %v20279_v42 = vmul.f32 %v19590_v62, %v1329_v40 }
 0x406   : > { %24393 = vst [vmem:[#allocation35_spill] sm:$0xff] %v20237_v47  ;;  %v6214_v27 = vmax.f32 %v6110_v56, 0.0  ;;  %v6218_v32 = vmax.f32 %v6114_v41, 0.0  ;;  %v20257_v56 = vmul.f32 %v19590_v62, %v20175_v38  ;;  %v20282_v45 = vmul.f32 %v19599_v9, %v1329_v40  ;;  %v2759_v21 = vpop.permute.xlu1 %2758 }
 0x407   : > { %24394 = vst [vmem:[#allocation43_spill] sm:$0xff] %v20242_v61  ;;  %v20285_v1 = vmul.f32 %v19590_v62, %v4397_v51  ;;  %v20296_v31 = vmul.f32 %v19599_v9, %v4397_v51  ;;  %v23342_v59 = vrot.slane %v20268_v22, 1  ;;  %v20310_v61 = vmul.f32 %v19896_v25, %v4397_v51 }
 0x408   : > { %24395 = vst [vmem:[#allocation27_spill] sm:$0xff] %v20253_v49  ;;  %v6886_v41 = vmax.f32 %v6214_v27, %v6218_v32  ;;  %v20276_v32 = vmul.f32 %v19558_v52, %v1329_v40  ;;  %v2030_v27 = vadd.f32 %v1817_v35, %v1091_v12  ;;  %v20293_v12 = vmul.f32 %v19599_v9, %v20175_v38 }
 0x409   : > { %24396 = vst [vmem:[#allocation57_spill] sm:$0xff] %v20257_v56  ;;  %v20313_v34 = vmul.f32 %v19549_v23, %v2759_v21  ;;  %v20318_v35 = vsel %vm1592_vm0, %v23342_v59, %v3460_v5  ;;  %v5798_v40 = vrot.slane %v20282_v45, 2  ;;  %v2861_v51 = vmul.f32 %v19566_v55, %v19927_v53  ;;  %v24408_v59 = vld [vmem:[#allocation31_spill] sm:$0xff] }
 0x40a   : > { %24397 = vst [vmem:[#allocation42_spill] sm:$0xff] %v20268_v22  ;;  %6905 = vmatpush.msrb.mxu0 %v6886_v41  ;;  %6931 = vmatpush.msrb.mxu1 %v6886_v41  ;;  %v24402_v41 = vrot.slane %v20059_v26, 2  ;;  %v5094_v26 = vrot.slane %v20279_v42, 1  ;;  %v20334_v5 = vmul.f32 %v19558_v52, %v2759_v21  ;;  %v20337_v42 = vmul.f32 %v19896_v25, %v2759_v21 }
 0x40b   : > { %24398 = vst [vmem:[#allocation56_spill] sm:$0xff] %v20273_v11  ;;  %11110 = vmatmul.msk.f32.vlgmr.msrb.gmra.mxu0 %vm6281_vm2, %v24292_v50  ;;  %11112 = vmatmul.msk.f32.vlgmr.msrb.gmra.mxu1 %vm6281_vm2, %v24294_v48  ;;  %v24403_v11 = vrot.slane %v20187_v14, 2  ;;  %v20340_v45 = vmul.f32 %v19590_v62, %v2759_v21  ;;  %v20351_v2 = vmul.f32 %v19599_v9, %v2759_v21  ;;  %v24416_v49 = vrot.slane %v19735_v57, 1 }
 0x40c   : > { %24399 = vst [vmem:[#allocation37_spill] sm:$0xff] %v20285_v1  ;;  %v20355_v6 = vmul.f32 %v19356_v4, %v20207_v37  ;;  %v20384_v38 = vmul.f32 %v19558_v52, %v19640_v7  ;;  %v20418_v48 = vmul.f32 %v19599_v9, %v20075_v0 }
 0x40d   : > { %24400 = vst [vmem:[#allocation10_spill] sm:$0xff] %v20293_v12  ;;  %v2522_v56 = vsel %vm2297_vm1, %v24403_v11, %v24402_v41  ;;  %v24409_v41 = vrot.slane %v24408_v59, 1  ;;  %v24410_v11 = vrot.slane %v19704_v39, 1 }
 0x40e   : > { %24401 = vst [vmem:[#allocation62_spill] sm:$0xff] %v20296_v31  ;;  %v2735_v47 = vadd.f32 %v2522_v56, %v2030_v27  ;;  %v20327_v56 = vmul.f32 %v19566_v55, %v2759_v21  ;;  %v20331_v27 = vmul.f32 %v19558_v52, %v19927_v53  ;;  %v20359_v31 = vmul.f32 %v19617_v30, %v20207_v37 }
 0x40f   : > { %24404 = vst [vmem:[#allocation46_spill] sm:$0xff] %v20310_v61  ;;  %v1808_v12 = vsel %vm1592_vm0, %v24410_v11, %v24409_v41  ;;  %v2853_v11 = vmul.f32 %v19566_v55, %v19640_v7  ;;  %v20370_v21 = vmul.f32 %v19356_v4, %v19927_v53  ;;  %v24411_v41 = vld [vmem:[#allocation25_spill] sm:$0xff]  ;;  %v24413_v30 = vrot.slane %v19722_v3, 2 }
 0x410   : > { %24405 = vst [vmem:[#allocation26_spill] sm:$0xff] %v20313_v34  ;;  %v20347_v22 = vadd.f32 %v2861_v51, %v2735_v47  ;;  %v2026_v59 = vadd.f32 %v1808_v12, %v19768_v18  ;;  %v2857_v47 = vmul.f32 %v19566_v55, %v20075_v0  ;;  %v24412_v51 = vrot.slane %v24411_v41, 2  ;;  %v24414_v18 = vld [vmem:[#allocation5_spill] sm:$0xff]  ;;  %v24432_v34 = vld [vmem:[#allocation32_spill] sm:$0xff] }
 0x411   : > { %24406 = vst [vmem:[#allocation21_spill] sm:$0xff] %v20327_v56  ;;  %v24415_v12 = vrot.slane %v24414_v18, 1  ;;  %v2957_v41 = vadd.f32 %v2853_v11, %v19756_v60  ;;  %v20396_v18 = vmul.f32 %v19558_v52, %v20075_v0  ;;  %v4496_v7 = vmul.f32 %v19896_v25, %v20075_v0 }
 0x412   : > { %24407 = vst [vmem:[#allocation23_spill] sm:$0xff] %v20331_v27  ;;  %v2513_v14 = vsel %vm2297_vm1, %v24413_v30, %v24412_v51  ;;  %v24418_v51 = vrot.slane %v20191_v63, 1  ;;  %v20405_v60 = vmul.f32 %v19590_v62, %v20075_v0  ;;  %v20410_v11 = vmul.f32 %v19590_v62, %v19927_v53 }
 0x413   : > { %11111 = vmatmul.msk.f32.gmra.mxu0 %vm6281_vm2, %v24314_v36  ;;  %v3443_v61 = vsel %vm1592_vm0, %v24416_v49, %v24415_v12  ;;  %11113 = vmatmul.msk.f32.gmra.mxu1 %vm6281_vm2, %v24319_v54  ;;  %v2731_v4 = vadd.f32 %v2513_v14, %v2026_v59  ;;  %v24417_v36 = vrot.slane %v20063_v28, 1  ;;  %v4144_v49 = vrot.slane %v20384_v38, 2  ;;  %v24419_v12 = vld [vmem:[#allocation52_spill] sm:$0xff] }
 0x414   : > { %v4500_v14 = vmul.f32 %v19896_v25, %v19927_v53  ;;  %v3666_v59 = vadd.f32 %v3443_v61, %v2957_v41  ;;  %v24420_v38 = vrot.slane %v24419_v12, 2  ;;  %v23359_v54 = vrot.slane %v20405_v60, 1 }
 0x415   : > { %v3452_v30 = vsel %vm1592_vm0, %v24418_v51, %v24417_v36  ;;  %v2961_v28 = vadd.f32 %v2857_v47, %v2731_v4  ;;  %v4153_v36 = vrot.slane %v20396_v18, 2  ;;  %v20422_v47 = vmul.f32 %v19599_v9, %v19927_v53 }
 0x416   : > { %v4147_v51 = vsel %vm2297_vm1, %v4144_v49, %v24420_v38  ;;  %v24421_v4 = vrot.slane %v20073_v17, 2  ;;  %v23358_v12 = vrot.slane %v20410_v11, 1  ;;  %v24422_v38 = vrot.slane %v20136_v8, 1 }
 0x417   : > { %v3670_v61 = vadd.f32 %v3452_v30, %v2961_v28  ;;  %v4370_v18 = vadd.f32 %v4147_v51, %v3666_v59  ;;  %v23362_v0 = vrot.slane %v20418_v48, 2  ;;  %v23365_v1 = vrot.slane %v20422_v47, 2 }
 0x418   : > { %v4156_v41 = vsel %vm2297_vm1, %v4153_v36, %v24421_v4  ;;  %v5086_v50 = vsel %vm1592_vm0, %v23359_v54, %v24422_v38  ;;  %v1082_v30 = vmul.f32 %v19764_v44, %v19771_v43  ;;  %v5095_v59 = vsel %vm1592_vm0, %v23358_v12, %v5094_v26  ;;  %v24430_v54 = vld [vmem:[#allocation9_spill] sm:$0xff] }
 0x419   : > { %v4374_v28 = vadd.f32 %v4156_v41, %v3670_v61  ;;  %v4600_v17 = vadd.f32 %v4496_v7, %v4370_v18  ;;  %v1086_v8 = vmul.f32 %v19764_v44, %v19758_v13  ;;  %v24423_v51 = vmov 0.0   ;;  %v24425_v7 = vld [vmem:[#allocation48_spill] sm:$0xff] }
 0x41a   : > { %v24424_v4 = vrot.slane %v20165_v46, 2  ;;  %v5799_v43 = vsel %vm2297_vm1, %v23365_v1, %v5798_v40  ;;  %v24426_v61 = vrot.slane %v24425_v7, 1  ;;  %v24427_v41 = vld [vmem:[#allocation60_spill] sm:$0xff]  ;;  %v24429_v12 = vrot.slane %v19704_v39, 1  ;;  %v24434_v1 = vld [vmem:[#allocation61_spill] sm:$0xff] }
 0x41b   : > { %6912 = vmatmul.f32.gmra.mxu0 %v24423_v51  ;;  %v24428_v18 = vrot.slane %v24427_v41, 1  ;;  %v24431_v33 = vrot.slane %v24430_v54, 1  ;;  %6938 = vmatmul.f32.gmra.mxu1 %v24423_v51  ;;  %v4604_v15 = vadd.f32 %v4500_v14, %v4374_v28  ;;  %v24433_v40 = vrot.slane %v24432_v34, 2 }
 0x41c   : > { %v5790_v38 = vsel %vm2297_vm1, %v23362_v0, %v24424_v4  ;;  %v5309_v4 = vadd.f32 %v5086_v50, %v4600_v17  ;;  %v24435_v7 = vrot.slane %v24434_v1, 2  ;;  %v20478_v17 = vmul.f32 %v19549_v23, %v19758_v13 }
 0x41d   : > { %v1797_v26 = vsel %vm1592_vm0, %v24428_v18, %v24426_v61  ;;  %v1806_v46 = vsel %vm1592_vm0, %v24431_v33, %v24429_v12  ;;  %v24436_v61 = vrot.slane %v19722_v3, 2  ;;  %v24437_v18 = vld [vmem:[#allocation59_spill] sm:$0xff]  ;;  %v2852_v33 = vmul.f32 %v19566_v55, %v19758_v13  ;;  %v24439_v12 = vld [vmem:[#allocation49_spill] sm:$0xff] }
 0x41e   : > { %v2021_v0 = vadd.f32 %v1797_v26, %v1082_v30  ;;  %v2025_v56 = vadd.f32 %v1806_v46, %v1086_v8  ;;  %v2502_v24 = vsel %vm2297_vm1, %v24435_v7, %v24433_v40  ;;  %v24438_v39 = vrot.slane %v24437_v18, 2 }
 0x41f   : > { %v2856_v50 = vmul.f32 %v19566_v55, %v24439_v12  ;;  %v5313_v14 = vadd.f32 %v5095_v59, %v4604_v15  ;;  %v6013_v30 = vadd.f32 %v5790_v38, %v5309_v4  ;;  %v20482_v3 = vmul.f32 %v19549_v23, %v24439_v12 }
 0x420   : > { %v2511_v20 = vsel %vm2297_vm1, %v24438_v39, %v24436_v61  ;;  %v2726_v28 = vadd.f32 %v2502_v24, %v2021_v0  ;;  %v20486_v8 = vmul.f32 %v19558_v52, %v19758_v13  ;;  %v20490_v26 = vmul.f32 %v19558_v52, %v24439_v12 }
 0x421   : > { %v2730_v34 = vadd.f32 %v2511_v20, %v2025_v56  ;;  %v6017_v55 = vadd.f32 %v5799_v43, %v5313_v14  ;;  %v6121_v24 = vadd.f32 %v20118_v10, %v6013_v30  ;;  %v3438_v56 = vrot.slane %v20478_v17, 1 }
 0x422   : > { %v2956_v20 = vadd.f32 %v2852_v33, %v2726_v28  ;;  %v3447_v0 = vrot.slane %v20482_v3, 1  ;;  %v4142_v23 = vrot.slane %v20486_v8, 2  ;;  %v4151_v59 = vrot.slane %v20490_v26, 2  ;;  %v20652_v8 = vld [vmem:[%s22812_s1 + $0x7] ss:$0 sm:$0xff] }
 0x423   : > { %v2960_v15 = vadd.f32 %v2856_v50, %v2730_v34  ;;  %v6125_v13 = vadd.f32 %v20118_v10, %v6017_v55  ;;  %v6225_v38 = vmax.f32 %v6121_v24, 0.0  ;;  %v4495_v52 = vmul.f32 %v19896_v25, %v24439_v12  ;;  %v20665_v26 = vld [vmem:[%s22812_s1 + $0x8] ss:$0 sm:$0xff] }
 0x424   : > { %v4499_v43 = vmul.f32 %v19896_v25, %v20207_v37  ;;  %v24440_v46 = vrot.slane %v19735_v57, 1  ;;  %v24441_v40 = vrot.slane %v20191_v63, 1  ;;  %v4145_v61 = vsel %vm2297_vm1, %v4142_v23, %v4144_v49 }
 0x425   : > { %v4154_v39 = vsel %vm2297_vm1, %v4151_v59, %v4153_v36  ;;  %v6229_v33 = vmax.f32 %v6125_v13, 0.0  ;;  %v20520_v14 = vmul.f32 %v19590_v62, %v24439_v12  ;;  %v20524_v63 = vmul.f32 %v19590_v62, %v20207_v37  ;;  %v24442_v36 = vld [vmem:[#allocation20_spill] sm:$0xff] }
 0x426   : > { %v3441_v4 = vsel %vm1592_vm0, %v3438_v56, %v24440_v46  ;;  %v3450_v7 = vsel %vm1592_vm0, %v3447_v0, %v24441_v40  ;;  %v20528_v30 = vmul.f32 %v19599_v9, %v24439_v12  ;;  %v20532_v49 = vmul.f32 %v19599_v9, %v20207_v37  ;;  %v24443_v46 = vld [vmem:[#allocation38_spill] sm:$0xff] }
 0x427   : > { %v3665_v57 = vadd.f32 %v3441_v4, %v2956_v20  ;;  %v3669_v50 = vadd.f32 %v3450_v7, %v2960_v15  ;;  %v1081_v28 = vmul.f32 %v19764_v44, %v24442_v36  ;;  %v6948_v34 = vmax.f32 %v6225_v38, %v6229_v33  ;;  %v24449_v36 = vld [vmem:[#allocation13_spill] sm:$0xff] }
 0x428   : > { %v23372_v20 = vrot.slane %v20520_v14, 1  ;;  %v23370_v15 = vrot.slane %v20524_v63, 1  ;;  %v23369_v62 = vrot.slane %v20528_v30, 2  ;;  %v23371_v13 = vrot.slane %v20532_v49, 2 }
 0x429   : > { %v4369_v55 = vadd.f32 %v4145_v61, %v3665_v57  ;;  %v4373_v24 = vadd.f32 %v4154_v39, %v3669_v50  ;;  %v1085_v4 = vmul.f32 %v19764_v44, %v24443_v46  ;;  %6961 = vmatpush.msrb.mxu2 %v6948_v34  ;;  %6987 = vmatpush.msra.mxu3 %v6948_v34  ;;  %v24444_v38 = vrot.slane %v20405_v60, 1 }
 0x42a   : > { %v24445_v39 = vrot.slane %v20410_v11, 1  ;;  %v24446_v57 = vrot.slane %v20418_v48, 2  ;;  %v24450_v11 = vrot.slane %v24449_v36, 1  ;;  %v24451_v48 = vrot.slane %v24430_v54, 1  ;;  %v20586_v54 = vld [vmem:[%s22812_s1 + $0x3] ss:$0 sm:$0xff] }
 0x42b   : > { %v4599_v40 = vadd.f32 %v4495_v52, %v4369_v55  ;;  %v4603_v7 = vadd.f32 %v4499_v43, %v4373_v24  ;;  %v5084_v61 = vsel %vm1592_vm0, %v23372_v20, %v24444_v38  ;;  %v24447_v52 = vrot.slane %v20422_v47, 2  ;;  %v24452_v38 = vld [vmem:[#allocation34_spill] sm:$0xff]  ;;  %v24458_v20 = vld [vmem:[#allocation36_spill] sm:$0xff] }
 0x42c   : > { %v5093_v33 = vsel %vm1592_vm0, %v23370_v15, %v24445_v39  ;;  %v5788_v50 = vsel %vm2297_vm1, %v23369_v62, %v24446_v57  ;;  %v24448_v43 = vrot.slane %v24427_v41, 1  ;;  %v24453_v39 = vrot.slane %v24452_v38, 1  ;;  %v24455_v15 = vld [vmem:[#allocation50_spill] sm:$0xff] }
 0x42d   : > { %v5797_v60 = vsel %vm2297_vm1, %v23371_v13, %v24447_v52  ;;  %v5308_v55 = vadd.f32 %v5084_v61, %v4599_v40  ;;  %v5312_v24 = vadd.f32 %v5093_v33, %v4603_v7  ;;  %v24454_v62 = vrot.slane %v24434_v1, 2 }
 0x42e   : > { %v1795_v34 = vsel %vm1592_vm0, %v24450_v11, %v24448_v43  ;;  %v1804_v57 = vsel %vm1592_vm0, %v24453_v39, %v24451_v48  ;;  %v24456_v52 = vrot.slane %v24455_v15, 2  ;;  %v24457_v13 = vrot.slane %v24437_v18, 2  ;;  %v20595_v18 = vld [vmem:[%s22812_s1 + $0x4] ss:$0 sm:$0xff] }
 0x42f   : > { %v2020_v9 = vadd.f32 %v1795_v34, %v1081_v28  ;;  %v2024_v47 = vadd.f32 %v1804_v57, %v1085_v4  ;;  %v24459_v43 = vrot.slane %v24458_v20, 2  ;;  %v2851_v28 = vmul.f32 %v20586_v54, %v24443_v46 }
 0x430   : > { %v2500_v41 = vsel %vm2297_vm1, %v24456_v52, %v24454_v62  ;;  %v6012_v4 = vadd.f32 %v5788_v50, %v5308_v55  ;;  %v6016_v1 = vadd.f32 %v5797_v60, %v5312_v24  ;;  %v2855_v62 = vmul.f32 %v20586_v54, %v20152_v58  ;;  %v20614_v60 = vpop.permute.xlu0 %973 }
 0x431   : > { %v2509_v40 = vsel %vm2297_vm1, %v24459_v43, %v24457_v13  ;;  %v2725_v7 = vadd.f32 %v2500_v41, %v2020_v9  ;;  %v20599_v13 = vmul.f32 %v20595_v18, %v24443_v46  ;;  %v20603_v33 = vmul.f32 %v20595_v18, %v20152_v58  ;;  %v20608_v9 = vld [vmem:[%s22812_s1 + $0x5] ss:$0 sm:$0xff] }
 0x432   : > { %v2729_v61 = vadd.f32 %v2509_v40, %v2024_v47  ;;  %v20612_v50 = vmul.f32 %v20608_v9, %v24443_v46  ;;  %v6120_v11 = vadd.f32 %v20118_v10, %v6012_v4  ;;  %v6124_v34 = vadd.f32 %v20118_v10, %v6016_v1 }
 0x433   : > { %v2955_v55 = vadd.f32 %v2851_v28, %v2725_v7  ;;  %v20620_v24 = vmul.f32 %v20608_v9, %v20152_v58  ;;  %v23376_v39 = vrot.slane %v20599_v13, 1  ;;  %v23375_v57 = vrot.slane %v20603_v33, 1 }
 0x434   : > { %v2959_v48 = vadd.f32 %v2855_v62, %v2729_v61  ;;  %v23374_v47 = vrot.slane %v20612_v50, 2  ;;  %v23377_v46 = vrot.slane %v20355_v6, 1  ;;  %v6224_v52 = vmax.f32 %v6120_v11, 0.0 }
 0x435   : > { %v6228_v41 = vmax.f32 %v6124_v34, 0.0  ;;  %v23373_v43 = vrot.slane %v20620_v24, 2  ;;  %v3439_v40 = vsel %vm1592_vm0, %v23376_v39, %v3438_v56  ;;  %v3448_v28 = vsel %vm1592_vm0, %v23375_v57, %v3447_v0  ;;  %v24460_v0 = vld [vmem:[#allocation54_spill] sm:$0xff]  ;;  %v20676_v34 = vpop.permute.xlu1 %2748 }
 0x436   : > { %v4143_v4 = vsel %vm2297_vm1, %v23374_v47, %v4142_v23  ;;  %v4494_v1 = vmul.f32 %v19896_v25, %v20152_v58  ;;  %v3664_v7 = vadd.f32 %v3439_v40, %v2955_v55  ;;  %v3668_v62 = vadd.f32 %v3448_v28, %v2959_v48 }
 0x437   : > { %v6947_v17 = vmax.f32 %v6224_v52, %v6228_v41  ;;  %v4152_v3 = vsel %vm2297_vm1, %v23373_v43, %v4151_v59  ;;  %v20656_v56 = vmul.f32 %v20652_v8, %v20152_v58  ;;  %v20660_v23 = vmul.f32 %v20652_v8, %v24460_v0  ;;  %v20680_v41 = vpop.f32.mrf.mxu3 }
 0x438   : > { %v20669_v59 = vmul.f32 %v20665_v26, %v20152_v58  ;;  %v20673_v61 = vmul.f32 %v20665_v26, %v24460_v0  ;;  %v4368_v55 = vadd.f32 %v4143_v4, %v3664_v7  ;;  %v4372_v48 = vadd.f32 %v4152_v3, %v3668_v62  ;;  %v20691_v4 = vld [vmem:[%s22812_s1 + $0x2] ss:$0 sm:$0xff] }
 0x439   : > { %6962 = vmatpush.msrb.mxu2 %v6947_v17  ;;  %6988 = vmatpush.msra.mxu3 %v6947_v17  ;;  %v4498_v52 = vmul.f32 %v19896_v25, %v24460_v0  ;;  %v1823_v40 = vrot.slane %v20370_v21, 1  ;;  %v23379_v28 = vrot.slane %v20656_v56, 1  ;;  %v23378_v43 = vrot.slane %v20660_v23, 1 }
 0x43a   : > { %v23381_v47 = vrot.slane %v20669_v59, 2  ;;  %v3674_v11 = vadd.f32 %v20318_v35, %v20347_v22  ;;  %v2165_v17 = vmul.f32 %v20691_v4, %v19927_v53  ;;  %v4598_v7 = vadd.f32 %v4494_v1, %v4368_v55 }
 0x43b   : > { %v4602_v62 = vadd.f32 %v4498_v52, %v4372_v48  ;;  %v1824_v21 = vsel %vm1592_vm0, %v23377_v46, %v1823_v40  ;;  %v24461_v3 = vrot.slane %v20520_v14, 1  ;;  %v24462_v35 = vrot.slane %v20524_v63, 1  ;;  %v20712_v48 = vpop.permute.xlu0 %2753 }
 0x43c   : > { %v23382_v39 = vrot.slane %v20673_v61, 2  ;;  %v1094_v55 = vmul.f32 %v19764_v44, %v20207_v37  ;;  %v24463_v46 = vrot.slane %v20528_v30, 2  ;;  %v24464_v1 = vrot.slane %v20532_v49, 2 }
 0x43d   : > { %v5082_v22 = vsel %vm1592_vm0, %v23379_v28, %v24461_v3  ;;  %v5091_v57 = vsel %vm1592_vm0, %v23378_v43, %v24462_v35  ;;  %v20716_v3 = vmul.f32 %v20595_v18, %v20676_v34  ;;  %v2528_v58 = vrot.slane %v2165_v17, 2 }
 0x43e   : > { %v5307_v14 = vadd.f32 %v5082_v22, %v4598_v7  ;;  %v5311_v52 = vadd.f32 %v5091_v57, %v4602_v62  ;;  %v5786_v35 = vsel %vm2297_vm1, %v23381_v47, %v24463_v46  ;;  %v5795_v43 = vsel %vm2297_vm1, %v23382_v39, %v24464_v1  ;;  %v24477_v39 = vld [vmem:[#allocation41_spill] sm:$0xff] }
 0x43f   : > { %v24465_v57 = vrot.slane %v20276_v32, 2  ;;  %v24466_v7 = vrot.slane %v20331_v27, 2  ;;  %v2033_v22 = vadd.f32 %v1824_v21, %v1094_v55  ;;  %v2864_v46 = vmul.f32 %v20586_v54, %v20712_v48 }
 0x440   : > { %v6011_v28 = vadd.f32 %v5786_v35, %v5307_v14  ;;  %v6015_v63 = vadd.f32 %v5795_v43, %v5311_v52  ;;  %v24467_v49 = vrot.slane %v20261_v16, 1  ;;  %v20741_v1 = vmul.f32 %v20595_v18, %v20712_v48  ;;  %v4617_v52 = vpop.permute.xlu1 %4616  ;;  %v24474_v35 = vld [vmem:[#allocation53_spill] sm:$0xff] }
 0x441   : > { %v4165_v62 = vsel %vm2297_vm1, %v24466_v7, %v24465_v57  ;;  %v1095_v43 = vmul.f32 %v19764_v44, %v19927_v53  ;;  %v20750_v17 = vmul.f32 %v19896_v25, %v20676_v34  ;;  %v24469_v16 = vrot.slane %v20359_v31, 2 }
 0x442   : > { %v4378_v30 = vadd.f32 %v4165_v62, %v3674_v11  ;;  %v1826_v47 = vsel %vm1592_vm0, %v1823_v40, %v24467_v49  ;;  %v6119_v32 = vadd.f32 %v20118_v10, %v6011_v28  ;;  %v6123_v57 = vadd.f32 %v20118_v10, %v6015_v63  ;;  %v20771_v49 = vpop.f32.mrf.mxu3 }
 0x443   : > { %24468 = vst [vmem:[#allocation7_spill] sm:$0xff] %v20750_v17  ;;  %v2529_v40 = vsel %vm2297_vm1, %v24469_v16, %v2528_v58  ;;  %v20757_v21 = vmul.f32 %v20608_v9, %v20712_v48  ;;  %v2034_v63 = vadd.f32 %v1826_v47, %v1095_v43  ;;  %v20765_v7 = vmul.f32 %v20652_v8, %v20676_v34  ;;  %v24472_v16 = vld [vmem:[#allocation44_spill] sm:$0xff] }
 0x444   : > { %v2738_v28 = vadd.f32 %v2529_v40, %v2033_v22  ;;  %v6223_v55 = vmax.f32 %v6119_v32, 0.0  ;;  %v6227_v14 = vmax.f32 %v6123_v57, 0.0  ;;  %v20760_v53 = vadd.f32 %v20337_v42, %v4378_v30  ;;  %24470 = vst [vmem:[#allocation31_spill] sm:$0xff] %v20771_v49 }
 0x445   : > { %v20769_v62 = vmul.f32 %v20665_v26, %v20676_v34  ;;  %v1080_v42 = vmul.f32 %v19764_v44, %v19873_v19  ;;  %v20777_v47 = vmul.f32 %v20652_v8, %v4617_v52  ;;  %v24471_v30 = vrot.slane %v20264_v29, 2 }
 0x446   : > { %v2968_v22 = vadd.f32 %v2864_v46, %v2738_v28  ;;  %v6946_v57 = vmax.f32 %v6223_v55, %v6227_v14  ;;  %v1084_v40 = vmul.f32 %v19764_v44, %v24472_v16  ;;  %v24473_v11 = vrot.slane %v24449_v36, 1  ;;  %v24480_v36 = vld [vmem:[#allocation28_spill] sm:$0xff] }
 0x447   : > { %v2531_v43 = vsel %vm2297_vm1, %v2528_v58, %v24471_v30  ;;  %v24475_v46 = vrot.slane %v24474_v35, 1  ;;  %v24476_v14 = vrot.slane %v24452_v38, 1  ;;  %v24478_v29 = vrot.slane %v24477_v39, 1 }
 0x448   : > { %6963 = vmatpush.msrb.mxu2 %v6946_v57  ;;  %6989 = vmatpush.msra.mxu3 %v6946_v57  ;;  %v2739_v19 = vadd.f32 %v2531_v43, %v2034_v63  ;;  %v24479_v44 = vrot.slane %v24455_v15, 2  ;;  %v24481_v17 = vrot.slane %v24480_v36, 2  ;;  %v2850_v38 = vmul.f32 %v20586_v54, %v24472_v16  ;;  %v24485_v57 = vld [vmem:[#allocation30_spill] sm:$0xff] }
 0x449   : > { %v1793_v28 = vsel %vm1592_vm0, %v24475_v46, %v24473_v11  ;;  %v1802_v58 = vsel %vm1592_vm0, %v24478_v29, %v24476_v14  ;;  %v24482_v11 = vrot.slane %v24458_v20, 2  ;;  %v24483_v46 = vld [vmem:[#allocation40_spill] sm:$0xff]  ;;  %v3087_v15 = vmul.f32 %v20595_v18, %v24472_v16 }
 0x44a   : > { %v2019_v30 = vadd.f32 %v1793_v28, %v1080_v42  ;;  %v2023_v32 = vadd.f32 %v1802_v58, %v1084_v40  ;;  %v2498_v35 = vsel %vm2297_vm1, %v24481_v17, %v24479_v44  ;;  %v24484_v55 = vrot.slane %v24483_v46, 2 }
 0x44b   : > { %v2854_v42 = vmul.f32 %v20586_v54, %v24485_v57  ;;  %v3092_v43 = vmul.f32 %v20595_v18, %v24485_v57  ;;  %v3791_v40 = vmul.f32 %v20608_v9, %v24472_v16  ;;  %v3796_v28 = vmul.f32 %v20608_v9, %v24485_v57 }
 0x44c   : > { %v2507_v63 = vsel %vm2297_vm1, %v24484_v55, %v24482_v11  ;;  %v2724_v39 = vadd.f32 %v2498_v35, %v2019_v30  ;;  %v24486_v55 = vld [vmem:[#allocation26_spill] sm:$0xff]  ;;  %v24488_v29 = vrot.slane %v20741_v1, 1  ;;  %v3435_v44 = vrot.slane %v3087_v15, 1  ;;  %v24489_v35 = vld [vmem:[#allocation21_spill] sm:$0xff] }
 0x44d   : > { %v2728_v20 = vadd.f32 %v2507_v63, %v2023_v32  ;;  %v24487_v14 = vrot.slane %v24486_v55, 1  ;;  %v3444_v36 = vrot.slane %v3092_v43, 1  ;;  %v2969_v11 = vadd.f32 %v24489_v35, %v2739_v19  ;;  %v20839_v43 = vpop.f32.mrf.mxu2 }
 0x44e   : > { %v2954_v30 = vadd.f32 %v2850_v38, %v2724_v39  ;;  %v4139_v17 = vrot.slane %v3791_v40, 2  ;;  %v4148_v32 = vrot.slane %v3796_v28, 2  ;;  %v24490_v63 = vrot.slane %v20599_v13, 1 }
 0x44f   : > { %v3468_v58 = vsel %vm1592_vm0, %v24488_v29, %v24487_v14  ;;  %v2958_v46 = vadd.f32 %v2854_v42, %v2728_v20  ;;  %v24491_v27 = vrot.slane %v20603_v33, 1  ;;  %v4493_v49 = vmul.f32 %v19896_v25, %v24485_v57  ;;  %v20841_v33 = vpop.f32.mrf.mxu3 }
 0x450   : > { %v3437_v16 = vsel %vm1592_vm0, %v3435_v44, %v24490_v63  ;;  %v4730_v38 = vmul.f32 %v20652_v8, %v24485_v57  ;;  %v24492_v19 = vrot.slane %v20612_v50, 2  ;;  %v4497_v13 = vmul.f32 %v19896_v25, %v20614_v60  ;;  %v4402_v50 = vpop.permute.xlu0 %4401 }
 0x451   : > { %v3446_v51 = vsel %vm1592_vm0, %v3444_v36, %v24491_v27  ;;  %v3663_v39 = vadd.f32 %v3437_v16, %v2954_v30  ;;  %v24493_v27 = vrot.slane %v20620_v24, 2  ;;  %v4735_v40 = vmul.f32 %v20652_v8, %v20614_v60 }
 0x452   : > { %v3667_v15 = vadd.f32 %v3446_v51, %v2958_v46  ;;  %v4141_v42 = vsel %vm2297_vm1, %v4139_v17, %v24492_v19  ;;  %v5078_v28 = vrot.slane %v4730_v38, 1  ;;  %v5434_v51 = vmul.f32 %v20665_v26, %v24485_v57  ;;  %v24494_v17 = vld [vmem:[#allocation33_spill] sm:$0xff] }
 0x453   : > { %v4150_v20 = vsel %vm2297_vm1, %v4148_v32, %v24493_v27  ;;  %v24495_v14 = vrot.slane %v24494_v17, 1  ;;  %v24496_v29 = vrot.slane %v24486_v55, 1  ;;  %v4367_v44 = vadd.f32 %v4141_v42, %v3663_v39  ;;  %v20863_v17 = vpop.f32.mrf.mxu0 }
 0x454   : > { %v4371_v36 = vadd.f32 %v4150_v20, %v3667_v15  ;;  %v5439_v24 = vmul.f32 %v20665_v26, %v20614_v60  ;;  %v20858_v35 = vmul.f32 %v20665_v26, %v4617_v52  ;;  %v24497_v46 = vrot.slane %v20656_v56, 1  ;;  %v24498_v15 = vld [vmem:[#allocation14_spill] sm:$0xff] }
 0x455   : > { %v3470_v30 = vsel %vm1592_vm0, %v24496_v29, %v24495_v14  ;;  %v5087_v63 = vrot.slane %v4735_v40, 1  ;;  %v5782_v16 = vrot.slane %v5434_v51, 2  ;;  %v3677_v38 = vadd.f32 %v3468_v58, %v2968_v22  ;;  %v13173_v29 = vld [vmem:[%s22812_s1 + $0x1] ss:$0 sm:$0xff] }
 0x456   : > { %v5080_v32 = vsel %vm1592_vm0, %v5078_v28, %v24497_v46  ;;  %v4597_v19 = vadd.f32 %v4493_v49, %v4367_v44  ;;  %v4601_v27 = vadd.f32 %v4497_v13, %v4371_v36  ;;  %v5791_v55 = vrot.slane %v5439_v24, 2 }
 0x457   : > { %v3678_v39 = vadd.f32 %v3470_v30, %v2969_v11  ;;  %v24499_v42 = vrot.slane %v24498_v15, 2  ;;  %v24500_v20 = vrot.slane %v20334_v5, 2  ;;  %v4748_v14 = vmul.f32 %v20652_v8, %v4402_v50  ;;  %v20904_v15 = vpop.f32.mrf.mxu2 }
 0x458   : > { %v24501_v56 = vrot.slane %v20660_v23, 1  ;;  %v4508_v22 = vmul.f32 %v19896_v25, %v4402_v50  ;;  %v5306_v49 = vadd.f32 %v5080_v32, %v4597_v19  ;;  %v24502_v13 = vrot.slane %v20669_v59, 2 }
 0x459   : > { %v4174_v52 = vsel %vm2297_vm1, %v24500_v20, %v24499_v42  ;;  %v24503_v28 = vrot.slane %v20673_v61, 2  ;;  %v1457_v23 = vmul.f32 %v13173_v29, %v20614_v60  ;;  %v1458_v30 = vmul.f32 %v13173_v29, %v24460_v0 }
 0x45a   : > { %v5089_v40 = vsel %vm1592_vm0, %v5087_v63, %v24501_v56  ;;  %v5784_v11 = vsel %vm2297_vm1, %v5782_v16, %v24502_v13  ;;  %v2162_v25 = vmul.f32 %v20691_v4, %v20614_v60  ;;  %v20889_v44 = vmul.f32 %v20665_v26, %v4402_v50 }
 0x45b   : > { %v5310_v58 = vadd.f32 %v5089_v40, %v4601_v27  ;;  %v5793_v51 = vsel %vm2297_vm1, %v5791_v55, %v24503_v28  ;;  %v6010_v59 = vadd.f32 %v5784_v11, %v5306_v49  ;;  %v20893_v61 = vmul.f32 %v20691_v4, %v24460_v0  ;;  %v20900_v27 = vld [vmem:[%s22812_s1] ss:$0 sm:$0xff]  ;;  %v20906_v4 = vpop.f32.mrf.mxu3 }
 0x45c   : > { %v4382_v24 = vadd.f32 %v4174_v52, %v3678_v39  ;;  %v5110_v46 = vrot.slane %v4748_v14, 1  ;;  %v1818_v32 = vrot.slane %v1457_v23, 1  ;;  %v1819_v63 = vrot.slane %v1458_v30, 1  ;;  %v20911_v39 = vld [vmem:[%s22812_s1 + $0x6] ss:$0 sm:$0xff] }
 0x45d   : > { %v6014_v36 = vadd.f32 %v5793_v51, %v5310_v58  ;;  %v6118_v16 = vadd.f32 %v20118_v10, %v6010_v59  ;;  %v1092_v50 = vmul.f32 %v20900_v27, %v20614_v60  ;;  %v2523_v55 = vrot.slane %v2162_v25, 2 }
 0x45e   : > { %v20915_v42 = vmul.f32 %v20911_v39, %v20712_v48  ;;  %v20919_v20 = vmul.f32 %v20652_v8, %v20712_v48  ;;  %v4612_v52 = vadd.f32 %v4508_v22, %v4382_v24  ;;  %v1820_v14 = vsel %vm1592_vm0, %v1818_v32, %v1819_v63 }
 0x45f   : > { %v6122_v19 = vadd.f32 %v20118_v10, %v6014_v36  ;;  %v6222_v56 = vmax.f32 %v6118_v16, 0.0  ;;  %v2031_v49 = vadd.f32 %v1820_v14, %v1092_v50  ;;  %v2524_v58 = vrot.slane %v20893_v61, 2  ;;  %v6311_v36 = vpop.f32.mrf.mxu0  ;;  %v24508_v16 = vld [vmem:[#allocation37_spill] sm:$0xff] }
 0x460   : > { %v20925_v13 = vmul.f32 %v20665_v26, %v20712_v48  ;;  %v5816_v11 = vrot.slane %v20858_v35, 2  ;;  %v24504_v28 = vrot.slane %v20334_v5, 2  ;;  %v24505_v51 = vrot.slane %v20757_v21, 2  ;;  %v12783_v48 = vld [vmem:[%s22814_s3 + $0x78] sm:$0xff] }
 0x461   : > { %v6226_v40 = vmax.f32 %v6122_v19, 0.0  ;;  %v24506_v22 = vrot.slane %v20777_v47, 1  ;;  %v5814_v25 = vrot.slane %v20889_v44, 2  ;;  %v12775_v5 = vld [vmem:[%s22814_s3 + $0x38] sm:$0xff]  ;;  %v2525_v35 = vsel %vm2297_vm1, %v2523_v55, %v2524_v58 }
 0x462   : > { %v4172_v29 = vsel %vm2297_vm1, %v24505_v51, %v24504_v28  ;;  %v20946_v47 = vmul.f32 %v20608_v9, %v20676_v34  ;;  %v2736_v61 = vadd.f32 %v2525_v35, %v2031_v49  ;;  %v24507_v44 = vrot.slane %v20355_v6, 1  ;;  %v24511_v6 = vld [vmem:[#allocation17_spill] sm:$0xff]  ;;  %v24513_v28 = vld [vmem:[#allocation46_spill] sm:$0xff]  ;;  %v24515_v35 = vld [vmem:[#allocation27_spill] sm:$0xff] }
 0x463   : > { %v5113_v23 = vsel %vm1592_vm0, %v5110_v46, %v24506_v22  ;;  %v4381_v30 = vadd.f32 %v4172_v29, %v3677_v38  ;;  %v6945_v59 = vmax.f32 %v6222_v56, %v6226_v40  ;;  %v1093_v38 = vmul.f32 %v20900_v27, %v24460_v0  ;;  %v24510_v40 = vld [vmem:[#allocation8_spill] sm:$0xff]  ;;  %v12782_v29 = vld [vmem:[%s22814_s3 + $0x70] sm:$0xff] }
 0x464   : > { %v1822_v24 = vsel %vm1592_vm0, %v1819_v63, %v24507_v44  ;;  %v24509_v19 = vrot.slane %v24508_v16, 1  ;;  %v5321_v55 = vadd.f32 %v5113_v23, %v4612_v52  ;;  %v20958_v14 = vmax.f32 %v6311_v36, %v20680_v41  ;;  %v24512_v63 = vld [vmem:[#allocation58_spill] sm:$0xff]  ;;  %v4387_v23 = vpop.permute.xlu1 %4386 }
 0x465   : > { %6964 = vmatpush.msrb.mxu2 %v6945_v59  ;;  %6990 = vmatpush.msra.mxu3 %v6945_v59  ;;  %v2862_v49 = vmul.f32 %v20586_v54, %v24512_v63  ;;  %v2032_v52 = vadd.f32 %v1822_v24, %v1093_v38  ;;  %v4611_v51 = vadd.f32 %v24513_v28, %v4381_v30  ;;  %v12774_v22 = vld [vmem:[%s22814_s3 + $0x30] sm:$0xff]  ;;  %v24514_v59 = vrot.slane %v20716_v3, 1  ;;  %v4392_v24 = vpop.permute.xlu0 %4391 }
 0x466   : > { %v5111_v50 = vsel %vm1592_vm0, %v24509_v19, %v5110_v46  ;;  %11114 = vmatmul.msk.f32.vlgmr.msrb.gmra.mxu2 %vm6281_vm2, %v24510_v40  ;;  %11116 = vmatmul.msk.f32.vlgmr.msra.gmra.mxu3 %vm6281_vm2, %v24511_v6  ;;  %v3806_v46 = vmul.f32 %v20608_v9, %v24512_v63  ;;  %v24516_v36 = vrot.slane %v24515_v35, 1  ;;  %v2863_v30 = vmul.f32 %v20586_v54, %v20676_v34  ;;  %v24518_v56 = vld [vmem:[#allocation62_spill] sm:$0xff]  ;;  %v20996_v34 = vpop.f32.mrf.mxu2 }
 0x467   : > { %7276 = vmatpush.bf16.msra.mxu2 %v12783_v48  ;;  %7386 = vmatpush.bf16.msrb.mxu3 %v12775_v5  ;;  %v5817_v48 = vsel %vm2297_vm1, %v5814_v25, %v5816_v11  ;;  %v4167_v5 = vrot.slane %v20946_v47, 2  ;;  %v2966_v44 = vadd.f32 %v2862_v49, %v2736_v61  ;;  %v24517_v19 = vrot.slane %v20359_v31, 2  ;;  %v20998_v11 = vpop.f32.mrf.mxu3 }
 0x468   : > { %v3464_v38 = vsel %vm1592_vm0, %v24516_v36, %v24514_v59  ;;  %v20989_v28 = vadd.f32 %v5111_v50, %v4611_v51  ;;  %v24519_v32 = vrot.slane %v24518_v56, 2  ;;  %v6025_v59 = vadd.f32 %v5817_v48, %v5321_v55  ;;  %v12781_v55 = vld [vmem:[%s22814_s3 + $0x68] sm:$0xff] }
 0x469   : > { %v2527_v63 = vsel %vm2297_vm1, %v2524_v58, %v24517_v19  ;;  %v3675_v47 = vadd.f32 %v3464_v38, %v2966_v44  ;;  %v4166_v61 = vrot.slane %v3806_v46, 2  ;;  %v4505_v49 = vmul.f32 %v20911_v39, %v4387_v23  ;;  %v12773_v46 = vld [vmem:[%s22814_s3 + $0x28] sm:$0xff] }
 0x46a   : > { %v20994_v35 = vsel %vm2297_vm1, %v24519_v32, %v5814_v25  ;;  %v2737_v36 = vadd.f32 %v2527_v63, %v2032_v52  ;;  %v4745_v31 = vmul.f32 %v20652_v8, %v4387_v23  ;;  %v21004_v50 = vmul.f32 %v20665_v26, %v4387_v23  ;;  %v24522_v38 = vld [vmem:[#allocation22_spill] sm:$0xff] }
 0x46b   : > { %7277 = vmatpush.bf16.msra.mxu2 %v12782_v29  ;;  %7387 = vmatpush.bf16.msrb.mxu3 %v12774_v22  ;;  %v4746_v32 = vmul.f32 %v20652_v8, %v4392_v24  ;;  %v4168_v52 = vsel %vm2297_vm1, %v4166_v61, %v4167_v5  ;;  %v24520_v51 = vrot.slane %v20741_v1, 1  ;;  %v24521_v29 = vrot.slane %v20716_v3, 1  ;;  %v24525_v61 = vld [vmem:[#allocation29_spill] sm:$0xff] }
 0x46c   : > { %v2967_v25 = vadd.f32 %v2863_v30, %v2737_v36  ;;  %v4506_v23 = vmul.f32 %v20911_v39, %v4392_v24  ;;  %v24523_v8 = vrot.slane %v24522_v38, 1  ;;  %v24524_v30 = vrot.slane %v20340_v45, 1  ;;  %v24526_v39 = vld [vmem:[#allocation6_spill] sm:$0xff] }
 0x46d   : > { %v3466_v22 = vsel %vm1592_vm0, %v24521_v29, %v24520_v51  ;;  %v21026_v44 = vmul.f32 %v20665_v26, %v4392_v24  ;;  %v6133_v63 = vadd.f32 %v20118_v10, %v6025_v59  ;;  %v1090_v3 = vmul.f32 %v20900_v27, %v24439_v12  ;;  %v24527_v51 = vld [vmem:[#allocation11_spill] sm:$0xff] }
 0x46e   : > { %v5104_v48 = vsel %vm1592_vm0, %v24524_v30, %v24523_v8  ;;  %v4379_v1 = vadd.f32 %v4168_v52, %v3675_v47  ;;  %v5105_v36 = vrot.slane %v4745_v31, 1  ;;  %11115 = vmatmul.msk.f32.gmra.mxu2 %vm6281_vm2, %v24525_v61  ;;  %11117 = vmatmul.msk.f32.gmra.mxu3 %vm6281_vm2, %v24526_v39  ;;  %v24528_v29 = vrot.slane %v24527_v51, 2  ;;  %v24532_v10 = vld [vmem:[#allocation51_spill] sm:$0xff]  ;;  %v12780_v52 = vld [vmem:[%s22814_s3 + $0x60] sm:$0xff]  ;;  %v21080_v6 = vpop.f32.mrf.mxu2 }
 0x46f   : > { %v5317_v19 = vadd.f32 %v5104_v48, %v20760_v53  ;;  %v24529_v26 = vrot.slane %v20351_v2, 2  ;;  %v24530_v53 = vld [vmem:[#allocation55_spill] sm:$0xff]  ;;  %v24533_v59 = vrot.slane %v24532_v10, 1  ;;  %v3676_v47 = vadd.f32 %v3466_v22, %v2967_v25  ;;  %7278 = vmatpush.bf16.msra.mxu2 %v12781_v55  ;;  %7388 = vmatpush.bf16.msrb.mxu3 %v12773_v46  ;;  %v12772_v8 = vld [vmem:[%s22814_s3 + $0x20] sm:$0xff]  ;;  %v6314_v22 = vpop.f32.mrf.mxu0 }
 0x470   : > { %v24531_v38 = vrot.slane %v24530_v53, 1  ;;  %v5106_v31 = vrot.slane %v4746_v32, 1  ;;  %v24534_v51 = vld [vmem:[#allocation47_spill] sm:$0xff]  ;;  %v2860_v25 = vmul.f32 %v20586_v54, %v20207_v37  ;;  %v21061_v32 = vmul.f32 %v20595_v18, %v20207_v37 }
 0x471   : > { %v5808_v24 = vsel %vm2297_vm1, %v24529_v26, %v24528_v29  ;;  %v24535_v29 = vrot.slane %v24534_v51, 2  ;;  %v24536_v26 = vld [vmem:[#allocation24_spill] sm:$0xff]  ;;  %v21065_v55 = vmul.f32 %v20608_v9, %v20207_v37  ;;  %v4609_v51 = vadd.f32 %v4505_v49, %v4379_v1 }
 0x472   : > { %v1815_v12 = vsel %vm1592_vm0, %v24533_v59, %v24531_v38  ;;  %v6021_v30 = vadd.f32 %v5808_v24, %v5317_v19  ;;  %v24537_v53 = vrot.slane %v24536_v26, 2  ;;  %v6343_v19 = vpop.f32.mrf.mxu1  ;;  %v6237_v59 = vmax.f32 %v6133_v63, 0.0  ;;  %v21082_v63 = vpop.f32.mrf.mxu3 }
 0x473   : > { %v2029_v48 = vadd.f32 %v1815_v12, %v1090_v3  ;;  %v21071_v3 = vld [vmem:[%s22813_s2] ss:$0 sm:$0xff]  ;;  %v3456_v37 = vrot.slane %v21061_v32, 1  ;;  %v4160_v58 = vrot.slane %v21065_v55, 2  ;;  %v5107_v46 = vsel %vm1592_vm0, %v5105_v36, %v5106_v31  ;;  %7279 = vmatpush.bf16.msra.mxu2 %v12780_v52  ;;  %7389 = vmatpush.bf16.msrb.mxu3 %v12772_v8  ;;  %v12779_v36 = vld [vmem:[%s22814_s3 + $0x58] sm:$0xff]  ;;  %v24541_v52 = vld [vmem:[#allocation42_spill] sm:$0xff] }
 0x474   : > { %v2520_v38 = vsel %vm2297_vm1, %v24537_v53, %v24535_v29  ;;  %v6129_v24 = vadd.f32 %v21071_v3, %v6021_v30  ;;  %v24538_v29 = vrot.slane %v20757_v21, 2  ;;  %v24539_v49 = vrot.slane %v24508_v16, 1 }
 0x475   : > { %v2734_v12 = vadd.f32 %v2520_v38, %v2029_v48  ;;  %v21091_v30 = vmax.f32 %v20863_v17, %v6343_v19  ;;  %v24542_v8 = vrot.slane %v24541_v52, 1  ;;  %v24544_v38 = vrot.slane %v21026_v44, 2 }
 0x476   : > { %v4170_v53 = vsel %vm2297_vm1, %v4167_v5, %v24538_v29  ;;  %v6233_v39 = vmax.f32 %v6129_v24, 0.0  ;;  %v5109_v21 = vsel %vm1592_vm0, %v5106_v31, %v24539_v49  ;;  %v24540_v5 = vld [vmem:[#allocation31_spill] sm:$0xff]  ;;  %v24543_v31 = vrot.slane %v24518_v56, 2 }
 0x477   : > { %v4380_v41 = vadd.f32 %v4170_v53, %v3676_v47  ;;  %v2964_v61 = vadd.f32 %v2860_v25, %v2734_v12  ;;  %v21088_v1 = vmax.f32 %v6314_v22, %v24540_v5  ;;  %v12771_v47 = vld [vmem:[%s22814_s3 + $0x18] sm:$0xff]  ;;  %v3459_v16 = vsel %vm1592_vm0, %v3456_v37, %v24542_v8  ;;  %7280 = vmatpush.bf16.msra.mxu2 %v12779_v36 }
 0x478   : > { %v5813_v17 = vsel %vm2297_vm1, %v24544_v38, %v24543_v31  ;;  %v7007_v25 = vmax.f32 %v6233_v39, %v6237_v59  ;;  %v7124_v22 = vrot.slane %v20958_v14, 1  ;;  %v21108_v19 = vadd.f32 %v5107_v46, %v4609_v51  ;;  %v24546_v12 = vld [vmem:[#allocation23_spill] sm:$0xff]  ;;  %7390 = vmatpush.bf16.msrb.mxu3 %v12771_v47 }
 0x479   : > { %v4610_v48 = vadd.f32 %v4506_v23, %v4380_v41  ;;  %v3673_v32 = vadd.f32 %v3459_v16, %v2964_v61  ;;  %v24545_v24 = vmov 0.0   ;;  %v24547_v29 = vrot.slane %v24546_v12, 2  ;;  %v24548_v41 = vld [vmem:[#allocation18_spill] sm:$0xff]  ;;  %v24550_v51 = vld [vmem:[#allocation35_spill] sm:$0xff] }
 0x47a   : > { %6971 = vmatmul.f32.gmra.mxu2 %v24545_v24  ;;  %6997 = vmatmul.f32.gmra.mxu3 %v24545_v24  ;;  %v1089_v23 = vmul.f32 %v20900_v27, %v24548_v41  ;;  %v5809_v39 = vrot.slane %v21004_v50, 2  ;;  %v6024_v46 = vadd.f32 %v20994_v35, %v20989_v28  ;;  %v24549_v59 = vrot.slane %v24532_v10, 1  ;;  %v12778_v28 = vld [vmem:[%s22814_s3 + $0x50] sm:$0xff] }
 0x47b   : > { %v4163_v56 = vsel %vm2297_vm1, %v4160_v58, %v24547_v29  ;;  %7020 = vmatpush.msra.mxu0 %v7007_v25  ;;  %7046 = vmatpush.msra.mxu1 %v7007_v25  ;;  %v24551_v53 = vrot.slane %v24550_v51, 1  ;;  %v7126_v5 = vrot.slane %v21088_v1, 1  ;;  %v24552_v52 = vrot.slane %v20340_v45, 1  ;;  %v12770_v35 = vld [vmem:[%s22814_s3 + $0x10] sm:$0xff] }
 0x47c   : > { %v4377_v61 = vadd.f32 %v4163_v56, %v3673_v32  ;;  %v24553_v8 = vrot.slane %v20919_v20, 1  ;;  %v3098_v31 = vmul.f32 %v20595_v18, %v24460_v0  ;;  %v5319_v36 = vadd.f32 %v5109_v21, %v4610_v48  ;;  %v24555_v38 = vld [vmem:[#allocation43_spill] sm:$0xff]  ;;  %7281 = vmatpush.bf16.msra.mxu2 %v12778_v28  ;;  %7391 = vmatpush.bf16.msrb.mxu3 %v12770_v35 }
 0x47d   : > { %v1813_v49 = vsel %vm1592_vm0, %v24551_v53, %v24549_v59  ;;  %v24554_v45 = vrot.slane %v24536_v26, 2  ;;  %v24556_v25 = vrot.slane %v24555_v38, 2  ;;  %v3802_v12 = vmul.f32 %v20608_v9, %v24460_v0 }
 0x47e   : > { %v5102_v16 = vsel %vm1592_vm0, %v24553_v8, %v24552_v52  ;;  %v2028_v10 = vadd.f32 %v1813_v49, %v1089_v23  ;;  %v4607_v47 = vadd.f32 %v20915_v42, %v4377_v61  ;;  %v2859_v56 = vmul.f32 %v20586_v54, %v24460_v0 }
 0x47f   : > { %v2518_v32 = vsel %vm2297_vm1, %v24556_v25, %v24554_v45  ;;  %v3454_v41 = vrot.slane %v3098_v31, 1  ;;  %v1088_v23 = vmul.f32 %v20900_v27, %v24485_v57  ;;  %v24557_v42 = vrot.slane %v20351_v2, 2  ;;  %v12777_v2 = vld [vmem:[%s22814_s3 + $0x48] sm:$0xff]  ;;  %v21182_v45 = vpop.f32.mrf.mxu3 }
 0x480   : > { %v2733_v29 = vadd.f32 %v2518_v32, %v2028_v10  ;;  %v5316_v21 = vadd.f32 %v5102_v16, %v4607_v47  ;;  %v24558_v26 = vrot.slane %v20925_v13, 2  ;;  %v6132_v61 = vadd.f32 %v21071_v3, %v6024_v46  ;;  %v12769_v46 = vld [vmem:[%s22814_s3 + $0x8] sm:$0xff]  ;;  %v24563_v10 = vld [vmem:[#allocation15_spill] sm:$0xff]  ;;  %v21180_v47 = vpop.f32.mrf.mxu2  ;;  %v21184_v32 = vpop.f32.mrf.mxu0  ;;  %7282 = vmatpush.bf16.msra.mxu2 %v12777_v2 }
 0x481   : > { %v24559_v59 = vmov %v24551_v53  ;;  %v24560_v53 = vld [vmem:[#allocation19_spill] sm:$0xff]  ;;  %v3457_v57 = vsel %vm1592_vm0, %v3454_v41, %v3456_v37  ;;  %v4158_v27 = vrot.slane %v3802_v12, 2  ;;  %v24562_v16 = vmov %v24556_v25  ;;  %v21186_v12 = vpop.f32.mrf.mxu1  ;;  %7392 = vmatpush.bf16.msrb.mxu3 %v12769_v46 }
 0x482   : > { %v5806_v48 = vsel %vm2297_vm1, %v24558_v26, %v24557_v42  ;;  %v24561_v49 = vrot.slane %v24560_v53, 1  ;;  %v2963_v0 = vadd.f32 %v2859_v56, %v2733_v29  ;;  %v24564_v31 = vrot.slane %v24563_v10, 2 }
 0x483   : > { %v6020_v51 = vadd.f32 %v5806_v48, %v5316_v21  ;;  %v2858_v37 = vmul.f32 %v20586_v54, %v20614_v60  ;;  %v3097_v35 = vmul.f32 %v20595_v18, %v20614_v60  ;;  %v6023_v25 = vadd.f32 %v5813_v17, %v5319_v36  ;;  %v12776_v48 = vld [vmem:[%s22814_s3 + $0x40] sm:$0xff] }
 0x484   : > { %v1811_v52 = vsel %vm1592_vm0, %v24561_v49, %v24559_v59  ;;  %v2516_v28 = vsel %vm2297_vm1, %v24564_v31, %v24562_v16  ;;  %v3672_v38 = vadd.f32 %v3457_v57, %v2963_v0  ;;  %v3801_v56 = vmul.f32 %v20608_v9, %v20614_v60  ;;  %v12768_v9 = vld [vmem:[%s22814_s3] sm:$0xff]  ;;  %v24568_v57 = vld [vmem:[#allocation7_spill] sm:$0xff]  ;;  %7283 = vmatpush.bf16.msra.mxu2 %v12776_v48 }
 0x485   : > { %v2027_v8 = vadd.f32 %v1811_v52, %v1088_v23  ;;  %v6128_v23 = vadd.f32 %v21071_v3, %v6020_v51  ;;  %v6236_v54 = vmax.f32 %v6132_v61, 0.0  ;;  %v4161_v18 = vsel %vm2297_vm1, %v4158_v27, %v4160_v58  ;;  %7393 = vmatpush.bf16.msrb.mxu3 %v12768_v9  ;;  %v24572_v31 = vld [vmem:[#allocation57_spill] sm:$0xff] }
 0x486   : > { %v3453_v21 = vrot.slane %v3097_v35, 1  ;;  %v7123_v42 = vrot.slane %v21091_v30, 1  ;;  %v4376_v17 = vadd.f32 %v4161_v18, %v3672_v38  ;;  %v4157_v26 = vrot.slane %v3801_v56, 2 }
 0x487   : > { %v2732_v29 = vadd.f32 %v2516_v28, %v2027_v8  ;;  %v7063_v60 = vpack.c.bf16 %v20958_v14, %v21091_v30  ;;  %v6232_v58 = vmax.f32 %v6128_v23, 0.0  ;;  %v24565_v55 = vrot.slane %v20919_v20, 1 }
 0x488   : > { %v24566_v61 = vrot.slane %v20765_v7, 1  ;;  %v3455_v53 = vsel %vm1592_vm0, %v3453_v21, %v3454_v41  ;;  %v24567_v49 = vrot.slane %v21026_v44, 2  ;;  %v7127_v0 = vsel %vm1592_vm0, %v7124_v22, %v7126_v5  ;;  %v21236_v56 = vpop.f32.mrf.mxu2  ;;  %v6438_v21 = vpop.f32.mrf.mxu0 }
 0x489   : > { %v2962_v36 = vadd.f32 %v2858_v37, %v2732_v29  ;;  %v4606_v2 = vadd.f32 %v24568_v57, %v4376_v17  ;;  %v7006_v8 = vmax.f32 %v6232_v58, %v6236_v54  ;;  %v6131_v51 = vadd.f32 %v21071_v3, %v6023_v25  ;;  %v24574_v25 = vld [vmem:[#allocation56_spill] sm:$0xff]  ;;  %v24575_v29 = vld [vmem:[#allocation10_spill] sm:$0xff]  ;;  %7394 = vmatmul.bf16.vlgmr.msrb.gmra.mxu3 %v7063_v60 }
 0x48a   : > { %v5100_v59 = vsel %vm1592_vm0, %v24566_v61, %v24565_v55  ;;  %v5811_v52 = vsel %vm2297_vm1, %v5809_v39, %v24567_v49  ;;  %v4159_v41 = vsel %vm2297_vm1, %v4157_v26, %v4158_v27  ;;  %v7125_v50 = vsel %vm1592_vm0, %v7123_v42, %v7124_v22  ;;  %v6464_v42 = vpop.f32.mrf.mxu1  ;;  %v12798_v57 = vld [vmem:[%s22814_s3 + $0xf0] sm:$0xff] }
 0x48b   : > { %v3671_v46 = vadd.f32 %v3455_v53, %v2962_v36  ;;  %v6022_v20 = vadd.f32 %v5811_v52, %v21108_v19  ;;  %v5315_v16 = vadd.f32 %v5100_v59, %v4606_v2  ;;  %7021 = vmatpush.msra.mxu0 %v7006_v8  ;;  %7047 = vmatpush.msra.mxu1 %v7006_v8  ;;  %v24569_v39 = vrot.slane %v20925_v13, 2  ;;  %v21238_v13 = vpop.f32.mrf.mxu3 }
 0x48c   : > { %v24570_v5 = vrot.slane %v20769_v62, 2  ;;  %v24571_v10 = vmov %v24566_v61  ;;  %v24573_v27 = vrot.slane %v24572_v31, 1  ;;  %v7200_v37 = vpack.c.bf16 %v7127_v0, %v7125_v50  ;;  %v12790_v0 = vld [vmem:[%s22814_s3 + $0xb0] sm:$0xff] }
 0x48d   : > { %v4375_v44 = vadd.f32 %v4159_v41, %v3671_v46  ;;  %v5800_v22 = vrot.slane %v24575_v29, 2  ;;  %v6235_v54 = vmax.f32 %v6131_v51, 0.0  ;;  %v6130_v18 = vadd.f32 %v21071_v3, %v6022_v20  ;;  %v24577_v20 = vld [vmem:[#allocation17_spill] sm:$0xff]  ;;  %v12786_v29 = vld [vmem:[%s22814_s3 + $0x90] sm:$0xff] }
 0x48e   : > { %v5804_v19 = vsel %vm2297_vm1, %v24570_v5, %v24569_v39  ;;  %v5098_v28 = vsel %vm1592_vm0, %v24573_v27, %v24571_v10  ;;  %7284 = vmatmul.bf16.vlgmr.msra.gmra.mxu2 %v7200_v37  ;;  %v24576_v17 = vmov %v24570_v5  ;;  %v21247_v9 = vmax.f32 %v20839_v43, %v20841_v33  ;;  %v12789_v41 = vld [vmem:[%s22814_s3 + $0xa8] sm:$0xff]  ;;  %v12788_v5 = vld [vmem:[%s22814_s3 + $0xa0] sm:$0xff] }
 0x48f   : > { %v6019_v35 = vadd.f32 %v5804_v19, %v5315_v16  ;;  %v4605_v38 = vadd.f32 %v24574_v25, %v4375_v44  ;;  %v5802_v36 = vsel %vm2297_vm1, %v5800_v22, %v24576_v17  ;;  %v21251_v60 = vmax.f32 %v20904_v15, %v20906_v4  ;;  %v12791_v15 = vld [vmem:[%s22814_s3 + $0xb8] sm:$0xff]  ;;  %v12797_v16 = vld [vmem:[%s22814_s3 + $0xe8] sm:$0xff]  ;;  %v12796_v19 = vld [vmem:[%s22814_s3 + $0xe0] sm:$0xff] }
 0x490   : > { %v21255_v58 = vmax.f32 %v20996_v34, %v20998_v11  ;;  %v6234_v62 = vmax.f32 %v6130_v18, 0.0  ;;  %v7128_v53 = vrot.slane %v21247_v9, 1  ;;  %v12799_v4 = vld [vmem:[%s22814_s3 + $0xf8] sm:$0xff]  ;;  %v21267_v11 = vpop.f32.mrf.mxu2  ;;  %v6441_v49 = vpop.f32.mrf.mxu0  ;;  %v21303_v50 = vmax.f32 %v21184_v32, %v21186_v12  ;;  %v24578_v32 = vld [vmem:[#allocation29_spill] sm:$0xff]  ;;  %v24579_v12 = vld [vmem:[#allocation6_spill] sm:$0xff] }
 0x491   : > { %v6127_v23 = vadd.f32 %v21071_v3, %v6019_v35  ;;  %v5314_v7 = vadd.f32 %v5098_v28, %v4605_v38  ;;  %v7129_v43 = vrot.slane %v21251_v60, 1  ;;  %v21287_v51 = vpack.c.bf16 %v21251_v60, %v21247_v9  ;;  %v12787_v25 = vld [vmem:[%s22814_s3 + $0x98] sm:$0xff]  ;;  %v12794_v22 = vld [vmem:[%s22814_s3 + $0xd0] sm:$0xff] }
 0x492   : > { %v7131_v33 = vrot.slane %v21255_v58, 1  ;;  %v6467_v52 = vpop.f32.mrf.mxu1  ;;  %v21305_v39 = vmax.f32 %v6438_v21, %v6464_v42  ;;  %v7133_v28 = vrot.slane %v21303_v50, 1  ;;  %v12795_v38 = vld [vmem:[%s22814_s3 + $0xd8] sm:$0xff] }
 0x493   : > { %v6231_v26 = vmax.f32 %v6127_v23, 0.0  ;;  %v6018_v48 = vadd.f32 %v5802_v36, %v5314_v7  ;;  %v7130_v2 = vsel %vm1592_vm0, %v7128_v53, %v7129_v43  ;;  %v21313_v10 = vmax.f32 %v6441_v49, %v6467_v52 }
 0x494   : > { %v7132_v46 = vsel %vm1592_vm0, %v7129_v43, %v7131_v33  ;;  %v7134_v37 = vrot.slane %v21305_v39, 1  ;;  %v21350_v36 = vpack.c.bf16 %v21305_v39, %v21303_v50  ;;  %v21369_v53 = vmax.f32 %v21180_v47, %v21182_v45 }
 0x495   : > { %v7005_v55 = vmax.f32 %v6231_v26, %v6235_v54  ;;  %v6126_v61 = vadd.f32 %v21071_v3, %v6018_v48  ;;  %v21269_v3 = vpop.f32.mrf.mxu3  ;;  %v21283_v8 = vpack.c.bf16 %v7132_v46, %v7130_v2  ;;  %v7136_v35 = vrot.slane %v21313_v10, 1  ;;  %v12785_v26 = vld [vmem:[%s22814_s3 + $0x88] sm:$0xff] }
 0x496   : > { %v7135_v23 = vsel %vm1592_vm0, %v7133_v28, %v7134_v37  ;;  %v12793_v48 = vld [vmem:[%s22814_s3 + $0xc8] sm:$0xff]  ;;  %v21373_v43 = vmax.f32 %v21236_v56, %v21238_v13  ;;  %v7139_v56 = vrot.slane %v21369_v53, 1  ;;  %v7453_v46 = vrot.slane %v21247_v9, 2 }
 0x497   : > { %7022 = vmatpush.msra.mxu0 %v7005_v55  ;;  %7048 = vmatpush.msra.mxu1 %v7005_v55  ;;  %v6230_v59 = vmax.f32 %v6126_v61, 0.0  ;;  %v7137_v54 = vsel %vm1592_vm0, %v7134_v37, %v7136_v35  ;;  %v7449_v55 = vrot.slane %v20958_v14, 2  ;;  %v7451_v61 = vrot.slane %v21088_v1, 2  ;;  %v12784_v14 = vld [vmem:[%s22814_s3 + $0x80] sm:$0xff] }
 0x498   : > { %v21315_v31 = vpop.f32.mrf.mxu2  ;;  %v21346_v17 = vpack.c.bf16 %v7137_v54, %v7135_v23  ;;  %v12792_v1 = vld [vmem:[%s22814_s3 + $0xc0] sm:$0xff]  ;;  %v7141_v13 = vrot.slane %v21373_v43, 1  ;;  %v7458_v54 = vrot.slane %v21303_v50, 2 }
 0x499   : > { %v7004_v34 = vmax.f32 %v6230_v59, %v6234_v62  ;;  %7399 = vmatmul.bf16.gmra.mxu3 %v21287_v51  ;;  %v7448_v62 = vrot.slane %v21091_v30, 2  ;;  %v21365_v59 = vmax.f32 %v21080_v6, %v21082_v63  ;;  %v7452_v6 = vsel %vm2297_vm1, %v7449_v55, %v7451_v61 }
 0x49a   : > { %v21299_v44 = vpop.f32.mrf.mxu1  ;;  %v7142_v49 = vsel %vm1592_vm0, %v7139_v56, %v7141_v13  ;;  %v7464_v13 = vrot.slane %v21369_v53, 2 }
 0x49b   : > { %7023 = vmatpush.msra.mxu0 %v7004_v34  ;;  %7049 = vmatpush.msra.mxu1 %v7004_v34  ;;  %v7450_v63 = vsel %vm2297_vm1, %v7448_v62, %v7449_v55  ;;  %v7138_v45 = vrot.slane %v21365_v59, 1  ;;  %v21444_v55 = vmax.f32 %v21267_v11, %v21269_v3 }
 0x49c   : > { %11118 = vmatmul.msk.f32.vlgmr.msra.gmra.mxu0 %vm6281_vm2, %v24510_v40  ;;  %11120 = vmatmul.msk.f32.vlgmr.msra.gmra.mxu1 %vm6281_vm2, %v24577_v20  ;;  %v21297_v40 = vpop.f32.mrf.mxu0  ;;  %v7454_v20 = vrot.slane %v21251_v60, 2 }
 0x49d   : > { %7601 = vmatpush.bf16.msrb.mxu0 %v12791_v15  ;;  %7749 = vmatpush.bf16.msrb.mxu1 %v12799_v4  ;;  %v21317_v27 = vpop.f32.mrf.mxu3  ;;  %v7525_v4 = vpack.c.bf16 %v7452_v6, %v7450_v63  ;;  %v7140_v34 = vsel %vm1592_vm0, %v7138_v45, %v7139_v56  ;;  %v7463_v56 = vrot.slane %v21365_v59, 2 }
 0x49e   : > { %7289 = vmatmul.bf16.gmra.mxu2 %v21283_v8  ;;  %v21393_v52 = vpack.c.bf16 %v7142_v49, %v7140_v34  ;;  %v21448_v61 = vmax.f32 %v21315_v31, %v21317_v27 }
 0x4a0   : > { %v21342_v21 = vpop.f32.mrf.mxu2  ;;  %v7149_v11 = vrot.slane %v21448_v61, 1 }
 0x4a1   : > { %7602 = vmatpush.bf16.msrb.mxu0 %v12790_v0  ;;  %7750 = vmatpush.bf16.msrb.mxu1 %v12798_v57  ;;  %v21397_v0 = vpack.c.bf16 %v21369_v53, %v21365_v59 }
 0x4a2   : > { %v6582_v18 = vpop.f32.mrf.mxu1 }
 0x4a4   : > { %11119 = vmatmul.msk.f32.gmra.mxu0 %vm6281_vm2, %v24578_v32  ;;  %11121 = vmatmul.msk.f32.gmra.mxu1 %vm6281_vm2, %v24579_v12  ;;  %v6556_v7 = vpop.f32.mrf.mxu0  ;;  %v7455_v12 = vsel %vm2297_vm1, %v7453_v46, %v7454_v20 }
 0x4a5   : > { %7603 = vmatpush.bf16.msrb.mxu0 %v12789_v41  ;;  %7751 = vmatpush.bf16.msrb.mxu1 %v12797_v16  ;;  %v21344_v42 = vpop.f32.mrf.mxu3 }
 0x4a6   : > { %v21452_v62 = vmax.f32 %v21342_v21, %v21344_v42 }
 0x4a8   : > { %v21386_v33 = vpop.f32.mrf.mxu2  ;;  %v7151_v3 = vrot.slane %v21452_v62, 1 }
 0x4a9   : > { %7604 = vmatpush.bf16.msrb.mxu0 %v12788_v5  ;;  %7752 = vmatpush.bf16.msrb.mxu1 %v12796_v19  ;;  %v21410_v5 = vmax.f32 %v21297_v40, %v21299_v44  ;;  %v21412_v19 = vmax.f32 %v6556_v7, %v6582_v18  ;;  %v7459_v7 = vrot.slane %v21305_v39, 2  ;;  %v7461_v18 = vrot.slane %v21313_v10, 2 }
 0x4aa   : > { %7404 = vmatmul.bf16.gmra.mxu3 %v21350_v36  ;;  %v6585_v47 = vpop.f32.mrf.mxu1  ;;  %v7152_v21 = vsel %vm1592_vm0, %v7149_v11, %v7151_v3 }
 0x4ab   : > { %v7143_v60 = vrot.slane %v21410_v5, 1  ;;  %v21435_v23 = vpack.c.bf16 %v21412_v19, %v21410_v5  ;;  %v7460_v50 = vsel %vm2297_vm1, %v7458_v54, %v7459_v7  ;;  %v7462_v39 = vsel %vm2297_vm1, %v7459_v7, %v7461_v18 }
 0x4ac   : > { %7030 = vmatmul.f32.gmra.mxu0 %v24545_v24  ;;  %7056 = vmatmul.f32.gmra.mxu1 %v24545_v24  ;;  %v6559_v30 = vpop.f32.mrf.mxu0  ;;  %v21463_v31 = vpack.c.bf16 %v7462_v39, %v7460_v50  ;;  %v7468_v54 = vrot.slane %v21410_v5, 2  ;;  %v7469_v7 = vrot.slane %v21412_v19, 2 }
 0x4ad   : > { %7605 = vmatpush.bf16.msrb.mxu0 %v12787_v25  ;;  %7753 = vmatpush.bf16.msrb.mxu1 %v12795_v38  ;;  %v21388_v15 = vpop.f32.mrf.mxu3  ;;  %v21414_v32 = vmax.f32 %v6559_v30, %v6585_v47  ;;  %v21477_v30 = vpack.c.bf16 %v21448_v61, %v21444_v55 }
 0x4ae   : > { %7294 = vmatmul.bf16.gmra.mxu2 %v21346_v17  ;;  %v21524_v39 = vmax.f32 %v21386_v33, %v21388_v15  ;;  %v7470_v5 = vsel %vm2297_vm1, %v7468_v54, %v7469_v7 }
 0x4af   : > { %v7146_v28 = vrot.slane %v21414_v32, 1  ;;  %v7471_v18 = vrot.slane %v21414_v32, 2 }
 0x4b0   : > { %v21404_v41 = vpop.f32.mrf.mxu2  ;;  %v7158_v32 = vrot.slane %v21524_v39, 1 }
 0x4b1   : > { %7606 = vmatpush.bf16.msrb.mxu0 %v12786_v29  ;;  %7754 = vmatpush.bf16.msrb.mxu1 %v12794_v22 }
 0x4b2   : > { %v6697_v2 = vpop.f32.mrf.mxu1 }
 0x4b4   : > { %v6671_v57 = vpop.f32.mrf.mxu0 }
 0x4b5   : > { %7607 = vmatpush.bf16.msrb.mxu0 %v12785_v26  ;;  %7755 = vmatpush.bf16.msrb.mxu1 %v12793_v48  ;;  %v21406_v16 = vpop.f32.mrf.mxu3  ;;  %v21488_v34 = vmax.f32 %v6671_v57, %v6697_v2 }
 0x4b8   : > { %v21425_v40 = vpop.f32.mrf.mxu2 }
 0x4b9   : > { %7608 = vmatpush.bf16.msrb.mxu0 %v12784_v14  ;;  %7756 = vmatpush.bf16.msrb.mxu1 %v12792_v1  ;;  %v7148_v1 = vrot.slane %v21444_v55, 1 }
 0x4ba   : > { %7409 = vmatmul.bf16.gmra.mxu3 %v21397_v0  ;;  %v6700_v25 = vpop.f32.mrf.mxu1 }
 0x4bb   : > { %v7150_v27 = vsel %vm1592_vm0, %v7148_v1, %v7149_v11  ;;  %v21528_v1 = vmax.f32 %v21404_v41, %v21406_v16 }
 0x4bc   : > { %7609 = vmatmul.bf16.vlgmr.msrb.gmra.mxu0 %v7525_v4  ;;  %7757 = vmatmul.bf16.vlgmr.msrb.gmra.mxu1 %v21287_v51  ;;  %v7456_v51 = vrot.slane %v21255_v58, 2  ;;  %v7144_v58 = vrot.slane %v21412_v19, 1  ;;  %v6674_v35 = vpop.f32.mrf.mxu0  ;;  %v21473_v63 = vpack.c.bf16 %v7152_v21, %v7150_v27  ;;  %v7466_v4 = vrot.slane %v21373_v43, 2 }
 0x4bd   : > { %v21427_v44 = vpop.f32.mrf.mxu3  ;;  %v21490_v49 = vmax.f32 %v6674_v35, %v6700_v25  ;;  %v7472_v19 = vsel %vm2297_vm1, %v7469_v7, %v7471_v18  ;;  %v7159_v3 = vrot.slane %v21528_v1, 1 }
 0x4be   : > { %7299 = vmatmul.bf16.gmra.mxu2 %v21393_v52  ;;  %v7457_v9 = vsel %vm2297_vm1, %v7454_v20, %v7456_v51  ;;  %v7145_v38 = vsel %vm1592_vm0, %v7143_v60, %v7144_v58  ;;  %v7147_v29 = vsel %vm1592_vm0, %v7144_v58, %v7146_v28  ;;  %v7465_v20 = vsel %vm2297_vm1, %v7463_v56, %v7464_v13 }
 0x4bf   : > { %v21421_v37 = vpack.c.bf16 %v7457_v9, %v7455_v12  ;;  %v21431_v22 = vpack.c.bf16 %v7147_v29, %v7145_v38  ;;  %v7467_v51 = vsel %vm2297_vm1, %v7464_v13, %v7466_v4  ;;  %v7153_v60 = vrot.slane %v21488_v34, 1 }
 0x4c0   : > { %v21456_v14 = vpop.f32.mrf.mxu2  ;;  %v7154_v59 = vrot.slane %v21490_v49, 1  ;;  %v21499_v58 = vpack.c.bf16 %v7467_v51, %v7465_v20  ;;  %v21513_v25 = vpack.c.bf16 %v21490_v49, %v21488_v34  ;;  %v21532_v11 = vmax.f32 %v21425_v40, %v21427_v44 }
 0x4c1   : > { %v21539_v33 = vpack.c.bf16 %v7472_v19, %v7470_v5  ;;  %v7160_v44 = vsel %vm1592_vm0, %v7158_v32, %v7159_v3  ;;  %v21555_v4 = vpack.c.bf16 %v21528_v1, %v21524_v39  ;;  %v7473_v20 = vrot.slane %v21444_v55, 2 }
 0x4c2   : > { %v6703_v48 = vpop.f32.mrf.mxu1  ;;  %v7155_v2 = vsel %vm1592_vm0, %v7153_v60, %v7154_v59  ;;  %v7161_v27 = vrot.slane %v21532_v11, 1  ;;  %v7474_v51 = vrot.slane %v21448_v61, 2  ;;  %v7476_v60 = vrot.slane %v21452_v62, 2 }
 0x4c4   : > { %v6677_v26 = vpop.f32.mrf.mxu0  ;;  %v7162_v56 = vsel %vm1592_vm0, %v7159_v3, %v7161_v27  ;;  %v7475_v18 = vsel %vm2297_vm1, %v7473_v20, %v7474_v51  ;;  %v7477_v55 = vsel %vm2297_vm1, %v7474_v51, %v7476_v60  ;;  %v12814_v3 = vld [vmem:[%s22814_s3 + $0x170] sm:$0xff] }
 0x4c5   : > { %v21458_v10 = vpop.f32.mrf.mxu3  ;;  %v21492_v46 = vmax.f32 %v6677_v26, %v6703_v48  ;;  %v21551_v13 = vpack.c.bf16 %v7162_v56, %v7160_v44  ;;  %v7479_v44 = vrot.slane %v21490_v49, 2 }
 0x4c6   : > { %v21612_v60 = vmax.f32 %v21456_v14, %v21458_v10 }
 0x4c7   : > { %v7156_v53 = vrot.slane %v21492_v46, 1  ;;  %v7481_v56 = vrot.slane %v21492_v46, 2 }
 0x4c8   : > { %v21479_v47 = vpop.f32.mrf.mxu2 }
 0x4c9   : > { %v7157_v28 = vsel %vm1592_vm0, %v7154_v59, %v7156_v53  ;;  %v7482_v46 = vsel %vm2297_vm1, %v7479_v44, %v7481_v56  ;;  %v7484_v56 = vrot.slane %v21528_v1, 2  ;;  %v12803_v1 = vld [vmem:[%s22814_s3 + $0x118] sm:$0xff] }
 0x4ca   : > { %7414 = vmatmul.bf16.gmra.mxu3 %v21435_v23  ;;  %v21471_v6 = vpop.f32.mrf.mxu1  ;;  %v21509_v35 = vpack.c.bf16 %v7157_v28, %v7155_v2 }
 0x4cc   : > { %7614 = vmatmul.bf16.gmra.mxu0 %v21421_v37  ;;  %7762 = vmatmul.bf16.gmra.mxu1 %v21350_v36  ;;  %v21469_v42 = vpop.f32.mrf.mxu0 }
 0x4cd   : > { %v21481_v45 = vpop.f32.mrf.mxu3  ;;  %v21566_v28 = vmax.f32 %v21469_v42, %v21471_v6  ;;  %v21581_v42 = vpack.c.bf16 %v7477_v55, %v7475_v18  ;;  %v12807_v6 = vld [vmem:[%s22814_s3 + $0x138] sm:$0xff]  ;;  %v7168_v18 = vrot.slane %v21612_v60, 1 }
 0x4ce   : > { %7304 = vmatmul.bf16.gmra.mxu2 %v21431_v22 }
 0x4cf   : > { %v7163_v62 = vrot.slane %v21566_v28, 1  ;;  %7907 = vmatpush.bf16.msrb.mxu2 %v12807_v6 }
 0x4d0   : > { %v21501_v43 = vpop.f32.mrf.mxu2 }
 0x4d2   : > { %v6818_v9 = vpop.f32.mrf.mxu1 }
 0x4d4   : > { %v6792_v12 = vpop.f32.mrf.mxu0 }
 0x4d5   : > { %v21503_v57 = vpop.f32.mrf.mxu3  ;;  %v21568_v54 = vmax.f32 %v6792_v12, %v6818_v9 }
 0x4d7   : > { %v21600_v32 = vpack.c.bf16 %v21568_v54, %v21566_v28 }
 0x4da   : > { %7419 = vmatmul.bf16.gmra.mxu3 %v21477_v30  ;;  %v6821_v29 = vpop.f32.mrf.mxu1 }
 0x4dc   : > { %7619 = vmatmul.bf16.gmra.mxu0 %v21463_v31  ;;  %7767 = vmatmul.bf16.gmra.mxu1 %v21397_v0  ;;  %v6795_v38 = vpop.f32.mrf.mxu0 }
 0x4dd   : > { %v21570_v7 = vmax.f32 %v6795_v38, %v6821_v29  ;;  %v12815_v38 = vld [vmem:[%s22814_s3 + $0x178] sm:$0xff]  ;;  %v12806_v29 = vld [vmem:[%s22814_s3 + $0x130] sm:$0xff] }
 0x4de   : > { %7309 = vmatmul.bf16.gmra.mxu2 %v21473_v63  ;;  %8062 = vmatpush.bf16.msra.mxu3 %v12815_v38  ;;  %v12804_v38 = vld [vmem:[%s22814_s3 + $0x120] sm:$0xff] }
 0x4df   : > { %v7166_v5 = vrot.slane %v21570_v7, 1  ;;  %7908 = vmatpush.bf16.msrb.mxu2 %v12806_v29  ;;  %v12812_v29 = vld [vmem:[%s22814_s3 + $0x160] sm:$0xff] }
 0x4e2   : > { %v21547_v40 = vpop.f32.mrf.mxu1  ;;  %8063 = vmatpush.bf16.msra.mxu3 %v12814_v3 }
 0x4e4   : > { %v21545_v16 = vpop.f32.mrf.mxu0 }
 0x4e9   : > { %v6966_v26 = vpop.f32.mrf.mxu2  ;;  %v6992_v48 = vpop.f32.mrf.mxu3 }
 0x4ea   : > { %7424 = vmatmul.bf16.gmra.mxu3 %v21513_v25  ;;  %v21520_v50 = vmax.f32 %v6966_v26, %v6992_v48  ;;  %v21576_v61 = vpop.f32.mrf.mxu1  ;;  %v7164_v48 = vrot.slane %v21568_v54, 1 }
 0x4ec   : > { %7624 = vmatmul.bf16.gmra.mxu0 %v21499_v58  ;;  %7772 = vmatmul.bf16.gmra.mxu1 %v21435_v23  ;;  %v21574_v26 = vpop.f32.mrf.mxu0  ;;  %v7165_v12 = vsel %vm1592_vm0, %v7163_v62, %v7164_v48  ;;  %v7167_v9 = vsel %vm1592_vm0, %v7164_v48, %v7166_v5  ;;  %v12805_v48 = vld [vmem:[%s22814_s3 + $0x128] sm:$0xff] }
 0x4ed   : > { %v21596_v19 = vpack.c.bf16 %v7167_v9, %v7165_v12  ;;  %v12813_v5 = vld [vmem:[%s22814_s3 + $0x168] sm:$0xff]  ;;  %7909 = vmatpush.bf16.msrb.mxu2 %v12805_v48 }
 0x4ee   : > { %7314 = vmatmul.bf16.gmra.mxu2 %v21509_v35  ;;  %8064 = vmatpush.bf16.msra.mxu3 %v12813_v5 }
 0x4f1   : > { %v6969_v15 = vpop.f32.mrf.mxu2  ;;  %v6995_v21 = vpop.f32.mrf.mxu3  ;;  %7910 = vmatpush.bf16.msrb.mxu2 %v12804_v38 }
 0x4f2   : > { %v21543_v41 = vmax.f32 %v6969_v15, %v6995_v21  ;;  %v6939_v15 = vpop.f32.mrf.mxu1  ;;  %v7478_v21 = vrot.slane %v21488_v34, 2  ;;  %8065 = vmatpush.bf16.msra.mxu3 %v12812_v29 }
 0x4f4   : > { %v6913_v27 = vpop.f32.mrf.mxu0  ;;  %v7480_v49 = vsel %vm2297_vm1, %v7478_v21, %v7479_v44  ;;  %v7483_v44 = vrot.slane %v21524_v39, 2  ;;  %v21686_v5 = vpack.c.bf16 %v21543_v41, %v21520_v50 }
 0x4f5   : > { %v21629_v10 = vpack.c.bf16 %v7482_v46, %v7480_v49  ;;  %v7989_v49 = vrot.slane %v21520_v50, 2  ;;  %v7835_v46 = vrot.slane %v21543_v41, 1  ;;  %7911 = vmatpush.bf16.msrb.mxu2 %v12803_v1 }
 0x4fa   : > { %7429 = vmatmul.bf16.gmra.mxu3 %v21555_v4 }
 0x4fc   : > { %7629 = vmatmul.bf16.gmra.mxu0 %v21539_v33  ;;  %7777 = vmatmul.bf16.gmra.mxu1 %v21477_v30 }
 0x4fd   : > { %v6972_v59 = vpop.f32.mrf.mxu2  ;;  %v6998_v53 = vpop.f32.mrf.mxu3 }
 0x4fe   : > { %7319 = vmatmul.bf16.gmra.mxu2 %v21551_v13  ;;  %v21562_v2 = vmax.f32 %v6972_v59, %v6998_v53  ;;  %v21616_v59 = vmax.f32 %v21479_v47, %v21481_v45  ;;  %v21620_v53 = vmax.f32 %v21501_v43, %v21503_v57 }
 0x500   : > { %v7169_v55 = vrot.slane %v21616_v59, 1  ;;  %v7171_v14 = vrot.slane %v21620_v53, 1  ;;  %v21655_v21 = vpack.c.bf16 %v21616_v59, %v21612_v60  ;;  %v7837_v29 = vrot.slane %v21562_v2, 1 }
 0x502   : > { %v7170_v12 = vsel %vm1592_vm0, %v7168_v18, %v7169_v55  ;;  %v7172_v9 = vsel %vm1592_vm0, %v7169_v55, %v7171_v14  ;;  %v7990_v18 = vrot.slane %v21543_v41, 2 }
 0x503   : > { %v21651_v3 = vpack.c.bf16 %v7172_v9, %v7170_v12  ;;  %v7485_v12 = vsel %vm2297_vm1, %v7483_v44, %v7484_v56  ;;  %v7992_v44 = vrot.slane %v21562_v2, 2  ;;  %v12823_v2 = vld [vmem:[%s22814_s3 + $0x1b8] sm:$0xff] }
 0x504   : > { %8210 = vmatpush.bf16.msra.mxu0 %v12823_v2 }
 0x50a   : > { %7434 = vmatmul.bf16.gmra.mxu3 %v21600_v32 }
 0x50c   : > { %7634 = vmatmul.bf16.gmra.mxu0 %v21581_v42  ;;  %7782 = vmatmul.bf16.gmra.mxu1 %v21513_v25  ;;  %v7395_v51 = vpop.f32.mrf.mxu3 }
 0x50e   : > { %7324 = vmatmul.bf16.gmra.mxu2 %v21596_v19 }
 0x511   : > { %v7285_v20 = vpop.f32.mrf.mxu2 }
 0x512   : > { %v21622_v34 = vadd.f32 %v7395_v51, %v7285_v20  ;;  %v7486_v20 = vrot.slane %v21532_v11, 2  ;;  %v7834_v51 = vrot.slane %v21520_v50, 1  ;;  %v12811_v11 = vld [vmem:[%s22814_s3 + $0x158] sm:$0xff]  ;;  %v7991_v50 = vsel %vm2297_vm1, %v7989_v49, %v7990_v18  ;;  %v12801_v49 = vld [vmem:[%s22814_s3 + $0x108] sm:$0xff] }
 0x513   : > { %8066 = vmatpush.bf16.msra.mxu3 %v12811_v11 }
 0x514   : > { %v7397_v62 = vpop.f32.mrf.mxu3  ;;  %v7487_v38 = vsel %vm2297_vm1, %v7484_v56, %v7486_v20 }
 0x519   : > { %v7025_v47 = vpop.f32.mrf.mxu0  ;;  %v7051_v45 = vpop.f32.mrf.mxu1 }
 0x51a   : > { %v21633_v43 = vmax.f32 %v7025_v47, %v7051_v45  ;;  %v7287_v57 = vpop.f32.mrf.mxu2  ;;  %7439 = vmatmul.bf16.gmra.mxu3 %v21655_v21  ;;  %v21676_v47 = vmax.f32 %v21545_v16, %v21547_v40  ;;  %v21680_v45 = vmax.f32 %v21574_v26, %v21576_v61  ;;  %v12802_v16 = vld [vmem:[%s22814_s3 + $0x110] sm:$0xff]  ;;  %v7836_v26 = vsel %vm1592_vm0, %v7834_v51, %v7835_v46 }
 0x51b   : > { %v21641_v6 = vadd.f32 %v7397_v62, %v7287_v57  ;;  %v21682_v57 = vmax.f32 %v6913_v27, %v6939_v15  ;;  %v12810_v40 = vld [vmem:[%s22814_s3 + $0x150] sm:$0xff]  ;;  %v21703_v15 = vpack.c.bf16 %v7487_v38, %v7485_v12  ;;  %7912 = vmatpush.bf16.msrb.mxu2 %v12802_v16  ;;  %v12800_v38 = vld [vmem:[%s22814_s3 + $0x100] sm:$0xff] }
 0x51c   : > { %7639 = vmatmul.bf16.gmra.mxu0 %v21629_v10  ;;  %7787 = vmatmul.bf16.gmra.mxu1 %v21555_v4  ;;  %v7400_v48 = vpop.f32.mrf.mxu3  ;;  %v7173_v41 = vrot.slane %v21676_v47, 1  ;;  %v7174_v61 = vrot.slane %v21680_v45, 1  ;;  %v12808_v16 = vld [vmem:[%s22814_s3 + $0x140] sm:$0xff] }
 0x51d   : > { %v7176_v27 = vrot.slane %v21682_v57, 1  ;;  %8067 = vmatpush.bf16.msra.mxu3 %v12810_v40  ;;  %v7838_v40 = vsel %vm1592_vm0, %v7835_v46, %v7837_v29  ;;  %v7489_v46 = vrot.slane %v21568_v54, 2  ;;  %v12822_v29 = vld [vmem:[%s22814_s3 + $0x1b0] sm:$0xff]  ;;  %v12829_v54 = vld [vmem:[%s22814_s3 + $0x1e8] sm:$0xff] }
 0x51e   : > { %7329 = vmatmul.bf16.gmra.mxu2 %v21651_v3  ;;  %v7175_v11 = vsel %vm1592_vm0, %v7173_v41, %v7174_v61  ;;  %v7993_v41 = vsel %vm2297_vm1, %v7990_v18, %v7992_v44  ;;  %v7491_v18 = vrot.slane %v21570_v7, 2  ;;  %8211 = vmatpush.bf16.msra.mxu0 %v12822_v29 }
 0x51f   : > { %7913 = vmatpush.bf16.msrb.mxu2 %v12801_v49  ;;  %v7488_v49 = vrot.slane %v21566_v28, 2  ;;  %v12821_v28 = vld [vmem:[%s22814_s3 + $0x1a8] sm:$0xff] }
 0x520   : > { %v7492_v2 = vsel %vm2297_vm1, %v7489_v46, %v7491_v18 }
 0x521   : > { %v7028_v55 = vpop.f32.mrf.mxu0  ;;  %v7054_v14 = vpop.f32.mrf.mxu1  ;;  %v7490_v7 = vsel %vm2297_vm1, %v7488_v49, %v7489_v46  ;;  %v12819_v49 = vld [vmem:[%s22814_s3 + $0x198] sm:$0xff] }
 0x522   : > { %v21666_v39 = vmax.f32 %v7028_v55, %v7054_v14  ;;  %v7290_v62 = vpop.f32.mrf.mxu2  ;;  %v12809_v55 = vld [vmem:[%s22814_s3 + $0x148] sm:$0xff]  ;;  %8212 = vmatpush.bf16.msra.mxu0 %v12821_v28  ;;  %v12827_v46 = vld [vmem:[%s22814_s3 + $0x1d8] sm:$0xff]  ;;  %v7496_v28 = vrot.slane %v21620_v53, 2 }
 0x523   : > { %v21689_v9 = vadd.f32 %v7400_v48, %v7290_v62  ;;  %v7177_v62 = vsel %vm1592_vm0, %v7174_v61, %v7176_v27  ;;  %v12831_v48 = vld [vmem:[%s22814_s3 + $0x1f8] sm:$0xff]  ;;  %8068 = vmatpush.bf16.msra.mxu3 %v12809_v55  ;;  %v21739_v27 = vpack.c.bf16 %v21680_v45, %v21676_v47  ;;  %7914 = vmatpush.bf16.msrb.mxu2 %v12800_v38  ;;  %v12820_v38 = vld [vmem:[%s22814_s3 + $0x1a0] sm:$0xff]  ;;  %v12817_v53 = vld [vmem:[%s22814_s3 + $0x188] sm:$0xff] }
 0x524   : > { %v7402_v1 = vpop.f32.mrf.mxu3  ;;  %v21735_v61 = vpack.c.bf16 %v7177_v62, %v7175_v11  ;;  %8368 = vmatpush.bf16.msra.mxu1 %v12831_v48  ;;  %v21767_v62 = vpack.c.bf16 %v7492_v2, %v7490_v7  ;;  %v12818_v7 = vld [vmem:[%s22814_s3 + $0x190] sm:$0xff] }
 0x526   : > { %8213 = vmatpush.bf16.msra.mxu0 %v12820_v38 }
 0x527   : > { %8069 = vmatpush.bf16.msra.mxu3 %v12808_v16  ;;  %v12828_v16 = vld [vmem:[%s22814_s3 + $0x1e0] sm:$0xff] }
 0x529   : > { %v7031_v56 = vpop.f32.mrf.mxu0  ;;  %v7057_v20 = vpop.f32.mrf.mxu1 }
 0x52a   : > { %v21709_v51 = vmax.f32 %v7031_v56, %v7057_v20  ;;  %v7292_v14 = vpop.f32.mrf.mxu2  ;;  %v21741_v56 = vpack.c.bf16 %v7838_v40, %v7836_v26  ;;  %v21743_v20 = vpack.c.bf16 %v7993_v41, %v7991_v50  ;;  %7444 = vmatmul.bf16.gmra.mxu3 %v21739_v27  ;;  %v12830_v26 = vld [vmem:[%s22814_s3 + $0x1f0] sm:$0xff]  ;;  %8214 = vmatpush.bf16.msra.mxu0 %v12819_v49  ;;  %v12824_v49 = vld [vmem:[%s22814_s3 + $0x1c0] sm:$0xff] }
 0x52b   : > { %v21725_v12 = vadd.f32 %v7402_v1, %v7292_v14  ;;  %8369 = vmatpush.bf16.msra.mxu1 %v12830_v26 }
 0x52c   : > { %7644 = vmatmul.bf16.gmra.mxu0 %v21703_v15  ;;  %7792 = vmatmul.bf16.gmra.mxu1 %v21600_v32 }
 0x52d   : > { %v7405_v44 = vpop.f32.mrf.mxu3 }
 0x52e   : > { %7334 = vmatmul.bf16.gmra.mxu2 %v21735_v61  ;;  %8215 = vmatpush.bf16.msra.mxu0 %v12818_v7  ;;  %v7501_v7 = vrot.slane %v21682_v57, 2 }
 0x52f   : > { %8370 = vmatpush.bf16.msra.mxu1 %v12829_v54 }
 0x532   : > { %v7295_v50 = vpop.f32.mrf.mxu2  ;;  %8216 = vmatpush.bf16.msra.mxu0 %v12817_v53 }
 0x533   : > { %v21756_v55 = vadd.f32 %v7405_v44, %v7295_v50  ;;  %8371 = vmatpush.bf16.msra.mxu1 %v12828_v16  ;;  %v7493_v50 = vrot.slane %v21612_v60, 2  ;;  %v7494_v44 = vrot.slane %v21616_v59, 2 }
 0x535   : > { %v7495_v60 = vsel %vm2297_vm1, %v7493_v50, %v7494_v44  ;;  %v7497_v59 = vsel %vm2297_vm1, %v7494_v44, %v7496_v28  ;;  %v7498_v44 = vrot.slane %v21676_v47, 2  ;;  %v7499_v28 = vrot.slane %v21680_v45, 2 }
 0x536   : > { %v21810_v16 = vpack.c.bf16 %v7497_v59, %v7495_v60 }
 0x537   : > { %8372 = vmatpush.bf16.msra.mxu1 %v12827_v46  ;;  %v7500_v59 = vsel %vm2297_vm1, %v7498_v44, %v7499_v28  ;;  %v7502_v53 = vsel %vm2297_vm1, %v7499_v28, %v7501_v7 }
 0x539   : > { %v7610_v14 = vpop.f32.mrf.mxu0  ;;  %v7758_v1 = vpop.f32.mrf.mxu1 }
 0x53a   : > { %v7663_v11 = vadd.f32 %v7610_v14, %v21622_v34  ;;  %v7297_v40 = vpop.f32.mrf.mxu2  ;;  %v7407_v34 = vpop.f32.mrf.mxu3  ;;  %8070 = vmatmul.bf16.vlgmr.msra.gmra.mxu3 %v21421_v37  ;;  %v12825_v14 = vld [vmem:[%s22814_s3 + $0x1c8] sm:$0xff] }
 0x53b   : > { %v21779_v41 = vadd.f32 %v7407_v34, %v7297_v40  ;;  %v12816_v34 = vld [vmem:[%s22814_s3 + $0x180] sm:$0xff] }
 0x53c   : > { %v21769_v48 = vadd.f32 %v7758_v1, %v7663_v11  ;;  %7649 = vmatmul.bf16.gmra.mxu0 %v21767_v62  ;;  %7797 = vmatmul.bf16.gmra.mxu1 %v21655_v21 }
 0x53d   : > { %8217 = vmatpush.bf16.msra.mxu0 %v12816_v34 }
 0x53e   : > { %7915 = vmatmul.bf16.vlgmr.msrb.gmra.mxu2 %v21283_v8  ;;  %v12826_v8 = vld [vmem:[%s22814_s3 + $0x1d0] sm:$0xff] }
 0x53f   : > { %8373 = vmatpush.bf16.msra.mxu1 %v12826_v8 }
 0x541   : > { %v7612_v18 = vpop.f32.mrf.mxu0  ;;  %v7760_v29 = vpop.f32.mrf.mxu1 }
 0x542   : > { %v7664_v26 = vadd.f32 %v7612_v18, %v21641_v6  ;;  %v7300_v6 = vpop.f32.mrf.mxu2  ;;  %v7410_v37 = vpop.f32.mrf.mxu3 }
 0x543   : > { %v7411_v2 = vadd.f32 %v7410_v37, %v7300_v6  ;;  %8374 = vmatpush.bf16.msra.mxu1 %v12825_v14 }
 0x544   : > { %v21793_v54 = vadd.f32 %v7760_v29, %v7664_v26 }
 0x547   : > { %8375 = vmatpush.bf16.msra.mxu1 %v12824_v49 }
 0x549   : > { %v7615_v1 = vpop.f32.mrf.mxu0  ;;  %v7763_v11 = vpop.f32.mrf.mxu1 }
 0x54a   : > { %v7665_v38 = vadd.f32 %v7615_v1, %v21689_v9  ;;  %v7302_v46 = vpop.f32.mrf.mxu2  ;;  %v7412_v9 = vpop.f32.mrf.mxu3  ;;  %8075 = vmatmul.bf16.gmra.mxu3 %v21463_v31 }
 0x54b   : > { %v7413_v18 = vadd.f32 %v7412_v9, %v7302_v46 }
 0x54c   : > { %v21812_v40 = vadd.f32 %v7763_v11, %v7665_v38  ;;  %7654 = vmatmul.bf16.gmra.mxu0 %v21810_v16  ;;  %7802 = vmatmul.bf16.gmra.mxu1 %v21739_v27  ;;  %v21833_v11 = vpack.c.bf16 %v7502_v53, %v7500_v59 }
 0x54e   : > { %7920 = vmatmul.bf16.gmra.mxu2 %v21346_v17 }
 0x551   : > { %v7617_v29 = vpop.f32.mrf.mxu0  ;;  %v7765_v26 = vpop.f32.mrf.mxu1 }
 0x552   : > { %v7666_v50 = vadd.f32 %v7617_v29, %v21725_v12  ;;  %v7305_v6 = vpop.f32.mrf.mxu2  ;;  %v7415_v37 = vpop.f32.mrf.mxu3 }
 0x553   : > { %v7416_v60 = vadd.f32 %v7415_v37, %v7305_v6 }
 0x554   : > { %v21828_v8 = vadd.f32 %v7765_v26, %v7666_v50 }
 0x559   : > { %v7620_v12 = vpop.f32.mrf.mxu0  ;;  %v7768_v14 = vpop.f32.mrf.mxu1 }
 0x55a   : > { %v7667_v1 = vadd.f32 %v7620_v12, %v21756_v55  ;;  %v7307_v45 = vpop.f32.mrf.mxu2  ;;  %v7417_v57 = vpop.f32.mrf.mxu3  ;;  %8080 = vmatmul.bf16.gmra.mxu3 %v21499_v58 }
 0x55b   : > { %v7418_v38 = vadd.f32 %v7417_v57, %v7307_v45 }
 0x55c   : > { %v21835_v47 = vadd.f32 %v7768_v14, %v7667_v1  ;;  %7659 = vmatmul.bf16.gmra.mxu0 %v21833_v11  ;;  %7807 = vmatmul.bf16.gmra.mxu1 %v21686_v5 }
 0x55e   : > { %7925 = vmatmul.bf16.gmra.mxu2 %v21393_v52 }
 0x561   : > { %v7622_v34 = vpop.f32.mrf.mxu0  ;;  %v7770_v49 = vpop.f32.mrf.mxu1 }
 0x562   : > { %v7668_v46 = vadd.f32 %v7622_v34, %v21779_v41  ;;  %v7310_v9 = vpop.f32.mrf.mxu2  ;;  %v7420_v29 = vpop.f32.mrf.mxu3 }
 0x563   : > { %v7421_v26 = vadd.f32 %v7420_v29, %v7310_v9 }
 0x564   : > { %v21842_v55 = vadd.f32 %v7770_v49, %v7668_v46 }
 0x569   : > { %v7625_v50 = vpop.f32.mrf.mxu0  ;;  %v7773_v44 = vpop.f32.mrf.mxu1 }
 0x56a   : > { %v7669_v28 = vadd.f32 %v7625_v50, %v7411_v2  ;;  %v7312_v6 = vpop.f32.mrf.mxu2  ;;  %v7422_v41 = vpop.f32.mrf.mxu3  ;;  %8085 = vmatmul.bf16.gmra.mxu3 %v21539_v33 }
 0x56b   : > { %v7423_v37 = vadd.f32 %v7422_v41, %v7312_v6 }
 0x56c   : > { %v21844_v7 = vadd.f32 %v7773_v44, %v7669_v28  ;;  %8218 = vmatmul.bf16.vlgmr.msra.gmra.mxu0 %v21350_v36  ;;  %8376 = vmatmul.bf16.vlgmr.msra.gmra.mxu1 %v21346_v17 }
 0x56e   : > { %7930 = vmatmul.bf16.gmra.mxu2 %v21431_v22 }
 0x571   : > { %v7627_v59 = vpop.f32.mrf.mxu0  ;;  %v7775_v53 = vpop.f32.mrf.mxu1 }
 0x572   : > { %v7670_v12 = vadd.f32 %v7627_v59, %v7413_v18  ;;  %v7315_v1 = vpop.f32.mrf.mxu2  ;;  %v7425_v2 = vpop.f32.mrf.mxu3 }
 0x573   : > { %v7426_v45 = vadd.f32 %v7425_v2, %v7315_v1 }
 0x574   : > { %v21850_v14 = vadd.f32 %v7775_v53, %v7670_v12 }
 0x579   : > { %v7630_v57 = vpop.f32.mrf.mxu0  ;;  %v7778_v34 = vpop.f32.mrf.mxu1 }
 0x57a   : > { %v7671_v36 = vadd.f32 %v7630_v57, %v7416_v60  ;;  %v7317_v17 = vpop.f32.mrf.mxu2  ;;  %v7427_v18 = vpop.f32.mrf.mxu3  ;;  %8090 = vmatmul.bf16.gmra.mxu3 %v21581_v42 }
 0x57b   : > { %v7428_v46 = vadd.f32 %v7427_v18, %v7317_v17 }
 0x57c   : > { %v21852_v49 = vadd.f32 %v7778_v34, %v7671_v36  ;;  %8223 = vmatmul.bf16.gmra.mxu0 %v21397_v0  ;;  %8381 = vmatmul.bf16.gmra.mxu1 %v21393_v52 }
 0x57e   : > { %7935 = vmatmul.bf16.gmra.mxu2 %v21473_v63 }
 0x581   : > { %v7632_v9 = vpop.f32.mrf.mxu0  ;;  %v7780_v29 = vpop.f32.mrf.mxu1 }
 0x582   : > { %v7672_v50 = vadd.f32 %v7632_v9, %v7418_v38  ;;  %v7320_v28 = vpop.f32.mrf.mxu2  ;;  %v7430_v60 = vpop.f32.mrf.mxu3 }
 0x583   : > { %v7431_v6 = vadd.f32 %v7430_v60, %v7320_v28 }
 0x584   : > { %v21858_v44 = vadd.f32 %v7780_v29, %v7672_v50 }
 0x589   : > { %v7635_v41 = vpop.f32.mrf.mxu0  ;;  %v7783_v59 = vpop.f32.mrf.mxu1 }
 0x58a   : > { %v7673_v0 = vadd.f32 %v7635_v41, %v7421_v26  ;;  %v7322_v52 = vpop.f32.mrf.mxu2  ;;  %v7432_v38 = vpop.f32.mrf.mxu3  ;;  %8095 = vmatmul.bf16.gmra.mxu3 %v21629_v10 }
 0x58b   : > { %v7433_v12 = vadd.f32 %v7432_v38, %v7322_v52 }
 0x58c   : > { %v21860_v53 = vadd.f32 %v7783_v59, %v7673_v0  ;;  %8228 = vmatmul.bf16.gmra.mxu0 %v21435_v23  ;;  %8386 = vmatmul.bf16.gmra.mxu1 %v21431_v22 }
 0x58e   : > { %7940 = vmatmul.bf16.gmra.mxu2 %v21509_v35 }
 0x591   : > { %v7637_v1 = vpop.f32.mrf.mxu0  ;;  %v7785_v2 = vpop.f32.mrf.mxu1 }
 0x592   : > { %v7674_v57 = vadd.f32 %v7637_v1, %v7423_v37  ;;  %v7325_v36 = vpop.f32.mrf.mxu2  ;;  %v7435_v26 = vpop.f32.mrf.mxu3 }
 0x593   : > { %v7436_v17 = vadd.f32 %v7435_v26, %v7325_v36 }
 0x594   : > { %v21866_v34 = vadd.f32 %v7785_v2, %v7674_v57 }
 0x599   : > { %v7640_v18 = vpop.f32.mrf.mxu0  ;;  %v7788_v9 = vpop.f32.mrf.mxu1 }
 0x59a   : > { %v7675_v23 = vadd.f32 %v7640_v18, %v7426_v45  ;;  %v7327_v22 = vpop.f32.mrf.mxu2  ;;  %v7437_v37 = vpop.f32.mrf.mxu3  ;;  %8100 = vmatmul.bf16.gmra.mxu3 %v21703_v15 }
 0x59b   : > { %v7438_v50 = vadd.f32 %v7437_v37, %v7327_v22 }
 0x59c   : > { %v21868_v29 = vadd.f32 %v7788_v9, %v7675_v23  ;;  %8233 = vmatmul.bf16.gmra.mxu0 %v21477_v30  ;;  %8391 = vmatmul.bf16.gmra.mxu1 %v21473_v63 }
 0x59e   : > { %7945 = vmatmul.bf16.gmra.mxu2 %v21551_v13 }
 0x5a1   : > { %v7642_v28 = vpop.f32.mrf.mxu0  ;;  %v7790_v60 = vpop.f32.mrf.mxu1 }
 0x5a2   : > { %v7676_v41 = vadd.f32 %v7642_v28, %v7428_v46  ;;  %v7330_v0 = vpop.f32.mrf.mxu2  ;;  %v7440_v45 = vpop.f32.mrf.mxu3 }
 0x5a3   : > { %v7441_v52 = vadd.f32 %v7440_v45, %v7330_v0  ;;  %v12838_v45 = vld [vmem:[%s22814_s3 + $0x230] sm:$0xff] }
 0x5a4   : > { %v21874_v59 = vadd.f32 %v7790_v60, %v7676_v41 }
 0x5a9   : > { %v7645_v38 = vpop.f32.mrf.mxu0  ;;  %v7793_v1 = vpop.f32.mrf.mxu1 }
 0x5aa   : > { %v7677_v30 = vadd.f32 %v7645_v38, %v7431_v6  ;;  %v7332_v63 = vpop.f32.mrf.mxu2  ;;  %v7442_v46 = vpop.f32.mrf.mxu3  ;;  %8105 = vmatmul.bf16.gmra.mxu3 %v21767_v62 }
 0x5ab   : > { %v7443_v57 = vadd.f32 %v7442_v46, %v7332_v63 }
 0x5ac   : > { %v21876_v2 = vadd.f32 %v7793_v1, %v7677_v30  ;;  %8238 = vmatmul.bf16.gmra.mxu0 %v21513_v25  ;;  %8396 = vmatmul.bf16.gmra.mxu1 %v21509_v35  ;;  %v12839_v35 = vld [vmem:[%s22814_s3 + $0x238] sm:$0xff] }
 0x5ad   : > { %8523 = vmatpush.bf16.msra.mxu2 %v12839_v35 }
 0x5ae   : > { %7950 = vmatmul.bf16.gmra.mxu2 %v21596_v19 }
 0x5b1   : > { %v7647_v36 = vpop.f32.mrf.mxu0  ;;  %v7795_v26 = vpop.f32.mrf.mxu1  ;;  %8524 = vmatpush.bf16.msra.mxu2 %v12838_v45  ;;  %v12832_v45 = vld [vmem:[%s22814_s3 + $0x200] sm:$0xff] }
 0x5b2   : > { %v7678_v18 = vadd.f32 %v7647_v36, %v7433_v12  ;;  %v7335_v23 = vpop.f32.mrf.mxu2  ;;  %v7445_v6 = vpop.f32.mrf.mxu3 }
 0x5b4   : > { %v21882_v9 = vadd.f32 %v7795_v26, %v7678_v18 }
 0x5b9   : > { %v7650_v22 = vpop.f32.mrf.mxu0  ;;  %v7798_v37 = vpop.f32.mrf.mxu1 }
 0x5ba   : > { %v7679_v28 = vadd.f32 %v7650_v22, %v7436_v17  ;;  %v7336_v12 = vpop.f32.mrf.mxu2  ;;  %v7446_v60 = vpop.f32.mrf.mxu3  ;;  %8110 = vmatmul.bf16.gmra.mxu3 %v21810_v16 }
 0x5bb   : > { %v12833_v60 = vld [vmem:[%s22814_s3 + $0x208] sm:$0xff] }
 0x5bc   : > { %v21884_v25 = vadd.f32 %v7798_v37, %v7679_v28  ;;  %8243 = vmatmul.bf16.gmra.mxu0 %v21555_v4  ;;  %8401 = vmatmul.bf16.gmra.mxu1 %v21551_v13 }
 0x5be   : > { %7955 = vmatmul.bf16.gmra.mxu2 %v21651_v3 }
 0x5c1   : > { %v7652_v41 = vpop.f32.mrf.mxu0  ;;  %v7800_v0 = vpop.f32.mrf.mxu1 }
 0x5c2   : > { %v7680_v17 = vadd.f32 %v7652_v41, %v7438_v50  ;;  %v7916_v4 = vpop.f32.mrf.mxu2  ;;  %v8071_v38 = vpop.f32.mrf.mxu3  ;;  %v12837_v50 = vld [vmem:[%s22814_s3 + $0x228] sm:$0xff] }
 0x5c3   : > { %v7969_v1 = vadd.f32 %v7916_v4, %v21769_v48  ;;  %8525 = vmatpush.bf16.msra.mxu2 %v12837_v50  ;;  %v12836_v48 = vld [vmem:[%s22814_s3 + $0x220] sm:$0xff] }
 0x5c4   : > { %v21896_v13 = vadd.f32 %v7800_v0, %v7680_v17 }
 0x5c7   : > { %8526 = vmatpush.bf16.msra.mxu2 %v12836_v48 }
 0x5c9   : > { %v7655_v30 = vpop.f32.mrf.mxu0  ;;  %v7803_v63 = vpop.f32.mrf.mxu1 }
 0x5ca   : > { %v7681_v46 = vadd.f32 %v7655_v30, %v7441_v52  ;;  %v7918_v26 = vpop.f32.mrf.mxu2  ;;  %v8073_v18 = vpop.f32.mrf.mxu3  ;;  %8115 = vmatmul.bf16.gmra.mxu3 %v21833_v11 }
 0x5cb   : > { %v7970_v23 = vadd.f32 %v7918_v26, %v21793_v54 }
 0x5cc   : > { %v21899_v36 = vadd.f32 %v7803_v63, %v7681_v46  ;;  %8248 = vmatmul.bf16.gmra.mxu0 %v21600_v32  ;;  %8406 = vmatmul.bf16.gmra.mxu1 %v21596_v19  ;;  %v12835_v32 = vld [vmem:[%s22814_s3 + $0x218] sm:$0xff]  ;;  %v8124_v46 = vadd.f32 %v8071_v38, %v7969_v1 }
 0x5cd   : > { %8527 = vmatpush.bf16.msra.mxu2 %v12835_v32  ;;  %v8125_v32 = vadd.f32 %v8073_v18, %v7970_v23 }
 0x5ce   : > { %7960 = vmatmul.bf16.gmra.mxu2 %v21735_v61 }
 0x5d1   : > { %v7657_v52 = vpop.f32.mrf.mxu0  ;;  %v7805_v6 = vpop.f32.mrf.mxu1 }
 0x5d2   : > { %v7682_v22 = vadd.f32 %v7657_v52, %v7443_v57  ;;  %v7921_v54 = vpop.f32.mrf.mxu2  ;;  %v8076_v37 = vpop.f32.mrf.mxu3  ;;  %v12834_v57 = vld [vmem:[%s22814_s3 + $0x210] sm:$0xff] }
 0x5d3   : > { %v7971_v28 = vadd.f32 %v7921_v54, %v21812_v40  ;;  %8528 = vmatpush.bf16.msra.mxu2 %v12834_v57 }
 0x5d4   : > { %v21912_v19 = vadd.f32 %v7805_v6, %v7682_v22 }
 0x5d7   : > { %8529 = vmatpush.bf16.msra.mxu2 %v12833_v60 }
 0x5d9   : > { %v7660_v35 = vpop.f32.mrf.mxu0  ;;  %v7808_v12 = vpop.f32.mrf.mxu1 }
 0x5da   : > { %v7923_v41 = vpop.f32.mrf.mxu2  ;;  %v8078_v0 = vpop.f32.mrf.mxu3  ;;  %8120 = vmatmul.bf16.gmra.mxu3 %v21743_v20 }
 0x5db   : > { %v7972_v40 = vadd.f32 %v7923_v41, %v21828_v8  ;;  %8530 = vmatpush.bf16.msra.mxu2 %v12832_v45 }
 0x5dc   : > { %8253 = vmatmul.bf16.gmra.mxu0 %v21655_v21  ;;  %8411 = vmatmul.bf16.gmra.mxu1 %v21651_v3 }
 0x5dd   : > { %v8127_v17 = vadd.f32 %v8078_v0, %v7972_v40 }
 0x5de   : > { %7965 = vmatmul.bf16.gmra.mxu2 %v21741_v56 }
 0x5e1   : > { %v7661_v4 = vpop.f32.mrf.mxu0  ;;  %v7809_v30 = vpop.f32.mrf.mxu1 }
 0x5e2   : > { %v7926_v3 = vpop.f32.mrf.mxu2  ;;  %v8081_v21 = vpop.f32.mrf.mxu3 }
 0x5e3   : > { %v7973_v63 = vadd.f32 %v7926_v3, %v21835_v47 }
 0x5e9   : > { %v8219_v50 = vpop.f32.mrf.mxu0  ;;  %v8377_v8 = vpop.f32.mrf.mxu1 }
 0x5ea   : > { %v8272_v26 = vadd.f32 %v8219_v50, %v8124_v46  ;;  %v7928_v52 = vpop.f32.mrf.mxu2  ;;  %v8083_v6 = vpop.f32.mrf.mxu3  ;;  %v8128_v46 = vadd.f32 %v8081_v21, %v7973_v63 }
 0x5eb   : > { %v7974_v22 = vadd.f32 %v7928_v52, %v21842_v55 }
 0x5ec   : > { %v21933_v48 = vadd.f32 %v8377_v8, %v8272_v26  ;;  %8258 = vmatmul.bf16.gmra.mxu0 %v21739_v27  ;;  %8416 = vmatmul.bf16.gmra.mxu1 %v21735_v61  ;;  %v8126_v27 = vadd.f32 %v8076_v37, %v7971_v28  ;;  %v8296_v37 = vrot.slane %v21666_v39, 1 }
 0x5ed   : > { %v8129_v54 = vadd.f32 %v8083_v6, %v7974_v22 }
 0x5ee   : > { %8531 = vmatmul.bf16.vlgmr.msra.gmra.mxu2 %v21463_v31 }
 0x5f1   : > { %v8221_v57 = vpop.f32.mrf.mxu0  ;;  %v21938_v35 = vpop.f32.mrf.mxu1 }
 0x5f2   : > { %v21940_v47 = vadd.f32 %v8221_v57, %v8125_v32  ;;  %v7931_v38 = vpop.f32.mrf.mxu2  ;;  %v8086_v1 = vpop.f32.mrf.mxu3 }
 0x5f3   : > { %v7975_v12 = vadd.f32 %v7931_v38, %v21844_v7  ;;  %v8295_v7 = vrot.slane %v21633_v43, 1 }
 0x5f9   : > { %v8224_v60 = vpop.f32.mrf.mxu0  ;;  %v8382_v61 = vpop.f32.mrf.mxu1 }
 0x5fa   : > { %v8274_v41 = vadd.f32 %v8224_v60, %v8126_v27  ;;  %v7933_v55 = vpop.f32.mrf.mxu2  ;;  %v8088_v18 = vpop.f32.mrf.mxu3 }
 0x5fb   : > { %v7976_v23 = vadd.f32 %v7933_v55, %v21850_v14  ;;  %v8297_v14 = vsel %vm1592_vm0, %v8295_v7, %v8296_v37 }
 0x5fc   : > { %v21944_v0 = vadd.f32 %v8382_v61, %v8274_v41  ;;  %8263 = vmatmul.bf16.gmra.mxu0 %v21686_v5  ;;  %8421 = vmatmul.bf16.gmra.mxu1 %v21741_v56  ;;  %v8298_v5 = vrot.slane %v21709_v51, 1  ;;  %v8130_v61 = vadd.f32 %v8086_v1, %v7975_v12 }
 0x5fd   : > { %v8131_v40 = vadd.f32 %v8088_v18, %v7976_v23 }
 0x5fe   : > { %8536 = vmatmul.bf16.gmra.mxu2 %v21499_v58  ;;  %v8299_v3 = vsel %vm1592_vm0, %v8296_v37, %v8298_v5  ;;  %v8144_v58 = vpack.c.bf16 %v21666_v39, %v21633_v43 }
 0x5ff   : > { %v8302_v26 = vpack.c.bf16 %v8299_v3, %v8297_v14 }
 0x601   : > { %v8226_v31 = vpop.f32.mrf.mxu0  ;;  %v21949_v45 = vpop.f32.mrf.mxu1 }
 0x602   : > { %v21951_v4 = vadd.f32 %v8226_v31, %v8127_v17  ;;  %v7936_v28 = vpop.f32.mrf.mxu2  ;;  %v8091_v56 = vpop.f32.mrf.mxu3 }
 0x603   : > { %v7977_v30 = vadd.f32 %v7936_v28, %v21852_v49 }
 0x605   : > { %v8132_v12 = vadd.f32 %v8091_v56, %v7977_v30 }
 0x609   : > { %v8229_v50 = vpop.f32.mrf.mxu0  ;;  %v8387_v17 = vpop.f32.mrf.mxu1 }
 0x60a   : > { %v8276_v8 = vadd.f32 %v8229_v50, %v8128_v46  ;;  %v7938_v6 = vpop.f32.mrf.mxu2  ;;  %v8093_v22 = vpop.f32.mrf.mxu3 }
 0x60b   : > { %v7978_v49 = vadd.f32 %v7938_v6, %v21858_v44 }
 0x60c   : > { %v21962_v52 = vadd.f32 %v8387_v17, %v8276_v8  ;;  %8268 = vmatmul.bf16.gmra.mxu0 %v8144_v58  ;;  %8426 = vmatmul.bf16.gmra.mxu1 %v8302_v26 }
 0x60d   : > { %v8133_v32 = vadd.f32 %v8093_v22, %v7978_v49 }
 0x60e   : > { %8541 = vmatmul.bf16.gmra.mxu2 %v21539_v33 }
 0x611   : > { %v8231_v57 = vpop.f32.mrf.mxu0  ;;  %v21965_v38 = vpop.f32.mrf.mxu1 }
 0x612   : > { %v21967_v21 = vadd.f32 %v8231_v57, %v8129_v54  ;;  %v7941_v63 = vpop.f32.mrf.mxu2  ;;  %v8096_v27 = vpop.f32.mrf.mxu3 }
 0x613   : > { %v7979_v60 = vadd.f32 %v7941_v63, %v21860_v53 }
 0x615   : > { %v8134_v30 = vadd.f32 %v8096_v27, %v7979_v60 }
 0x619   : > { %v8234_v41 = vpop.f32.mrf.mxu0  ;;  %v8392_v55 = vpop.f32.mrf.mxu1 }
 0x61a   : > { %v8278_v18 = vadd.f32 %v8234_v41, %v8130_v61  ;;  %v7943_v31 = vpop.f32.mrf.mxu2  ;;  %v8098_v44 = vpop.f32.mrf.mxu3 }
 0x61b   : > { %v7980_v7 = vadd.f32 %v7943_v31, %v21866_v34 }
 0x61c   : > { %v21971_v23 = vadd.f32 %v8392_v55, %v8278_v18 }
 0x61d   : > { %v8135_v37 = vadd.f32 %v8098_v44, %v7980_v7 }
 0x61e   : > { %8546 = vmatmul.bf16.gmra.mxu2 %v21581_v42 }
 0x621   : > { %v8236_v5 = vpop.f32.mrf.mxu0  ;;  %v21974_v54 = vpop.f32.mrf.mxu1 }
 0x622   : > { %v21976_v28 = vadd.f32 %v8236_v5, %v8131_v40  ;;  %v7946_v33 = vpop.f32.mrf.mxu2  ;;  %v8101_v53 = vpop.f32.mrf.mxu3 }
 0x623   : > { %v7981_v1 = vadd.f32 %v7946_v33, %v21868_v29 }
 0x625   : > { %v8136_v60 = vadd.f32 %v8101_v53, %v7981_v1 }
 0x629   : > { %v8239_v14 = vpop.f32.mrf.mxu0  ;;  %v8397_v3 = vpop.f32.mrf.mxu1 }
 0x62a   : > { %v8280_v46 = vadd.f32 %v8239_v14, %v8132_v12  ;;  %v7948_v17 = vpop.f32.mrf.mxu2  ;;  %v8103_v34 = vpop.f32.mrf.mxu3 }
 0x62b   : > { %v7982_v8 = vadd.f32 %v7948_v17, %v21874_v59 }
 0x62c   : > { %v21980_v50 = vadd.f32 %v8397_v3, %v8280_v46 }
 0x62d   : > { %v8137_v58 = vadd.f32 %v8103_v34, %v7982_v8 }
 0x62e   : > { %8551 = vmatmul.bf16.gmra.mxu2 %v21629_v10 }
 0x631   : > { %v8241_v26 = vpop.f32.mrf.mxu0  ;;  %v21983_v40 = vpop.f32.mrf.mxu1 }
 0x632   : > { %v21985_v6 = vadd.f32 %v8241_v26, %v8133_v32  ;;  %v7951_v42 = vpop.f32.mrf.mxu2  ;;  %v8106_v29 = vpop.f32.mrf.mxu3 }
 0x633   : > { %v7983_v56 = vadd.f32 %v7951_v42, %v21876_v2 }
 0x635   : > { %v8138_v1 = vadd.f32 %v8106_v29, %v7983_v56 }
 0x639   : > { %v8244_v22 = vpop.f32.mrf.mxu0  ;;  %v8402_v49 = vpop.f32.mrf.mxu1 }
 0x63a   : > { %v8282_v57 = vadd.f32 %v8244_v22, %v8134_v30  ;;  %v7953_v61 = vpop.f32.mrf.mxu2  ;;  %v8108_v59 = vpop.f32.mrf.mxu3 }
 0x63b   : > { %v7984_v41 = vadd.f32 %v7953_v61, %v21882_v9 }
 0x63c   : > { %v21989_v63 = vadd.f32 %v8402_v49, %v8282_v57 }
 0x63d   : > { %v8139_v55 = vadd.f32 %v8108_v59, %v7984_v41 }
 0x63e   : > { %8556 = vmatmul.bf16.gmra.mxu2 %v21703_v15 }
 0x641   : > { %v8246_v18 = vpop.f32.mrf.mxu0  ;;  %v21992_v32 = vpop.f32.mrf.mxu1 }
 0x642   : > { %v21994_v31 = vadd.f32 %v8246_v18, %v8135_v37  ;;  %v7956_v10 = vpop.f32.mrf.mxu2  ;;  %v8111_v2 = vpop.f32.mrf.mxu3 }
 0x643   : > { %v7985_v27 = vadd.f32 %v7956_v10, %v21884_v25 }
 0x645   : > { %v8140_v56 = vadd.f32 %v8111_v2, %v7985_v27 }
 0x649   : > { %v8249_v44 = vpop.f32.mrf.mxu0  ;;  %v8407_v7 = vpop.f32.mrf.mxu1 }
 0x64a   : > { %v8284_v5 = vadd.f32 %v8249_v44, %v8136_v60  ;;  %v7958_v12 = vpop.f32.mrf.mxu2  ;;  %v8113_v9 = vpop.f32.mrf.mxu3 }
 0x64b   : > { %v7986_v14 = vadd.f32 %v7958_v12, %v21896_v13 }
 0x64c   : > { %v21998_v33 = vadd.f32 %v8407_v7, %v8284_v5 }
 0x64d   : > { %v8141_v3 = vadd.f32 %v8113_v9, %v7986_v14 }
 0x64e   : > { %8561 = vmatmul.bf16.gmra.mxu2 %v21767_v62 }
 0x651   : > { %v8251_v46 = vpop.f32.mrf.mxu0  ;;  %v22001_v37 = vpop.f32.mrf.mxu1 }
 0x652   : > { %v22003_v17 = vadd.f32 %v8251_v46, %v8137_v58  ;;  %v7961_v15 = vpop.f32.mrf.mxu2  ;;  %v8116_v25 = vpop.f32.mrf.mxu3 }
 0x653   : > { %v7987_v53 = vadd.f32 %v7961_v15, %v21899_v36 }
 0x655   : > { %v8142_v34 = vadd.f32 %v8116_v25, %v7987_v53 }
 0x659   : > { %v8254_v8 = vpop.f32.mrf.mxu0  ;;  %v8412_v26 = vpop.f32.mrf.mxu1 }
 0x65a   : > { %v8286_v42 = vadd.f32 %v8254_v8, %v8138_v1  ;;  %v7963_v13 = vpop.f32.mrf.mxu2  ;;  %v8118_v22 = vpop.f32.mrf.mxu3 }
 0x65b   : > { %v7988_v49 = vadd.f32 %v7963_v13, %v21912_v19  ;;  %v8451_v13 = vrot.slane %v21666_v39, 2 }
 0x65c   : > { %v22007_v30 = vadd.f32 %v8412_v26, %v8286_v42  ;;  %v8431_v26 = vadd.f32 %v21938_v35, %v21940_v47 }
 0x65d   : > { %v8143_v57 = vadd.f32 %v8118_v22, %v7988_v49  ;;  %v8453_v22 = vrot.slane %v21709_v51, 2 }
 0x65e   : > { %8566 = vmatmul.bf16.gmra.mxu2 %v21810_v16 }
 0x65f   : > { %v8454_v47 = vsel %vm2297_vm1, %v8451_v13, %v8453_v22 }
 0x661   : > { %v8256_v58 = vpop.f32.mrf.mxu0  ;;  %v22010_v61 = vpop.f32.mrf.mxu1 }
 0x662   : > { %v22012_v62 = vadd.f32 %v8256_v58, %v8139_v55  ;;  %v7966_v36 = vpop.f32.mrf.mxu2  ;;  %v8121_v29 = vpop.f32.mrf.mxu3 }
 0x663   : > { %v8433_v29 = vadd.f32 %v21949_v45, %v21951_v4 }
 0x669   : > { %v8259_v59 = vpop.f32.mrf.mxu0  ;;  %v8417_v41 = vpop.f32.mrf.mxu1 }
 0x66a   : > { %v8288_v18 = vadd.f32 %v8259_v59, %v8140_v56  ;;  %v7967_v60 = vpop.f32.mrf.mxu2  ;;  %v8122_v44 = vpop.f32.mrf.mxu3 }
 0x66c   : > { %v22015_v10 = vadd.f32 %v8417_v41, %v8288_v18 }
 0x66e   : > { %8571 = vmatmul.bf16.gmra.mxu2 %v21833_v11 }
 0x671   : > { %v8261_v7 = vpop.f32.mrf.mxu0  ;;  %v8419_v19 = vpop.f32.mrf.mxu1 }
 0x672   : > { %v8289_v5 = vadd.f32 %v8261_v7, %v8141_v3  ;;  %v8532_v55 = vpop.f32.mrf.mxu2  ;;  %v22026_v3 = vld [vmem:[%s22815_s4] ss:$0 sm:$0xff] }
 0x673   : > { %v8585_v53 = vadd.f32 %v8532_v55, %v21933_v48  ;;  %v8450_v48 = vrot.slane %v21633_v43, 2 }
 0x674   : > { %v22018_v12 = vadd.f32 %v8419_v19, %v8289_v5  ;;  %v24580_v19 = vld [vmem:[#allocation39_spill] sm:$0xff] }
 0x675   : > { %v8452_v35 = vsel %vm2297_vm1, %v8450_v48, %v8451_v13  ;;  %vm8649_vm10 = vcmp.lt.s32.totalorder %v24580_v19, 5 }
 0x676   : > { %v8457_v51 = vpack.c.bf16 %v8454_v47, %v8452_v35  ;;  %vm8650_vm11 = vmand %vm15970_vm6, %vm8649_vm10  ;;  %v8441_v47 = vadd.f32 %v21992_v32, %v21994_v31 }
 0x677   : > { %v22049_v5 = vsel %vm8650_vm11, 1.0, %v24545_v24  ;;  %vm8653_vm13 = vmand %vm6265_vm7, %vm8649_vm10 }
 0x679   : > { %v8264_v9 = vpop.f32.mrf.mxu0  ;;  %v8422_v16 = vpop.f32.mrf.mxu1 }
 0x67a   : > { %v8290_v14 = vadd.f32 %v8264_v9, %v8142_v34  ;;  %v8534_v2 = vpop.f32.mrf.mxu2  ;;  %v8609_v34 = vadd.f32 %v22026_v3, %v8585_v53  ;;  %v8435_v53 = vadd.f32 %v21965_v38, %v21967_v21  ;;  %v8445_v9 = vadd.f32 %v22010_v61, %v22012_v62  ;;  %v12853_v62 = vld [vmem:[%s22816_s5 + $0x68] sm:$0xff] }
 0x67b   : > { %v8586_v58 = vadd.f32 %v8534_v2, %v8431_v26 }
 0x67c   : > { %v22020_v46 = vadd.f32 %v8422_v16, %v8290_v14  ;;  %v22057_v14 = vsel %vm8653_vm13, 1.0, %v24545_v24  ;;  %v8437_v24 = vadd.f32 %v21974_v54, %v21976_v28 }
 0x67d   : > { %v8610_v43 = vadd.f32 %v22026_v3, %v8586_v58 }
 0x67e   : > { %8576 = vmatmul.bf16.gmra.mxu2 %v21743_v20 }
 0x67f   : > { %v8630_v60 = vmax.f32 %v8610_v43, 0.0 }
 0x681   : > { %v8266_v27 = vpop.f32.mrf.mxu0  ;;  %v8424_v15 = vpop.f32.mrf.mxu1 }
 0x682   : > { %v8291_v25 = vadd.f32 %v8266_v27, %v8143_v57  ;;  %v8537_v1 = vpop.f32.mrf.mxu2  ;;  %v8629_v57 = vmax.f32 %v8609_v34, 0.0 }
 0x683   : > { %v8587_v8 = vadd.f32 %v8537_v1, %v21944_v0 }
 0x684   : > { %v22029_v11 = vadd.f32 %v8424_v15, %v8291_v25 }
 0x685   : > { %v8611_v42 = vadd.f32 %v22026_v3, %v8587_v8 }
 0x687   : > { %v8631_v36 = vmax.f32 %v8611_v42, 0.0 }
 0x689   : > { %v8269_v49 = vpop.f32.mrf.mxu0  ;;  %v8427_v20 = vpop.f32.mrf.mxu1  ;;  %v8656_v0 = vmax.f32 %v8629_v57, %v8631_v36  ;;  %v8439_v36 = vadd.f32 %v21983_v40, %v21985_v6 }
 0x68a   : > { %v8539_v56 = vpop.f32.mrf.mxu2 }
 0x68b   : > { %v8588_v59 = vadd.f32 %v8539_v56, %v8433_v29 }
 0x68d   : > { %v8612_v39 = vadd.f32 %v22026_v3, %v8588_v59 }
 0x68e   : > { %8581 = vmatmul.bf16.gmra.mxu2 %v8457_v51 }
 0x68f   : > { %v8632_v44 = vmax.f32 %v8612_v39, 0.0 }
 0x691   : > { %v8270_v41 = vpop.f32.mrf.mxu0  ;;  %v8428_v18 = vpop.f32.mrf.mxu1  ;;  %v8657_v7 = vmax.f32 %v8630_v60, %v8632_v44 }
 0x692   : > { %v8542_v45 = vpop.f32.mrf.mxu2 }
 0x693   : > { %8676 = vmatpush.msrb.mxu3 %v8657_v7  ;;  %v8589_v2 = vadd.f32 %v8542_v45, %v21962_v52 }
 0x695   : > { %8677 = vmatpush.msrb.mxu3 %v8656_v0  ;;  %v8613_v15 = vadd.f32 %v22026_v3, %v8589_v2 }
 0x696   : > { %11540 = vmatmul.msk.f32.vlgmr.msrb.gmra.mxu3 %vm8658_vm12, %v22049_v5 }
 0x697   : > { %8699 = vmatpush.msra.mxu3 %v8657_v7  ;;  %v8633_v34 = vmax.f32 %v8613_v15, 0.0  ;;  %v8443_v7 = vadd.f32 %v22001_v37, %v22003_v17  ;;  %v12855_v37 = vld [vmem:[%s22816_s5 + $0x78] sm:$0xff]  ;;  %v12854_v17 = vld [vmem:[%s22816_s5 + $0x70] sm:$0xff] }
 0x699   : > { %8700 = vmatpush.msra.mxu3 %v8656_v0 }
 0x69a   : > { %v8544_v16 = vpop.f32.mrf.mxu2 }
 0x69b   : > { %v8590_v8 = vadd.f32 %v8544_v16, %v8435_v53 }
 0x69d   : > { %v8614_v48 = vadd.f32 %v22026_v3, %v8590_v8 }
 0x69e   : > { %11541 = vmatmul.msk.f32.vlgmr.msra.gmra.mxu3 %vm8658_vm12, %v22057_v14 }
 0x69f   : > { %v8634_v49 = vmax.f32 %v8614_v48, 0.0 }
 0x6a2   : > { %v8547_v27 = vpop.f32.mrf.mxu2 }
 0x6a3   : > { %v8591_v25 = vadd.f32 %v8547_v27, %v21971_v23 }
 0x6a5   : > { %v8615_v1 = vadd.f32 %v22026_v3, %v8591_v25 }
 0x6a7   : > { %v8635_v26 = vmax.f32 %v8615_v1, 0.0 }
 0x6a9   : > { %v8706_v52 = vmax.f32 %v8633_v34, %v8635_v26  ;;  %v12852_v34 = vld [vmem:[%s22816_s5 + $0x60] sm:$0xff] }
 0x6aa   : > { %v8549_v42 = vpop.f32.mrf.mxu2 }
 0x6ab   : > { %v8592_v13 = vadd.f32 %v8549_v42, %v8437_v24  ;;  %v12851_v24 = vld [vmem:[%s22816_s5 + $0x58] sm:$0xff] }
 0x6ad   : > { %v8616_v22 = vadd.f32 %v22026_v3, %v8592_v13  ;;  %v12850_v13 = vld [vmem:[%s22816_s5 + $0x50] sm:$0xff] }
 0x6af   : > { %v8636_v23 = vmax.f32 %v8616_v22, 0.0 }
 0x6b1   : > { %v8707_v20 = vmax.f32 %v8634_v49, %v8636_v23 }
 0x6b2   : > { %v8552_v57 = vpop.f32.mrf.mxu2 }
 0x6b3   : > { %8722 = vmatpush.msrb.mxu3 %v8707_v20  ;;  %8742 = vmatpush.msrb.mxu0 %v8707_v20  ;;  %v8593_v21 = vadd.f32 %v8552_v57, %v21980_v50  ;;  %v12849_v57 = vld [vmem:[%s22816_s5 + $0x48] sm:$0xff] }
 0x6b5   : > { %8723 = vmatpush.msrb.mxu3 %v8706_v52  ;;  %8743 = vmatpush.msrb.mxu0 %v8706_v52  ;;  %v8617_v28 = vadd.f32 %v22026_v3, %v8593_v21 }
 0x6b6   : > { %11542 = vmatmul.msk.f32.vlgmr.msrb.gmra.mxu3 %vm8658_vm12, %v22049_v5  ;;  %11543 = vmatmul.msk.f32.vlgmr.msrb.gmra.mxu0 %vm8658_vm12, %v22057_v14 }
 0x6b7   : > { %v8637_v0 = vmax.f32 %v8617_v28, 0.0 }
 0x6ba   : > { %v8554_v38 = vpop.f32.mrf.mxu2 }
 0x6bb   : > { %v8594_v56 = vadd.f32 %v8554_v38, %v8439_v36 }
 0x6bd   : > { %v8618_v50 = vadd.f32 %v22026_v3, %v8594_v56  ;;  %v12846_v56 = vld [vmem:[%s22816_s5 + $0x30] sm:$0xff] }
 0x6bf   : > { %v8638_v41 = vmax.f32 %v8618_v50, 0.0  ;;  %v12861_v50 = vld [vmem:[%s22816_s5 + $0xa8] sm:$0xff] }
 0x6c2   : > { %v8557_v54 = vpop.f32.mrf.mxu2 }
 0x6c3   : > { %v8595_v58 = vadd.f32 %v8557_v54, %v21989_v63  ;;  %v12848_v54 = vld [vmem:[%s22816_s5 + $0x40] sm:$0xff] }
 0x6c5   : > { %v8619_v29 = vadd.f32 %v22026_v3, %v8595_v58  ;;  %v12871_v58 = vld [vmem:[%s22816_s5 + $0xf8] sm:$0xff] }
 0x6c7   : > { %v8639_v35 = vmax.f32 %v8619_v29, 0.0 }
 0x6c9   : > { %v8749_v43 = vmax.f32 %v8637_v0, %v8639_v35  ;;  %v12847_v0 = vld [vmem:[%s22816_s5 + $0x38] sm:$0xff]  ;;  %v12862_v35 = vld [vmem:[%s22816_s5 + $0xb0] sm:$0xff] }
 0x6ca   : > { %v8559_v59 = vpop.f32.mrf.mxu2 }
 0x6cb   : > { %v8596_v39 = vadd.f32 %v8559_v59, %v8441_v47  ;;  %v12869_v47 = vld [vmem:[%s22816_s5 + $0xe8] sm:$0xff] }
 0x6cc   : > { %v12845_v59 = vld [vmem:[%s22816_s5 + $0x28] sm:$0xff] }
 0x6cd   : > { %v8620_v51 = vadd.f32 %v22026_v3, %v8596_v39  ;;  %v12844_v39 = vld [vmem:[%s22816_s5 + $0x20] sm:$0xff] }
 0x6cf   : > { %v8640_v63 = vmax.f32 %v8620_v51, 0.0  ;;  %v12860_v51 = vld [vmem:[%s22816_s5 + $0xa0] sm:$0xff] }
 0x6d1   : > { %v8750_v18 = vmax.f32 %v8638_v41, %v8640_v63  ;;  %v12867_v41 = vld [vmem:[%s22816_s5 + $0xd8] sm:$0xff] }
 0x6d2   : > { %v8562_v60 = vpop.f32.mrf.mxu2  ;;  %v12843_v63 = vld [vmem:[%s22816_s5 + $0x18] sm:$0xff] }
 0x6d3   : > { %8765 = vmatpush.msrb.mxu1 %v8750_v18  ;;  %8785 = vmatpush.msra.mxu3 %v8750_v18  ;;  %v8597_v6 = vadd.f32 %v8562_v60, %v21998_v33  ;;  %v12859_v18 = vld [vmem:[%s22816_s5 + $0x98] sm:$0xff] }
 0x6d5   : > { %8766 = vmatpush.msrb.mxu1 %v8749_v43  ;;  %8786 = vmatpush.msra.mxu3 %v8749_v43  ;;  %v8621_v31 = vadd.f32 %v22026_v3, %v8597_v6  ;;  %v12866_v6 = vld [vmem:[%s22816_s5 + $0xd0] sm:$0xff] }
 0x6d6   : > { %11544 = vmatmul.msk.f32.vlgmr.msrb.gmra.mxu1 %vm8658_vm12, %v22049_v5  ;;  %11545 = vmatmul.msk.f32.vlgmr.msra.gmra.mxu3 %vm8658_vm12, %v22057_v14 }
 0x6d7   : > { %v8641_v45 = vmax.f32 %v8621_v31, 0.0  ;;  %v12842_v31 = vld [vmem:[%s22816_s5 + $0x10] sm:$0xff] }
 0x6da   : > { %v8564_v40 = vpop.f32.mrf.mxu2 }
 0x6db   : > { %v8598_v4 = vadd.f32 %v8564_v40, %v8443_v7 }
 0x6dd   : > { %v8622_v33 = vadd.f32 %v22026_v3, %v8598_v4  ;;  %v12857_v4 = vld [vmem:[%s22816_s5 + $0x88] sm:$0xff] }
 0x6df   : > { %v8642_v25 = vmax.f32 %v8622_v33, 0.0  ;;  %v12879_v33 = vld [vmem:[%s22816_s5 + $0x138] sm:$0xff] }
 0x6e2   : > { %v8567_v32 = vpop.f32.mrf.mxu2 }
 0x6e3   : > { %v8599_v44 = vadd.f32 %v8567_v32, %v22007_v30 }
 0x6e5   : > { %v8623_v19 = vadd.f32 %v22026_v3, %v8599_v44  ;;  %v12858_v44 = vld [vmem:[%s22816_s5 + $0x90] sm:$0xff] }
 0x6e7   : > { %v8643_v55 = vmax.f32 %v8623_v19, 0.0  ;;  %v12865_v19 = vld [vmem:[%s22816_s5 + $0xc8] sm:$0xff] }
 0x6e9   : > { %v8792_v16 = vmax.f32 %v8641_v45, %v8643_v55  ;;  %v12841_v45 = vld [vmem:[%s22816_s5 + $0x8] sm:$0xff]  ;;  %v12864_v55 = vld [vmem:[%s22816_s5 + $0xc0] sm:$0xff] }
 0x6ea   : > { %v8569_v2 = vpop.f32.mrf.mxu2 }
 0x6eb   : > { %v8600_v27 = vadd.f32 %v8569_v2, %v8445_v9  ;;  %v12895_v9 = vld [vmem:[%s22816_s5 + $0x1b8] sm:$0xff]  ;;  %v12856_v2 = vld [vmem:[%s22816_s5 + $0x80] sm:$0xff] }
 0x6ed   : > { %v8624_v15 = vadd.f32 %v22026_v3, %v8600_v27  ;;  %v12887_v27 = vld [vmem:[%s22816_s5 + $0x178] sm:$0xff] }
 0x6ef   : > { %v8644_v30 = vmax.f32 %v8624_v15, 0.0  ;;  %v12894_v15 = vld [vmem:[%s22816_s5 + $0x1b0] sm:$0xff] }
 0x6f1   : > { %v8793_v53 = vmax.f32 %v8642_v25, %v8644_v30  ;;  %v12878_v30 = vld [vmem:[%s22816_s5 + $0x130] sm:$0xff] }
 0x6f2   : > { %v8572_v1 = vpop.f32.mrf.mxu2 }
 0x6f3   : > { %8808 = vmatpush.msra.mxu0 %v8793_v53  ;;  %8828 = vmatpush.msra.mxu1 %v8793_v53  ;;  %v8601_v8 = vadd.f32 %v8572_v1, %v22015_v10  ;;  %v12886_v53 = vld [vmem:[%s22816_s5 + $0x170] sm:$0xff]  ;;  %v12893_v1 = vld [vmem:[%s22816_s5 + $0x1a8] sm:$0xff] }
 0x6f5   : > { %8809 = vmatpush.msra.mxu0 %v8792_v16  ;;  %8829 = vmatpush.msra.mxu1 %v8792_v16  ;;  %v8625_v52 = vadd.f32 %v22026_v3, %v8601_v8  ;;  %v12840_v16 = vld [vmem:[%s22816_s5] sm:$0xff] }
 0x6f6   : > { %11546 = vmatmul.msk.f32.vlgmr.msra.gmra.mxu0 %vm8658_vm12, %v22049_v5  ;;  %11547 = vmatmul.msk.f32.vlgmr.msra.gmra.mxu1 %vm8658_vm12, %v22057_v14  ;;  %v12876_v8 = vld [vmem:[%s22816_s5 + $0x120] sm:$0xff] }
 0x6f7   : > { %8964 = vmatpush.bf16.msrb.mxu1 %v12855_v37  ;;  %v8645_v22 = vmax.f32 %v8625_v52, 0.0  ;;  %v12875_v52 = vld [vmem:[%s22816_s5 + $0x118] sm:$0xff] }
 0x6fa   : > { %v8574_v61 = vpop.f32.mrf.mxu2 }
 0x6fb   : > { %8965 = vmatpush.bf16.msrb.mxu1 %v12854_v17  ;;  %v8602_v10 = vadd.f32 %v8574_v61, %v22018_v12  ;;  %v12877_v17 = vld [vmem:[%s22816_s5 + $0x128] sm:$0xff] }
 0x6fc   : > { %v12885_v61 = vld [vmem:[%s22816_s5 + $0x168] sm:$0xff] }
 0x6ff   : > { %8966 = vmatpush.bf16.msrb.mxu1 %v12853_v62  ;;  %v12943_v62 = vld [vmem:[%s22816_s5 + $0x338] sm:$0xff] }
 0x700   : > { %9920 = vmatpush.bf16.msrb.mxu2 %v12943_v62  ;;  %v12925_v62 = vld [vmem:[%s22816_s5 + $0x2a8] sm:$0xff] }
 0x702   : > { %v8577_v26 = vpop.f32.mrf.mxu2 }
 0x703   : > { %8967 = vmatpush.bf16.msrb.mxu1 %v12852_v34  ;;  %v8603_v42 = vadd.f32 %v8577_v26, %v22020_v46  ;;  %v8626_v46 = vadd.f32 %v22026_v3, %v8602_v10  ;;  %v12892_v34 = vld [vmem:[%s22816_s5 + $0x1a0] sm:$0xff]  ;;  %v12889_v10 = vld [vmem:[%s22816_s5 + $0x188] sm:$0xff] }
 0x704   : > { %v12884_v26 = vld [vmem:[%s22816_s5 + $0x160] sm:$0xff] }
 0x705   : > { %v8627_v48 = vadd.f32 %v22026_v3, %v8603_v42  ;;  %v8646_v12 = vmax.f32 %v8626_v46, 0.0  ;;  %v12883_v42 = vld [vmem:[%s22816_s5 + $0x158] sm:$0xff]  ;;  %v12872_v46 = vld [vmem:[%s22816_s5 + $0x100] sm:$0xff] }
 0x707   : > { %8968 = vmatpush.bf16.msrb.mxu1 %v12851_v24  ;;  %v8647_v49 = vmax.f32 %v8627_v48, 0.0  ;;  %v12891_v24 = vld [vmem:[%s22816_s5 + $0x198] sm:$0xff]  ;;  %v12890_v48 = vld [vmem:[%s22816_s5 + $0x190] sm:$0xff] }
 0x709   : > { %v8835_v23 = vmax.f32 %v8645_v22, %v8647_v49  ;;  %v12882_v22 = vld [vmem:[%s22816_s5 + $0x150] sm:$0xff]  ;;  %v12873_v49 = vld [vmem:[%s22816_s5 + $0x108] sm:$0xff] }
 0x70a   : > { %v8579_v20 = vpop.f32.mrf.mxu2 }
 0x70b   : > { %8969 = vmatpush.bf16.msrb.mxu1 %v12850_v13  ;;  %v8604_v38 = vadd.f32 %v8579_v20, %v22029_v11  ;;  %v12870_v11 = vld [vmem:[%s22816_s5 + $0xf0] sm:$0xff]  ;;  %v12888_v20 = vld [vmem:[%s22816_s5 + $0x180] sm:$0xff] }
 0x70c   : > { %v12874_v13 = vld [vmem:[%s22816_s5 + $0x110] sm:$0xff] }
 0x70d   : > { %v8628_v21 = vadd.f32 %v22026_v3, %v8604_v38  ;;  %v12863_v3 = vld [vmem:[%s22816_s5 + $0xb8] sm:$0xff]  ;;  %v12880_v38 = vld [vmem:[%s22816_s5 + $0x140] sm:$0xff] }
 0x70f   : > { %8970 = vmatpush.bf16.msrb.mxu1 %v12849_v57  ;;  %v8648_v28 = vmax.f32 %v8628_v21, 0.0  ;;  %v12919_v57 = vld [vmem:[%s22816_s5 + $0x278] sm:$0xff] }
 0x710   : > { %v12903_v21 = vld [vmem:[%s22816_s5 + $0x1f8] sm:$0xff] }
 0x711   : > { %v8836_v36 = vmax.f32 %v8646_v12, %v8648_v28  ;;  %v12942_v12 = vld [vmem:[%s22816_s5 + $0x330] sm:$0xff] }
 0x712   : > { %v8582_v29 = vpop.f32.mrf.mxu2  ;;  %9921 = vmatpush.bf16.msrb.mxu2 %v12942_v12  ;;  %v12971_v12 = vld [vmem:[%s22816_s5 + $0x418] sm:$0xff] }
 0x713   : > { %8971 = vmatpush.bf16.msrb.mxu1 %v12848_v54  ;;  %8851 = vmatpush.msrb.mxu3 %v8836_v36  ;;  %v12911_v54 = vld [vmem:[%s22816_s5 + $0x238] sm:$0xff] }
 0x714   : > { %8871 = vmatpush.msrb.mxu0 %v8836_v36  ;;  %v12918_v36 = vld [vmem:[%s22816_s5 + $0x270] sm:$0xff] }
 0x715   : > { %8852 = vmatpush.msrb.mxu3 %v8835_v23 }
 0x716   : > { %8872 = vmatpush.msrb.mxu0 %v8835_v23  ;;  %11548 = vmatmul.msk.f32.vlgmr.msrb.gmra.mxu3 %vm8658_vm12, %v22049_v5  ;;  %v12881_v23 = vld [vmem:[%s22816_s5 + $0x148] sm:$0xff] }
 0x717   : > { %9187 = vmatpush.bf16.msra.mxu1 %v12871_v58  ;;  %9025 = vmatpush.bf16.msra.mxu3 %v12847_v0 }
 0x718   : > { %9106 = vmatpush.bf16.msra.mxu0 %v12863_v3  ;;  %v12902_v3 = vld [vmem:[%s22816_s5 + $0x1f0] sm:$0xff] }
 0x719   : > { %11549 = vmatmul.msk.f32.vlgmr.msrb.gmra.mxu0 %vm8658_vm12, %v22057_v14  ;;  %v8679_v5 = vpop.f32.mrf.mxu3  ;;  %v12868_v14 = vld [vmem:[%s22816_s5 + $0xe0] sm:$0xff] }
 0x71a   : > { %v8583_v43 = vpop.f32.mrf.mxu2 }
 0x71b   : > { %9188 = vmatpush.bf16.msra.mxu1 %v12870_v11  ;;  %9026 = vmatpush.bf16.msra.mxu3 %v12846_v56  ;;  %v12910_v11 = vld [vmem:[%s22816_s5 + $0x230] sm:$0xff]  ;;  %v12901_v43 = vld [vmem:[%s22816_s5 + $0x1e8] sm:$0xff] }
 0x71c   : > { %9107 = vmatpush.bf16.msra.mxu0 %v12862_v35  ;;  %v12917_v35 = vld [vmem:[%s22816_s5 + $0x268] sm:$0xff] }
 0x71f   : > { %9189 = vmatpush.bf16.msra.mxu1 %v12869_v47  ;;  %9027 = vmatpush.bf16.msra.mxu3 %v12845_v59  ;;  %v12909_v59 = vld [vmem:[%s22816_s5 + $0x228] sm:$0xff] }
 0x720   : > { %9108 = vmatpush.bf16.msra.mxu0 %v12861_v50  ;;  %v12916_v50 = vld [vmem:[%s22816_s5 + $0x260] sm:$0xff] }
 0x721   : > { %v8702_v60 = vpop.f32.mrf.mxu3 }
 0x722   : > { %v8705_v40 = vmax.f32 %v8679_v5, %v8702_v60  ;;  %v12900_v5 = vld [vmem:[%s22816_s5 + $0x1e0] sm:$0xff]  ;;  %v12914_v60 = vld [vmem:[%s22816_s5 + $0x250] sm:$0xff] }
 0x723   : > { %9190 = vmatpush.bf16.msra.mxu1 %v12868_v14  ;;  %9028 = vmatpush.bf16.msra.mxu3 %v12844_v39  ;;  %v12908_v14 = vld [vmem:[%s22816_s5 + $0x220] sm:$0xff]  ;;  %v12941_v39 = vld [vmem:[%s22816_s5 + $0x328] sm:$0xff] }
 0x724   : > { %9109 = vmatpush.bf16.msra.mxu0 %v12860_v51  ;;  %v22187_v32 = vpack.c.bf16 %v8705_v40, %v8705_v40  ;;  %v12915_v51 = vld [vmem:[%s22816_s5 + $0x258] sm:$0xff]  ;;  %9922 = vmatpush.bf16.msrb.mxu2 %v12941_v39  ;;  %v12898_v40 = vld [vmem:[%s22816_s5 + $0x1d0] sm:$0xff] }
 0x725   : > { %v12982_v39 = vld [vmem:[%s22816_s5 + $0x470] sm:$0xff] }
 0x726   : > { %v8913_v7 = vshrl.u32 %v22187_v32, 16  ;;  %v9056_v25 = vrot.slane %v22187_v32, 1  ;;  %v9218_v0 = vrot.slane %v22187_v32, 2 }
 0x727   : > { %9191 = vmatpush.bf16.msra.mxu1 %v12867_v41  ;;  %9029 = vmatpush.bf16.msra.mxu3 %v12843_v63  ;;  %v12899_v41 = vld [vmem:[%s22816_s5 + $0x1d8] sm:$0xff] }
 0x728   : > { %9110 = vmatpush.bf16.msra.mxu0 %v12859_v18  ;;  %8972 = vmatmul.bf16.vlgmr.msrb.gmra.mxu1 %v8913_v7  ;;  %v9137_v37 = vrot.slane %v8913_v7, 1  ;;  %v12907_v63 = vld [vmem:[%s22816_s5 + $0x218] sm:$0xff]  ;;  %v12940_v18 = vld [vmem:[%s22816_s5 + $0x320] sm:$0xff]  ;;  %v12905_v7 = vld [vmem:[%s22816_s5 + $0x208] sm:$0xff] }
 0x729   : > { %9923 = vmatpush.bf16.msrb.mxu2 %v12940_v18  ;;  %v12968_v18 = vld [vmem:[%s22816_s5 + $0x400] sm:$0xff] }
 0x72b   : > { %9192 = vmatpush.bf16.msra.mxu1 %v12866_v6  ;;  %9030 = vmatpush.bf16.msra.mxu3 %v12842_v31  ;;  %v12906_v6 = vld [vmem:[%s22816_s5 + $0x210] sm:$0xff]  ;;  %v12913_v31 = vld [vmem:[%s22816_s5 + $0x248] sm:$0xff] }
 0x72c   : > { %9111 = vmatpush.bf16.msra.mxu0 %v12858_v44  ;;  %v12897_v44 = vld [vmem:[%s22816_s5 + $0x1c8] sm:$0xff] }
 0x72f   : > { %9193 = vmatpush.bf16.msra.mxu1 %v12865_v19  ;;  %9031 = vmatpush.bf16.msra.mxu3 %v12841_v45  ;;  %v12938_v19 = vld [vmem:[%s22816_s5 + $0x310] sm:$0xff]  ;;  %v12912_v45 = vld [vmem:[%s22816_s5 + $0x240] sm:$0xff] }
 0x730   : > { %9112 = vmatpush.bf16.msra.mxu0 %v12857_v4  ;;  %v12951_v4 = vld [vmem:[%s22816_s5 + $0x378] sm:$0xff] }
 0x733   : > { %9194 = vmatpush.bf16.msra.mxu1 %v12864_v55  ;;  %9032 = vmatpush.bf16.msra.mxu3 %v12840_v16  ;;  %v8745_v58 = vpop.f32.mrf.mxu0  ;;  %v12896_v55 = vld [vmem:[%s22816_s5 + $0x1c0] sm:$0xff]  ;;  %v12927_v16 = vld [vmem:[%s22816_s5 + $0x2b8] sm:$0xff] }
 0x734   : > { %9113 = vmatpush.bf16.msra.mxu0 %v12856_v2  ;;  %v12935_v2 = vld [vmem:[%s22816_s5 + $0x2f8] sm:$0xff] }
 0x736   : > { %9033 = vmatmul.bf16.vlgmr.msra.gmra.mxu3 %v22187_v32  ;;  %v12939_v32 = vld [vmem:[%s22816_s5 + $0x318] sm:$0xff] }
 0x737   : > { %9431 = vmatpush.bf16.msrb.mxu1 %v12895_v9  ;;  %9268 = vmatpush.bf16.msrb.mxu3 %v12879_v33  ;;  %v12904_v9 = vld [vmem:[%s22816_s5 + $0x200] sm:$0xff]  ;;  %v12937_v33 = vld [vmem:[%s22816_s5 + $0x308] sm:$0xff] }
 0x738   : > { %9348 = vmatpush.bf16.msrb.mxu0 %v12887_v27  ;;  %9195 = vmatmul.bf16.vlgmr.msra.gmra.mxu1 %v9137_v37  ;;  %v12934_v37 = vld [vmem:[%s22816_s5 + $0x2f0] sm:$0xff] }
 0x739   : > { %9114 = vmatmul.bf16.vlgmr.msra.gmra.mxu0 %v9056_v25  ;;  %v8725_v28 = vpop.f32.mrf.mxu3  ;;  %9924 = vmatpush.bf16.msrb.mxu2 %v12939_v32  ;;  %v12950_v25 = vld [vmem:[%s22816_s5 + $0x370] sm:$0xff]  ;;  %v12957_v32 = vld [vmem:[%s22816_s5 + $0x3a8] sm:$0xff] }
 0x73a   : > { %v8748_v29 = vmax.f32 %v8725_v28, %v8745_v58  ;;  %v12945_v28 = vld [vmem:[%s22816_s5 + $0x348] sm:$0xff] }
 0x73b   : > { %9432 = vmatpush.bf16.msrb.mxu1 %v12894_v15  ;;  %9269 = vmatpush.bf16.msrb.mxu3 %v12878_v30  ;;  %v12921_v58 = vld [vmem:[%s22816_s5 + $0x288] sm:$0xff] }
 0x73c   : > { %9349 = vmatpush.bf16.msrb.mxu0 %v12886_v53  ;;  %v22313_v56 = vpack.c.bf16 %v8748_v29, %v8748_v29  ;;  %v12936_v53 = vld [vmem:[%s22816_s5 + $0x300] sm:$0xff]  ;;  %v12970_v29 = vld [vmem:[%s22816_s5 + $0x410] sm:$0xff] }
 0x73d   : > { %9925 = vmatpush.bf16.msrb.mxu2 %v12938_v19  ;;  %v13006_v19 = vld [vmem:[%s22816_s5 + $0x530] sm:$0xff] }
 0x73e   : > { %v9380_v47 = vshrl.u32 %v22313_v56, 16  ;;  %v9625_v27 = vrot.slane %v22313_v56, 2  ;;  %v9463_v15 = vrot.slane %v22313_v56, 1 }
 0x73f   : > { %9433 = vmatpush.bf16.msrb.mxu1 %v12893_v1  ;;  %9270 = vmatpush.bf16.msrb.mxu3 %v12877_v17  ;;  %v12926_v1 = vld [vmem:[%s22816_s5 + $0x2b0] sm:$0xff]  ;;  %v12975_v17 = vld [vmem:[%s22816_s5 + $0x438] sm:$0xff] }
 0x740   : > { %9350 = vmatpush.bf16.msrb.mxu0 %v12885_v61  ;;  %v9544_v30 = vrot.slane %v9380_v47, 1  ;;  %v12949_v61 = vld [vmem:[%s22816_s5 + $0x368] sm:$0xff] }
 0x741   : > { %9926 = vmatpush.bf16.msrb.mxu2 %v12937_v33  ;;  %v12978_v33 = vld [vmem:[%s22816_s5 + $0x450] sm:$0xff] }
 0x743   : > { %9434 = vmatpush.bf16.msrb.mxu1 %v12892_v34  ;;  %9271 = vmatpush.bf16.msrb.mxu3 %v12876_v8  ;;  %v12933_v34 = vld [vmem:[%s22816_s5 + $0x2e8] sm:$0xff]  ;;  %v12974_v8 = vld [vmem:[%s22816_s5 + $0x430] sm:$0xff] }
 0x744   : > { %9351 = vmatpush.bf16.msrb.mxu0 %v12884_v26  ;;  %v12948_v26 = vld [vmem:[%s22816_s5 + $0x360] sm:$0xff] }
 0x745   : > { %9927 = vmatpush.bf16.msrb.mxu2 %v12936_v53  ;;  %v13003_v53 = vld [vmem:[%s22816_s5 + $0x518] sm:$0xff] }
 0x747   : > { %9435 = vmatpush.bf16.msrb.mxu1 %v12891_v24  ;;  %9272 = vmatpush.bf16.msrb.mxu3 %v12875_v52  ;;  %v12924_v24 = vld [vmem:[%s22816_s5 + $0x2a0] sm:$0xff] }
 0x748   : > { %9352 = vmatpush.bf16.msrb.mxu0 %v12883_v42  ;;  %v12932_v52 = vld [vmem:[%s22816_s5 + $0x2e0] sm:$0xff]  ;;  %v12973_v42 = vld [vmem:[%s22816_s5 + $0x428] sm:$0xff] }
 0x749   : > { %10245 = vmatpush.bf16.msra.mxu2 %v12975_v17  ;;  %v12976_v17 = vld [vmem:[%s22816_s5 + $0x440] sm:$0xff] }
 0x74b   : > { %9436 = vmatpush.bf16.msrb.mxu1 %v12890_v48  ;;  %9273 = vmatpush.bf16.msrb.mxu3 %v12874_v13 }
 0x74c   : > { %9353 = vmatpush.bf16.msrb.mxu0 %v12882_v22  ;;  %v12947_v22 = vld [vmem:[%s22816_s5 + $0x358] sm:$0xff] }
 0x74d   : > { %10246 = vmatpush.bf16.msra.mxu2 %v12974_v8  ;;  %v12960_v8 = vld [vmem:[%s22816_s5 + $0x3c0] sm:$0xff] }
 0x74f   : > { %9437 = vmatpush.bf16.msrb.mxu1 %v12889_v10  ;;  %9274 = vmatpush.bf16.msrb.mxu3 %v12873_v49  ;;  %v12923_v49 = vld [vmem:[%s22816_s5 + $0x298] sm:$0xff] }
 0x750   : > { %9354 = vmatpush.bf16.msrb.mxu0 %v12881_v23  ;;  %v12931_v23 = vld [vmem:[%s22816_s5 + $0x2d8] sm:$0xff] }
 0x751   : > { %10247 = vmatpush.bf16.msra.mxu2 %v12973_v42 }
 0x753   : > { %9438 = vmatpush.bf16.msrb.mxu1 %v12888_v20  ;;  %9275 = vmatpush.bf16.msrb.mxu3 %v12872_v46  ;;  %v8768_v48 = vpop.f32.mrf.mxu1  ;;  %v12946_v46 = vld [vmem:[%s22816_s5 + $0x350] sm:$0xff] }
 0x754   : > { %9355 = vmatpush.bf16.msrb.mxu0 %v12880_v38 }
 0x756   : > { %9276 = vmatmul.bf16.vlgmr.msrb.gmra.mxu3 %v9218_v0  ;;  %9439 = vmatmul.bf16.vlgmr.msrb.gmra.mxu1 %v9380_v47  ;;  %v12944_v0 = vld [vmem:[%s22816_s5 + $0x340] sm:$0xff]  ;;  %v12959_v47 = vld [vmem:[%s22816_s5 + $0x3b8] sm:$0xff] }
 0x757   : > { %9675 = vmatpush.bf16.msra.mxu1 %v12919_v57  ;;  %9513 = vmatpush.bf16.msra.mxu3 %v12903_v21  ;;  %v12972_v57 = vld [vmem:[%s22816_s5 + $0x420] sm:$0xff]  ;;  %v12922_v21 = vld [vmem:[%s22816_s5 + $0x290] sm:$0xff] }
 0x758   : > { %9594 = vmatpush.bf16.msra.mxu0 %v12911_v54  ;;  %v12930_v54 = vld [vmem:[%s22816_s5 + $0x2d0] sm:$0xff]  ;;  %10248 = vmatpush.bf16.msra.mxu2 %v12972_v57 }
 0x759   : > { %9356 = vmatmul.bf16.vlgmr.msrb.gmra.mxu0 %v22313_v56  ;;  %v8788_v13 = vpop.f32.mrf.mxu3  ;;  %v12920_v56 = vld [vmem:[%s22816_s5 + $0x280] sm:$0xff] }
 0x75a   : > { %v8791_v10 = vmax.f32 %v8768_v48, %v8788_v13 }
 0x75b   : > { %9676 = vmatpush.bf16.msra.mxu1 %v12918_v36  ;;  %9514 = vmatpush.bf16.msra.mxu3 %v12902_v3  ;;  %v12929_v36 = vld [vmem:[%s22816_s5 + $0x2c8] sm:$0xff] }
 0x75c   : > { %9595 = vmatpush.bf16.msra.mxu0 %v12910_v11  ;;  %v22445_v20 = vpack.c.bf16 %v8791_v10, %v8791_v10  ;;  %10249 = vmatpush.bf16.msra.mxu2 %v12971_v12  ;;  %v12983_v11 = vld [vmem:[%s22816_s5 + $0x478] sm:$0xff] }
 0x75e   : > { %v9870_v38 = vrot.slane %v22445_v20, 1  ;;  %v9787_v3 = vshrl.u32 %v22445_v20, 16  ;;  %v10032_v10 = vrot.slane %v22445_v20, 2 }
 0x75f   : > { %9677 = vmatpush.bf16.msra.mxu1 %v12917_v35  ;;  %9515 = vmatpush.bf16.msra.mxu3 %v12901_v43  ;;  %v12928_v35 = vld [vmem:[%s22816_s5 + $0x2c0] sm:$0xff]  ;;  %v12967_v43 = vld [vmem:[%s22816_s5 + $0x3f8] sm:$0xff] }
 0x760   : > { %9596 = vmatpush.bf16.msra.mxu0 %v12909_v59  ;;  %9928 = vmatmul.bf16.vlgmr.msrb.gmra.mxu2 %v9870_v38  ;;  %v9951_v59 = vrot.slane %v9787_v3, 1  ;;  %v13013_v38 = vld [vmem:[%s22816_s5 + $0x568] sm:$0xff] }
 0x761   : > { %10250 = vmatpush.bf16.msra.mxu2 %v12970_v29  ;;  %v12996_v29 = vld [vmem:[%s22816_s5 + $0x4e0] sm:$0xff] }
 0x763   : > { %9678 = vmatpush.bf16.msra.mxu1 %v12916_v50  ;;  %9516 = vmatpush.bf16.msra.mxu3 %v12900_v5  ;;  %v12969_v50 = vld [vmem:[%s22816_s5 + $0x408] sm:$0xff] }
 0x764   : > { %9597 = vmatpush.bf16.msra.mxu0 %v12908_v14 }
 0x765   : > { %10251 = vmatpush.bf16.msra.mxu2 %v12969_v50  ;;  %v13035_v50 = vld [vmem:[%s22816_s5 + $0x618] sm:$0xff] }
 0x767   : > { %9679 = vmatpush.bf16.msra.mxu1 %v12915_v51  ;;  %9517 = vmatpush.bf16.msra.mxu3 %v12899_v41  ;;  %v12958_v41 = vld [vmem:[%s22816_s5 + $0x3b0] sm:$0xff] }
 0x768   : > { %9598 = vmatpush.bf16.msra.mxu0 %v12907_v63  ;;  %v12966_v63 = vld [vmem:[%s22816_s5 + $0x3f0] sm:$0xff] }
 0x769   : > { %10252 = vmatpush.bf16.msra.mxu2 %v12968_v18  ;;  %v12992_v18 = vld [vmem:[%s22816_s5 + $0x4c0] sm:$0xff] }
 0x76b   : > { %9680 = vmatpush.bf16.msra.mxu1 %v12914_v60  ;;  %9518 = vmatpush.bf16.msra.mxu3 %v12898_v40  ;;  %v12981_v40 = vld [vmem:[%s22816_s5 + $0x468] sm:$0xff] }
 0x76c   : > { %9599 = vmatpush.bf16.msra.mxu0 %v12906_v6  ;;  %v13007_v6 = vld [vmem:[%s22816_s5 + $0x538] sm:$0xff] }
 0x76d   : > { %10569 = vmatpush.bf16.msrb.mxu2 %v13007_v6  ;;  %v13031_v6 = vld [vmem:[%s22816_s5 + $0x5f8] sm:$0xff] }
 0x76f   : > { %9681 = vmatpush.bf16.msra.mxu1 %v12913_v31  ;;  %9519 = vmatpush.bf16.msra.mxu3 %v12897_v44  ;;  %v12965_v31 = vld [vmem:[%s22816_s5 + $0x3e8] sm:$0xff] }
 0x770   : > { %9600 = vmatpush.bf16.msra.mxu0 %v12905_v7  ;;  %v12980_v7 = vld [vmem:[%s22816_s5 + $0x460] sm:$0xff] }
 0x771   : > { %10570 = vmatpush.bf16.msrb.mxu2 %v13006_v19 }
 0x773   : > { %9682 = vmatpush.bf16.msra.mxu1 %v12912_v45  ;;  %9520 = vmatpush.bf16.msra.mxu3 %v12896_v55  ;;  %v8811_v5 = vpop.f32.mrf.mxu0  ;;  %v8831_v14 = vpop.f32.mrf.mxu1  ;;  %v12956_v45 = vld [vmem:[%s22816_s5 + $0x3a0] sm:$0xff]  ;;  %v12979_v55 = vld [vmem:[%s22816_s5 + $0x458] sm:$0xff] }
 0x774   : > { %9601 = vmatpush.bf16.msra.mxu0 %v12904_v9  ;;  %v8834_v51 = vmax.f32 %v8811_v5, %v8831_v14  ;;  %v13005_v9 = vld [vmem:[%s22816_s5 + $0x528] sm:$0xff] }
 0x775   : > { %10571 = vmatpush.bf16.msrb.mxu2 %v13005_v9  ;;  %v13009_v5 = vld [vmem:[%s22816_s5 + $0x548] sm:$0xff]  ;;  %v13030_v9 = vld [vmem:[%s22816_s5 + $0x5f0] sm:$0xff] }
 0x776   : > { %9683 = vmatmul.bf16.vlgmr.msra.gmra.mxu1 %v9625_v27  ;;  %9521 = vmatmul.bf16.vlgmr.msra.gmra.mxu3 %v9463_v15  ;;  %v22509_v60 = vpack.c.bf16 %v8834_v51, %v8834_v51  ;;  %v13004_v27 = vld [vmem:[%s22816_s5 + $0x520] sm:$0xff]  ;;  %v12954_v15 = vld [vmem:[%s22816_s5 + $0x390] sm:$0xff]  ;;  %v12985_v14 = vld [vmem:[%s22816_s5 + $0x488] sm:$0xff] }
 0x777   : > { %10001 = vmatpush.bf16.msrb.mxu1 %v12951_v4  ;;  %9755 = vmatpush.bf16.msrb.mxu3 %v12927_v16  ;;  %v12964_v4 = vld [vmem:[%s22816_s5 + $0x3e0] sm:$0xff]  ;;  %v12955_v16 = vld [vmem:[%s22816_s5 + $0x398] sm:$0xff]  ;;  %v13034_v51 = vld [vmem:[%s22816_s5 + $0x610] sm:$0xff] }
 0x778   : > { %9838 = vmatpush.bf16.msrb.mxu0 %v12935_v2  ;;  %v10194_v44 = vshrl.u32 %v22509_v60, 16  ;;  %v12963_v2 = vld [vmem:[%s22816_s5 + $0x3d8] sm:$0xff]  ;;  %v10277_v13 = vrot.slane %v22509_v60, 1 }
 0x779   : > { %9602 = vmatmul.bf16.vlgmr.msra.gmra.mxu0 %v9544_v30  ;;  %v12977_v30 = vld [vmem:[%s22816_s5 + $0x448] sm:$0xff]  ;;  %10572 = vmatpush.bf16.msrb.mxu2 %v13004_v27 }
 0x77a   : > { %10253 = vmatmul.bf16.vlgmr.msra.gmra.mxu2 %v10194_v44  ;;  %v13029_v27 = vld [vmem:[%s22816_s5 + $0x5e8] sm:$0xff] }
 0x77b   : > { %10002 = vmatpush.bf16.msrb.mxu1 %v12950_v25  ;;  %9756 = vmatpush.bf16.msrb.mxu3 %v12926_v1  ;;  %v12962_v25 = vld [vmem:[%s22816_s5 + $0x3d0] sm:$0xff]  ;;  %v12953_v1 = vld [vmem:[%s22816_s5 + $0x388] sm:$0xff] }
 0x77c   : > { %9839 = vmatpush.bf16.msrb.mxu0 %v12934_v37  ;;  %v12961_v37 = vld [vmem:[%s22816_s5 + $0x3c8] sm:$0xff] }
 0x77d   : > { %10573 = vmatpush.bf16.msrb.mxu2 %v13003_v53  ;;  %v13020_v53 = vld [vmem:[%s22816_s5 + $0x5a0] sm:$0xff] }
 0x77f   : > { %10003 = vmatpush.bf16.msrb.mxu1 %v12949_v61  ;;  %9757 = vmatpush.bf16.msrb.mxu3 %v12925_v62  ;;  %v13002_v61 = vld [vmem:[%s22816_s5 + $0x510] sm:$0xff]  ;;  %v13015_v62 = vld [vmem:[%s22816_s5 + $0x578] sm:$0xff] }
 0x780   : > { %9840 = vmatpush.bf16.msrb.mxu0 %v12933_v34  ;;  %v12952_v34 = vld [vmem:[%s22816_s5 + $0x380] sm:$0xff] }
 0x781   : > { %10574 = vmatpush.bf16.msrb.mxu2 %v13002_v61  ;;  %v13027_v61 = vld [vmem:[%s22816_s5 + $0x5d8] sm:$0xff] }
 0x783   : > { %10004 = vmatpush.bf16.msrb.mxu1 %v12948_v26  ;;  %9758 = vmatpush.bf16.msrb.mxu3 %v12924_v24  ;;  %v12991_v26 = vld [vmem:[%s22816_s5 + $0x4b8] sm:$0xff] }
 0x784   : > { %9841 = vmatpush.bf16.msrb.mxu0 %v12932_v52  ;;  %v12999_v24 = vld [vmem:[%s22816_s5 + $0x4f8] sm:$0xff]  ;;  %v13001_v52 = vld [vmem:[%s22816_s5 + $0x508] sm:$0xff] }
 0x785   : > { %10575 = vmatpush.bf16.msrb.mxu2 %v13001_v52 }
 0x787   : > { %10005 = vmatpush.bf16.msrb.mxu1 %v12947_v22  ;;  %9759 = vmatpush.bf16.msrb.mxu3 %v12923_v49  ;;  %v13014_v22 = vld [vmem:[%s22816_s5 + $0x570] sm:$0xff] }
 0x788   : > { %9842 = vmatpush.bf16.msrb.mxu0 %v12931_v23  ;;  %v12990_v49 = vld [vmem:[%s22816_s5 + $0x4b0] sm:$0xff] }
 0x789   : > { %v12998_v23 = vld [vmem:[%s22816_s5 + $0x4f0] sm:$0xff] }
 0x78b   : > { %10006 = vmatpush.bf16.msrb.mxu1 %v12946_v46  ;;  %9760 = vmatpush.bf16.msrb.mxu3 %v12922_v21  ;;  %v13000_v46 = vld [vmem:[%s22816_s5 + $0x500] sm:$0xff]  ;;  %v12989_v21 = vld [vmem:[%s22816_s5 + $0x4a8] sm:$0xff] }
 0x78c   : > { %9843 = vmatpush.bf16.msrb.mxu0 %v12930_v54  ;;  %v12997_v54 = vld [vmem:[%s22816_s5 + $0x4e8] sm:$0xff]  ;;  %10576 = vmatpush.bf16.msrb.mxu2 %v13000_v46 }
 0x78f   : > { %10007 = vmatpush.bf16.msrb.mxu1 %v12945_v28  ;;  %9761 = vmatpush.bf16.msrb.mxu3 %v12921_v58  ;;  %v13038_v28 = vld [vmem:[%s22816_s5 + $0x630] sm:$0xff]  ;;  %v13012_v58 = vld [vmem:[%s22816_s5 + $0x560] sm:$0xff] }
 0x790   : > { %9844 = vmatpush.bf16.msrb.mxu0 %v12929_v36  ;;  %v12988_v36 = vld [vmem:[%s22816_s5 + $0x4a0] sm:$0xff] }
 0x793   : > { %10008 = vmatpush.bf16.msrb.mxu1 %v12944_v0  ;;  %9762 = vmatpush.bf16.msrb.mxu3 %v12920_v56  ;;  %v13037_v0 = vld [vmem:[%s22816_s5 + $0x628] sm:$0xff]  ;;  %v12995_v56 = vld [vmem:[%s22816_s5 + $0x4d8] sm:$0xff] }
 0x794   : > { %9845 = vmatpush.bf16.msrb.mxu0 %v12928_v35  ;;  %v13036_v35 = vld [vmem:[%s22816_s5 + $0x620] sm:$0xff] }
 0x796   : > { %10009 = vmatmul.bf16.vlgmr.msrb.gmra.mxu1 %v9951_v59  ;;  %9763 = vmatmul.bf16.vlgmr.msrb.gmra.mxu3 %v22445_v20  ;;  %v8874_v48 = vpop.f32.mrf.mxu0  ;;  %v13039_v20 = vld [vmem:[%s22816_s5 + $0x638] sm:$0xff]  ;;  %v12994_v59 = vld [vmem:[%s22816_s5 + $0x4d0] sm:$0xff] }
 0x797   : > { %10327 = vmatpush.bf16.msra.mxu1 %v12983_v11  ;;  %10082 = vmatpush.bf16.msra.mxu3 %v12959_v47  ;;  %v12987_v11 = vld [vmem:[%s22816_s5 + $0x498] sm:$0xff]  ;;  %v13010_v47 = vld [vmem:[%s22816_s5 + $0x550] sm:$0xff] }
 0x798   : > { %10162 = vmatpush.bf16.msra.mxu0 %v12967_v43  ;;  %10896 = vmatpush.bf16.msra.mxu2 %v13039_v20  ;;  %v12986_v43 = vld [vmem:[%s22816_s5 + $0x490] sm:$0xff] }
 0x799   : > { %9846 = vmatmul.bf16.vlgmr.msrb.gmra.mxu0 %v9787_v3  ;;  %v8854_v42 = vpop.f32.mrf.mxu3  ;;  %v13011_v3 = vld [vmem:[%s22816_s5 + $0x558] sm:$0xff] }
 0x79a   : > { %v8877_v57 = vmax.f32 %v8854_v42, %v8874_v48  ;;  %v13017_v48 = vld [vmem:[%s22816_s5 + $0x588] sm:$0xff] }
 0x79b   : > { %10328 = vmatpush.bf16.msra.mxu1 %v12982_v39  ;;  %10083 = vmatpush.bf16.msra.mxu3 %v12958_v41  ;;  %v12993_v39 = vld [vmem:[%s22816_s5 + $0x4c8] sm:$0xff]  ;;  %v13008_v41 = vld [vmem:[%s22816_s5 + $0x540] sm:$0xff] }
 0x79c   : > { %10163 = vmatpush.bf16.msra.mxu0 %v12966_v63  ;;  %v22626_v12 = vpack.c.bf16 %v8877_v57, %v8877_v57  ;;  %10897 = vmatpush.bf16.msra.mxu2 %v13038_v28  ;;  %v12984_v63 = vld [vmem:[%s22816_s5 + $0x480] sm:$0xff] }
 0x79e   : > { %10577 = vmatmul.bf16.vlgmr.msrb.gmra.mxu2 %v22626_v12  ;;  %v10684_v20 = vrot.slane %v22626_v12, 1 }
 0x79f   : > { %10329 = vmatpush.bf16.msra.mxu1 %v12981_v40  ;;  %10084 = vmatpush.bf16.msra.mxu3 %v12957_v32  ;;  %v13023_v40 = vld [vmem:[%s22816_s5 + $0x5b8] sm:$0xff]  ;;  %v13033_v32 = vld [vmem:[%s22816_s5 + $0x608] sm:$0xff] }
 0x7a0   : > { %10164 = vmatpush.bf16.msra.mxu0 %v12965_v31  ;;  %10898 = vmatpush.bf16.msra.mxu2 %v13037_v0  ;;  %v10601_v31 = vshrl.u32 %v22626_v12, 16 }
 0x7a3   : > { %10330 = vmatpush.bf16.msra.mxu1 %v12980_v7  ;;  %10085 = vmatpush.bf16.msra.mxu3 %v12956_v45  ;;  %v10358_v45 = vrot.slane %v10194_v44, 1  ;;  %v13032_v44 = vld [vmem:[%s22816_s5 + $0x600] sm:$0xff] }
 0x7a4   : > { %10165 = vmatpush.bf16.msra.mxu0 %v12964_v4  ;;  %10899 = vmatpush.bf16.msra.mxu2 %v13036_v35  ;;  %v10439_v4 = vrot.slane %v22509_v60, 2 }
 0x7a5   : > { %v8973_v7 = vpop.f32.mrf.mxu1 }
 0x7a7   : > { %10331 = vmatpush.bf16.msra.mxu1 %v12979_v55  ;;  %10086 = vmatpush.bf16.msra.mxu3 %v12955_v16  ;;  %v13022_v55 = vld [vmem:[%s22816_s5 + $0x5b0] sm:$0xff] }
 0x7a8   : > { %10166 = vmatpush.bf16.msra.mxu0 %v12963_v2  ;;  %10900 = vmatpush.bf16.msra.mxu2 %v13035_v50 }
 0x7ab   : > { %10332 = vmatpush.bf16.msra.mxu1 %v12978_v33  ;;  %10087 = vmatpush.bf16.msra.mxu3 %v12954_v15  ;;  %v13021_v33 = vld [vmem:[%s22816_s5 + $0x5a8] sm:$0xff]  ;;  %v10846_v15 = vrot.slane %v22626_v12, 2 }
 0x7ac   : > { %10167 = vmatpush.bf16.msra.mxu0 %v12962_v25  ;;  %10901 = vmatpush.bf16.msra.mxu2 %v13034_v51 }
 0x7ad   : > { %v8975_v25 = vpop.f32.mrf.mxu1 }
 0x7af   : > { %10333 = vmatpush.bf16.msra.mxu1 %v12977_v30  ;;  %10088 = vmatpush.bf16.msra.mxu3 %v12953_v1  ;;  %v13028_v1 = vld [vmem:[%s22816_s5 + $0x5e0] sm:$0xff] }
 0x7b0   : > { %10168 = vmatpush.bf16.msra.mxu0 %v12961_v37  ;;  %10902 = vmatpush.bf16.msra.mxu2 %v13033_v32 }
 0x7b3   : > { %10334 = vmatpush.bf16.msra.mxu1 %v12976_v17  ;;  %10089 = vmatpush.bf16.msra.mxu3 %v12952_v34  ;;  %v13019_v17 = vld [vmem:[%s22816_s5 + $0x598] sm:$0xff]  ;;  %v13018_v34 = vld [vmem:[%s22816_s5 + $0x590] sm:$0xff] }
 0x7b4   : > { %10169 = vmatpush.bf16.msra.mxu0 %v12960_v8  ;;  %10903 = vmatpush.bf16.msra.mxu2 %v13032_v44  ;;  %v13026_v8 = vld [vmem:[%s22816_s5 + $0x5d0] sm:$0xff] }
 0x7b5   : > { %v13046_v44 = vld [vmem:[%s22818_s7 + $0x30] sm:$0xff] }
 0x7b6   : > { %10335 = vmatmul.bf16.vlgmr.msra.gmra.mxu1 %v10277_v13  ;;  %10090 = vmatmul.bf16.vlgmr.msra.gmra.mxu3 %v10032_v10  ;;  %v9115_v2 = vpop.f32.mrf.mxu0  ;;  %v13025_v13 = vld [vmem:[%s22816_s5 + $0x5c8] sm:$0xff] }
 0x7b7   : > { %10652 = vmatpush.bf16.msrb.mxu1 %v13015_v62  ;;  %10408 = vmatpush.bf16.msrb.mxu3 %v12991_v26  ;;  %v9196_v62 = vpop.f32.mrf.mxu1 }
 0x7b8   : > { %10489 = vmatpush.bf16.msrb.mxu0 %v12999_v24  ;;  %10904 = vmatmul.bf16.vlgmr.msra.gmra.mxu2 %v10846_v15  ;;  %v13044_v15 = vld [vmem:[%s22818_s7 + $0x20] sm:$0xff] }
 0x7b9   : > { %10170 = vmatmul.bf16.vlgmr.msra.gmra.mxu0 %v22509_v60  ;;  %v9034_v19 = vpop.f32.mrf.mxu3 }
 0x7ba   : > { %v9035_v16 = vadd.f32 %v9034_v19, %v8973_v7 }
 0x7bb   : > { %10653 = vmatpush.bf16.msrb.mxu1 %v13014_v22  ;;  %10409 = vmatpush.bf16.msrb.mxu3 %v12990_v49  ;;  %v13016_v49 = vld [vmem:[%s22816_s5 + $0x580] sm:$0xff] }
 0x7bc   : > { %10490 = vmatpush.bf16.msrb.mxu0 %v12998_v23  ;;  %v9119_v60 = vadd.f32 %v9115_v2, %v9035_v16  ;;  %v13024_v23 = vld [vmem:[%s22816_s5 + $0x5c0] sm:$0xff]  ;;  %v13047_v16 = vld [vmem:[%s22818_s7 + $0x38] sm:$0xff] }
 0x7be   : > { %v9117_v37 = vpop.f32.mrf.mxu0  ;;  %v9200_v26 = vadd.f32 %v9196_v62, %v9119_v60 }
 0x7bf   : > { %10654 = vmatpush.bf16.msrb.mxu1 %v13013_v38  ;;  %10410 = vmatpush.bf16.msrb.mxu3 %v12989_v21  ;;  %v9198_v10 = vpop.f32.mrf.mxu1  ;;  %v10765_v38 = vrot.slane %v10601_v31, 1 }
 0x7c0   : > { %10491 = vmatpush.bf16.msrb.mxu0 %v12997_v54 }
 0x7c1   : > { %v9036_v30 = vpop.f32.mrf.mxu3 }
 0x7c2   : > { %v13043_v30 = vld [vmem:[%s22818_s7 + $0x18] sm:$0xff] }
 0x7c3   : > { %10655 = vmatpush.bf16.msrb.mxu1 %v13012_v58  ;;  %10411 = vmatpush.bf16.msrb.mxu3 %v12988_v36 }
 0x7c4   : > { %10492 = vmatpush.bf16.msrb.mxu0 %v12996_v29 }
 0x7c7   : > { %10656 = vmatpush.bf16.msrb.mxu1 %v13011_v3  ;;  %10412 = vmatpush.bf16.msrb.mxu3 %v12987_v11 }
 0x7c8   : > { %10493 = vmatpush.bf16.msrb.mxu0 %v12995_v56 }
 0x7cb   : > { %10657 = vmatpush.bf16.msrb.mxu1 %v13010_v47  ;;  %10413 = vmatpush.bf16.msrb.mxu3 %v12986_v43 }
 0x7cc   : > { %10494 = vmatpush.bf16.msrb.mxu0 %v12994_v59 }
 0x7cf   : > { %10658 = vmatpush.bf16.msrb.mxu1 %v13009_v5  ;;  %10414 = vmatpush.bf16.msrb.mxu3 %v12985_v14 }
 0x7d0   : > { %10495 = vmatpush.bf16.msrb.mxu0 %v12993_v39 }
 0x7d3   : > { %10659 = vmatpush.bf16.msrb.mxu1 %v13008_v41  ;;  %10415 = vmatpush.bf16.msrb.mxu3 %v12984_v63  ;;  %v9440_v21 = vpop.f32.mrf.mxu1 }
 0x7d4   : > { %10496 = vmatpush.bf16.msrb.mxu0 %v12992_v18 }
 0x7d6   : > { %10660 = vmatmul.bf16.vlgmr.msrb.gmra.mxu1 %v10601_v31  ;;  %10416 = vmatmul.bf16.vlgmr.msrb.gmra.mxu3 %v10358_v45  ;;  %v9357_v24 = vpop.f32.mrf.mxu0 }
 0x7d7   : > { %10734 = vmatpush.bf16.msra.mxu3 %v13023_v40  ;;  %10497 = vmatmul.bf16.vlgmr.msrb.gmra.mxu0 %v10439_v4 }
 0x7d8   : > { %10815 = vmatpush.bf16.msra.mxu0 %v13031_v6  ;;  %10979 = vmatpush.bf16.msra.mxu1 %v13047_v16 }
 0x7d9   : > { %v9277_v52 = vpop.f32.mrf.mxu3 }
 0x7da   : > { %v9281_v42 = vadd.f32 %v9277_v52, %v9200_v26  ;;  %v13041_v26 = vld [vmem:[%s22818_s7 + $0x8] sm:$0xff] }
 0x7db   : > { %10735 = vmatpush.bf16.msra.mxu3 %v13022_v55  ;;  %v9442_v28 = vpop.f32.mrf.mxu1 }
 0x7dc   : > { %10816 = vmatpush.bf16.msra.mxu0 %v13030_v9  ;;  %v9361_v22 = vadd.f32 %v9357_v24, %v9281_v42  ;;  %10980 = vmatpush.bf16.msra.mxu1 %v13046_v44  ;;  %v13040_v24 = vld [vmem:[%s22818_s7] sm:$0xff] }
 0x7de   : > { %v9359_v57 = vpop.f32.mrf.mxu0  ;;  %v9444_v54 = vadd.f32 %v9440_v21, %v9361_v22 }
 0x7df   : > { %10736 = vmatpush.bf16.msra.mxu3 %v13021_v33 }
 0x7e0   : > { %10817 = vmatpush.bf16.msra.mxu0 %v13029_v27  ;;  %v13045_v27 = vld [vmem:[%s22818_s7 + $0x28] sm:$0xff] }
 0x7e1   : > { %v9279_v46 = vpop.f32.mrf.mxu3  ;;  %10981 = vmatpush.bf16.msra.mxu1 %v13045_v27 }
 0x7e3   : > { %10737 = vmatpush.bf16.msra.mxu3 %v13020_v53  ;;  %v9929_v43 = vpop.f32.mrf.mxu2 }
 0x7e4   : > { %10818 = vmatpush.bf16.msra.mxu0 %v13028_v1 }
 0x7e5   : > { %10982 = vmatpush.bf16.msra.mxu1 %v13044_v15 }
 0x7e7   : > { %10738 = vmatpush.bf16.msra.mxu3 %v13019_v17  ;;  %v13042_v17 = vld [vmem:[%s22818_s7 + $0x10] sm:$0xff] }
 0x7e8   : > { %10819 = vmatpush.bf16.msra.mxu0 %v13027_v61 }
 0x7e9   : > { %10983 = vmatpush.bf16.msra.mxu1 %v13043_v30 }
 0x7eb   : > { %10739 = vmatpush.bf16.msra.mxu3 %v13018_v34  ;;  %v9931_v5 = vpop.f32.mrf.mxu2 }
 0x7ec   : > { %10820 = vmatpush.bf16.msra.mxu0 %v13026_v8 }
 0x7ed   : > { %10984 = vmatpush.bf16.msra.mxu1 %v13042_v17 }
 0x7ef   : > { %10740 = vmatpush.bf16.msra.mxu3 %v13017_v48 }
 0x7f0   : > { %10821 = vmatpush.bf16.msra.mxu0 %v13025_v13 }
 0x7f1   : > { %10985 = vmatpush.bf16.msra.mxu1 %v13041_v26 }
 0x7f3   : > { %10741 = vmatpush.bf16.msra.mxu3 %v13016_v49  ;;  %v9684_v0 = vpop.f32.mrf.mxu1 }
 0x7f4   : > { %10822 = vmatpush.bf16.msra.mxu0 %v13024_v23 }
 0x7f5   : > { %10986 = vmatpush.bf16.msra.mxu1 %v13040_v24 }
 0x7f6   : > { %10742 = vmatmul.bf16.vlgmr.msra.gmra.mxu3 %v10684_v20  ;;  %v9603_v58 = vpop.f32.mrf.mxu0 }
 0x7f7   : > { %10823 = vmatmul.bf16.vlgmr.msra.gmra.mxu0 %v10765_v38  ;;  %v10910_v38 = vld [vmem:[%s22817_s6] sm:$0x1] }
 0x7f9   : > { %v9522_v36 = vpop.f32.mrf.mxu3 }
 0x7fa   : > { %v9526_v29 = vadd.f32 %v9522_v36, %v9444_v54 }
 0x7fb   : > { %v9686_v47 = vpop.f32.mrf.mxu1 }
 0x7fc   : > { %v9607_v3 = vadd.f32 %v9603_v58, %v9526_v29  ;;  %v10930_v29 = vld [vmem:[%s22819_s8] sm:$0x1] }
 0x7fd   : > { %v10254_v40 = vpop.f32.mrf.mxu2 }
 0x7fe   : > { %v9605_v11 = vpop.f32.mrf.mxu0  ;;  %v9688_v56 = vadd.f32 %v9684_v0, %v9607_v3 }
 0x801   : > { %v9524_v35 = vpop.f32.mrf.mxu3 }
 0x805   : > { %v10256_v32 = vpop.f32.mrf.mxu2 }
 0x813   : > { %v10010_v59 = vpop.f32.mrf.mxu1 }
 0x816   : > { %v9847_v50 = vpop.f32.mrf.mxu0 }
 0x819   : > { %v9764_v12 = vpop.f32.mrf.mxu3 }
 0x81a   : > { %v9768_v14 = vadd.f32 %v9764_v12, %v9688_v56 }
 0x81b   : > { %v10012_v39 = vpop.f32.mrf.mxu1 }
 0x81c   : > { %v9851_v51 = vadd.f32 %v9847_v50, %v9768_v14 }
 0x81e   : > { %v9849_v41 = vpop.f32.mrf.mxu0  ;;  %v9933_v63 = vadd.f32 %v9929_v43, %v9851_v51 }
 0x820   : > { %v10014_v18 = vadd.f32 %v10010_v59, %v9933_v63 }
 0x821   : > { %v9766_v6 = vpop.f32.mrf.mxu3  ;;  %v10578_v60 = vpop.f32.mrf.mxu2 }
 0x829   : > { %v10580_v25 = vpop.f32.mrf.mxu2 }
 0x833   : > { %v10336_v31 = vpop.f32.mrf.mxu1 }
 0x836   : > { %v10171_v7 = vpop.f32.mrf.mxu0 }
 0x839   : > { %v10091_v19 = vpop.f32.mrf.mxu3 }
 0x83a   : > { %v10095_v45 = vadd.f32 %v10091_v19, %v10014_v18 }
 0x83b   : > { %v10338_v4 = vpop.f32.mrf.mxu1  ;;  %v10905_v34 = vpop.f32.mrf.mxu2 }
 0x83c   : > { %v10175_v9 = vadd.f32 %v10171_v7, %v10095_v45 }
 0x83e   : > { %v10173_v55 = vpop.f32.mrf.mxu0  ;;  %v10258_v2 = vadd.f32 %v10254_v40, %v10175_v9 }
 0x840   : > { %v10340_v52 = vadd.f32 %v10336_v31, %v10258_v2 }
 0x841   : > { %v10093_v33 = vpop.f32.mrf.mxu3 }
 0x843   : > { %v10907_v42 = vpop.f32.mrf.mxu2 }
 0x853   : > { %v10661_v53 = vpop.f32.mrf.mxu1 }
 0x854   : > { %v10498_v1 = vpop.f32.mrf.mxu0 }
 0x859   : > { %v10417_v37 = vpop.f32.mrf.mxu3 }
 0x85a   : > { %v10421_v48 = vadd.f32 %v10417_v37, %v10340_v52 }
 0x85b   : > { %v10663_v61 = vpop.f32.mrf.mxu1 }
 0x85c   : > { %v10500_v62 = vpop.f32.mrf.mxu0  ;;  %v10502_v13 = vadd.f32 %v10498_v1, %v10421_v48 }
 0x85e   : > { %v10582_v10 = vadd.f32 %v10578_v60, %v10502_v13 }
 0x860   : > { %v10665_v49 = vadd.f32 %v10661_v53, %v10582_v10 }
 0x861   : > { %v10419_v8 = vpop.f32.mrf.mxu3 }
 0x874   : > { %v10824_v22 = vpop.f32.mrf.mxu0 }
 0x879   : > { %v10743_v23 = vpop.f32.mrf.mxu3 }
 0x87a   : > { %v10747_v57 = vadd.f32 %v10743_v23, %v10665_v49 }
 0x87c   : > { %v10826_v46 = vpop.f32.mrf.mxu0  ;;  %v10828_v20 = vadd.f32 %v10824_v22, %v10747_v57 }
 0x87e   : > { %v10909_v21 = vadd.f32 %v10905_v34, %v10828_v20 }
 0x880   : > { %v10911_v54 = vadd.f32 %v10910_v38, %v10909_v21 }
 0x881   : > { %v10745_v28 = vpop.f32.mrf.mxu3 }
 0x882   : > { %v10912_v58 = vmax.f32 %v10911_v54, 0.0 }
 0x884   : > { %v10913_v36 = vpack.c.bf16 %v10912_v58, %v10912_v58 }
 0x886   : > { %10987 = vmatmul.bf16.vlgmr.msra.gmra.mxu1 %v10913_v36 }
 0x903   : > { %v10988_v0 = vpop.f32.mrf.mxu1 }
 0x904   : > { %v10989_v3 = vadd.f32 %v10988_v0, %v10930_v29 }
 0x906   : > { %10992 = vst [vmem:[%s324_s14] sm:$0x1] %v10989_v3 }
 0x907   : > { %13204 = shalt.err (!%p13201_p3)
}
 0x908   : > { %13053 = dma.vmem_to_hbm [thread:$0]  (%p13331_p5), %s11005_s16, 16, %s11007_s17, %s10994_s21  }
 0x90b   : > { %v10990_v11 = vpop.f32.mrf.mxu1 }
 0x90c PF: > { %p13059_p4 = scmp.ge.s32.totalorder %s13239_s12, 2  ;;  %s11018_s24 = sand.u32 1, %s13227_s30  }
 0x90d   : > { %s11019_s27 = scalar_lea.sflag [#allocation3], %s11018_s24 }
 0x90e   : > { %p13056_p7 = pnand %p13059_p4, %p13335_p6 }
 0x910   : > { %p13057_p8 = pneg %p13056_p7 }
 0x912   : > { %13222 = dma.done.wait (%p13057_p8), %s11019_s27, 16  }
 0x913   : > { %13224 = vsyncadd (%p13057_p8), %s11019_s27, 4294967280  ;;  %p19_p9 = scmp.ge.s32.totalorder %s13318_s15, 4   ;;  %s24584_s30 = smov %s13231_s10 }
 0x914   : > { %s24585_s10 = smov %s13235_s11  ;;  %s24586_s11 = smov %s13329_s18 }
 0x915   : > { %s24587_s12 = smov %s13318_s15  ;;  %21 = sbr.rel (!%p19_p9) target bundleno = 3 (0x3), region = 123 }
 0x91a   :  { %11024 = vsyncpa [#allocation3], 1 }
 0x91b   :  { %11026 = vsyncpa [#allocation3 + $0x1], 1 }

</bundles_post_ra>
